<compile_context>
chip_gen: v5e
topology: v5e:2x2
jax: 0.10.0
libtpu: 0.0.40
codegen_flags: <defaults>
</compile_context>

<pallas_src>
import jax
import jax.numpy as jnp
from jax.experimental import pallas as pl
from jax.experimental.pallas import tpu as pltpu

EPS = 1e-6

# order of the packed parameter arguments passed to the kernel
KPARAM_ORDER = [
    "ln_w", "ln_b", "scale",
    "pfa_w", "pfa_b", "pfx_w", "pfx_b",
    "pr_w", "pr_b",
    "d1w", "d1b", "xw", "xb",
    "d2w0", "d2b0", "d2w1", "d2b1", "d2w2", "d2b2",
    "pw", "pwb",
]

# original-module parameter names (used by init / reference)
PARAM_ORDER = [
    "ln_w", "ln_b", "scale",
    "pf_w", "pf_b", "pr_w", "pr_b",
    "l3d1w", "l3d1b", "l3d2w", "l3d2b", "l3pw", "l3pwb",
    "l5d1w", "l5d1b", "l5d2w", "l5d2b", "l5pw", "l5pwb",
    "l7d1w", "l7d1b", "l7d2w", "l7d2b", "l7pw", "l7pwb",
    "x3w", "x3b", "x5w", "x5b", "x7w", "x7b",
]


def _round_up(v, m):
    return ((v + m - 1) // m) * m


def make_mlka_kernel(C, H, W):
    assert C % 3 == 0, "n_feats must be divisible by 3 for MLKA"
    Cg = C // 3
    HW = H * W
    f32 = jnp.float32

    # conv geometries: fused conv1/X (7x7, dil 1) + the three dilated conv2s
    conv_cfgs = [(7, 1), (5, 2), (7, 3), (9, 4)]
    halo_max = max((k // 2) * d for k, d in conv_cfgs)
    # max |flattened tap shift| = halo*(W+1); round the padding up to a multiple of
    # 128 so the interior slab and the dx=dy=0 window start lane-aligned.
    SMAX = _round_up(halo_max * (W + 1), 128)
    for k, d in conv_cfgs:
        assert (k // 2) * d * (W + 1) <= SMAX
    NP = HW + 2 * SMAX

    branch2 = [(5, 2), (7, 3), (9, 4)]  # (K, dilation) of conv2 per branch

    def kernel(x_ref,
               ln_w, ln_b, scale,
               pfa_w, pfa_b, pfx_w, pfx_b,
               pr_w, pr_b,
               d1w, d1b, xw, xb,
               d2w0, d2b0, d2w1, d2b1, d2w2, d2b2,
               pw, pwb,
               out_ref,
               pbuf, x2buf, ggbuf, c2buf):
        # ---- zero the padded-row halos (2 small lane-aligned stores).
        # Done every step (not gated on program_id==0): with "parallel" batch
        # sharding each core's first step need not be step 0, and scratch is per-core.
        zhalo = jnp.zeros((C, SMAX), f32)
        pbuf[:, 0:SMAX] = zhalo
        pbuf[:, SMAX + HW:] = zhalo

        # ---- LayerNorm (channels_first) ----
        x = x_ref[0]                                          # (C, HW), lane-dense
        u = jnp.mean(x, axis=0, keepdims=True)                # (1, HW)
        var = jnp.mean((x - u) ** 2, axis=0, keepdims=True)
        y = ln_w[...] * ((x - u) * jax.lax.rsqrt(var + EPS)) + ln_b[...]

        # ---- proj_first (1x1 conv C -> 2C) as two (C,C) MXU matmuls ----
        a = jnp.dot(pfa_w[...], y, preferred_element_type=f32) + pfa_b[...]   # (C, HW)
        x2buf[...] = jnp.dot(pfx_w[...], y, preferred_element_type=f32) + pfx_b[...]
        pbuf[:, SMAX:SMAX + HW] = a          # write 'a' straight into the padded rows

        # column-within-row index for the horizontal-wrap masks
        lane = jax.lax.broadcasted_iota(jnp.int32, (1, HW), 1)
        if (W & (W - 1)) == 0:
            col = jnp.bitwise_and(lane, W - 1)
        else:
            col = lane % W

        mask_cache = {}

        def col_mask(dx, nrows):
            key = (dx, nrows)
            if key not in mask_cache:
                if dx > 0:
                    m = jnp.where(col < (W - dx), 1.0, 0.0)
                else:
                    m = jnp.where(col >= (-dx), 1.0, 0.0)
                mask_cache[key] = jnp.broadcast_to(m, (nrows, HW))
            return mask_cache[key]

        def dwconv(row0, nrows, wsets, K, dil):
            """Depthwise 'same' conv over pbuf rows [row0, row0+nrows).

            pbuf holds data at columns [SMAX, SMAX+HW) and zeros in the halos.
            wsets: list of (w_ref (nrows, K*K), b_ref (nrows, 1)) sharing tap geometry.
            The column mask is factored out of the inner dy loop: unmasked per-dx
            partials over dy, then one masked add per dx per weight set.
            """
            half = (K // 2) * dil
            accs = [None] * len(wsets)
            for kj in range(K):
                dx = kj * dil - half
                if dx <= -W or dx >= W:
                    continue                       # tap never overlaps image columns
                parts = [None] * len(wsets)
                for ki in range(K):
                    dy = ki * dil - half
                    if dy <= -H or dy >= H:
                        continue                   # tap never overlaps image rows
                    off = SMAX + dy * W + dx
                    win = pbuf[row0:row0 + nrows, off:off + HW]     # (nrows, HW)
                    idx = ki * K + kj
                    for s, (w_ref, _) in enumerate(wsets):
                        wc = w_ref[:, idx:idx + 1]                  # (nrows, 1)
                        t = wc * win
                        parts[s] = t if parts[s] is None else parts[s] + t
                if parts[0] is None:
                    continue
                cm = None if dx == 0 else col_mask(dx, nrows)
                for s in range(len(wsets)):
                    c = parts[s] if cm is None else cm * parts[s]
                    accs[s] = c if accs[s] is None else accs[s] + c
            outs = []
            for acc, (_, b_ref) in zip(accs, wsets):
                if acc is None:
                    acc = jnp.zeros((nrows, HW), f32)
                outs.append(acc + b_ref[...])
            return outs

        # ---- branch-fused first depthwise conv + X gate: one 7x7 tap loop over all
        #      C channels (small-K branch weights zero-embedded to 7x7 in the wrapper).
        c1_all, gg_all = dwconv(0, C, [(d1w, d1b), (xw, xb)], 7, 1)
        ggbuf[...] = gg_all

        # reuse pbuf's interior for the conv1 output (the 'a' data is dead now)
        pbuf[:, SMAX:SMAX + HW] = c1_all

        # ---- dilated second depthwise conv, per branch (geometry differs) ----
        d2sets = [(d2w0, d2b0), (d2w1, d2b1), (d2w2, d2b2)]
        for g in range(3):
            K2, dil2 = branch2[g]
            w_ref, b_ref = d2sets[g]
            (c2_g,) = dwconv(g * Cg, Cg, [(w_ref, b_ref)], K2, dil2)
            c2buf[g * Cg:(g + 1) * Cg, :] = c2_g

        # ---- block-diagonal pointwise conv (one (C,C)@(C,HW) MXU matmul), gate,
        #      multiply by x2, then a single proj_last matmul; scale + residual.
        bg = jnp.dot(pw[...], c2buf[...], preferred_element_type=f32) + pwb[...]
        prod = x2buf[...] * (bg * ggbuf[...])
        o = jnp.dot(pr_w[...], prod, preferred_element_type=f32) + pr_b[...]
        out_ref[0] = ((o * scale[...]) + x_ref[0]).astype(out_ref.dtype)

    return kernel, SMAX, NP


# ---------------- parameter packing (wrapper-side, outside the kernel) ----------------
def _embed_center(w, kb):
    """(Cg, 1, K, K) depthwise weight -> (Cg, kb*kb), zero-embedded at the center."""
    cg, _, k, _ = w.shape
    pad = (kb - k) // 2
    wp = jnp.pad(w[:, 0], ((0, 0), (pad, pad), (pad, pad)))
    return wp.reshape(cg, kb * kb)


def pack_params(params, C):
    Cg = C // 3
    f32 = jnp.float32
    g = lambda n: params[n].astype(f32)
    col = lambda n: g(n).reshape(-1, 1)

    pf_w, pf_b = g("pf_w"), g("pf_b")

    # fused conv1 + X-gate weights, zero-padded to the shared 7x7 / dil-1 geometry
    d1w = jnp.concatenate([_embed_center(g("l3d1w"), 7),
                           _embed_center(g("l5d1w"), 7),
                           g("l7d1w").reshape(Cg, 49)], axis=0)
    d1b = jnp.concatenate([col("l3d1b"), col("l5d1b"), col("l7d1b")], axis=0)
    xw = jnp.concatenate([_embed_center(g("x3w"), 7),
                          _embed_center(g("x5w"), 7),
                          g("x7w").reshape(Cg, 49)], axis=0)
    xb = jnp.concatenate([col("x3b"), col("x5b"), col("x7b")], axis=0)

    # block-diagonal pointwise conv of the three branches
    pw = jnp.zeros((C, C), f32)
    pw = pw.at[0:Cg, 0:Cg].set(g("l3pw"))
    pw = pw.at[Cg:2 * Cg, Cg:2 * Cg].set(g("l5pw"))
    pw = pw.at[2 * Cg:, 2 * Cg:].set(g("l7pw"))
    pwb = jnp.concatenate([col("l3pwb"), col("l5pwb"), col("l7pwb")], axis=0)

    return dict(
        ln_w=col("ln_w"), ln_b=col("ln_b"), scale=col("scale"),
        pfa_w=pf_w[:C], pfa_b=pf_b[:C].reshape(-1, 1),
        pfx_w=pf_w[C:], pfx_b=pf_b[C:].reshape(-1, 1),
        pr_w=g("pr_w"), pr_b=col("pr_b"),
        d1w=d1w, d1b=d1b, xw=xw, xb=xb,
        d2w0=g("l3d2w").reshape(Cg, 25), d2b0=col("l3d2b"),
        d2w1=g("l5d2w").reshape(Cg, 49), d2b1=col("l5d2b"),
        d2w2=g("l7d2w").reshape(Cg, 81), d2b2=col("l7d2b"),
        pw=pw, pwb=pwb,
    )


def mlka_forward(x, params):
    B, C, H, W = x.shape
    HW = H * W
    f32 = jnp.float32

    packed = pack_params(params, C)
    flat = [packed[name] for name in KPARAM_ORDER]

    kernel, SMAX, NP = make_mlka_kernel(C, H, W)

    in_specs = [pl.BlockSpec((1, C, HW), lambda b: (b, 0, 0))]
    in_specs += [pl.BlockSpec(p.shape, lambda b: (0, 0)) for p in flat]

    scratch = [
        pltpu.VMEM((C, NP), f32),   # pbuf: padded rows (conv1 input, then conv1 output)
        pltpu.VMEM((C, HW), f32),   # x2buf: x2 half of proj_first
        pltpu.VMEM((C, HW), f32),   # ggbuf: stacked X-gate outputs
        pltpu.VMEM((C, HW), f32),   # c2buf: stacked conv2 outputs
    ]

    # shape-aware VMEM budget: double-buffered in/out blocks + params + scratch,
    # with headroom, capped below the physical VMEM of the current generation.
    need = 2 * 2 * C * HW * 4                                  # in/out blocks (x2 buf)
    need += sum(2 * int(p.size) * 4 for p in flat)             # params (double-buffered)
    need += (C * NP + 3 * C * HW) * 4                          # scratch
    try:
        phys = int(getattr(pltpu.get_tpu_info(), "vmem_capacity_bytes"))
    except Exception:
        phys = 128 * 1024 * 1024
    cap = max(phys - 16 * 1024 * 1024, 32 * 1024 * 1024)
    vmem_limit = int(min(max(4 * need, 32 * 1024 * 1024), cap))

    out = pl.pallas_call(
        kernel,
        out_shape=jax.ShapeDtypeStruct((B, C, HW), f32),
        grid=(B,),
        in_specs=in_specs,
        out_specs=pl.BlockSpec((1, C, HW), lambda b: (b, 0, 0)),
        scratch_shapes=scratch,
        compiler_params=pltpu.CompilerParams(
            dimension_semantics=("parallel",),
            vmem_limit_bytes=vmem_limit,
        ),
    )(x.reshape(B, C, HW).astype(f32), *flat)
    return out.reshape(B, C, H, W)


# ---------------- deterministic parameter init ----------------
def init_params(key, C):
    Cg = C // 3
    shapes = {
        "ln_w": (C,), "ln_b": (C,), "scale": (C,),
        "pf_w": (2 * C, C), "pf_b": (2 * C,),
        "pr_w": (C, C), "pr_b": (C,),
        "l3d1w": (Cg, 1, 3, 3), "l3d1b": (Cg,), "l3d2w": (Cg, 1, 5, 5), "l3d2b": (Cg,),
        "l3pw": (Cg, Cg), "l3pwb": (Cg,),
        "l5d1w": (Cg, 1, 5, 5), "l5d1b": (Cg,), "l5d2w": (Cg, 1, 7, 7), "l5d2b": (Cg,),
        "l5pw": (Cg, Cg), "l5pwb": (Cg,),
        "l7d1w": (Cg, 1, 7, 7), "l7d1b": (Cg,), "l7d2w": (Cg, 1, 9, 9), "l7d2b": (Cg,),
        "l7pw": (Cg, Cg), "l7pwb": (Cg,),
        "x3w": (Cg, 1, 3, 3), "x3b": (Cg,),
        "x5w": (Cg, 1, 5, 5), "x5b": (Cg,),
        "x7w": (Cg, 1, 7, 7), "x7b": (Cg,),
    }
    params = {}
    keys = jax.random.split(key, len(shapes))
    for k, (name, shape) in zip(keys, shapes.items()):
        if name == "ln_w":
            params[name] = jnp.ones(shape, jnp.float32)
        elif name == "ln_b":
            params[name] = jnp.zeros(shape, jnp.float32)
        else:
            # NOTE: torch initializes `scale` to zeros (output == shortcut); here all
            # learnable tensors get small random values so the kernel math is exercised.
            params[name] = 0.1 * jax.random.normal(k, shape, jnp.float32)
    return params


# ---------------- pure-JAX reference for verification ----------------
def reference_forward(x, p):
    C = x.shape[1]
    Cg = C // 3
    hp = jax.lax.Precision.HIGHEST

    u = jnp.mean(x, axis=1, keepdims=True)
    s = jnp.mean((x - u) ** 2, axis=1, keepdims=True)
    xn = (x - u) / jnp.sqrt(s + EPS)
    y = p["ln_w"][None, :, None, None] * xn + p["ln_b"][None, :, None, None]

    def conv1x1(z, w, b):
        return jnp.einsum("bchw,oc->bohw", z, w, precision=hp) + b[None, :, None, None]

    def dw(z, w, b, dil):
        K = w.shape[-1]
        pad = (K // 2) * dil
        out = jax.lax.conv_general_dilated(
            z, w, window_strides=(1, 1), padding=[(pad, pad), (pad, pad)],
            rhs_dilation=(dil, dil), dimension_numbers=("NCHW", "OIHW", "NCHW"),
            feature_group_count=z.shape[1], precision=hp)
        return out + b[None, :, None, None]

    t = conv1x1(y, p["pf_w"], p["pf_b"])
    a, x2 = t[:, :C], t[:, C:]
    a1, a2, a3 = a[:, :Cg], a[:, Cg:2 * Cg], a[:, 2 * Cg:]

    def lka(z, d1w, d1b, d2w, d2b, dil2, pww, pwb):
        r = dw(z, d1w, d1b, 1)
        r = dw(r, d2w, d2b, dil2)
        return conv1x1(r, pww, pwb)

    a_out = jnp.concatenate([
        lka(a1, p["l3d1w"], p["l3d1b"], p["l3d2w"], p["l3d2b"], 2, p["l3pw"], p["l3pwb"]) * dw(a1, p["x3w"], p["x3b"], 1),
        lka(a2, p["l5d1w"], p["l5d1b"], p["l5d2w"], p["l5d2b"], 3, p["l5pw"], p["l5pwb"]) * dw(a2, p["x5w"], p["x5b"], 1),
        lka(a3, p["l7d1w"], p["l7d1b"], p["l7d2w"], p["l7d2b"], 4, p["l7pw"], p["l7pwb"]) * dw(a3, p["x7w"], p["x7b"], 1),
    ], axis=1)

    return conv1x1(x2 * a_out, p["pr_w"], p["pr_b"]) * p["scale"][None, :, None, None] + x


if __name__ == "__main__":
    B, C, H, W = 2, 6, 16, 16  # n_feats=6 (divisible by 3, groups of 2 channels)
    key = jax.random.PRNGKey(0)
    kx, kp = jax.random.split(key)
    x = jax.random.normal(kx, (B, C, H, W), jnp.float32)
    params = init_params(kp, C)

    out = mlka_forward(x, params)
    out = jax.block_until_ready(out)

    ref = reference_forward(x, params)
    assert out.shape == (B, C, H, W)
    if not bool(jnp.allclose(out, ref, atol=2e-3, rtol=2e-3)):
        raise AssertionError(
            f"kernel/reference mismatch, max abs err = {float(jnp.max(jnp.abs(out - ref)))}")
    print("KERNEL_OK")
</pallas_src>

<mosaic_0001>
module attributes {stable_mosaic.version = 11 : i64} {
  func.func @kernel(%arg0: i32, %arg1: memref<1x6x256xf32, #tpu.memory_space<vmem>>, %arg2: memref<6x1xf32, #tpu.memory_space<vmem>>, %arg3: memref<6x1xf32, #tpu.memory_space<vmem>>, %arg4: memref<6x1xf32, #tpu.memory_space<vmem>>, %arg5: memref<6x6xf32, #tpu.memory_space<vmem>>, %arg6: memref<6x1xf32, #tpu.memory_space<vmem>>, %arg7: memref<6x6xf32, #tpu.memory_space<vmem>>, %arg8: memref<6x1xf32, #tpu.memory_space<vmem>>, %arg9: memref<6x6xf32, #tpu.memory_space<vmem>>, %arg10: memref<6x1xf32, #tpu.memory_space<vmem>>, %arg11: memref<6x49xf32, #tpu.memory_space<vmem>>, %arg12: memref<6x1xf32, #tpu.memory_space<vmem>>, %arg13: memref<6x49xf32, #tpu.memory_space<vmem>>, %arg14: memref<6x1xf32, #tpu.memory_space<vmem>>, %arg15: memref<2x25xf32, #tpu.memory_space<vmem>>, %arg16: memref<2x1xf32, #tpu.memory_space<vmem>>, %arg17: memref<2x49xf32, #tpu.memory_space<vmem>>, %arg18: memref<2x1xf32, #tpu.memory_space<vmem>>, %arg19: memref<2x81xf32, #tpu.memory_space<vmem>>, %arg20: memref<2x1xf32, #tpu.memory_space<vmem>>, %arg21: memref<6x6xf32, #tpu.memory_space<vmem>>, %arg22: memref<6x1xf32, #tpu.memory_space<vmem>>, %arg23: memref<1x6x256xf32, #tpu.memory_space<vmem>>, %arg24: memref<6x1024xf32, #tpu.memory_space<vmem>>, %arg25: memref<6x256xf32, #tpu.memory_space<vmem>>, %arg26: memref<6x256xf32, #tpu.memory_space<vmem>>, %arg27: memref<6x256xf32, #tpu.memory_space<vmem>>) attributes {dimension_semantics = [#tpu.dimension_semantics<parallel>], iteration_bounds = array<i64: 2>, scalar_prefetch = 0 : i64, scratch_operands = 4 : i64, tpu.core_type = #tpu.core_type<tc>, window_params = [{transform_indices = @transform_0, window_bounds = array<i64: 1, 6, 256>}, {pipeline_mode = #tpu.pipeline_mode<synchronous>, transform_indices = @transform_1, window_bounds = array<i64: 6, 1>}, {pipeline_mode = #tpu.pipeline_mode<synchronous>, transform_indices = @transform_2, window_bounds = array<i64: 6, 1>}, {pipeline_mode = #tpu.pipeline_mode<synchronous>, transform_indices = @transform_3, window_bounds = array<i64: 6, 1>}, {pipeline_mode = #tpu.pipeline_mode<synchronous>, transform_indices = @transform_4, window_bounds = array<i64: 6, 6>}, {pipeline_mode = #tpu.pipeline_mode<synchronous>, transform_indices = @transform_5, window_bounds = array<i64: 6, 1>}, {pipeline_mode = #tpu.pipeline_mode<synchronous>, transform_indices = @transform_6, window_bounds = array<i64: 6, 6>}, {pipeline_mode = #tpu.pipeline_mode<synchronous>, transform_indices = @transform_7, window_bounds = array<i64: 6, 1>}, {pipeline_mode = #tpu.pipeline_mode<synchronous>, transform_indices = @transform_8, window_bounds = array<i64: 6, 6>}, {pipeline_mode = #tpu.pipeline_mode<synchronous>, transform_indices = @transform_9, window_bounds = array<i64: 6, 1>}, {pipeline_mode = #tpu.pipeline_mode<synchronous>, transform_indices = @transform_10, window_bounds = array<i64: 6, 49>}, {pipeline_mode = #tpu.pipeline_mode<synchronous>, transform_indices = @transform_11, window_bounds = array<i64: 6, 1>}, {pipeline_mode = #tpu.pipeline_mode<synchronous>, transform_indices = @transform_12, window_bounds = array<i64: 6, 49>}, {pipeline_mode = #tpu.pipeline_mode<synchronous>, transform_indices = @transform_13, window_bounds = array<i64: 6, 1>}, {pipeline_mode = #tpu.pipeline_mode<synchronous>, transform_indices = @transform_14, window_bounds = array<i64: 2, 25>}, {pipeline_mode = #tpu.pipeline_mode<synchronous>, transform_indices = @transform_15, window_bounds = array<i64: 2, 1>}, {pipeline_mode = #tpu.pipeline_mode<synchronous>, transform_indices = @transform_16, window_bounds = array<i64: 2, 49>}, {pipeline_mode = #tpu.pipeline_mode<synchronous>, transform_indices = @transform_17, window_bounds = array<i64: 2, 1>}, {pipeline_mode = #tpu.pipeline_mode<synchronous>, transform_indices = @transform_18, window_bounds = array<i64: 2, 81>}, {pipeline_mode = #tpu.pipeline_mode<synchronous>, transform_indices = @transform_19, window_bounds = array<i64: 2, 1>}, {pipeline_mode = #tpu.pipeline_mode<synchronous>, transform_indices = @transform_20, window_bounds = array<i64: 6, 6>}, {pipeline_mode = #tpu.pipeline_mode<synchronous>, transform_indices = @transform_21, window_bounds = array<i64: 6, 1>}, {transform_indices = @transform_22, window_bounds = array<i64: 1, 6, 256>}]} {
    %cst = arith.constant 0.000000e+00 : f32
    %0 = vector.broadcast %cst : f32 to vector<6x384xf32>
    %c0 = arith.constant 0 : index
    %c0_0 = arith.constant 0 : index
    %1 = vector.load %arg24[%c0, %c0_0] : memref<6x1024xf32, #tpu.memory_space<vmem>>, vector<6x384xf32>
    tpu.vector_store %arg24[%c0, %c0_0], %0 {strides = array<i32>} : memref<6x1024xf32, #tpu.memory_space<vmem>>, vector<6x384xf32>,
    %c0_1 = arith.constant 0 : index
    %c640 = arith.constant 640 : index
    %2 = vector.load %arg24[%c0_1, %c640] : memref<6x1024xf32, #tpu.memory_space<vmem>>, vector<6x384xf32>
    tpu.vector_store %arg24[%c0_1, %c640], %0 {strides = array<i32>} : memref<6x1024xf32, #tpu.memory_space<vmem>>, vector<6x384xf32>,
    %c0_2 = arith.constant 0 : index
    %c0_3 = arith.constant 0 : index
    %c0_4 = arith.constant 0 : index
    %3 = vector.load %arg1[%c0_2, %c0_3, %c0_4] : memref<1x6x256xf32, #tpu.memory_space<vmem>>, vector<1x6x256xf32>
    %4 = vector.shape_cast %3 : vector<1x6x256xf32> to vector<6x256xf32>
    %cst_5 = arith.constant dense<0.000000e+00> : vector<256xf32>
    %5 = vector.multi_reduction <add>, %4, %cst_5 [0] : vector<6x256xf32> to vector<256xf32>
    %6 = vector.shape_cast %5 : vector<256xf32> to vector<1x256xf32>
    %cst_6 = arith.constant 6.000000e+00 : f32
    %7 = vector.broadcast %cst_6 : f32 to vector<1x256xf32>
    %8 = arith.divf %6, %7 : vector<1x256xf32>
    %9 = vector.broadcast %8 : vector<1x256xf32> to vector<6x256xf32>
    %10 = arith.subf %4, %9 : vector<6x256xf32>
    %11 = arith.mulf %10, %10 : vector<6x256xf32>
    %cst_7 = arith.constant dense<0.000000e+00> : vector<256xf32>
    %12 = vector.multi_reduction <add>, %11, %cst_7 [0] : vector<6x256xf32> to vector<256xf32>
    %13 = vector.shape_cast %12 : vector<256xf32> to vector<1x256xf32>
    %cst_8 = arith.constant 6.000000e+00 : f32
    %14 = vector.broadcast %cst_8 : f32 to vector<1x256xf32>
    %15 = arith.divf %13, %14 : vector<1x256xf32>
    %c0_9 = arith.constant 0 : index
    %c0_10 = arith.constant 0 : index
    %16 = vector.load %arg2[%c0_9, %c0_10] : memref<6x1xf32, #tpu.memory_space<vmem>>, vector<6x1xf32>
    %17 = vector.broadcast %8 : vector<1x256xf32> to vector<6x256xf32>
    %18 = arith.subf %4, %17 : vector<6x256xf32>
    %cst_11 = arith.constant 9.99999997E-7 : f32
    %19 = vector.broadcast %cst_11 : f32 to vector<1x256xf32>
    %20 = arith.addf %15, %19 : vector<1x256xf32>
    %21 = math.rsqrt %20 : vector<1x256xf32>
    %22 = vector.broadcast %21 : vector<1x256xf32> to vector<6x256xf32>
    %23 = arith.mulf %18, %22 : vector<6x256xf32>
    %24 = vector.broadcast %16 : vector<6x1xf32> to vector<6x256xf32>
    %25 = arith.mulf %24, %23 : vector<6x256xf32>
    %c0_12 = arith.constant 0 : index
    %c0_13 = arith.constant 0 : index
    %26 = vector.load %arg3[%c0_12, %c0_13] : memref<6x1xf32, #tpu.memory_space<vmem>>, vector<6x1xf32>
    %27 = vector.broadcast %26 : vector<6x1xf32> to vector<6x256xf32>
    %28 = arith.addf %25, %27 : vector<6x256xf32>
    %c0_14 = arith.constant 0 : index
    %c0_15 = arith.constant 0 : index
    %29 = vector.load %arg5[%c0_14, %c0_15] : memref<6x6xf32, #tpu.memory_space<vmem>>, vector<6x6xf32>
    %cst_16 = arith.constant dense<0.000000e+00> : vector<6x256xf32>
    %30 = tpu.matmul %29, %28, %cst_16 {dimension_numbers = #tpu.dot_dimension_numbers<[1], [0], [0], [1], [0, 0, 1, 1], [], []>} : vector<6x6xf32>, vector<6x256xf32>, vector<6x256xf32> -> vector<6x256xf32>
    %c0_17 = arith.constant 0 : index
    %c0_18 = arith.constant 0 : index
    %31 = vector.load %arg6[%c0_17, %c0_18] : memref<6x1xf32, #tpu.memory_space<vmem>>, vector<6x1xf32>
    %32 = vector.broadcast %31 : vector<6x1xf32> to vector<6x256xf32>
    %33 = arith.addf %30, %32 : vector<6x256xf32>
    %c0_19 = arith.constant 0 : index
    %c0_20 = arith.constant 0 : index
    %34 = vector.load %arg7[%c0_19, %c0_20] : memref<6x6xf32, #tpu.memory_space<vmem>>, vector<6x6xf32>
    %cst_21 = arith.constant dense<0.000000e+00> : vector<6x256xf32>
    %35 = tpu.matmul %34, %28, %cst_21 {dimension_numbers = #tpu.dot_dimension_numbers<[1], [0], [0], [1], [0, 0, 1, 1], [], []>} : vector<6x6xf32>, vector<6x256xf32>, vector<6x256xf32> -> vector<6x256xf32>
    %c0_22 = arith.constant 0 : index
    %c0_23 = arith.constant 0 : index
    %36 = vector.load %arg8[%c0_22, %c0_23] : memref<6x1xf32, #tpu.memory_space<vmem>>, vector<6x1xf32>
    %37 = vector.broadcast %36 : vector<6x1xf32> to vector<6x256xf32>
    %38 = arith.addf %35, %37 : vector<6x256xf32>
    %c0_24 = arith.constant 0 : index
    %c0_25 = arith.constant 0 : index
    %39 = vector.load %arg25[%c0_24, %c0_25] : memref<6x256xf32, #tpu.memory_space<vmem>>, vector<6x256xf32>
    tpu.vector_store %arg25[%c0_24, %c0_25], %38 {strides = array<i32>} : memref<6x256xf32, #tpu.memory_space<vmem>>, vector<6x256xf32>,
    %c0_26 = arith.constant 0 : index
    %c384 = arith.constant 384 : index
    %40 = vector.load %arg24[%c0_26, %c384] : memref<6x1024xf32, #tpu.memory_space<vmem>>, vector<6x256xf32>
    tpu.vector_store %arg24[%c0_26, %c384], %33 {strides = array<i32>} : memref<6x1024xf32, #tpu.memory_space<vmem>>, vector<6x256xf32>,
    %41 = tpu.iota {dimensions = array<i32: 1>} : vector<1x256xi32>
    %c15_i32 = arith.constant 15 : i32
    %42 = vector.broadcast %c15_i32 : i32 to vector<1x256xi32>
    %43 = arith.andi %41, %42 : vector<1x256xi32>
    %c0_27 = arith.constant 0 : index
    %c333 = arith.constant 333 : index
    %44 = vector.load %arg24[%c0_27, %c333] : memref<6x1024xf32, #tpu.memory_space<vmem>>, vector<6x256xf32>
    %c0_28 = arith.constant 0 : index
    %c0_29 = arith.constant 0 : index
    %45 = vector.load %arg11[%c0_28, %c0_29] : memref<6x49xf32, #tpu.memory_space<vmem>>, vector<6x1xf32>
    %46 = vector.broadcast %45 : vector<6x1xf32> to vector<6x256xf32>
    %47 = arith.mulf %46, %44 : vector<6x256xf32>
    %c0_30 = arith.constant 0 : index
    %c0_31 = arith.constant 0 : index
    %48 = vector.load %arg13[%c0_30, %c0_31] : memref<6x49xf32, #tpu.memory_space<vmem>>, vector<6x1xf32>
    %49 = vector.broadcast %48 : vector<6x1xf32> to vector<6x256xf32>
    %50 = arith.mulf %49, %44 : vector<6x256xf32>
    %c0_32 = arith.constant 0 : index
    %c349 = arith.constant 349 : index
    %51 = vector.load %arg24[%c0_32, %c349] : memref<6x1024xf32, #tpu.memory_space<vmem>>, vector<6x256xf32>
    %c0_33 = arith.constant 0 : index
    %c7 = arith.constant 7 : index
    %52 = vector.load %arg11[%c0_33, %c7] : memref<6x49xf32, #tpu.memory_space<vmem>>, vector<6x1xf32>
    %53 = vector.broadcast %52 : vector<6x1xf32> to vector<6x256xf32>
    %54 = arith.mulf %53, %51 : vector<6x256xf32>
    %55 = arith.addf %47, %54 : vector<6x256xf32>
    %c0_34 = arith.constant 0 : index
    %c7_35 = arith.constant 7 : index
    %56 = vector.load %arg13[%c0_34, %c7_35] : memref<6x49xf32, #tpu.memory_space<vmem>>, vector<6x1xf32>
    %57 = vector.broadcast %56 : vector<6x1xf32> to vector<6x256xf32>
    %58 = arith.mulf %57, %51 : vector<6x256xf32>
    %59 = arith.addf %50, %58 : vector<6x256xf32>
    %c0_36 = arith.constant 0 : index
    %c365 = arith.constant 365 : index
    %60 = vector.load %arg24[%c0_36, %c365] : memref<6x1024xf32, #tpu.memory_space<vmem>>, vector<6x256xf32>
    %c0_37 = arith.constant 0 : index
    %c14 = arith.constant 14 : index
    %61 = vector.load %arg11[%c0_37, %c14] : memref<6x49xf32, #tpu.memory_space<vmem>>, vector<6x1xf32>
    %62 = vector.broadcast %61 : vector<6x1xf32> to vector<6x256xf32>
    %63 = arith.mulf %62, %60 : vector<6x256xf32>
    %64 = arith.addf %55, %63 : vector<6x256xf32>
    %c0_38 = arith.constant 0 : index
    %c14_39 = arith.constant 14 : index
    %65 = vector.load %arg13[%c0_38, %c14_39] : memref<6x49xf32, #tpu.memory_space<vmem>>, vector<6x1xf32>
    %66 = vector.broadcast %65 : vector<6x1xf32> to vector<6x256xf32>
    %67 = arith.mulf %66, %60 : vector<6x256xf32>
    %68 = arith.addf %59, %67 : vector<6x256xf32>
    %c0_40 = arith.constant 0 : index
    %c381 = arith.constant 381 : index
    %69 = vector.load %arg24[%c0_40, %c381] : memref<6x1024xf32, #tpu.memory_space<vmem>>, vector<6x256xf32>
    %c0_41 = arith.constant 0 : index
    %c21 = arith.constant 21 : index
    %70 = vector.load %arg11[%c0_41, %c21] : memref<6x49xf32, #tpu.memory_space<vmem>>, vector<6x1xf32>
    %71 = vector.broadcast %70 : vector<6x1xf32> to vector<6x256xf32>
    %72 = arith.mulf %71, %69 : vector<6x256xf32>
    %73 = arith.addf %64, %72 : vector<6x256xf32>
    %c0_42 = arith.constant 0 : index
    %c21_43 = arith.constant 21 : index
    %74 = vector.load %arg13[%c0_42, %c21_43] : memref<6x49xf32, #tpu.memory_space<vmem>>, vector<6x1xf32>
    %75 = vector.broadcast %74 : vector<6x1xf32> to vector<6x256xf32>
    %76 = arith.mulf %75, %69 : vector<6x256xf32>
    %77 = arith.addf %68, %76 : vector<6x256xf32>
    %c0_44 = arith.constant 0 : index
    %c397 = arith.constant 397 : index
    %78 = vector.load %arg24[%c0_44, %c397] : memref<6x1024xf32, #tpu.memory_space<vmem>>, vector<6x256xf32>
    %c0_45 = arith.constant 0 : index
    %c28 = arith.constant 28 : index
    %79 = vector.load %arg11[%c0_45, %c28] : memref<6x49xf32, #tpu.memory_space<vmem>>, vector<6x1xf32>
    %80 = vector.broadcast %79 : vector<6x1xf32> to vector<6x256xf32>
    %81 = arith.mulf %80, %78 : vector<6x256xf32>
    %82 = arith.addf %73, %81 : vector<6x256xf32>
    %c0_46 = arith.constant 0 : index
    %c28_47 = arith.constant 28 : index
    %83 = vector.load %arg13[%c0_46, %c28_47] : memref<6x49xf32, #tpu.memory_space<vmem>>, vector<6x1xf32>
    %84 = vector.broadcast %83 : vector<6x1xf32> to vector<6x256xf32>
    %85 = arith.mulf %84, %78 : vector<6x256xf32>
    %86 = arith.addf %77, %85 : vector<6x256xf32>
    %c0_48 = arith.constant 0 : index
    %c413 = arith.constant 413 : index
    %87 = vector.load %arg24[%c0_48, %c413] : memref<6x1024xf32, #tpu.memory_space<vmem>>, vector<6x256xf32>
    %c0_49 = arith.constant 0 : index
    %c35 = arith.constant 35 : index
    %88 = vector.load %arg11[%c0_49, %c35] : memref<6x49xf32, #tpu.memory_space<vmem>>, vector<6x1xf32>
    %89 = vector.broadcast %88 : vector<6x1xf32> to vector<6x256xf32>
    %90 = arith.mulf %89, %87 : vector<6x256xf32>
    %91 = arith.addf %82, %90 : vector<6x256xf32>
    %c0_50 = arith.constant 0 : index
    %c35_51 = arith.constant 35 : index
    %92 = vector.load %arg13[%c0_50, %c35_51] : memref<6x49xf32, #tpu.memory_space<vmem>>, vector<6x1xf32>
    %93 = vector.broadcast %92 : vector<6x1xf32> to vector<6x256xf32>
    %94 = arith.mulf %93, %87 : vector<6x256xf32>
    %95 = arith.addf %86, %94 : vector<6x256xf32>
    %c0_52 = arith.constant 0 : index
    %c429 = arith.constant 429 : index
    %96 = vector.load %arg24[%c0_52, %c429] : memref<6x1024xf32, #tpu.memory_space<vmem>>, vector<6x256xf32>
    %c0_53 = arith.constant 0 : index
    %c42 = arith.constant 42 : index
    %97 = vector.load %arg11[%c0_53, %c42] : memref<6x49xf32, #tpu.memory_space<vmem>>, vector<6x1xf32>
    %98 = vector.broadcast %97 : vector<6x1xf32> to vector<6x256xf32>
    %99 = arith.mulf %98, %96 : vector<6x256xf32>
    %100 = arith.addf %91, %99 : vector<6x256xf32>
    %c0_54 = arith.constant 0 : index
    %c42_55 = arith.constant 42 : index
    %101 = vector.load %arg13[%c0_54, %c42_55] : memref<6x49xf32, #tpu.memory_space<vmem>>, vector<6x1xf32>
    %102 = vector.broadcast %101 : vector<6x1xf32> to vector<6x256xf32>
    %103 = arith.mulf %102, %96 : vector<6x256xf32>
    %104 = arith.addf %95, %103 : vector<6x256xf32>
    %c3_i32 = arith.constant 3 : i32
    %105 = vector.broadcast %c3_i32 : i32 to vector<1x256xi32>
    %106 = arith.cmpi sge, %43, %105 : vector<1x256xi32>
    %cst_56 = arith.constant 1.000000e+00 : f32
    %cst_57 = arith.constant 0.000000e+00 : f32
    %107 = vector.broadcast %cst_56 : f32 to vector<1x256xf32>
    %108 = vector.broadcast %cst_57 : f32 to vector<1x256xf32>
    %109 = arith.select %106, %107, %108 : vector<1x256xi1>, vector<1x256xf32>
    %110 = vector.shape_cast %109 : vector<1x256xf32> to vector<1x256xf32>
    %111 = vector.broadcast %110 : vector<1x256xf32> to vector<6x256xf32>
    %112 = arith.mulf %111, %100 : vector<6x256xf32>
    %113 = arith.mulf %111, %104 : vector<6x256xf32>
    %c0_58 = arith.constant 0 : index
    %c334 = arith.constant 334 : index
    %114 = vector.load %arg24[%c0_58, %c334] : memref<6x1024xf32, #tpu.memory_space<vmem>>, vector<6x256xf32>
    %c0_59 = arith.constant 0 : index
    %c1 = arith.constant 1 : index
    %115 = vector.load %arg11[%c0_59, %c1] : memref<6x49xf32, #tpu.memory_space<vmem>>, vector<6x1xf32>
    %116 = vector.broadcast %115 : vector<6x1xf32> to vector<6x256xf32>
    %117 = arith.mulf %116, %114 : vector<6x256xf32>
    %c0_60 = arith.constant 0 : index
    %c1_61 = arith.constant 1 : index
    %118 = vector.load %arg13[%c0_60, %c1_61] : memref<6x49xf32, #tpu.memory_space<vmem>>, vector<6x1xf32>
    %119 = vector.broadcast %118 : vector<6x1xf32> to vector<6x256xf32>
    %120 = arith.mulf %119, %114 : vector<6x256xf32>
    %c0_62 = arith.constant 0 : index
    %c350 = arith.constant 350 : index
    %121 = vector.load %arg24[%c0_62, %c350] : memref<6x1024xf32, #tpu.memory_space<vmem>>, vector<6x256xf32>
    %c0_63 = arith.constant 0 : index
    %c8 = arith.constant 8 : index
    %122 = vector.load %arg11[%c0_63, %c8] : memref<6x49xf32, #tpu.memory_space<vmem>>, vector<6x1xf32>
    %123 = vector.broadcast %122 : vector<6x1xf32> to vector<6x256xf32>
    %124 = arith.mulf %123, %121 : vector<6x256xf32>
    %125 = arith.addf %117, %124 : vector<6x256xf32>
    %c0_64 = arith.constant 0 : index
    %c8_65 = arith.constant 8 : index
    %126 = vector.load %arg13[%c0_64, %c8_65] : memref<6x49xf32, #tpu.memory_space<vmem>>, vector<6x1xf32>
    %127 = vector.broadcast %126 : vector<6x1xf32> to vector<6x256xf32>
    %128 = arith.mulf %127, %121 : vector<6x256xf32>
    %129 = arith.addf %120, %128 : vector<6x256xf32>
    %c0_66 = arith.constant 0 : index
    %c366 = arith.constant 366 : index
    %130 = vector.load %arg24[%c0_66, %c366] : memref<6x1024xf32, #tpu.memory_space<vmem>>, vector<6x256xf32>
    %c0_67 = arith.constant 0 : index
    %c15 = arith.constant 15 : index
    %131 = vector.load %arg11[%c0_67, %c15] : memref<6x49xf32, #tpu.memory_space<vmem>>, vector<6x1xf32>
    %132 = vector.broadcast %131 : vector<6x1xf32> to vector<6x256xf32>
    %133 = arith.mulf %132, %130 : vector<6x256xf32>
    %134 = arith.addf %125, %133 : vector<6x256xf32>
    %c0_68 = arith.constant 0 : index
    %c15_69 = arith.constant 15 : index
    %135 = vector.load %arg13[%c0_68, %c15_69] : memref<6x49xf32, #tpu.memory_space<vmem>>, vector<6x1xf32>
    %136 = vector.broadcast %135 : vector<6x1xf32> to vector<6x256xf32>
    %137 = arith.mulf %136, %130 : vector<6x256xf32>
    %138 = arith.addf %129, %137 : vector<6x256xf32>
    %c0_70 = arith.constant 0 : index
    %c382 = arith.constant 382 : index
    %139 = vector.load %arg24[%c0_70, %c382] : memref<6x1024xf32, #tpu.memory_space<vmem>>, vector<6x256xf32>
    %c0_71 = arith.constant 0 : index
    %c22 = arith.constant 22 : index
    %140 = vector.load %arg11[%c0_71, %c22] : memref<6x49xf32, #tpu.memory_space<vmem>>, vector<6x1xf32>
    %141 = vector.broadcast %140 : vector<6x1xf32> to vector<6x256xf32>
    %142 = arith.mulf %141, %139 : vector<6x256xf32>
    %143 = arith.addf %134, %142 : vector<6x256xf32>
    %c0_72 = arith.constant 0 : index
    %c22_73 = arith.constant 22 : index
    %144 = vector.load %arg13[%c0_72, %c22_73] : memref<6x49xf32, #tpu.memory_space<vmem>>, vector<6x1xf32>
    %145 = vector.broadcast %144 : vector<6x1xf32> to vector<6x256xf32>
    %146 = arith.mulf %145, %139 : vector<6x256xf32>
    %147 = arith.addf %138, %146 : vector<6x256xf32>
    %c0_74 = arith.constant 0 : index
    %c398 = arith.constant 398 : index
    %148 = vector.load %arg24[%c0_74, %c398] : memref<6x1024xf32, #tpu.memory_space<vmem>>, vector<6x256xf32>
    %c0_75 = arith.constant 0 : index
    %c29 = arith.constant 29 : index
    %149 = vector.load %arg11[%c0_75, %c29] : memref<6x49xf32, #tpu.memory_space<vmem>>, vector<6x1xf32>
    %150 = vector.broadcast %149 : vector<6x1xf32> to vector<6x256xf32>
    %151 = arith.mulf %150, %148 : vector<6x256xf32>
    %152 = arith.addf %143, %151 : vector<6x256xf32>
    %c0_76 = arith.constant 0 : index
    %c29_77 = arith.constant 29 : index
    %153 = vector.load %arg13[%c0_76, %c29_77] : memref<6x49xf32, #tpu.memory_space<vmem>>, vector<6x1xf32>
    %154 = vector.broadcast %153 : vector<6x1xf32> to vector<6x256xf32>
    %155 = arith.mulf %154, %148 : vector<6x256xf32>
    %156 = arith.addf %147, %155 : vector<6x256xf32>
    %c0_78 = arith.constant 0 : index
    %c414 = arith.constant 414 : index
    %157 = vector.load %arg24[%c0_78, %c414] : memref<6x1024xf32, #tpu.memory_space<vmem>>, vector<6x256xf32>
    %c0_79 = arith.constant 0 : index
    %c36 = arith.constant 36 : index
    %158 = vector.load %arg11[%c0_79, %c36] : memref<6x49xf32, #tpu.memory_space<vmem>>, vector<6x1xf32>
    %159 = vector.broadcast %158 : vector<6x1xf32> to vector<6x256xf32>
    %160 = arith.mulf %159, %157 : vector<6x256xf32>
    %161 = arith.addf %152, %160 : vector<6x256xf32>
    %c0_80 = arith.constant 0 : index
    %c36_81 = arith.constant 36 : index
    %162 = vector.load %arg13[%c0_80, %c36_81] : memref<6x49xf32, #tpu.memory_space<vmem>>, vector<6x1xf32>
    %163 = vector.broadcast %162 : vector<6x1xf32> to vector<6x256xf32>
    %164 = arith.mulf %163, %157 : vector<6x256xf32>
    %165 = arith.addf %156, %164 : vector<6x256xf32>
    %c0_82 = arith.constant 0 : index
    %c430 = arith.constant 430 : index
    %166 = vector.load %arg24[%c0_82, %c430] : memref<6x1024xf32, #tpu.memory_space<vmem>>, vector<6x256xf32>
    %c0_83 = arith.constant 0 : index
    %c43 = arith.constant 43 : index
    %167 = vector.load %arg11[%c0_83, %c43] : memref<6x49xf32, #tpu.memory_space<vmem>>, vector<6x1xf32>
    %168 = vector.broadcast %167 : vector<6x1xf32> to vector<6x256xf32>
    %169 = arith.mulf %168, %166 : vector<6x256xf32>
    %170 = arith.addf %161, %169 : vector<6x256xf32>
    %c0_84 = arith.constant 0 : index
    %c43_85 = arith.constant 43 : index
    %171 = vector.load %arg13[%c0_84, %c43_85] : memref<6x49xf32, #tpu.memory_space<vmem>>, vector<6x1xf32>
    %172 = vector.broadcast %171 : vector<6x1xf32> to vector<6x256xf32>
    %173 = arith.mulf %172, %166 : vector<6x256xf32>
    %174 = arith.addf %165, %173 : vector<6x256xf32>
    %c2_i32 = arith.constant 2 : i32
    %175 = vector.broadcast %c2_i32 : i32 to vector<1x256xi32>
    %176 = arith.cmpi sge, %43, %175 : vector<1x256xi32>
    %cst_86 = arith.constant 1.000000e+00 : f32
    %cst_87 = arith.constant 0.000000e+00 : f32
    %177 = vector.broadcast %cst_86 : f32 to vector<1x256xf32>
    %178 = vector.broadcast %cst_87 : f32 to vector<1x256xf32>
    %179 = arith.select %176, %177, %178 : vector<1x256xi1>, vector<1x256xf32>
    %180 = vector.shape_cast %179 : vector<1x256xf32> to vector<1x256xf32>
    %181 = vector.broadcast %180 : vector<1x256xf32> to vector<6x256xf32>
    %182 = arith.mulf %181, %170 : vector<6x256xf32>
    %183 = arith.addf %112, %182 : vector<6x256xf32>
    %184 = arith.mulf %181, %174 : vector<6x256xf32>
    %185 = arith.addf %113, %184 : vector<6x256xf32>
    %c0_88 = arith.constant 0 : index
    %c335 = arith.constant 335 : index
    %186 = vector.load %arg24[%c0_88, %c335] : memref<6x1024xf32, #tpu.memory_space<vmem>>, vector<6x256xf32>
    %c0_89 = arith.constant 0 : index
    %c2 = arith.constant 2 : index
    %187 = vector.load %arg11[%c0_89, %c2] : memref<6x49xf32, #tpu.memory_space<vmem>>, vector<6x1xf32>
    %188 = vector.broadcast %187 : vector<6x1xf32> to vector<6x256xf32>
    %189 = arith.mulf %188, %186 : vector<6x256xf32>
    %c0_90 = arith.constant 0 : index
    %c2_91 = arith.constant 2 : index
    %190 = vector.load %arg13[%c0_90, %c2_91] : memref<6x49xf32, #tpu.memory_space<vmem>>, vector<6x1xf32>
    %191 = vector.broadcast %190 : vector<6x1xf32> to vector<6x256xf32>
    %192 = arith.mulf %191, %186 : vector<6x256xf32>
    %c0_92 = arith.constant 0 : index
    %c351 = arith.constant 351 : index
    %193 = vector.load %arg24[%c0_92, %c351] : memref<6x1024xf32, #tpu.memory_space<vmem>>, vector<6x256xf32>
    %c0_93 = arith.constant 0 : index
    %c9 = arith.constant 9 : index
    %194 = vector.load %arg11[%c0_93, %c9] : memref<6x49xf32, #tpu.memory_space<vmem>>, vector<6x1xf32>
    %195 = vector.broadcast %194 : vector<6x1xf32> to vector<6x256xf32>
    %196 = arith.mulf %195, %193 : vector<6x256xf32>
    %197 = arith.addf %189, %196 : vector<6x256xf32>
    %c0_94 = arith.constant 0 : index
    %c9_95 = arith.constant 9 : index
    %198 = vector.load %arg13[%c0_94, %c9_95] : memref<6x49xf32, #tpu.memory_space<vmem>>, vector<6x1xf32>
    %199 = vector.broadcast %198 : vector<6x1xf32> to vector<6x256xf32>
    %200 = arith.mulf %199, %193 : vector<6x256xf32>
    %201 = arith.addf %192, %200 : vector<6x256xf32>
    %c0_96 = arith.constant 0 : index
    %c367 = arith.constant 367 : index
    %202 = vector.load %arg24[%c0_96, %c367] : memref<6x1024xf32, #tpu.memory_space<vmem>>, vector<6x256xf32>
    %c0_97 = arith.constant 0 : index
    %c16 = arith.constant 16 : index
    %203 = vector.load %arg11[%c0_97, %c16] : memref<6x49xf32, #tpu.memory_space<vmem>>, vector<6x1xf32>
    %204 = vector.broadcast %203 : vector<6x1xf32> to vector<6x256xf32>
    %205 = arith.mulf %204, %202 : vector<6x256xf32>
    %206 = arith.addf %197, %205 : vector<6x256xf32>
    %c0_98 = arith.constant 0 : index
    %c16_99 = arith.constant 16 : index
    %207 = vector.load %arg13[%c0_98, %c16_99] : memref<6x49xf32, #tpu.memory_space<vmem>>, vector<6x1xf32>
    %208 = vector.broadcast %207 : vector<6x1xf32> to vector<6x256xf32>
    %209 = arith.mulf %208, %202 : vector<6x256xf32>
    %210 = arith.addf %201, %209 : vector<6x256xf32>
    %c0_100 = arith.constant 0 : index
    %c383 = arith.constant 383 : index
    %211 = vector.load %arg24[%c0_100, %c383] : memref<6x1024xf32, #tpu.memory_space<vmem>>, vector<6x256xf32>
    %c0_101 = arith.constant 0 : index
    %c23 = arith.constant 23 : index
    %212 = vector.load %arg11[%c0_101, %c23] : memref<6x49xf32, #tpu.memory_space<vmem>>, vector<6x1xf32>
    %213 = vector.broadcast %212 : vector<6x1xf32> to vector<6x256xf32>
    %214 = arith.mulf %213, %211 : vector<6x256xf32>
    %215 = arith.addf %206, %214 : vector<6x256xf32>
    %c0_102 = arith.constant 0 : index
    %c23_103 = arith.constant 23 : index
    %216 = vector.load %arg13[%c0_102, %c23_103] : memref<6x49xf32, #tpu.memory_space<vmem>>, vector<6x1xf32>
    %217 = vector.broadcast %216 : vector<6x1xf32> to vector<6x256xf32>
    %218 = arith.mulf %217, %211 : vector<6x256xf32>
    %219 = arith.addf %210, %218 : vector<6x256xf32>
    %c0_104 = arith.constant 0 : index
    %c399 = arith.constant 399 : index
    %220 = vector.load %arg24[%c0_104, %c399] : memref<6x1024xf32, #tpu.memory_space<vmem>>, vector<6x256xf32>
    %c0_105 = arith.constant 0 : index
    %c30 = arith.constant 30 : index
    %221 = vector.load %arg11[%c0_105, %c30] : memref<6x49xf32, #tpu.memory_space<vmem>>, vector<6x1xf32>
    %222 = vector.broadcast %221 : vector<6x1xf32> to vector<6x256xf32>
    %223 = arith.mulf %222, %220 : vector<6x256xf32>
    %224 = arith.addf %215, %223 : vector<6x256xf32>
    %c0_106 = arith.constant 0 : index
    %c30_107 = arith.constant 30 : index
    %225 = vector.load %arg13[%c0_106, %c30_107] : memref<6x49xf32, #tpu.memory_space<vmem>>, vector<6x1xf32>
    %226 = vector.broadcast %225 : vector<6x1xf32> to vector<6x256xf32>
    %227 = arith.mulf %226, %220 : vector<6x256xf32>
    %228 = arith.addf %219, %227 : vector<6x256xf32>
    %c0_108 = arith.constant 0 : index
    %c415 = arith.constant 415 : index
    %229 = vector.load %arg24[%c0_108, %c415] : memref<6x1024xf32, #tpu.memory_space<vmem>>, vector<6x256xf32>
    %c0_109 = arith.constant 0 : index
    %c37 = arith.constant 37 : index
    %230 = vector.load %arg11[%c0_109, %c37] : memref<6x49xf32, #tpu.memory_space<vmem>>, vector<6x1xf32>
    %231 = vector.broadcast %230 : vector<6x1xf32> to vector<6x256xf32>
    %232 = arith.mulf %231, %229 : vector<6x256xf32>
    %233 = arith.addf %224, %232 : vector<6x256xf32>
    %c0_110 = arith.constant 0 : index
    %c37_111 = arith.constant 37 : index
    %234 = vector.load %arg13[%c0_110, %c37_111] : memref<6x49xf32, #tpu.memory_space<vmem>>, vector<6x1xf32>
    %235 = vector.broadcast %234 : vector<6x1xf32> to vector<6x256xf32>
    %236 = arith.mulf %235, %229 : vector<6x256xf32>
    %237 = arith.addf %228, %236 : vector<6x256xf32>
    %c0_112 = arith.constant 0 : index
    %c431 = arith.constant 431 : index
    %238 = vector.load %arg24[%c0_112, %c431] : memref<6x1024xf32, #tpu.memory_space<vmem>>, vector<6x256xf32>
    %c0_113 = arith.constant 0 : index
    %c44 = arith.constant 44 : index
    %239 = vector.load %arg11[%c0_113, %c44] : memref<6x49xf32, #tpu.memory_space<vmem>>, vector<6x1xf32>
    %240 = vector.broadcast %239 : vector<6x1xf32> to vector<6x256xf32>
    %241 = arith.mulf %240, %238 : vector<6x256xf32>
    %242 = arith.addf %233, %241 : vector<6x256xf32>
    %c0_114 = arith.constant 0 : index
    %c44_115 = arith.constant 44 : index
    %243 = vector.load %arg13[%c0_114, %c44_115] : memref<6x49xf32, #tpu.memory_space<vmem>>, vector<6x1xf32>
    %244 = vector.broadcast %243 : vector<6x1xf32> to vector<6x256xf32>
    %245 = arith.mulf %244, %238 : vector<6x256xf32>
    %246 = arith.addf %237, %245 : vector<6x256xf32>
    %c1_i32 = arith.constant 1 : i32
    %247 = vector.broadcast %c1_i32 : i32 to vector<1x256xi32>
    %248 = arith.cmpi sge, %43, %247 : vector<1x256xi32>
    %cst_116 = arith.constant 1.000000e+00 : f32
    %cst_117 = arith.constant 0.000000e+00 : f32
    %249 = vector.broadcast %cst_116 : f32 to vector<1x256xf32>
    %250 = vector.broadcast %cst_117 : f32 to vector<1x256xf32>
    %251 = arith.select %248, %249, %250 : vector<1x256xi1>, vector<1x256xf32>
    %252 = vector.shape_cast %251 : vector<1x256xf32> to vector<1x256xf32>
    %253 = vector.broadcast %252 : vector<1x256xf32> to vector<6x256xf32>
    %254 = arith.mulf %253, %242 : vector<6x256xf32>
    %255 = arith.addf %183, %254 : vector<6x256xf32>
    %256 = arith.mulf %253, %246 : vector<6x256xf32>
    %257 = arith.addf %185, %256 : vector<6x256xf32>
    %c0_118 = arith.constant 0 : index
    %c336 = arith.constant 336 : index
    %258 = vector.load %arg24[%c0_118, %c336] : memref<6x1024xf32, #tpu.memory_space<vmem>>, vector<6x256xf32>
    %c0_119 = arith.constant 0 : index
    %c3 = arith.constant 3 : index
    %259 = vector.load %arg11[%c0_119, %c3] : memref<6x49xf32, #tpu.memory_space<vmem>>, vector<6x1xf32>
    %260 = vector.broadcast %259 : vector<6x1xf32> to vector<6x256xf32>
    %261 = arith.mulf %260, %258 : vector<6x256xf32>
    %c0_120 = arith.constant 0 : index
    %c3_121 = arith.constant 3 : index
    %262 = vector.load %arg13[%c0_120, %c3_121] : memref<6x49xf32, #tpu.memory_space<vmem>>, vector<6x1xf32>
    %263 = vector.broadcast %262 : vector<6x1xf32> to vector<6x256xf32>
    %264 = arith.mulf %263, %258 : vector<6x256xf32>
    %c0_122 = arith.constant 0 : index
    %c352 = arith.constant 352 : index
    %265 = vector.load %arg24[%c0_122, %c352] : memref<6x1024xf32, #tpu.memory_space<vmem>>, vector<6x256xf32>
    %c0_123 = arith.constant 0 : index
    %c10 = arith.constant 10 : index
    %266 = vector.load %arg11[%c0_123, %c10] : memref<6x49xf32, #tpu.memory_space<vmem>>, vector<6x1xf32>
    %267 = vector.broadcast %266 : vector<6x1xf32> to vector<6x256xf32>
    %268 = arith.mulf %267, %265 : vector<6x256xf32>
    %269 = arith.addf %261, %268 : vector<6x256xf32>
    %c0_124 = arith.constant 0 : index
    %c10_125 = arith.constant 10 : index
    %270 = vector.load %arg13[%c0_124, %c10_125] : memref<6x49xf32, #tpu.memory_space<vmem>>, vector<6x1xf32>
    %271 = vector.broadcast %270 : vector<6x1xf32> to vector<6x256xf32>
    %272 = arith.mulf %271, %265 : vector<6x256xf32>
    %273 = arith.addf %264, %272 : vector<6x256xf32>
    %c0_126 = arith.constant 0 : index
    %c368 = arith.constant 368 : index
    %274 = vector.load %arg24[%c0_126, %c368] : memref<6x1024xf32, #tpu.memory_space<vmem>>, vector<6x256xf32>
    %c0_127 = arith.constant 0 : index
    %c17 = arith.constant 17 : index
    %275 = vector.load %arg11[%c0_127, %c17] : memref<6x49xf32, #tpu.memory_space<vmem>>, vector<6x1xf32>
    %276 = vector.broadcast %275 : vector<6x1xf32> to vector<6x256xf32>
    %277 = arith.mulf %276, %274 : vector<6x256xf32>
    %278 = arith.addf %269, %277 : vector<6x256xf32>
    %c0_128 = arith.constant 0 : index
    %c17_129 = arith.constant 17 : index
    %279 = vector.load %arg13[%c0_128, %c17_129] : memref<6x49xf32, #tpu.memory_space<vmem>>, vector<6x1xf32>
    %280 = vector.broadcast %279 : vector<6x1xf32> to vector<6x256xf32>
    %281 = arith.mulf %280, %274 : vector<6x256xf32>
    %282 = arith.addf %273, %281 : vector<6x256xf32>
    %c0_130 = arith.constant 0 : index
    %c384_131 = arith.constant 384 : index
    %283 = vector.load %arg24[%c0_130, %c384_131] : memref<6x1024xf32, #tpu.memory_space<vmem>>, vector<6x256xf32>
    %c0_132 = arith.constant 0 : index
    %c24 = arith.constant 24 : index
    %284 = vector.load %arg11[%c0_132, %c24] : memref<6x49xf32, #tpu.memory_space<vmem>>, vector<6x1xf32>
    %285 = vector.broadcast %284 : vector<6x1xf32> to vector<6x256xf32>
    %286 = arith.mulf %285, %283 : vector<6x256xf32>
    %287 = arith.addf %278, %286 : vector<6x256xf32>
    %c0_133 = arith.constant 0 : index
    %c24_134 = arith.constant 24 : index
    %288 = vector.load %arg13[%c0_133, %c24_134] : memref<6x49xf32, #tpu.memory_space<vmem>>, vector<6x1xf32>
    %289 = vector.broadcast %288 : vector<6x1xf32> to vector<6x256xf32>
    %290 = arith.mulf %289, %283 : vector<6x256xf32>
    %291 = arith.addf %282, %290 : vector<6x256xf32>
    %c0_135 = arith.constant 0 : index
    %c400 = arith.constant 400 : index
    %292 = vector.load %arg24[%c0_135, %c400] : memref<6x1024xf32, #tpu.memory_space<vmem>>, vector<6x256xf32>
    %c0_136 = arith.constant 0 : index
    %c31 = arith.constant 31 : index
    %293 = vector.load %arg11[%c0_136, %c31] : memref<6x49xf32, #tpu.memory_space<vmem>>, vector<6x1xf32>
    %294 = vector.broadcast %293 : vector<6x1xf32> to vector<6x256xf32>
    %295 = arith.mulf %294, %292 : vector<6x256xf32>
    %296 = arith.addf %287, %295 : vector<6x256xf32>
    %c0_137 = arith.constant 0 : index
    %c31_138 = arith.constant 31 : index
    %297 = vector.load %arg13[%c0_137, %c31_138] : memref<6x49xf32, #tpu.memory_space<vmem>>, vector<6x1xf32>
    %298 = vector.broadcast %297 : vector<6x1xf32> to vector<6x256xf32>
    %299 = arith.mulf %298, %292 : vector<6x256xf32>
    %300 = arith.addf %291, %299 : vector<6x256xf32>
    %c0_139 = arith.constant 0 : index
    %c416 = arith.constant 416 : index
    %301 = vector.load %arg24[%c0_139, %c416] : memref<6x1024xf32, #tpu.memory_space<vmem>>, vector<6x256xf32>
    %c0_140 = arith.constant 0 : index
    %c38 = arith.constant 38 : index
    %302 = vector.load %arg11[%c0_140, %c38] : memref<6x49xf32, #tpu.memory_space<vmem>>, vector<6x1xf32>
    %303 = vector.broadcast %302 : vector<6x1xf32> to vector<6x256xf32>
    %304 = arith.mulf %303, %301 : vector<6x256xf32>
    %305 = arith.addf %296, %304 : vector<6x256xf32>
    %c0_141 = arith.constant 0 : index
    %c38_142 = arith.constant 38 : index
    %306 = vector.load %arg13[%c0_141, %c38_142] : memref<6x49xf32, #tpu.memory_space<vmem>>, vector<6x1xf32>
    %307 = vector.broadcast %306 : vector<6x1xf32> to vector<6x256xf32>
    %308 = arith.mulf %307, %301 : vector<6x256xf32>
    %309 = arith.addf %300, %308 : vector<6x256xf32>
    %c0_143 = arith.constant 0 : index
    %c432 = arith.constant 432 : index
    %310 = vector.load %arg24[%c0_143, %c432] : memref<6x1024xf32, #tpu.memory_space<vmem>>, vector<6x256xf32>
    %c0_144 = arith.constant 0 : index
    %c45 = arith.constant 45 : index
    %311 = vector.load %arg11[%c0_144, %c45] : memref<6x49xf32, #tpu.memory_space<vmem>>, vector<6x1xf32>
    %312 = vector.broadcast %311 : vector<6x1xf32> to vector<6x256xf32>
    %313 = arith.mulf %312, %310 : vector<6x256xf32>
    %314 = arith.addf %305, %313 : vector<6x256xf32>
    %c0_145 = arith.constant 0 : index
    %c45_146 = arith.constant 45 : index
    %315 = vector.load %arg13[%c0_145, %c45_146] : memref<6x49xf32, #tpu.memory_space<vmem>>, vector<6x1xf32>
    %316 = vector.broadcast %315 : vector<6x1xf32> to vector<6x256xf32>
    %317 = arith.mulf %316, %310 : vector<6x256xf32>
    %318 = arith.addf %309, %317 : vector<6x256xf32>
    %319 = arith.addf %255, %314 : vector<6x256xf32>
    %320 = arith.addf %257, %318 : vector<6x256xf32>
    %c0_147 = arith.constant 0 : index
    %c337 = arith.constant 337 : index
    %321 = vector.load %arg24[%c0_147, %c337] : memref<6x1024xf32, #tpu.memory_space<vmem>>, vector<6x256xf32>
    %c0_148 = arith.constant 0 : index
    %c4 = arith.constant 4 : index
    %322 = vector.load %arg11[%c0_148, %c4] : memref<6x49xf32, #tpu.memory_space<vmem>>, vector<6x1xf32>
    %323 = vector.broadcast %322 : vector<6x1xf32> to vector<6x256xf32>
    %324 = arith.mulf %323, %321 : vector<6x256xf32>
    %c0_149 = arith.constant 0 : index
    %c4_150 = arith.constant 4 : index
    %325 = vector.load %arg13[%c0_149, %c4_150] : memref<6x49xf32, #tpu.memory_space<vmem>>, vector<6x1xf32>
    %326 = vector.broadcast %325 : vector<6x1xf32> to vector<6x256xf32>
    %327 = arith.mulf %326, %321 : vector<6x256xf32>
    %c0_151 = arith.constant 0 : index
    %c353 = arith.constant 353 : index
    %328 = vector.load %arg24[%c0_151, %c353] : memref<6x1024xf32, #tpu.memory_space<vmem>>, vector<6x256xf32>
    %c0_152 = arith.constant 0 : index
    %c11 = arith.constant 11 : index
    %329 = vector.load %arg11[%c0_152, %c11] : memref<6x49xf32, #tpu.memory_space<vmem>>, vector<6x1xf32>
    %330 = vector.broadcast %329 : vector<6x1xf32> to vector<6x256xf32>
    %331 = arith.mulf %330, %328 : vector<6x256xf32>
    %332 = arith.addf %324, %331 : vector<6x256xf32>
    %c0_153 = arith.constant 0 : index
    %c11_154 = arith.constant 11 : index
    %333 = vector.load %arg13[%c0_153, %c11_154] : memref<6x49xf32, #tpu.memory_space<vmem>>, vector<6x1xf32>
    %334 = vector.broadcast %333 : vector<6x1xf32> to vector<6x256xf32>
    %335 = arith.mulf %334, %328 : vector<6x256xf32>
    %336 = arith.addf %327, %335 : vector<6x256xf32>
    %c0_155 = arith.constant 0 : index
    %c369 = arith.constant 369 : index
    %337 = vector.load %arg24[%c0_155, %c369] : memref<6x1024xf32, #tpu.memory_space<vmem>>, vector<6x256xf32>
    %c0_156 = arith.constant 0 : index
    %c18 = arith.constant 18 : index
    %338 = vector.load %arg11[%c0_156, %c18] : memref<6x49xf32, #tpu.memory_space<vmem>>, vector<6x1xf32>
    %339 = vector.broadcast %338 : vector<6x1xf32> to vector<6x256xf32>
    %340 = arith.mulf %339, %337 : vector<6x256xf32>
    %341 = arith.addf %332, %340 : vector<6x256xf32>
    %c0_157 = arith.constant 0 : index
    %c18_158 = arith.constant 18 : index
    %342 = vector.load %arg13[%c0_157, %c18_158] : memref<6x49xf32, #tpu.memory_space<vmem>>, vector<6x1xf32>
    %343 = vector.broadcast %342 : vector<6x1xf32> to vector<6x256xf32>
    %344 = arith.mulf %343, %337 : vector<6x256xf32>
    %345 = arith.addf %336, %344 : vector<6x256xf32>
    %c0_159 = arith.constant 0 : index
    %c385 = arith.constant 385 : index
    %346 = vector.load %arg24[%c0_159, %c385] : memref<6x1024xf32, #tpu.memory_space<vmem>>, vector<6x256xf32>
    %c0_160 = arith.constant 0 : index
    %c25 = arith.constant 25 : index
    %347 = vector.load %arg11[%c0_160, %c25] : memref<6x49xf32, #tpu.memory_space<vmem>>, vector<6x1xf32>
    %348 = vector.broadcast %347 : vector<6x1xf32> to vector<6x256xf32>
    %349 = arith.mulf %348, %346 : vector<6x256xf32>
    %350 = arith.addf %341, %349 : vector<6x256xf32>
    %c0_161 = arith.constant 0 : index
    %c25_162 = arith.constant 25 : index
    %351 = vector.load %arg13[%c0_161, %c25_162] : memref<6x49xf32, #tpu.memory_space<vmem>>, vector<6x1xf32>
    %352 = vector.broadcast %351 : vector<6x1xf32> to vector<6x256xf32>
    %353 = arith.mulf %352, %346 : vector<6x256xf32>
    %354 = arith.addf %345, %353 : vector<6x256xf32>
    %c0_163 = arith.constant 0 : index
    %c401 = arith.constant 401 : index
    %355 = vector.load %arg24[%c0_163, %c401] : memref<6x1024xf32, #tpu.memory_space<vmem>>, vector<6x256xf32>
    %c0_164 = arith.constant 0 : index
    %c32 = arith.constant 32 : index
    %356 = vector.load %arg11[%c0_164, %c32] : memref<6x49xf32, #tpu.memory_space<vmem>>, vector<6x1xf32>
    %357 = vector.broadcast %356 : vector<6x1xf32> to vector<6x256xf32>
    %358 = arith.mulf %357, %355 : vector<6x256xf32>
    %359 = arith.addf %350, %358 : vector<6x256xf32>
    %c0_165 = arith.constant 0 : index
    %c32_166 = arith.constant 32 : index
    %360 = vector.load %arg13[%c0_165, %c32_166] : memref<6x49xf32, #tpu.memory_space<vmem>>, vector<6x1xf32>
    %361 = vector.broadcast %360 : vector<6x1xf32> to vector<6x256xf32>
    %362 = arith.mulf %361, %355 : vector<6x256xf32>
    %363 = arith.addf %354, %362 : vector<6x256xf32>
    %c0_167 = arith.constant 0 : index
    %c417 = arith.constant 417 : index
    %364 = vector.load %arg24[%c0_167, %c417] : memref<6x1024xf32, #tpu.memory_space<vmem>>, vector<6x256xf32>
    %c0_168 = arith.constant 0 : index
    %c39 = arith.constant 39 : index
    %365 = vector.load %arg11[%c0_168, %c39] : memref<6x49xf32, #tpu.memory_space<vmem>>, vector<6x1xf32>
    %366 = vector.broadcast %365 : vector<6x1xf32> to vector<6x256xf32>
    %367 = arith.mulf %366, %364 : vector<6x256xf32>
    %368 = arith.addf %359, %367 : vector<6x256xf32>
    %c0_169 = arith.constant 0 : index
    %c39_170 = arith.constant 39 : index
    %369 = vector.load %arg13[%c0_169, %c39_170] : memref<6x49xf32, #tpu.memory_space<vmem>>, vector<6x1xf32>
    %370 = vector.broadcast %369 : vector<6x1xf32> to vector<6x256xf32>
    %371 = arith.mulf %370, %364 : vector<6x256xf32>
    %372 = arith.addf %363, %371 : vector<6x256xf32>
    %c0_171 = arith.constant 0 : index
    %c433 = arith.constant 433 : index
    %373 = vector.load %arg24[%c0_171, %c433] : memref<6x1024xf32, #tpu.memory_space<vmem>>, vector<6x256xf32>
    %c0_172 = arith.constant 0 : index
    %c46 = arith.constant 46 : index
    %374 = vector.load %arg11[%c0_172, %c46] : memref<6x49xf32, #tpu.memory_space<vmem>>, vector<6x1xf32>
    %375 = vector.broadcast %374 : vector<6x1xf32> to vector<6x256xf32>
    %376 = arith.mulf %375, %373 : vector<6x256xf32>
    %377 = arith.addf %368, %376 : vector<6x256xf32>
    %c0_173 = arith.constant 0 : index
    %c46_174 = arith.constant 46 : index
    %378 = vector.load %arg13[%c0_173, %c46_174] : memref<6x49xf32, #tpu.memory_space<vmem>>, vector<6x1xf32>
    %379 = vector.broadcast %378 : vector<6x1xf32> to vector<6x256xf32>
    %380 = arith.mulf %379, %373 : vector<6x256xf32>
    %381 = arith.addf %372, %380 : vector<6x256xf32>
    %c15_i32_175 = arith.constant 15 : i32
    %382 = vector.broadcast %c15_i32_175 : i32 to vector<1x256xi32>
    %383 = arith.cmpi slt, %43, %382 : vector<1x256xi32>
    %cst_176 = arith.constant 1.000000e+00 : f32
    %cst_177 = arith.constant 0.000000e+00 : f32
    %384 = vector.broadcast %cst_176 : f32 to vector<1x256xf32>
    %385 = vector.broadcast %cst_177 : f32 to vector<1x256xf32>
    %386 = arith.select %383, %384, %385 : vector<1x256xi1>, vector<1x256xf32>
    %387 = vector.shape_cast %386 : vector<1x256xf32> to vector<1x256xf32>
    %388 = vector.broadcast %387 : vector<1x256xf32> to vector<6x256xf32>
    %389 = arith.mulf %388, %377 : vector<6x256xf32>
    %390 = arith.addf %319, %389 : vector<6x256xf32>
    %391 = arith.mulf %388, %381 : vector<6x256xf32>
    %392 = arith.addf %320, %391 : vector<6x256xf32>
    %c0_178 = arith.constant 0 : index
    %c338 = arith.constant 338 : index
    %393 = vector.load %arg24[%c0_178, %c338] : memref<6x1024xf32, #tpu.memory_space<vmem>>, vector<6x256xf32>
    %c0_179 = arith.constant 0 : index
    %c5 = arith.constant 5 : index
    %394 = vector.load %arg11[%c0_179, %c5] : memref<6x49xf32, #tpu.memory_space<vmem>>, vector<6x1xf32>
    %395 = vector.broadcast %394 : vector<6x1xf32> to vector<6x256xf32>
    %396 = arith.mulf %395, %393 : vector<6x256xf32>
    %c0_180 = arith.constant 0 : index
    %c5_181 = arith.constant 5 : index
    %397 = vector.load %arg13[%c0_180, %c5_181] : memref<6x49xf32, #tpu.memory_space<vmem>>, vector<6x1xf32>
    %398 = vector.broadcast %397 : vector<6x1xf32> to vector<6x256xf32>
    %399 = arith.mulf %398, %393 : vector<6x256xf32>
    %c0_182 = arith.constant 0 : index
    %c354 = arith.constant 354 : index
    %400 = vector.load %arg24[%c0_182, %c354] : memref<6x1024xf32, #tpu.memory_space<vmem>>, vector<6x256xf32>
    %c0_183 = arith.constant 0 : index
    %c12 = arith.constant 12 : index
    %401 = vector.load %arg11[%c0_183, %c12] : memref<6x49xf32, #tpu.memory_space<vmem>>, vector<6x1xf32>
    %402 = vector.broadcast %401 : vector<6x1xf32> to vector<6x256xf32>
    %403 = arith.mulf %402, %400 : vector<6x256xf32>
    %404 = arith.addf %396, %403 : vector<6x256xf32>
    %c0_184 = arith.constant 0 : index
    %c12_185 = arith.constant 12 : index
    %405 = vector.load %arg13[%c0_184, %c12_185] : memref<6x49xf32, #tpu.memory_space<vmem>>, vector<6x1xf32>
    %406 = vector.broadcast %405 : vector<6x1xf32> to vector<6x256xf32>
    %407 = arith.mulf %406, %400 : vector<6x256xf32>
    %408 = arith.addf %399, %407 : vector<6x256xf32>
    %c0_186 = arith.constant 0 : index
    %c370 = arith.constant 370 : index
    %409 = vector.load %arg24[%c0_186, %c370] : memref<6x1024xf32, #tpu.memory_space<vmem>>, vector<6x256xf32>
    %c0_187 = arith.constant 0 : index
    %c19 = arith.constant 19 : index
    %410 = vector.load %arg11[%c0_187, %c19] : memref<6x49xf32, #tpu.memory_space<vmem>>, vector<6x1xf32>
    %411 = vector.broadcast %410 : vector<6x1xf32> to vector<6x256xf32>
    %412 = arith.mulf %411, %409 : vector<6x256xf32>
    %413 = arith.addf %404, %412 : vector<6x256xf32>
    %c0_188 = arith.constant 0 : index
    %c19_189 = arith.constant 19 : index
    %414 = vector.load %arg13[%c0_188, %c19_189] : memref<6x49xf32, #tpu.memory_space<vmem>>, vector<6x1xf32>
    %415 = vector.broadcast %414 : vector<6x1xf32> to vector<6x256xf32>
    %416 = arith.mulf %415, %409 : vector<6x256xf32>
    %417 = arith.addf %408, %416 : vector<6x256xf32>
    %c0_190 = arith.constant 0 : index
    %c386 = arith.constant 386 : index
    %418 = vector.load %arg24[%c0_190, %c386] : memref<6x1024xf32, #tpu.memory_space<vmem>>, vector<6x256xf32>
    %c0_191 = arith.constant 0 : index
    %c26 = arith.constant 26 : index
    %419 = vector.load %arg11[%c0_191, %c26] : memref<6x49xf32, #tpu.memory_space<vmem>>, vector<6x1xf32>
    %420 = vector.broadcast %419 : vector<6x1xf32> to vector<6x256xf32>
    %421 = arith.mulf %420, %418 : vector<6x256xf32>
    %422 = arith.addf %413, %421 : vector<6x256xf32>
    %c0_192 = arith.constant 0 : index
    %c26_193 = arith.constant 26 : index
    %423 = vector.load %arg13[%c0_192, %c26_193] : memref<6x49xf32, #tpu.memory_space<vmem>>, vector<6x1xf32>
    %424 = vector.broadcast %423 : vector<6x1xf32> to vector<6x256xf32>
    %425 = arith.mulf %424, %418 : vector<6x256xf32>
    %426 = arith.addf %417, %425 : vector<6x256xf32>
    %c0_194 = arith.constant 0 : index
    %c402 = arith.constant 402 : index
    %427 = vector.load %arg24[%c0_194, %c402] : memref<6x1024xf32, #tpu.memory_space<vmem>>, vector<6x256xf32>
    %c0_195 = arith.constant 0 : index
    %c33 = arith.constant 33 : index
    %428 = vector.load %arg11[%c0_195, %c33] : memref<6x49xf32, #tpu.memory_space<vmem>>, vector<6x1xf32>
    %429 = vector.broadcast %428 : vector<6x1xf32> to vector<6x256xf32>
    %430 = arith.mulf %429, %427 : vector<6x256xf32>
    %431 = arith.addf %422, %430 : vector<6x256xf32>
    %c0_196 = arith.constant 0 : index
    %c33_197 = arith.constant 33 : index
    %432 = vector.load %arg13[%c0_196, %c33_197] : memref<6x49xf32, #tpu.memory_space<vmem>>, vector<6x1xf32>
    %433 = vector.broadcast %432 : vector<6x1xf32> to vector<6x256xf32>
    %434 = arith.mulf %433, %427 : vector<6x256xf32>
    %435 = arith.addf %426, %434 : vector<6x256xf32>
    %c0_198 = arith.constant 0 : index
    %c418 = arith.constant 418 : index
    %436 = vector.load %arg24[%c0_198, %c418] : memref<6x1024xf32, #tpu.memory_space<vmem>>, vector<6x256xf32>
    %c0_199 = arith.constant 0 : index
    %c40 = arith.constant 40 : index
    %437 = vector.load %arg11[%c0_199, %c40] : memref<6x49xf32, #tpu.memory_space<vmem>>, vector<6x1xf32>
    %438 = vector.broadcast %437 : vector<6x1xf32> to vector<6x256xf32>
    %439 = arith.mulf %438, %436 : vector<6x256xf32>
    %440 = arith.addf %431, %439 : vector<6x256xf32>
    %c0_200 = arith.constant 0 : index
    %c40_201 = arith.constant 40 : index
    %441 = vector.load %arg13[%c0_200, %c40_201] : memref<6x49xf32, #tpu.memory_space<vmem>>, vector<6x1xf32>
    %442 = vector.broadcast %441 : vector<6x1xf32> to vector<6x256xf32>
    %443 = arith.mulf %442, %436 : vector<6x256xf32>
    %444 = arith.addf %435, %443 : vector<6x256xf32>
    %c0_202 = arith.constant 0 : index
    %c434 = arith.constant 434 : index
    %445 = vector.load %arg24[%c0_202, %c434] : memref<6x1024xf32, #tpu.memory_space<vmem>>, vector<6x256xf32>
    %c0_203 = arith.constant 0 : index
    %c47 = arith.constant 47 : index
    %446 = vector.load %arg11[%c0_203, %c47] : memref<6x49xf32, #tpu.memory_space<vmem>>, vector<6x1xf32>
    %447 = vector.broadcast %446 : vector<6x1xf32> to vector<6x256xf32>
    %448 = arith.mulf %447, %445 : vector<6x256xf32>
    %449 = arith.addf %440, %448 : vector<6x256xf32>
    %c0_204 = arith.constant 0 : index
    %c47_205 = arith.constant 47 : index
    %450 = vector.load %arg13[%c0_204, %c47_205] : memref<6x49xf32, #tpu.memory_space<vmem>>, vector<6x1xf32>
    %451 = vector.broadcast %450 : vector<6x1xf32> to vector<6x256xf32>
    %452 = arith.mulf %451, %445 : vector<6x256xf32>
    %453 = arith.addf %444, %452 : vector<6x256xf32>
    %c14_i32 = arith.constant 14 : i32
    %454 = vector.broadcast %c14_i32 : i32 to vector<1x256xi32>
    %455 = arith.cmpi slt, %43, %454 : vector<1x256xi32>
    %cst_206 = arith.constant 1.000000e+00 : f32
    %cst_207 = arith.constant 0.000000e+00 : f32
    %456 = vector.broadcast %cst_206 : f32 to vector<1x256xf32>
    %457 = vector.broadcast %cst_207 : f32 to vector<1x256xf32>
    %458 = arith.select %455, %456, %457 : vector<1x256xi1>, vector<1x256xf32>
    %459 = vector.shape_cast %458 : vector<1x256xf32> to vector<1x256xf32>
    %460 = vector.broadcast %459 : vector<1x256xf32> to vector<6x256xf32>
    %461 = arith.mulf %460, %449 : vector<6x256xf32>
    %462 = arith.addf %390, %461 : vector<6x256xf32>
    %463 = arith.mulf %460, %453 : vector<6x256xf32>
    %464 = arith.addf %392, %463 : vector<6x256xf32>
    %c0_208 = arith.constant 0 : index
    %c339 = arith.constant 339 : index
    %465 = vector.load %arg24[%c0_208, %c339] : memref<6x1024xf32, #tpu.memory_space<vmem>>, vector<6x256xf32>
    %c0_209 = arith.constant 0 : index
    %c6 = arith.constant 6 : index
    %466 = vector.load %arg11[%c0_209, %c6] : memref<6x49xf32, #tpu.memory_space<vmem>>, vector<6x1xf32>
    %467 = vector.broadcast %466 : vector<6x1xf32> to vector<6x256xf32>
    %468 = arith.mulf %467, %465 : vector<6x256xf32>
    %c0_210 = arith.constant 0 : index
    %c6_211 = arith.constant 6 : index
    %469 = vector.load %arg13[%c0_210, %c6_211] : memref<6x49xf32, #tpu.memory_space<vmem>>, vector<6x1xf32>
    %470 = vector.broadcast %469 : vector<6x1xf32> to vector<6x256xf32>
    %471 = arith.mulf %470, %465 : vector<6x256xf32>
    %c0_212 = arith.constant 0 : index
    %c355 = arith.constant 355 : index
    %472 = vector.load %arg24[%c0_212, %c355] : memref<6x1024xf32, #tpu.memory_space<vmem>>, vector<6x256xf32>
    %c0_213 = arith.constant 0 : index
    %c13 = arith.constant 13 : index
    %473 = vector.load %arg11[%c0_213, %c13] : memref<6x49xf32, #tpu.memory_space<vmem>>, vector<6x1xf32>
    %474 = vector.broadcast %473 : vector<6x1xf32> to vector<6x256xf32>
    %475 = arith.mulf %474, %472 : vector<6x256xf32>
    %476 = arith.addf %468, %475 : vector<6x256xf32>
    %c0_214 = arith.constant 0 : index
    %c13_215 = arith.constant 13 : index
    %477 = vector.load %arg13[%c0_214, %c13_215] : memref<6x49xf32, #tpu.memory_space<vmem>>, vector<6x1xf32>
    %478 = vector.broadcast %477 : vector<6x1xf32> to vector<6x256xf32>
    %479 = arith.mulf %478, %472 : vector<6x256xf32>
    %480 = arith.addf %471, %479 : vector<6x256xf32>
    %c0_216 = arith.constant 0 : index
    %c371 = arith.constant 371 : index
    %481 = vector.load %arg24[%c0_216, %c371] : memref<6x1024xf32, #tpu.memory_space<vmem>>, vector<6x256xf32>
    %c0_217 = arith.constant 0 : index
    %c20 = arith.constant 20 : index
    %482 = vector.load %arg11[%c0_217, %c20] : memref<6x49xf32, #tpu.memory_space<vmem>>, vector<6x1xf32>
    %483 = vector.broadcast %482 : vector<6x1xf32> to vector<6x256xf32>
    %484 = arith.mulf %483, %481 : vector<6x256xf32>
    %485 = arith.addf %476, %484 : vector<6x256xf32>
    %c0_218 = arith.constant 0 : index
    %c20_219 = arith.constant 20 : index
    %486 = vector.load %arg13[%c0_218, %c20_219] : memref<6x49xf32, #tpu.memory_space<vmem>>, vector<6x1xf32>
    %487 = vector.broadcast %486 : vector<6x1xf32> to vector<6x256xf32>
    %488 = arith.mulf %487, %481 : vector<6x256xf32>
    %489 = arith.addf %480, %488 : vector<6x256xf32>
    %c0_220 = arith.constant 0 : index
    %c387 = arith.constant 387 : index
    %490 = vector.load %arg24[%c0_220, %c387] : memref<6x1024xf32, #tpu.memory_space<vmem>>, vector<6x256xf32>
    %c0_221 = arith.constant 0 : index
    %c27 = arith.constant 27 : index
    %491 = vector.load %arg11[%c0_221, %c27] : memref<6x49xf32, #tpu.memory_space<vmem>>, vector<6x1xf32>
    %492 = vector.broadcast %491 : vector<6x1xf32> to vector<6x256xf32>
    %493 = arith.mulf %492, %490 : vector<6x256xf32>
    %494 = arith.addf %485, %493 : vector<6x256xf32>
    %c0_222 = arith.constant 0 : index
    %c27_223 = arith.constant 27 : index
    %495 = vector.load %arg13[%c0_222, %c27_223] : memref<6x49xf32, #tpu.memory_space<vmem>>, vector<6x1xf32>
    %496 = vector.broadcast %495 : vector<6x1xf32> to vector<6x256xf32>
    %497 = arith.mulf %496, %490 : vector<6x256xf32>
    %498 = arith.addf %489, %497 : vector<6x256xf32>
    %c0_224 = arith.constant 0 : index
    %c403 = arith.constant 403 : index
    %499 = vector.load %arg24[%c0_224, %c403] : memref<6x1024xf32, #tpu.memory_space<vmem>>, vector<6x256xf32>
    %c0_225 = arith.constant 0 : index
    %c34 = arith.constant 34 : index
    %500 = vector.load %arg11[%c0_225, %c34] : memref<6x49xf32, #tpu.memory_space<vmem>>, vector<6x1xf32>
    %501 = vector.broadcast %500 : vector<6x1xf32> to vector<6x256xf32>
    %502 = arith.mulf %501, %499 : vector<6x256xf32>
    %503 = arith.addf %494, %502 : vector<6x256xf32>
    %c0_226 = arith.constant 0 : index
    %c34_227 = arith.constant 34 : index
    %504 = vector.load %arg13[%c0_226, %c34_227] : memref<6x49xf32, #tpu.memory_space<vmem>>, vector<6x1xf32>
    %505 = vector.broadcast %504 : vector<6x1xf32> to vector<6x256xf32>
    %506 = arith.mulf %505, %499 : vector<6x256xf32>
    %507 = arith.addf %498, %506 : vector<6x256xf32>
    %c0_228 = arith.constant 0 : index
    %c419 = arith.constant 419 : index
    %508 = vector.load %arg24[%c0_228, %c419] : memref<6x1024xf32, #tpu.memory_space<vmem>>, vector<6x256xf32>
    %c0_229 = arith.constant 0 : index
    %c41 = arith.constant 41 : index
    %509 = vector.load %arg11[%c0_229, %c41] : memref<6x49xf32, #tpu.memory_space<vmem>>, vector<6x1xf32>
    %510 = vector.broadcast %509 : vector<6x1xf32> to vector<6x256xf32>
    %511 = arith.mulf %510, %508 : vector<6x256xf32>
    %512 = arith.addf %503, %511 : vector<6x256xf32>
    %c0_230 = arith.constant 0 : index
    %c41_231 = arith.constant 41 : index
    %513 = vector.load %arg13[%c0_230, %c41_231] : memref<6x49xf32, #tpu.memory_space<vmem>>, vector<6x1xf32>
    %514 = vector.broadcast %513 : vector<6x1xf32> to vector<6x256xf32>
    %515 = arith.mulf %514, %508 : vector<6x256xf32>
    %516 = arith.addf %507, %515 : vector<6x256xf32>
    %c0_232 = arith.constant 0 : index
    %c435 = arith.constant 435 : index
    %517 = vector.load %arg24[%c0_232, %c435] : memref<6x1024xf32, #tpu.memory_space<vmem>>, vector<6x256xf32>
    %c0_233 = arith.constant 0 : index
    %c48 = arith.constant 48 : index
    %518 = vector.load %arg11[%c0_233, %c48] : memref<6x49xf32, #tpu.memory_space<vmem>>, vector<6x1xf32>
    %519 = vector.broadcast %518 : vector<6x1xf32> to vector<6x256xf32>
    %520 = arith.mulf %519, %517 : vector<6x256xf32>
    %521 = arith.addf %512, %520 : vector<6x256xf32>
    %c0_234 = arith.constant 0 : index
    %c48_235 = arith.constant 48 : index
    %522 = vector.load %arg13[%c0_234, %c48_235] : memref<6x49xf32, #tpu.memory_space<vmem>>, vector<6x1xf32>
    %523 = vector.broadcast %522 : vector<6x1xf32> to vector<6x256xf32>
    %524 = arith.mulf %523, %517 : vector<6x256xf32>
    %525 = arith.addf %516, %524 : vector<6x256xf32>
    %c13_i32 = arith.constant 13 : i32
    %526 = vector.broadcast %c13_i32 : i32 to vector<1x256xi32>
    %527 = arith.cmpi slt, %43, %526 : vector<1x256xi32>
    %cst_236 = arith.constant 1.000000e+00 : f32
    %cst_237 = arith.constant 0.000000e+00 : f32
    %528 = vector.broadcast %cst_236 : f32 to vector<1x256xf32>
    %529 = vector.broadcast %cst_237 : f32 to vector<1x256xf32>
    %530 = arith.select %527, %528, %529 : vector<1x256xi1>, vector<1x256xf32>
    %531 = vector.shape_cast %530 : vector<1x256xf32> to vector<1x256xf32>
    %532 = vector.broadcast %531 : vector<1x256xf32> to vector<6x256xf32>
    %533 = arith.mulf %532, %521 : vector<6x256xf32>
    %534 = arith.addf %462, %533 : vector<6x256xf32>
    %535 = arith.mulf %532, %525 : vector<6x256xf32>
    %536 = arith.addf %464, %535 : vector<6x256xf32>
    %c0_238 = arith.constant 0 : index
    %c0_239 = arith.constant 0 : index
    %537 = vector.load %arg12[%c0_238, %c0_239] : memref<6x1xf32, #tpu.memory_space<vmem>>, vector<6x1xf32>
    %538 = vector.broadcast %537 : vector<6x1xf32> to vector<6x256xf32>
    %539 = arith.addf %534, %538 : vector<6x256xf32>
    %c0_240 = arith.constant 0 : index
    %c0_241 = arith.constant 0 : index
    %540 = vector.load %arg14[%c0_240, %c0_241] : memref<6x1xf32, #tpu.memory_space<vmem>>, vector<6x1xf32>
    %541 = vector.broadcast %540 : vector<6x1xf32> to vector<6x256xf32>
    %542 = arith.addf %536, %541 : vector<6x256xf32>
    %c0_242 = arith.constant 0 : index
    %c0_243 = arith.constant 0 : index
    %543 = vector.load %arg26[%c0_242, %c0_243] : memref<6x256xf32, #tpu.memory_space<vmem>>, vector<6x256xf32>
    tpu.vector_store %arg26[%c0_242, %c0_243], %542 {strides = array<i32>} : memref<6x256xf32, #tpu.memory_space<vmem>>, vector<6x256xf32>,
    %c0_244 = arith.constant 0 : index
    %c384_245 = arith.constant 384 : index
    %544 = vector.load %arg24[%c0_244, %c384_245] : memref<6x1024xf32, #tpu.memory_space<vmem>>, vector<6x256xf32>
    tpu.vector_store %arg24[%c0_244, %c384_245], %539 {strides = array<i32>} : memref<6x1024xf32, #tpu.memory_space<vmem>>, vector<6x256xf32>,
    %c0_246 = arith.constant 0 : index
    %c316 = arith.constant 316 : index
    %545 = vector.load %arg24[%c0_246, %c316] : memref<6x1024xf32, #tpu.memory_space<vmem>>, vector<2x256xf32>
    %c0_247 = arith.constant 0 : index
    %c0_248 = arith.constant 0 : index
    %546 = vector.load %arg15[%c0_247, %c0_248] : memref<2x25xf32, #tpu.memory_space<vmem>>, vector<2x1xf32>
    %547 = vector.broadcast %546 : vector<2x1xf32> to vector<2x256xf32>
    %548 = arith.mulf %547, %545 : vector<2x256xf32>
    %c0_249 = arith.constant 0 : index
    %c348 = arith.constant 348 : index
    %549 = vector.load %arg24[%c0_249, %c348] : memref<6x1024xf32, #tpu.memory_space<vmem>>, vector<2x256xf32>
    %c0_250 = arith.constant 0 : index
    %c5_251 = arith.constant 5 : index
    %550 = vector.load %arg15[%c0_250, %c5_251] : memref<2x25xf32, #tpu.memory_space<vmem>>, vector<2x1xf32>
    %551 = vector.broadcast %550 : vector<2x1xf32> to vector<2x256xf32>
    %552 = arith.mulf %551, %549 : vector<2x256xf32>
    %553 = arith.addf %548, %552 : vector<2x256xf32>
    %c0_252 = arith.constant 0 : index
    %c380 = arith.constant 380 : index
    %554 = vector.load %arg24[%c0_252, %c380] : memref<6x1024xf32, #tpu.memory_space<vmem>>, vector<2x256xf32>
    %c0_253 = arith.constant 0 : index
    %c10_254 = arith.constant 10 : index
    %555 = vector.load %arg15[%c0_253, %c10_254] : memref<2x25xf32, #tpu.memory_space<vmem>>, vector<2x1xf32>
    %556 = vector.broadcast %555 : vector<2x1xf32> to vector<2x256xf32>
    %557 = arith.mulf %556, %554 : vector<2x256xf32>
    %558 = arith.addf %553, %557 : vector<2x256xf32>
    %c0_255 = arith.constant 0 : index
    %c412 = arith.constant 412 : index
    %559 = vector.load %arg24[%c0_255, %c412] : memref<6x1024xf32, #tpu.memory_space<vmem>>, vector<2x256xf32>
    %c0_256 = arith.constant 0 : index
    %c15_257 = arith.constant 15 : index
    %560 = vector.load %arg15[%c0_256, %c15_257] : memref<2x25xf32, #tpu.memory_space<vmem>>, vector<2x1xf32>
    %561 = vector.broadcast %560 : vector<2x1xf32> to vector<2x256xf32>
    %562 = arith.mulf %561, %559 : vector<2x256xf32>
    %563 = arith.addf %558, %562 : vector<2x256xf32>
    %c0_258 = arith.constant 0 : index
    %c444 = arith.constant 444 : index
    %564 = vector.load %arg24[%c0_258, %c444] : memref<6x1024xf32, #tpu.memory_space<vmem>>, vector<2x256xf32>
    %c0_259 = arith.constant 0 : index
    %c20_260 = arith.constant 20 : index
    %565 = vector.load %arg15[%c0_259, %c20_260] : memref<2x25xf32, #tpu.memory_space<vmem>>, vector<2x1xf32>
    %566 = vector.broadcast %565 : vector<2x1xf32> to vector<2x256xf32>
    %567 = arith.mulf %566, %564 : vector<2x256xf32>
    %568 = arith.addf %563, %567 : vector<2x256xf32>
    %c4_i32 = arith.constant 4 : i32
    %569 = vector.broadcast %c4_i32 : i32 to vector<1x256xi32>
    %570 = arith.cmpi sge, %43, %569 : vector<1x256xi32>
    %cst_261 = arith.constant 1.000000e+00 : f32
    %cst_262 = arith.constant 0.000000e+00 : f32
    %571 = vector.broadcast %cst_261 : f32 to vector<1x256xf32>
    %572 = vector.broadcast %cst_262 : f32 to vector<1x256xf32>
    %573 = arith.select %570, %571, %572 : vector<1x256xi1>, vector<1x256xf32>
    %574 = vector.shape_cast %573 : vector<1x256xf32> to vector<1x256xf32>
    %575 = vector.broadcast %574 : vector<1x256xf32> to vector<2x256xf32>
    %576 = arith.mulf %575, %568 : vector<2x256xf32>
    %c0_263 = arith.constant 0 : index
    %c318 = arith.constant 318 : index
    %577 = vector.load %arg24[%c0_263, %c318] : memref<6x1024xf32, #tpu.memory_space<vmem>>, vector<2x256xf32>
    %c0_264 = arith.constant 0 : index
    %c1_265 = arith.constant 1 : index
    %578 = vector.load %arg15[%c0_264, %c1_265] : memref<2x25xf32, #tpu.memory_space<vmem>>, vector<2x1xf32>
    %579 = vector.broadcast %578 : vector<2x1xf32> to vector<2x256xf32>
    %580 = arith.mulf %579, %577 : vector<2x256xf32>
    %c0_266 = arith.constant 0 : index
    %c350_267 = arith.constant 350 : index
    %581 = vector.load %arg24[%c0_266, %c350_267] : memref<6x1024xf32, #tpu.memory_space<vmem>>, vector<2x256xf32>
    %c0_268 = arith.constant 0 : index
    %c6_269 = arith.constant 6 : index
    %582 = vector.load %arg15[%c0_268, %c6_269] : memref<2x25xf32, #tpu.memory_space<vmem>>, vector<2x1xf32>
    %583 = vector.broadcast %582 : vector<2x1xf32> to vector<2x256xf32>
    %584 = arith.mulf %583, %581 : vector<2x256xf32>
    %585 = arith.addf %580, %584 : vector<2x256xf32>
    %c0_270 = arith.constant 0 : index
    %c382_271 = arith.constant 382 : index
    %586 = vector.load %arg24[%c0_270, %c382_271] : memref<6x1024xf32, #tpu.memory_space<vmem>>, vector<2x256xf32>
    %c0_272 = arith.constant 0 : index
    %c11_273 = arith.constant 11 : index
    %587 = vector.load %arg15[%c0_272, %c11_273] : memref<2x25xf32, #tpu.memory_space<vmem>>, vector<2x1xf32>
    %588 = vector.broadcast %587 : vector<2x1xf32> to vector<2x256xf32>
    %589 = arith.mulf %588, %586 : vector<2x256xf32>
    %590 = arith.addf %585, %589 : vector<2x256xf32>
    %c0_274 = arith.constant 0 : index
    %c414_275 = arith.constant 414 : index
    %591 = vector.load %arg24[%c0_274, %c414_275] : memref<6x1024xf32, #tpu.memory_space<vmem>>, vector<2x256xf32>
    %c0_276 = arith.constant 0 : index
    %c16_277 = arith.constant 16 : index
    %592 = vector.load %arg15[%c0_276, %c16_277] : memref<2x25xf32, #tpu.memory_space<vmem>>, vector<2x1xf32>
    %593 = vector.broadcast %592 : vector<2x1xf32> to vector<2x256xf32>
    %594 = arith.mulf %593, %591 : vector<2x256xf32>
    %595 = arith.addf %590, %594 : vector<2x256xf32>
    %c0_278 = arith.constant 0 : index
    %c446 = arith.constant 446 : index
    %596 = vector.load %arg24[%c0_278, %c446] : memref<6x1024xf32, #tpu.memory_space<vmem>>, vector<2x256xf32>
    %c0_279 = arith.constant 0 : index
    %c21_280 = arith.constant 21 : index
    %597 = vector.load %arg15[%c0_279, %c21_280] : memref<2x25xf32, #tpu.memory_space<vmem>>, vector<2x1xf32>
    %598 = vector.broadcast %597 : vector<2x1xf32> to vector<2x256xf32>
    %599 = arith.mulf %598, %596 : vector<2x256xf32>
    %600 = arith.addf %595, %599 : vector<2x256xf32>
    %c2_i32_281 = arith.constant 2 : i32
    %601 = vector.broadcast %c2_i32_281 : i32 to vector<1x256xi32>
    %602 = arith.cmpi sge, %43, %601 : vector<1x256xi32>
    %cst_282 = arith.constant 1.000000e+00 : f32
    %cst_283 = arith.constant 0.000000e+00 : f32
    %603 = vector.broadcast %cst_282 : f32 to vector<1x256xf32>
    %604 = vector.broadcast %cst_283 : f32 to vector<1x256xf32>
    %605 = arith.select %602, %603, %604 : vector<1x256xi1>, vector<1x256xf32>
    %606 = vector.shape_cast %605 : vector<1x256xf32> to vector<1x256xf32>
    %607 = vector.broadcast %606 : vector<1x256xf32> to vector<2x256xf32>
    %608 = arith.mulf %607, %600 : vector<2x256xf32>
    %609 = arith.addf %576, %608 : vector<2x256xf32>
    %c0_284 = arith.constant 0 : index
    %c320 = arith.constant 320 : index
    %610 = vector.load %arg24[%c0_284, %c320] : memref<6x1024xf32, #tpu.memory_space<vmem>>, vector<2x256xf32>
    %c0_285 = arith.constant 0 : index
    %c2_286 = arith.constant 2 : index
    %611 = vector.load %arg15[%c0_285, %c2_286] : memref<2x25xf32, #tpu.memory_space<vmem>>, vector<2x1xf32>
    %612 = vector.broadcast %611 : vector<2x1xf32> to vector<2x256xf32>
    %613 = arith.mulf %612, %610 : vector<2x256xf32>
    %c0_287 = arith.constant 0 : index
    %c352_288 = arith.constant 352 : index
    %614 = vector.load %arg24[%c0_287, %c352_288] : memref<6x1024xf32, #tpu.memory_space<vmem>>, vector<2x256xf32>
    %c0_289 = arith.constant 0 : index
    %c7_290 = arith.constant 7 : index
    %615 = vector.load %arg15[%c0_289, %c7_290] : memref<2x25xf32, #tpu.memory_space<vmem>>, vector<2x1xf32>
    %616 = vector.broadcast %615 : vector<2x1xf32> to vector<2x256xf32>
    %617 = arith.mulf %616, %614 : vector<2x256xf32>
    %618 = arith.addf %613, %617 : vector<2x256xf32>
    %c0_291 = arith.constant 0 : index
    %c384_292 = arith.constant 384 : index
    %619 = vector.load %arg24[%c0_291, %c384_292] : memref<6x1024xf32, #tpu.memory_space<vmem>>, vector<2x256xf32>
    %c0_293 = arith.constant 0 : index
    %c12_294 = arith.constant 12 : index
    %620 = vector.load %arg15[%c0_293, %c12_294] : memref<2x25xf32, #tpu.memory_space<vmem>>, vector<2x1xf32>
    %621 = vector.broadcast %620 : vector<2x1xf32> to vector<2x256xf32>
    %622 = arith.mulf %621, %619 : vector<2x256xf32>
    %623 = arith.addf %618, %622 : vector<2x256xf32>
    %c0_295 = arith.constant 0 : index
    %c416_296 = arith.constant 416 : index
    %624 = vector.load %arg24[%c0_295, %c416_296] : memref<6x1024xf32, #tpu.memory_space<vmem>>, vector<2x256xf32>
    %c0_297 = arith.constant 0 : index
    %c17_298 = arith.constant 17 : index
    %625 = vector.load %arg15[%c0_297, %c17_298] : memref<2x25xf32, #tpu.memory_space<vmem>>, vector<2x1xf32>
    %626 = vector.broadcast %625 : vector<2x1xf32> to vector<2x256xf32>
    %627 = arith.mulf %626, %624 : vector<2x256xf32>
    %628 = arith.addf %623, %627 : vector<2x256xf32>
    %c0_299 = arith.constant 0 : index
    %c448 = arith.constant 448 : index
    %629 = vector.load %arg24[%c0_299, %c448] : memref<6x1024xf32, #tpu.memory_space<vmem>>, vector<2x256xf32>
    %c0_300 = arith.constant 0 : index
    %c22_301 = arith.constant 22 : index
    %630 = vector.load %arg15[%c0_300, %c22_301] : memref<2x25xf32, #tpu.memory_space<vmem>>, vector<2x1xf32>
    %631 = vector.broadcast %630 : vector<2x1xf32> to vector<2x256xf32>
    %632 = arith.mulf %631, %629 : vector<2x256xf32>
    %633 = arith.addf %628, %632 : vector<2x256xf32>
    %634 = arith.addf %609, %633 : vector<2x256xf32>
    %c0_302 = arith.constant 0 : index
    %c322 = arith.constant 322 : index
    %635 = vector.load %arg24[%c0_302, %c322] : memref<6x1024xf32, #tpu.memory_space<vmem>>, vector<2x256xf32>
    %c0_303 = arith.constant 0 : index
    %c3_304 = arith.constant 3 : index
    %636 = vector.load %arg15[%c0_303, %c3_304] : memref<2x25xf32, #tpu.memory_space<vmem>>, vector<2x1xf32>
    %637 = vector.broadcast %636 : vector<2x1xf32> to vector<2x256xf32>
    %638 = arith.mulf %637, %635 : vector<2x256xf32>
    %c0_305 = arith.constant 0 : index
    %c354_306 = arith.constant 354 : index
    %639 = vector.load %arg24[%c0_305, %c354_306] : memref<6x1024xf32, #tpu.memory_space<vmem>>, vector<2x256xf32>
    %c0_307 = arith.constant 0 : index
    %c8_308 = arith.constant 8 : index
    %640 = vector.load %arg15[%c0_307, %c8_308] : memref<2x25xf32, #tpu.memory_space<vmem>>, vector<2x1xf32>
    %641 = vector.broadcast %640 : vector<2x1xf32> to vector<2x256xf32>
    %642 = arith.mulf %641, %639 : vector<2x256xf32>
    %643 = arith.addf %638, %642 : vector<2x256xf32>
    %c0_309 = arith.constant 0 : index
    %c386_310 = arith.constant 386 : index
    %644 = vector.load %arg24[%c0_309, %c386_310] : memref<6x1024xf32, #tpu.memory_space<vmem>>, vector<2x256xf32>
    %c0_311 = arith.constant 0 : index
    %c13_312 = arith.constant 13 : index
    %645 = vector.load %arg15[%c0_311, %c13_312] : memref<2x25xf32, #tpu.memory_space<vmem>>, vector<2x1xf32>
    %646 = vector.broadcast %645 : vector<2x1xf32> to vector<2x256xf32>
    %647 = arith.mulf %646, %644 : vector<2x256xf32>
    %648 = arith.addf %643, %647 : vector<2x256xf32>
    %c0_313 = arith.constant 0 : index
    %c418_314 = arith.constant 418 : index
    %649 = vector.load %arg24[%c0_313, %c418_314] : memref<6x1024xf32, #tpu.memory_space<vmem>>, vector<2x256xf32>
    %c0_315 = arith.constant 0 : index
    %c18_316 = arith.constant 18 : index
    %650 = vector.load %arg15[%c0_315, %c18_316] : memref<2x25xf32, #tpu.memory_space<vmem>>, vector<2x1xf32>
    %651 = vector.broadcast %650 : vector<2x1xf32> to vector<2x256xf32>
    %652 = arith.mulf %651, %649 : vector<2x256xf32>
    %653 = arith.addf %648, %652 : vector<2x256xf32>
    %c0_317 = arith.constant 0 : index
    %c450 = arith.constant 450 : index
    %654 = vector.load %arg24[%c0_317, %c450] : memref<6x1024xf32, #tpu.memory_space<vmem>>, vector<2x256xf32>
    %c0_318 = arith.constant 0 : index
    %c23_319 = arith.constant 23 : index
    %655 = vector.load %arg15[%c0_318, %c23_319] : memref<2x25xf32, #tpu.memory_space<vmem>>, vector<2x1xf32>
    %656 = vector.broadcast %655 : vector<2x1xf32> to vector<2x256xf32>
    %657 = arith.mulf %656, %654 : vector<2x256xf32>
    %658 = arith.addf %653, %657 : vector<2x256xf32>
    %c14_i32_320 = arith.constant 14 : i32
    %659 = vector.broadcast %c14_i32_320 : i32 to vector<1x256xi32>
    %660 = arith.cmpi slt, %43, %659 : vector<1x256xi32>
    %cst_321 = arith.constant 1.000000e+00 : f32
    %cst_322 = arith.constant 0.000000e+00 : f32
    %661 = vector.broadcast %cst_321 : f32 to vector<1x256xf32>
    %662 = vector.broadcast %cst_322 : f32 to vector<1x256xf32>
    %663 = arith.select %660, %661, %662 : vector<1x256xi1>, vector<1x256xf32>
    %664 = vector.shape_cast %663 : vector<1x256xf32> to vector<1x256xf32>
    %665 = vector.broadcast %664 : vector<1x256xf32> to vector<2x256xf32>
    %666 = arith.mulf %665, %658 : vector<2x256xf32>
    %667 = arith.addf %634, %666 : vector<2x256xf32>
    %c0_323 = arith.constant 0 : index
    %c324 = arith.constant 324 : index
    %668 = vector.load %arg24[%c0_323, %c324] : memref<6x1024xf32, #tpu.memory_space<vmem>>, vector<2x256xf32>
    %c0_324 = arith.constant 0 : index
    %c4_325 = arith.constant 4 : index
    %669 = vector.load %arg15[%c0_324, %c4_325] : memref<2x25xf32, #tpu.memory_space<vmem>>, vector<2x1xf32>
    %670 = vector.broadcast %669 : vector<2x1xf32> to vector<2x256xf32>
    %671 = arith.mulf %670, %668 : vector<2x256xf32>
    %c0_326 = arith.constant 0 : index
    %c356 = arith.constant 356 : index
    %672 = vector.load %arg24[%c0_326, %c356] : memref<6x1024xf32, #tpu.memory_space<vmem>>, vector<2x256xf32>
    %c0_327 = arith.constant 0 : index
    %c9_328 = arith.constant 9 : index
    %673 = vector.load %arg15[%c0_327, %c9_328] : memref<2x25xf32, #tpu.memory_space<vmem>>, vector<2x1xf32>
    %674 = vector.broadcast %673 : vector<2x1xf32> to vector<2x256xf32>
    %675 = arith.mulf %674, %672 : vector<2x256xf32>
    %676 = arith.addf %671, %675 : vector<2x256xf32>
    %c0_329 = arith.constant 0 : index
    %c388 = arith.constant 388 : index
    %677 = vector.load %arg24[%c0_329, %c388] : memref<6x1024xf32, #tpu.memory_space<vmem>>, vector<2x256xf32>
    %c0_330 = arith.constant 0 : index
    %c14_331 = arith.constant 14 : index
    %678 = vector.load %arg15[%c0_330, %c14_331] : memref<2x25xf32, #tpu.memory_space<vmem>>, vector<2x1xf32>
    %679 = vector.broadcast %678 : vector<2x1xf32> to vector<2x256xf32>
    %680 = arith.mulf %679, %677 : vector<2x256xf32>
    %681 = arith.addf %676, %680 : vector<2x256xf32>
    %c0_332 = arith.constant 0 : index
    %c420 = arith.constant 420 : index
    %682 = vector.load %arg24[%c0_332, %c420] : memref<6x1024xf32, #tpu.memory_space<vmem>>, vector<2x256xf32>
    %c0_333 = arith.constant 0 : index
    %c19_334 = arith.constant 19 : index
    %683 = vector.load %arg15[%c0_333, %c19_334] : memref<2x25xf32, #tpu.memory_space<vmem>>, vector<2x1xf32>
    %684 = vector.broadcast %683 : vector<2x1xf32> to vector<2x256xf32>
    %685 = arith.mulf %684, %682 : vector<2x256xf32>
    %686 = arith.addf %681, %685 : vector<2x256xf32>
    %c0_335 = arith.constant 0 : index
    %c452 = arith.constant 452 : index
    %687 = vector.load %arg24[%c0_335, %c452] : memref<6x1024xf32, #tpu.memory_space<vmem>>, vector<2x256xf32>
    %c0_336 = arith.constant 0 : index
    %c24_337 = arith.constant 24 : index
    %688 = vector.load %arg15[%c0_336, %c24_337] : memref<2x25xf32, #tpu.memory_space<vmem>>, vector<2x1xf32>
    %689 = vector.broadcast %688 : vector<2x1xf32> to vector<2x256xf32>
    %690 = arith.mulf %689, %687 : vector<2x256xf32>
    %691 = arith.addf %686, %690 : vector<2x256xf32>
    %c12_i32 = arith.constant 12 : i32
    %692 = vector.broadcast %c12_i32 : i32 to vector<1x256xi32>
    %693 = arith.cmpi slt, %43, %692 : vector<1x256xi32>
    %cst_338 = arith.constant 1.000000e+00 : f32
    %cst_339 = arith.constant 0.000000e+00 : f32
    %694 = vector.broadcast %cst_338 : f32 to vector<1x256xf32>
    %695 = vector.broadcast %cst_339 : f32 to vector<1x256xf32>
    %696 = arith.select %693, %694, %695 : vector<1x256xi1>, vector<1x256xf32>
    %697 = vector.shape_cast %696 : vector<1x256xf32> to vector<1x256xf32>
    %698 = vector.broadcast %697 : vector<1x256xf32> to vector<2x256xf32>
    %699 = arith.mulf %698, %691 : vector<2x256xf32>
    %700 = arith.addf %667, %699 : vector<2x256xf32>
    %c0_340 = arith.constant 0 : index
    %c0_341 = arith.constant 0 : index
    %701 = vector.load %arg16[%c0_340, %c0_341] : memref<2x1xf32, #tpu.memory_space<vmem>>, vector<2x1xf32>
    %702 = vector.broadcast %701 : vector<2x1xf32> to vector<2x256xf32>
    %703 = arith.addf %700, %702 : vector<2x256xf32>
    %c0_342 = arith.constant 0 : index
    %c0_343 = arith.constant 0 : index
    %704 = vector.load %arg27[%c0_342, %c0_343] : memref<6x256xf32, #tpu.memory_space<vmem>>, vector<2x256xf32>
    tpu.vector_store %arg27[%c0_342, %c0_343], %703 {strides = array<i32>} : memref<6x256xf32, #tpu.memory_space<vmem>>, vector<2x256xf32>,
    %c2_344 = arith.constant 2 : index
    %c231 = arith.constant 231 : index
    %705 = vector.load %arg24[%c2_344, %c231] : memref<6x1024xf32, #tpu.memory_space<vmem>>, vector<2x256xf32>
    %c0_345 = arith.constant 0 : index
    %c0_346 = arith.constant 0 : index
    %706 = vector.load %arg17[%c0_345, %c0_346] : memref<2x49xf32, #tpu.memory_space<vmem>>, vector<2x1xf32>
    %707 = vector.broadcast %706 : vector<2x1xf32> to vector<2x256xf32>
    %708 = arith.mulf %707, %705 : vector<2x256xf32>
    %c2_347 = arith.constant 2 : index
    %c279 = arith.constant 279 : index
    %709 = vector.load %arg24[%c2_347, %c279] : memref<6x1024xf32, #tpu.memory_space<vmem>>, vector<2x256xf32>
    %c0_348 = arith.constant 0 : index
    %c7_349 = arith.constant 7 : index
    %710 = vector.load %arg17[%c0_348, %c7_349] : memref<2x49xf32, #tpu.memory_space<vmem>>, vector<2x1xf32>
    %711 = vector.broadcast %710 : vector<2x1xf32> to vector<2x256xf32>
    %712 = arith.mulf %711, %709 : vector<2x256xf32>
    %713 = arith.addf %708, %712 : vector<2x256xf32>
    %c2_350 = arith.constant 2 : index
    %c327 = arith.constant 327 : index
    %714 = vector.load %arg24[%c2_350, %c327] : memref<6x1024xf32, #tpu.memory_space<vmem>>, vector<2x256xf32>
    %c0_351 = arith.constant 0 : index
    %c14_352 = arith.constant 14 : index
    %715 = vector.load %arg17[%c0_351, %c14_352] : memref<2x49xf32, #tpu.memory_space<vmem>>, vector<2x1xf32>
    %716 = vector.broadcast %715 : vector<2x1xf32> to vector<2x256xf32>
    %717 = arith.mulf %716, %714 : vector<2x256xf32>
    %718 = arith.addf %713, %717 : vector<2x256xf32>
    %c2_353 = arith.constant 2 : index
    %c375 = arith.constant 375 : index
    %719 = vector.load %arg24[%c2_353, %c375] : memref<6x1024xf32, #tpu.memory_space<vmem>>, vector<2x256xf32>
    %c0_354 = arith.constant 0 : index
    %c21_355 = arith.constant 21 : index
    %720 = vector.load %arg17[%c0_354, %c21_355] : memref<2x49xf32, #tpu.memory_space<vmem>>, vector<2x1xf32>
    %721 = vector.broadcast %720 : vector<2x1xf32> to vector<2x256xf32>
    %722 = arith.mulf %721, %719 : vector<2x256xf32>
    %723 = arith.addf %718, %722 : vector<2x256xf32>
    %c2_356 = arith.constant 2 : index
    %c423 = arith.constant 423 : index
    %724 = vector.load %arg24[%c2_356, %c423] : memref<6x1024xf32, #tpu.memory_space<vmem>>, vector<2x256xf32>
    %c0_357 = arith.constant 0 : index
    %c28_358 = arith.constant 28 : index
    %725 = vector.load %arg17[%c0_357, %c28_358] : memref<2x49xf32, #tpu.memory_space<vmem>>, vector<2x1xf32>
    %726 = vector.broadcast %725 : vector<2x1xf32> to vector<2x256xf32>
    %727 = arith.mulf %726, %724 : vector<2x256xf32>
    %728 = arith.addf %723, %727 : vector<2x256xf32>
    %c2_359 = arith.constant 2 : index
    %c471 = arith.constant 471 : index
    %729 = vector.load %arg24[%c2_359, %c471] : memref<6x1024xf32, #tpu.memory_space<vmem>>, vector<2x256xf32>
    %c0_360 = arith.constant 0 : index
    %c35_361 = arith.constant 35 : index
    %730 = vector.load %arg17[%c0_360, %c35_361] : memref<2x49xf32, #tpu.memory_space<vmem>>, vector<2x1xf32>
    %731 = vector.broadcast %730 : vector<2x1xf32> to vector<2x256xf32>
    %732 = arith.mulf %731, %729 : vector<2x256xf32>
    %733 = arith.addf %728, %732 : vector<2x256xf32>
    %c2_362 = arith.constant 2 : index
    %c519 = arith.constant 519 : index
    %734 = vector.load %arg24[%c2_362, %c519] : memref<6x1024xf32, #tpu.memory_space<vmem>>, vector<2x256xf32>
    %c0_363 = arith.constant 0 : index
    %c42_364 = arith.constant 42 : index
    %735 = vector.load %arg17[%c0_363, %c42_364] : memref<2x49xf32, #tpu.memory_space<vmem>>, vector<2x1xf32>
    %736 = vector.broadcast %735 : vector<2x1xf32> to vector<2x256xf32>
    %737 = arith.mulf %736, %734 : vector<2x256xf32>
    %738 = arith.addf %733, %737 : vector<2x256xf32>
    %c9_i32 = arith.constant 9 : i32
    %739 = vector.broadcast %c9_i32 : i32 to vector<1x256xi32>
    %740 = arith.cmpi sge, %43, %739 : vector<1x256xi32>
    %cst_365 = arith.constant 1.000000e+00 : f32
    %cst_366 = arith.constant 0.000000e+00 : f32
    %741 = vector.broadcast %cst_365 : f32 to vector<1x256xf32>
    %742 = vector.broadcast %cst_366 : f32 to vector<1x256xf32>
    %743 = arith.select %740, %741, %742 : vector<1x256xi1>, vector<1x256xf32>
    %744 = vector.shape_cast %743 : vector<1x256xf32> to vector<1x256xf32>
    %745 = vector.broadcast %744 : vector<1x256xf32> to vector<2x256xf32>
    %746 = arith.mulf %745, %738 : vector<2x256xf32>
    %c2_367 = arith.constant 2 : index
    %c234 = arith.constant 234 : index
    %747 = vector.load %arg24[%c2_367, %c234] : memref<6x1024xf32, #tpu.memory_space<vmem>>, vector<2x256xf32>
    %c0_368 = arith.constant 0 : index
    %c1_369 = arith.constant 1 : index
    %748 = vector.load %arg17[%c0_368, %c1_369] : memref<2x49xf32, #tpu.memory_space<vmem>>, vector<2x1xf32>
    %749 = vector.broadcast %748 : vector<2x1xf32> to vector<2x256xf32>
    %750 = arith.mulf %749, %747 : vector<2x256xf32>
    %c2_370 = arith.constant 2 : index
    %c282 = arith.constant 282 : index
    %751 = vector.load %arg24[%c2_370, %c282] : memref<6x1024xf32, #tpu.memory_space<vmem>>, vector<2x256xf32>
    %c0_371 = arith.constant 0 : index
    %c8_372 = arith.constant 8 : index
    %752 = vector.load %arg17[%c0_371, %c8_372] : memref<2x49xf32, #tpu.memory_space<vmem>>, vector<2x1xf32>
    %753 = vector.broadcast %752 : vector<2x1xf32> to vector<2x256xf32>
    %754 = arith.mulf %753, %751 : vector<2x256xf32>
    %755 = arith.addf %750, %754 : vector<2x256xf32>
    %c2_373 = arith.constant 2 : index
    %c330 = arith.constant 330 : index
    %756 = vector.load %arg24[%c2_373, %c330] : memref<6x1024xf32, #tpu.memory_space<vmem>>, vector<2x256xf32>
    %c0_374 = arith.constant 0 : index
    %c15_375 = arith.constant 15 : index
    %757 = vector.load %arg17[%c0_374, %c15_375] : memref<2x49xf32, #tpu.memory_space<vmem>>, vector<2x1xf32>
    %758 = vector.broadcast %757 : vector<2x1xf32> to vector<2x256xf32>
    %759 = arith.mulf %758, %756 : vector<2x256xf32>
    %760 = arith.addf %755, %759 : vector<2x256xf32>
    %c2_376 = arith.constant 2 : index
    %c378 = arith.constant 378 : index
    %761 = vector.load %arg24[%c2_376, %c378] : memref<6x1024xf32, #tpu.memory_space<vmem>>, vector<2x256xf32>
    %c0_377 = arith.constant 0 : index
    %c22_378 = arith.constant 22 : index
    %762 = vector.load %arg17[%c0_377, %c22_378] : memref<2x49xf32, #tpu.memory_space<vmem>>, vector<2x1xf32>
    %763 = vector.broadcast %762 : vector<2x1xf32> to vector<2x256xf32>
    %764 = arith.mulf %763, %761 : vector<2x256xf32>
    %765 = arith.addf %760, %764 : vector<2x256xf32>
    %c2_379 = arith.constant 2 : index
    %c426 = arith.constant 426 : index
    %766 = vector.load %arg24[%c2_379, %c426] : memref<6x1024xf32, #tpu.memory_space<vmem>>, vector<2x256xf32>
    %c0_380 = arith.constant 0 : index
    %c29_381 = arith.constant 29 : index
    %767 = vector.load %arg17[%c0_380, %c29_381] : memref<2x49xf32, #tpu.memory_space<vmem>>, vector<2x1xf32>
    %768 = vector.broadcast %767 : vector<2x1xf32> to vector<2x256xf32>
    %769 = arith.mulf %768, %766 : vector<2x256xf32>
    %770 = arith.addf %765, %769 : vector<2x256xf32>
    %c2_382 = arith.constant 2 : index
    %c474 = arith.constant 474 : index
    %771 = vector.load %arg24[%c2_382, %c474] : memref<6x1024xf32, #tpu.memory_space<vmem>>, vector<2x256xf32>
    %c0_383 = arith.constant 0 : index
    %c36_384 = arith.constant 36 : index
    %772 = vector.load %arg17[%c0_383, %c36_384] : memref<2x49xf32, #tpu.memory_space<vmem>>, vector<2x1xf32>
    %773 = vector.broadcast %772 : vector<2x1xf32> to vector<2x256xf32>
    %774 = arith.mulf %773, %771 : vector<2x256xf32>
    %775 = arith.addf %770, %774 : vector<2x256xf32>
    %c2_385 = arith.constant 2 : index
    %c522 = arith.constant 522 : index
    %776 = vector.load %arg24[%c2_385, %c522] : memref<6x1024xf32, #tpu.memory_space<vmem>>, vector<2x256xf32>
    %c0_386 = arith.constant 0 : index
    %c43_387 = arith.constant 43 : index
    %777 = vector.load %arg17[%c0_386, %c43_387] : memref<2x49xf32, #tpu.memory_space<vmem>>, vector<2x1xf32>
    %778 = vector.broadcast %777 : vector<2x1xf32> to vector<2x256xf32>
    %779 = arith.mulf %778, %776 : vector<2x256xf32>
    %780 = arith.addf %775, %779 : vector<2x256xf32>
    %c6_i32 = arith.constant 6 : i32
    %781 = vector.broadcast %c6_i32 : i32 to vector<1x256xi32>
    %782 = arith.cmpi sge, %43, %781 : vector<1x256xi32>
    %cst_388 = arith.constant 1.000000e+00 : f32
    %cst_389 = arith.constant 0.000000e+00 : f32
    %783 = vector.broadcast %cst_388 : f32 to vector<1x256xf32>
    %784 = vector.broadcast %cst_389 : f32 to vector<1x256xf32>
    %785 = arith.select %782, %783, %784 : vector<1x256xi1>, vector<1x256xf32>
    %786 = vector.shape_cast %785 : vector<1x256xf32> to vector<1x256xf32>
    %787 = vector.broadcast %786 : vector<1x256xf32> to vector<2x256xf32>
    %788 = arith.mulf %787, %780 : vector<2x256xf32>
    %789 = arith.addf %746, %788 : vector<2x256xf32>
    %c2_390 = arith.constant 2 : index
    %c237 = arith.constant 237 : index
    %790 = vector.load %arg24[%c2_390, %c237] : memref<6x1024xf32, #tpu.memory_space<vmem>>, vector<2x256xf32>
    %c0_391 = arith.constant 0 : index
    %c2_392 = arith.constant 2 : index
    %791 = vector.load %arg17[%c0_391, %c2_392] : memref<2x49xf32, #tpu.memory_space<vmem>>, vector<2x1xf32>
    %792 = vector.broadcast %791 : vector<2x1xf32> to vector<2x256xf32>
    %793 = arith.mulf %792, %790 : vector<2x256xf32>
    %c2_393 = arith.constant 2 : index
    %c285 = arith.constant 285 : index
    %794 = vector.load %arg24[%c2_393, %c285] : memref<6x1024xf32, #tpu.memory_space<vmem>>, vector<2x256xf32>
    %c0_394 = arith.constant 0 : index
    %c9_395 = arith.constant 9 : index
    %795 = vector.load %arg17[%c0_394, %c9_395] : memref<2x49xf32, #tpu.memory_space<vmem>>, vector<2x1xf32>
    %796 = vector.broadcast %795 : vector<2x1xf32> to vector<2x256xf32>
    %797 = arith.mulf %796, %794 : vector<2x256xf32>
    %798 = arith.addf %793, %797 : vector<2x256xf32>
    %c2_396 = arith.constant 2 : index
    %c333_397 = arith.constant 333 : index
    %799 = vector.load %arg24[%c2_396, %c333_397] : memref<6x1024xf32, #tpu.memory_space<vmem>>, vector<2x256xf32>
    %c0_398 = arith.constant 0 : index
    %c16_399 = arith.constant 16 : index
    %800 = vector.load %arg17[%c0_398, %c16_399] : memref<2x49xf32, #tpu.memory_space<vmem>>, vector<2x1xf32>
    %801 = vector.broadcast %800 : vector<2x1xf32> to vector<2x256xf32>
    %802 = arith.mulf %801, %799 : vector<2x256xf32>
    %803 = arith.addf %798, %802 : vector<2x256xf32>
    %c2_400 = arith.constant 2 : index
    %c381_401 = arith.constant 381 : index
    %804 = vector.load %arg24[%c2_400, %c381_401] : memref<6x1024xf32, #tpu.memory_space<vmem>>, vector<2x256xf32>
    %c0_402 = arith.constant 0 : index
    %c23_403 = arith.constant 23 : index
    %805 = vector.load %arg17[%c0_402, %c23_403] : memref<2x49xf32, #tpu.memory_space<vmem>>, vector<2x1xf32>
    %806 = vector.broadcast %805 : vector<2x1xf32> to vector<2x256xf32>
    %807 = arith.mulf %806, %804 : vector<2x256xf32>
    %808 = arith.addf %803, %807 : vector<2x256xf32>
    %c2_404 = arith.constant 2 : index
    %c429_405 = arith.constant 429 : index
    %809 = vector.load %arg24[%c2_404, %c429_405] : memref<6x1024xf32, #tpu.memory_space<vmem>>, vector<2x256xf32>
    %c0_406 = arith.constant 0 : index
    %c30_407 = arith.constant 30 : index
    %810 = vector.load %arg17[%c0_406, %c30_407] : memref<2x49xf32, #tpu.memory_space<vmem>>, vector<2x1xf32>
    %811 = vector.broadcast %810 : vector<2x1xf32> to vector<2x256xf32>
    %812 = arith.mulf %811, %809 : vector<2x256xf32>
    %813 = arith.addf %808, %812 : vector<2x256xf32>
    %c2_408 = arith.constant 2 : index
    %c477 = arith.constant 477 : index
    %814 = vector.load %arg24[%c2_408, %c477] : memref<6x1024xf32, #tpu.memory_space<vmem>>, vector<2x256xf32>
    %c0_409 = arith.constant 0 : index
    %c37_410 = arith.constant 37 : index
    %815 = vector.load %arg17[%c0_409, %c37_410] : memref<2x49xf32, #tpu.memory_space<vmem>>, vector<2x1xf32>
    %816 = vector.broadcast %815 : vector<2x1xf32> to vector<2x256xf32>
    %817 = arith.mulf %816, %814 : vector<2x256xf32>
    %818 = arith.addf %813, %817 : vector<2x256xf32>
    %c2_411 = arith.constant 2 : index
    %c525 = arith.constant 525 : index
    %819 = vector.load %arg24[%c2_411, %c525] : memref<6x1024xf32, #tpu.memory_space<vmem>>, vector<2x256xf32>
    %c0_412 = arith.constant 0 : index
    %c44_413 = arith.constant 44 : index
    %820 = vector.load %arg17[%c0_412, %c44_413] : memref<2x49xf32, #tpu.memory_space<vmem>>, vector<2x1xf32>
    %821 = vector.broadcast %820 : vector<2x1xf32> to vector<2x256xf32>
    %822 = arith.mulf %821, %819 : vector<2x256xf32>
    %823 = arith.addf %818, %822 : vector<2x256xf32>
    %c3_i32_414 = arith.constant 3 : i32
    %824 = vector.broadcast %c3_i32_414 : i32 to vector<1x256xi32>
    %825 = arith.cmpi sge, %43, %824 : vector<1x256xi32>
    %cst_415 = arith.constant 1.000000e+00 : f32
    %cst_416 = arith.constant 0.000000e+00 : f32
    %826 = vector.broadcast %cst_415 : f32 to vector<1x256xf32>
    %827 = vector.broadcast %cst_416 : f32 to vector<1x256xf32>
    %828 = arith.select %825, %826, %827 : vector<1x256xi1>, vector<1x256xf32>
    %829 = vector.shape_cast %828 : vector<1x256xf32> to vector<1x256xf32>
    %830 = vector.broadcast %829 : vector<1x256xf32> to vector<2x256xf32>
    %831 = arith.mulf %830, %823 : vector<2x256xf32>
    %832 = arith.addf %789, %831 : vector<2x256xf32>
    %c2_417 = arith.constant 2 : index
    %c240 = arith.constant 240 : index
    %833 = vector.load %arg24[%c2_417, %c240] : memref<6x1024xf32, #tpu.memory_space<vmem>>, vector<2x256xf32>
    %c0_418 = arith.constant 0 : index
    %c3_419 = arith.constant 3 : index
    %834 = vector.load %arg17[%c0_418, %c3_419] : memref<2x49xf32, #tpu.memory_space<vmem>>, vector<2x1xf32>
    %835 = vector.broadcast %834 : vector<2x1xf32> to vector<2x256xf32>
    %836 = arith.mulf %835, %833 : vector<2x256xf32>
    %c2_420 = arith.constant 2 : index
    %c288 = arith.constant 288 : index
    %837 = vector.load %arg24[%c2_420, %c288] : memref<6x1024xf32, #tpu.memory_space<vmem>>, vector<2x256xf32>
    %c0_421 = arith.constant 0 : index
    %c10_422 = arith.constant 10 : index
    %838 = vector.load %arg17[%c0_421, %c10_422] : memref<2x49xf32, #tpu.memory_space<vmem>>, vector<2x1xf32>
    %839 = vector.broadcast %838 : vector<2x1xf32> to vector<2x256xf32>
    %840 = arith.mulf %839, %837 : vector<2x256xf32>
    %841 = arith.addf %836, %840 : vector<2x256xf32>
    %c2_423 = arith.constant 2 : index
    %c336_424 = arith.constant 336 : index
    %842 = vector.load %arg24[%c2_423, %c336_424] : memref<6x1024xf32, #tpu.memory_space<vmem>>, vector<2x256xf32>
    %c0_425 = arith.constant 0 : index
    %c17_426 = arith.constant 17 : index
    %843 = vector.load %arg17[%c0_425, %c17_426] : memref<2x49xf32, #tpu.memory_space<vmem>>, vector<2x1xf32>
    %844 = vector.broadcast %843 : vector<2x1xf32> to vector<2x256xf32>
    %845 = arith.mulf %844, %842 : vector<2x256xf32>
    %846 = arith.addf %841, %845 : vector<2x256xf32>
    %c2_427 = arith.constant 2 : index
    %c384_428 = arith.constant 384 : index
    %847 = vector.load %arg24[%c2_427, %c384_428] : memref<6x1024xf32, #tpu.memory_space<vmem>>, vector<2x256xf32>
    %c0_429 = arith.constant 0 : index
    %c24_430 = arith.constant 24 : index
    %848 = vector.load %arg17[%c0_429, %c24_430] : memref<2x49xf32, #tpu.memory_space<vmem>>, vector<2x1xf32>
    %849 = vector.broadcast %848 : vector<2x1xf32> to vector<2x256xf32>
    %850 = arith.mulf %849, %847 : vector<2x256xf32>
    %851 = arith.addf %846, %850 : vector<2x256xf32>
    %c2_431 = arith.constant 2 : index
    %c432_432 = arith.constant 432 : index
    %852 = vector.load %arg24[%c2_431, %c432_432] : memref<6x1024xf32, #tpu.memory_space<vmem>>, vector<2x256xf32>
    %c0_433 = arith.constant 0 : index
    %c31_434 = arith.constant 31 : index
    %853 = vector.load %arg17[%c0_433, %c31_434] : memref<2x49xf32, #tpu.memory_space<vmem>>, vector<2x1xf32>
    %854 = vector.broadcast %853 : vector<2x1xf32> to vector<2x256xf32>
    %855 = arith.mulf %854, %852 : vector<2x256xf32>
    %856 = arith.addf %851, %855 : vector<2x256xf32>
    %c2_435 = arith.constant 2 : index
    %c480 = arith.constant 480 : index
    %857 = vector.load %arg24[%c2_435, %c480] : memref<6x1024xf32, #tpu.memory_space<vmem>>, vector<2x256xf32>
    %c0_436 = arith.constant 0 : index
    %c38_437 = arith.constant 38 : index
    %858 = vector.load %arg17[%c0_436, %c38_437] : memref<2x49xf32, #tpu.memory_space<vmem>>, vector<2x1xf32>
    %859 = vector.broadcast %858 : vector<2x1xf32> to vector<2x256xf32>
    %860 = arith.mulf %859, %857 : vector<2x256xf32>
    %861 = arith.addf %856, %860 : vector<2x256xf32>
    %c2_438 = arith.constant 2 : index
    %c528 = arith.constant 528 : index
    %862 = vector.load %arg24[%c2_438, %c528] : memref<6x1024xf32, #tpu.memory_space<vmem>>, vector<2x256xf32>
    %c0_439 = arith.constant 0 : index
    %c45_440 = arith.constant 45 : index
    %863 = vector.load %arg17[%c0_439, %c45_440] : memref<2x49xf32, #tpu.memory_space<vmem>>, vector<2x1xf32>
    %864 = vector.broadcast %863 : vector<2x1xf32> to vector<2x256xf32>
    %865 = arith.mulf %864, %862 : vector<2x256xf32>
    %866 = arith.addf %861, %865 : vector<2x256xf32>
    %867 = arith.addf %832, %866 : vector<2x256xf32>
    %c2_441 = arith.constant 2 : index
    %c243 = arith.constant 243 : index
    %868 = vector.load %arg24[%c2_441, %c243] : memref<6x1024xf32, #tpu.memory_space<vmem>>, vector<2x256xf32>
    %c0_442 = arith.constant 0 : index
    %c4_443 = arith.constant 4 : index
    %869 = vector.load %arg17[%c0_442, %c4_443] : memref<2x49xf32, #tpu.memory_space<vmem>>, vector<2x1xf32>
    %870 = vector.broadcast %869 : vector<2x1xf32> to vector<2x256xf32>
    %871 = arith.mulf %870, %868 : vector<2x256xf32>
    %c2_444 = arith.constant 2 : index
    %c291 = arith.constant 291 : index
    %872 = vector.load %arg24[%c2_444, %c291] : memref<6x1024xf32, #tpu.memory_space<vmem>>, vector<2x256xf32>
    %c0_445 = arith.constant 0 : index
    %c11_446 = arith.constant 11 : index
    %873 = vector.load %arg17[%c0_445, %c11_446] : memref<2x49xf32, #tpu.memory_space<vmem>>, vector<2x1xf32>
    %874 = vector.broadcast %873 : vector<2x1xf32> to vector<2x256xf32>
    %875 = arith.mulf %874, %872 : vector<2x256xf32>
    %876 = arith.addf %871, %875 : vector<2x256xf32>
    %c2_447 = arith.constant 2 : index
    %c339_448 = arith.constant 339 : index
    %877 = vector.load %arg24[%c2_447, %c339_448] : memref<6x1024xf32, #tpu.memory_space<vmem>>, vector<2x256xf32>
    %c0_449 = arith.constant 0 : index
    %c18_450 = arith.constant 18 : index
    %878 = vector.load %arg17[%c0_449, %c18_450] : memref<2x49xf32, #tpu.memory_space<vmem>>, vector<2x1xf32>
    %879 = vector.broadcast %878 : vector<2x1xf32> to vector<2x256xf32>
    %880 = arith.mulf %879, %877 : vector<2x256xf32>
    %881 = arith.addf %876, %880 : vector<2x256xf32>
    %c2_451 = arith.constant 2 : index
    %c387_452 = arith.constant 387 : index
    %882 = vector.load %arg24[%c2_451, %c387_452] : memref<6x1024xf32, #tpu.memory_space<vmem>>, vector<2x256xf32>
    %c0_453 = arith.constant 0 : index
    %c25_454 = arith.constant 25 : index
    %883 = vector.load %arg17[%c0_453, %c25_454] : memref<2x49xf32, #tpu.memory_space<vmem>>, vector<2x1xf32>
    %884 = vector.broadcast %883 : vector<2x1xf32> to vector<2x256xf32>
    %885 = arith.mulf %884, %882 : vector<2x256xf32>
    %886 = arith.addf %881, %885 : vector<2x256xf32>
    %c2_455 = arith.constant 2 : index
    %c435_456 = arith.constant 435 : index
    %887 = vector.load %arg24[%c2_455, %c435_456] : memref<6x1024xf32, #tpu.memory_space<vmem>>, vector<2x256xf32>
    %c0_457 = arith.constant 0 : index
    %c32_458 = arith.constant 32 : index
    %888 = vector.load %arg17[%c0_457, %c32_458] : memref<2x49xf32, #tpu.memory_space<vmem>>, vector<2x1xf32>
    %889 = vector.broadcast %888 : vector<2x1xf32> to vector<2x256xf32>
    %890 = arith.mulf %889, %887 : vector<2x256xf32>
    %891 = arith.addf %886, %890 : vector<2x256xf32>
    %c2_459 = arith.constant 2 : index
    %c483 = arith.constant 483 : index
    %892 = vector.load %arg24[%c2_459, %c483] : memref<6x1024xf32, #tpu.memory_space<vmem>>, vector<2x256xf32>
    %c0_460 = arith.constant 0 : index
    %c39_461 = arith.constant 39 : index
    %893 = vector.load %arg17[%c0_460, %c39_461] : memref<2x49xf32, #tpu.memory_space<vmem>>, vector<2x1xf32>
    %894 = vector.broadcast %893 : vector<2x1xf32> to vector<2x256xf32>
    %895 = arith.mulf %894, %892 : vector<2x256xf32>
    %896 = arith.addf %891, %895 : vector<2x256xf32>
    %c2_462 = arith.constant 2 : index
    %c531 = arith.constant 531 : index
    %897 = vector.load %arg24[%c2_462, %c531] : memref<6x1024xf32, #tpu.memory_space<vmem>>, vector<2x256xf32>
    %c0_463 = arith.constant 0 : index
    %c46_464 = arith.constant 46 : index
    %898 = vector.load %arg17[%c0_463, %c46_464] : memref<2x49xf32, #tpu.memory_space<vmem>>, vector<2x1xf32>
    %899 = vector.broadcast %898 : vector<2x1xf32> to vector<2x256xf32>
    %900 = arith.mulf %899, %897 : vector<2x256xf32>
    %901 = arith.addf %896, %900 : vector<2x256xf32>
    %c13_i32_465 = arith.constant 13 : i32
    %902 = vector.broadcast %c13_i32_465 : i32 to vector<1x256xi32>
    %903 = arith.cmpi slt, %43, %902 : vector<1x256xi32>
    %cst_466 = arith.constant 1.000000e+00 : f32
    %cst_467 = arith.constant 0.000000e+00 : f32
    %904 = vector.broadcast %cst_466 : f32 to vector<1x256xf32>
    %905 = vector.broadcast %cst_467 : f32 to vector<1x256xf32>
    %906 = arith.select %903, %904, %905 : vector<1x256xi1>, vector<1x256xf32>
    %907 = vector.shape_cast %906 : vector<1x256xf32> to vector<1x256xf32>
    %908 = vector.broadcast %907 : vector<1x256xf32> to vector<2x256xf32>
    %909 = arith.mulf %908, %901 : vector<2x256xf32>
    %910 = arith.addf %867, %909 : vector<2x256xf32>
    %c2_468 = arith.constant 2 : index
    %c246 = arith.constant 246 : index
    %911 = vector.load %arg24[%c2_468, %c246] : memref<6x1024xf32, #tpu.memory_space<vmem>>, vector<2x256xf32>
    %c0_469 = arith.constant 0 : index
    %c5_470 = arith.constant 5 : index
    %912 = vector.load %arg17[%c0_469, %c5_470] : memref<2x49xf32, #tpu.memory_space<vmem>>, vector<2x1xf32>
    %913 = vector.broadcast %912 : vector<2x1xf32> to vector<2x256xf32>
    %914 = arith.mulf %913, %911 : vector<2x256xf32>
    %c2_471 = arith.constant 2 : index
    %c294 = arith.constant 294 : index
    %915 = vector.load %arg24[%c2_471, %c294] : memref<6x1024xf32, #tpu.memory_space<vmem>>, vector<2x256xf32>
    %c0_472 = arith.constant 0 : index
    %c12_473 = arith.constant 12 : index
    %916 = vector.load %arg17[%c0_472, %c12_473] : memref<2x49xf32, #tpu.memory_space<vmem>>, vector<2x1xf32>
    %917 = vector.broadcast %916 : vector<2x1xf32> to vector<2x256xf32>
    %918 = arith.mulf %917, %915 : vector<2x256xf32>
    %919 = arith.addf %914, %918 : vector<2x256xf32>
    %c2_474 = arith.constant 2 : index
    %c342 = arith.constant 342 : index
    %920 = vector.load %arg24[%c2_474, %c342] : memref<6x1024xf32, #tpu.memory_space<vmem>>, vector<2x256xf32>
    %c0_475 = arith.constant 0 : index
    %c19_476 = arith.constant 19 : index
    %921 = vector.load %arg17[%c0_475, %c19_476] : memref<2x49xf32, #tpu.memory_space<vmem>>, vector<2x1xf32>
    %922 = vector.broadcast %921 : vector<2x1xf32> to vector<2x256xf32>
    %923 = arith.mulf %922, %920 : vector<2x256xf32>
    %924 = arith.addf %919, %923 : vector<2x256xf32>
    %c2_477 = arith.constant 2 : index
    %c390 = arith.constant 390 : index
    %925 = vector.load %arg24[%c2_477, %c390] : memref<6x1024xf32, #tpu.memory_space<vmem>>, vector<2x256xf32>
    %c0_478 = arith.constant 0 : index
    %c26_479 = arith.constant 26 : index
    %926 = vector.load %arg17[%c0_478, %c26_479] : memref<2x49xf32, #tpu.memory_space<vmem>>, vector<2x1xf32>
    %927 = vector.broadcast %926 : vector<2x1xf32> to vector<2x256xf32>
    %928 = arith.mulf %927, %925 : vector<2x256xf32>
    %929 = arith.addf %924, %928 : vector<2x256xf32>
    %c2_480 = arith.constant 2 : index
    %c438 = arith.constant 438 : index
    %930 = vector.load %arg24[%c2_480, %c438] : memref<6x1024xf32, #tpu.memory_space<vmem>>, vector<2x256xf32>
    %c0_481 = arith.constant 0 : index
    %c33_482 = arith.constant 33 : index
    %931 = vector.load %arg17[%c0_481, %c33_482] : memref<2x49xf32, #tpu.memory_space<vmem>>, vector<2x1xf32>
    %932 = vector.broadcast %931 : vector<2x1xf32> to vector<2x256xf32>
    %933 = arith.mulf %932, %930 : vector<2x256xf32>
    %934 = arith.addf %929, %933 : vector<2x256xf32>
    %c2_483 = arith.constant 2 : index
    %c486 = arith.constant 486 : index
    %935 = vector.load %arg24[%c2_483, %c486] : memref<6x1024xf32, #tpu.memory_space<vmem>>, vector<2x256xf32>
    %c0_484 = arith.constant 0 : index
    %c40_485 = arith.constant 40 : index
    %936 = vector.load %arg17[%c0_484, %c40_485] : memref<2x49xf32, #tpu.memory_space<vmem>>, vector<2x1xf32>
    %937 = vector.broadcast %936 : vector<2x1xf32> to vector<2x256xf32>
    %938 = arith.mulf %937, %935 : vector<2x256xf32>
    %939 = arith.addf %934, %938 : vector<2x256xf32>
    %c2_486 = arith.constant 2 : index
    %c534 = arith.constant 534 : index
    %940 = vector.load %arg24[%c2_486, %c534] : memref<6x1024xf32, #tpu.memory_space<vmem>>, vector<2x256xf32>
    %c0_487 = arith.constant 0 : index
    %c47_488 = arith.constant 47 : index
    %941 = vector.load %arg17[%c0_487, %c47_488] : memref<2x49xf32, #tpu.memory_space<vmem>>, vector<2x1xf32>
    %942 = vector.broadcast %941 : vector<2x1xf32> to vector<2x256xf32>
    %943 = arith.mulf %942, %940 : vector<2x256xf32>
    %944 = arith.addf %939, %943 : vector<2x256xf32>
    %c10_i32 = arith.constant 10 : i32
    %945 = vector.broadcast %c10_i32 : i32 to vector<1x256xi32>
    %946 = arith.cmpi slt, %43, %945 : vector<1x256xi32>
    %cst_489 = arith.constant 1.000000e+00 : f32
    %cst_490 = arith.constant 0.000000e+00 : f32
    %947 = vector.broadcast %cst_489 : f32 to vector<1x256xf32>
    %948 = vector.broadcast %cst_490 : f32 to vector<1x256xf32>
    %949 = arith.select %946, %947, %948 : vector<1x256xi1>, vector<1x256xf32>
    %950 = vector.shape_cast %949 : vector<1x256xf32> to vector<1x256xf32>
    %951 = vector.broadcast %950 : vector<1x256xf32> to vector<2x256xf32>
    %952 = arith.mulf %951, %944 : vector<2x256xf32>
    %953 = arith.addf %910, %952 : vector<2x256xf32>
    %c2_491 = arith.constant 2 : index
    %c249 = arith.constant 249 : index
    %954 = vector.load %arg24[%c2_491, %c249] : memref<6x1024xf32, #tpu.memory_space<vmem>>, vector<2x256xf32>
    %c0_492 = arith.constant 0 : index
    %c6_493 = arith.constant 6 : index
    %955 = vector.load %arg17[%c0_492, %c6_493] : memref<2x49xf32, #tpu.memory_space<vmem>>, vector<2x1xf32>
    %956 = vector.broadcast %955 : vector<2x1xf32> to vector<2x256xf32>
    %957 = arith.mulf %956, %954 : vector<2x256xf32>
    %c2_494 = arith.constant 2 : index
    %c297 = arith.constant 297 : index
    %958 = vector.load %arg24[%c2_494, %c297] : memref<6x1024xf32, #tpu.memory_space<vmem>>, vector<2x256xf32>
    %c0_495 = arith.constant 0 : index
    %c13_496 = arith.constant 13 : index
    %959 = vector.load %arg17[%c0_495, %c13_496] : memref<2x49xf32, #tpu.memory_space<vmem>>, vector<2x1xf32>
    %960 = vector.broadcast %959 : vector<2x1xf32> to vector<2x256xf32>
    %961 = arith.mulf %960, %958 : vector<2x256xf32>
    %962 = arith.addf %957, %961 : vector<2x256xf32>
    %c2_497 = arith.constant 2 : index
    %c345 = arith.constant 345 : index
    %963 = vector.load %arg24[%c2_497, %c345] : memref<6x1024xf32, #tpu.memory_space<vmem>>, vector<2x256xf32>
    %c0_498 = arith.constant 0 : index
    %c20_499 = arith.constant 20 : index
    %964 = vector.load %arg17[%c0_498, %c20_499] : memref<2x49xf32, #tpu.memory_space<vmem>>, vector<2x1xf32>
    %965 = vector.broadcast %964 : vector<2x1xf32> to vector<2x256xf32>
    %966 = arith.mulf %965, %963 : vector<2x256xf32>
    %967 = arith.addf %962, %966 : vector<2x256xf32>
    %c2_500 = arith.constant 2 : index
    %c393 = arith.constant 393 : index
    %968 = vector.load %arg24[%c2_500, %c393] : memref<6x1024xf32, #tpu.memory_space<vmem>>, vector<2x256xf32>
    %c0_501 = arith.constant 0 : index
    %c27_502 = arith.constant 27 : index
    %969 = vector.load %arg17[%c0_501, %c27_502] : memref<2x49xf32, #tpu.memory_space<vmem>>, vector<2x1xf32>
    %970 = vector.broadcast %969 : vector<2x1xf32> to vector<2x256xf32>
    %971 = arith.mulf %970, %968 : vector<2x256xf32>
    %972 = arith.addf %967, %971 : vector<2x256xf32>
    %c2_503 = arith.constant 2 : index
    %c441 = arith.constant 441 : index
    %973 = vector.load %arg24[%c2_503, %c441] : memref<6x1024xf32, #tpu.memory_space<vmem>>, vector<2x256xf32>
    %c0_504 = arith.constant 0 : index
    %c34_505 = arith.constant 34 : index
    %974 = vector.load %arg17[%c0_504, %c34_505] : memref<2x49xf32, #tpu.memory_space<vmem>>, vector<2x1xf32>
    %975 = vector.broadcast %974 : vector<2x1xf32> to vector<2x256xf32>
    %976 = arith.mulf %975, %973 : vector<2x256xf32>
    %977 = arith.addf %972, %976 : vector<2x256xf32>
    %c2_506 = arith.constant 2 : index
    %c489 = arith.constant 489 : index
    %978 = vector.load %arg24[%c2_506, %c489] : memref<6x1024xf32, #tpu.memory_space<vmem>>, vector<2x256xf32>
    %c0_507 = arith.constant 0 : index
    %c41_508 = arith.constant 41 : index
    %979 = vector.load %arg17[%c0_507, %c41_508] : memref<2x49xf32, #tpu.memory_space<vmem>>, vector<2x1xf32>
    %980 = vector.broadcast %979 : vector<2x1xf32> to vector<2x256xf32>
    %981 = arith.mulf %980, %978 : vector<2x256xf32>
    %982 = arith.addf %977, %981 : vector<2x256xf32>
    %c2_509 = arith.constant 2 : index
    %c537 = arith.constant 537 : index
    %983 = vector.load %arg24[%c2_509, %c537] : memref<6x1024xf32, #tpu.memory_space<vmem>>, vector<2x256xf32>
    %c0_510 = arith.constant 0 : index
    %c48_511 = arith.constant 48 : index
    %984 = vector.load %arg17[%c0_510, %c48_511] : memref<2x49xf32, #tpu.memory_space<vmem>>, vector<2x1xf32>
    %985 = vector.broadcast %984 : vector<2x1xf32> to vector<2x256xf32>
    %986 = arith.mulf %985, %983 : vector<2x256xf32>
    %987 = arith.addf %982, %986 : vector<2x256xf32>
    %c7_i32 = arith.constant 7 : i32
    %988 = vector.broadcast %c7_i32 : i32 to vector<1x256xi32>
    %989 = arith.cmpi slt, %43, %988 : vector<1x256xi32>
    %cst_512 = arith.constant 1.000000e+00 : f32
    %cst_513 = arith.constant 0.000000e+00 : f32
    %990 = vector.broadcast %cst_512 : f32 to vector<1x256xf32>
    %991 = vector.broadcast %cst_513 : f32 to vector<1x256xf32>
    %992 = arith.select %989, %990, %991 : vector<1x256xi1>, vector<1x256xf32>
    %993 = vector.shape_cast %992 : vector<1x256xf32> to vector<1x256xf32>
    %994 = vector.broadcast %993 : vector<1x256xf32> to vector<2x256xf32>
    %995 = arith.mulf %994, %987 : vector<2x256xf32>
    %996 = arith.addf %953, %995 : vector<2x256xf32>
    %c0_514 = arith.constant 0 : index
    %c0_515 = arith.constant 0 : index
    %997 = vector.load %arg18[%c0_514, %c0_515] : memref<2x1xf32, #tpu.memory_space<vmem>>, vector<2x1xf32>
    %998 = vector.broadcast %997 : vector<2x1xf32> to vector<2x256xf32>
    %999 = arith.addf %996, %998 : vector<2x256xf32>
    %c2_516 = arith.constant 2 : index
    %c0_517 = arith.constant 0 : index
    %1000 = vector.load %arg27[%c2_516, %c0_517] : memref<6x256xf32, #tpu.memory_space<vmem>>, vector<2x256xf32>
    tpu.vector_store %arg27[%c2_516, %c0_517], %999 {strides = array<i32>} : memref<6x256xf32, #tpu.memory_space<vmem>>, vector<2x256xf32>,
    %c4_518 = arith.constant 4 : index
    %c180 = arith.constant 180 : index
    %1001 = vector.load %arg24[%c4_518, %c180] : memref<6x1024xf32, #tpu.memory_space<vmem>>, vector<2x256xf32>
    %c0_519 = arith.constant 0 : index
    %c10_520 = arith.constant 10 : index
    %1002 = vector.load %arg19[%c0_519, %c10_520] : memref<2x81xf32, #tpu.memory_space<vmem>>, vector<2x1xf32>
    %1003 = vector.broadcast %1002 : vector<2x1xf32> to vector<2x256xf32>
    %1004 = arith.mulf %1003, %1001 : vector<2x256xf32>
    %c4_521 = arith.constant 4 : index
    %c244 = arith.constant 244 : index
    %1005 = vector.load %arg24[%c4_521, %c244] : memref<6x1024xf32, #tpu.memory_space<vmem>>, vector<2x256xf32>
    %c0_522 = arith.constant 0 : index
    %c19_523 = arith.constant 19 : index
    %1006 = vector.load %arg19[%c0_522, %c19_523] : memref<2x81xf32, #tpu.memory_space<vmem>>, vector<2x1xf32>
    %1007 = vector.broadcast %1006 : vector<2x1xf32> to vector<2x256xf32>
    %1008 = arith.mulf %1007, %1005 : vector<2x256xf32>
    %1009 = arith.addf %1004, %1008 : vector<2x256xf32>
    %c4_524 = arith.constant 4 : index
    %c308 = arith.constant 308 : index
    %1010 = vector.load %arg24[%c4_524, %c308] : memref<6x1024xf32, #tpu.memory_space<vmem>>, vector<2x256xf32>
    %c0_525 = arith.constant 0 : index
    %c28_526 = arith.constant 28 : index
    %1011 = vector.load %arg19[%c0_525, %c28_526] : memref<2x81xf32, #tpu.memory_space<vmem>>, vector<2x1xf32>
    %1012 = vector.broadcast %1011 : vector<2x1xf32> to vector<2x256xf32>
    %1013 = arith.mulf %1012, %1010 : vector<2x256xf32>
    %1014 = arith.addf %1009, %1013 : vector<2x256xf32>
    %c4_527 = arith.constant 4 : index
    %c372 = arith.constant 372 : index
    %1015 = vector.load %arg24[%c4_527, %c372] : memref<6x1024xf32, #tpu.memory_space<vmem>>, vector<2x256xf32>
    %c0_528 = arith.constant 0 : index
    %c37_529 = arith.constant 37 : index
    %1016 = vector.load %arg19[%c0_528, %c37_529] : memref<2x81xf32, #tpu.memory_space<vmem>>, vector<2x1xf32>
    %1017 = vector.broadcast %1016 : vector<2x1xf32> to vector<2x256xf32>
    %1018 = arith.mulf %1017, %1015 : vector<2x256xf32>
    %1019 = arith.addf %1014, %1018 : vector<2x256xf32>
    %c4_530 = arith.constant 4 : index
    %c436 = arith.constant 436 : index
    %1020 = vector.load %arg24[%c4_530, %c436] : memref<6x1024xf32, #tpu.memory_space<vmem>>, vector<2x256xf32>
    %c0_531 = arith.constant 0 : index
    %c46_532 = arith.constant 46 : index
    %1021 = vector.load %arg19[%c0_531, %c46_532] : memref<2x81xf32, #tpu.memory_space<vmem>>, vector<2x1xf32>
    %1022 = vector.broadcast %1021 : vector<2x1xf32> to vector<2x256xf32>
    %1023 = arith.mulf %1022, %1020 : vector<2x256xf32>
    %1024 = arith.addf %1019, %1023 : vector<2x256xf32>
    %c4_533 = arith.constant 4 : index
    %c500 = arith.constant 500 : index
    %1025 = vector.load %arg24[%c4_533, %c500] : memref<6x1024xf32, #tpu.memory_space<vmem>>, vector<2x256xf32>
    %c0_534 = arith.constant 0 : index
    %c55 = arith.constant 55 : index
    %1026 = vector.load %arg19[%c0_534, %c55] : memref<2x81xf32, #tpu.memory_space<vmem>>, vector<2x1xf32>
    %1027 = vector.broadcast %1026 : vector<2x1xf32> to vector<2x256xf32>
    %1028 = arith.mulf %1027, %1025 : vector<2x256xf32>
    %1029 = arith.addf %1024, %1028 : vector<2x256xf32>
    %c4_535 = arith.constant 4 : index
    %c564 = arith.constant 564 : index
    %1030 = vector.load %arg24[%c4_535, %c564] : memref<6x1024xf32, #tpu.memory_space<vmem>>, vector<2x256xf32>
    %c0_536 = arith.constant 0 : index
    %c64 = arith.constant 64 : index
    %1031 = vector.load %arg19[%c0_536, %c64] : memref<2x81xf32, #tpu.memory_space<vmem>>, vector<2x1xf32>
    %1032 = vector.broadcast %1031 : vector<2x1xf32> to vector<2x256xf32>
    %1033 = arith.mulf %1032, %1030 : vector<2x256xf32>
    %1034 = arith.addf %1029, %1033 : vector<2x256xf32>
    %c12_i32_537 = arith.constant 12 : i32
    %1035 = vector.broadcast %c12_i32_537 : i32 to vector<1x256xi32>
    %1036 = arith.cmpi sge, %43, %1035 : vector<1x256xi32>
    %cst_538 = arith.constant 1.000000e+00 : f32
    %cst_539 = arith.constant 0.000000e+00 : f32
    %1037 = vector.broadcast %cst_538 : f32 to vector<1x256xf32>
    %1038 = vector.broadcast %cst_539 : f32 to vector<1x256xf32>
    %1039 = arith.select %1036, %1037, %1038 : vector<1x256xi1>, vector<1x256xf32>
    %1040 = vector.shape_cast %1039 : vector<1x256xf32> to vector<1x256xf32>
    %1041 = vector.broadcast %1040 : vector<1x256xf32> to vector<2x256xf32>
    %1042 = arith.mulf %1041, %1034 : vector<2x256xf32>
    %c4_540 = arith.constant 4 : index
    %c184 = arith.constant 184 : index
    %1043 = vector.load %arg24[%c4_540, %c184] : memref<6x1024xf32, #tpu.memory_space<vmem>>, vector<2x256xf32>
    %c0_541 = arith.constant 0 : index
    %c11_542 = arith.constant 11 : index
    %1044 = vector.load %arg19[%c0_541, %c11_542] : memref<2x81xf32, #tpu.memory_space<vmem>>, vector<2x1xf32>
    %1045 = vector.broadcast %1044 : vector<2x1xf32> to vector<2x256xf32>
    %1046 = arith.mulf %1045, %1043 : vector<2x256xf32>
    %c4_543 = arith.constant 4 : index
    %c248 = arith.constant 248 : index
    %1047 = vector.load %arg24[%c4_543, %c248] : memref<6x1024xf32, #tpu.memory_space<vmem>>, vector<2x256xf32>
    %c0_544 = arith.constant 0 : index
    %c20_545 = arith.constant 20 : index
    %1048 = vector.load %arg19[%c0_544, %c20_545] : memref<2x81xf32, #tpu.memory_space<vmem>>, vector<2x1xf32>
    %1049 = vector.broadcast %1048 : vector<2x1xf32> to vector<2x256xf32>
    %1050 = arith.mulf %1049, %1047 : vector<2x256xf32>
    %1051 = arith.addf %1046, %1050 : vector<2x256xf32>
    %c4_546 = arith.constant 4 : index
    %c312 = arith.constant 312 : index
    %1052 = vector.load %arg24[%c4_546, %c312] : memref<6x1024xf32, #tpu.memory_space<vmem>>, vector<2x256xf32>
    %c0_547 = arith.constant 0 : index
    %c29_548 = arith.constant 29 : index
    %1053 = vector.load %arg19[%c0_547, %c29_548] : memref<2x81xf32, #tpu.memory_space<vmem>>, vector<2x1xf32>
    %1054 = vector.broadcast %1053 : vector<2x1xf32> to vector<2x256xf32>
    %1055 = arith.mulf %1054, %1052 : vector<2x256xf32>
    %1056 = arith.addf %1051, %1055 : vector<2x256xf32>
    %c4_549 = arith.constant 4 : index
    %c376 = arith.constant 376 : index
    %1057 = vector.load %arg24[%c4_549, %c376] : memref<6x1024xf32, #tpu.memory_space<vmem>>, vector<2x256xf32>
    %c0_550 = arith.constant 0 : index
    %c38_551 = arith.constant 38 : index
    %1058 = vector.load %arg19[%c0_550, %c38_551] : memref<2x81xf32, #tpu.memory_space<vmem>>, vector<2x1xf32>
    %1059 = vector.broadcast %1058 : vector<2x1xf32> to vector<2x256xf32>
    %1060 = arith.mulf %1059, %1057 : vector<2x256xf32>
    %1061 = arith.addf %1056, %1060 : vector<2x256xf32>
    %c4_552 = arith.constant 4 : index
    %c440 = arith.constant 440 : index
    %1062 = vector.load %arg24[%c4_552, %c440] : memref<6x1024xf32, #tpu.memory_space<vmem>>, vector<2x256xf32>
    %c0_553 = arith.constant 0 : index
    %c47_554 = arith.constant 47 : index
    %1063 = vector.load %arg19[%c0_553, %c47_554] : memref<2x81xf32, #tpu.memory_space<vmem>>, vector<2x1xf32>
    %1064 = vector.broadcast %1063 : vector<2x1xf32> to vector<2x256xf32>
    %1065 = arith.mulf %1064, %1062 : vector<2x256xf32>
    %1066 = arith.addf %1061, %1065 : vector<2x256xf32>
    %c4_555 = arith.constant 4 : index
    %c504 = arith.constant 504 : index
    %1067 = vector.load %arg24[%c4_555, %c504] : memref<6x1024xf32, #tpu.memory_space<vmem>>, vector<2x256xf32>
    %c0_556 = arith.constant 0 : index
    %c56 = arith.constant 56 : index
    %1068 = vector.load %arg19[%c0_556, %c56] : memref<2x81xf32, #tpu.memory_space<vmem>>, vector<2x1xf32>
    %1069 = vector.broadcast %1068 : vector<2x1xf32> to vector<2x256xf32>
    %1070 = arith.mulf %1069, %1067 : vector<2x256xf32>
    %1071 = arith.addf %1066, %1070 : vector<2x256xf32>
    %c4_557 = arith.constant 4 : index
    %c568 = arith.constant 568 : index
    %1072 = vector.load %arg24[%c4_557, %c568] : memref<6x1024xf32, #tpu.memory_space<vmem>>, vector<2x256xf32>
    %c0_558 = arith.constant 0 : index
    %c65 = arith.constant 65 : index
    %1073 = vector.load %arg19[%c0_558, %c65] : memref<2x81xf32, #tpu.memory_space<vmem>>, vector<2x1xf32>
    %1074 = vector.broadcast %1073 : vector<2x1xf32> to vector<2x256xf32>
    %1075 = arith.mulf %1074, %1072 : vector<2x256xf32>
    %1076 = arith.addf %1071, %1075 : vector<2x256xf32>
    %c8_i32 = arith.constant 8 : i32
    %1077 = vector.broadcast %c8_i32 : i32 to vector<1x256xi32>
    %1078 = arith.cmpi sge, %43, %1077 : vector<1x256xi32>
    %cst_559 = arith.constant 1.000000e+00 : f32
    %cst_560 = arith.constant 0.000000e+00 : f32
    %1079 = vector.broadcast %cst_559 : f32 to vector<1x256xf32>
    %1080 = vector.broadcast %cst_560 : f32 to vector<1x256xf32>
    %1081 = arith.select %1078, %1079, %1080 : vector<1x256xi1>, vector<1x256xf32>
    %1082 = vector.shape_cast %1081 : vector<1x256xf32> to vector<1x256xf32>
    %1083 = vector.broadcast %1082 : vector<1x256xf32> to vector<2x256xf32>
    %1084 = arith.mulf %1083, %1076 : vector<2x256xf32>
    %1085 = arith.addf %1042, %1084 : vector<2x256xf32>
    %c4_561 = arith.constant 4 : index
    %c188 = arith.constant 188 : index
    %1086 = vector.load %arg24[%c4_561, %c188] : memref<6x1024xf32, #tpu.memory_space<vmem>>, vector<2x256xf32>
    %c0_562 = arith.constant 0 : index
    %c12_563 = arith.constant 12 : index
    %1087 = vector.load %arg19[%c0_562, %c12_563] : memref<2x81xf32, #tpu.memory_space<vmem>>, vector<2x1xf32>
    %1088 = vector.broadcast %1087 : vector<2x1xf32> to vector<2x256xf32>
    %1089 = arith.mulf %1088, %1086 : vector<2x256xf32>
    %c4_564 = arith.constant 4 : index
    %c252 = arith.constant 252 : index
    %1090 = vector.load %arg24[%c4_564, %c252] : memref<6x1024xf32, #tpu.memory_space<vmem>>, vector<2x256xf32>
    %c0_565 = arith.constant 0 : index
    %c21_566 = arith.constant 21 : index
    %1091 = vector.load %arg19[%c0_565, %c21_566] : memref<2x81xf32, #tpu.memory_space<vmem>>, vector<2x1xf32>
    %1092 = vector.broadcast %1091 : vector<2x1xf32> to vector<2x256xf32>
    %1093 = arith.mulf %1092, %1090 : vector<2x256xf32>
    %1094 = arith.addf %1089, %1093 : vector<2x256xf32>
    %c4_567 = arith.constant 4 : index
    %c316_568 = arith.constant 316 : index
    %1095 = vector.load %arg24[%c4_567, %c316_568] : memref<6x1024xf32, #tpu.memory_space<vmem>>, vector<2x256xf32>
    %c0_569 = arith.constant 0 : index
    %c30_570 = arith.constant 30 : index
    %1096 = vector.load %arg19[%c0_569, %c30_570] : memref<2x81xf32, #tpu.memory_space<vmem>>, vector<2x1xf32>
    %1097 = vector.broadcast %1096 : vector<2x1xf32> to vector<2x256xf32>
    %1098 = arith.mulf %1097, %1095 : vector<2x256xf32>
    %1099 = arith.addf %1094, %1098 : vector<2x256xf32>
    %c4_571 = arith.constant 4 : index
    %c380_572 = arith.constant 380 : index
    %1100 = vector.load %arg24[%c4_571, %c380_572] : memref<6x1024xf32, #tpu.memory_space<vmem>>, vector<2x256xf32>
    %c0_573 = arith.constant 0 : index
    %c39_574 = arith.constant 39 : index
    %1101 = vector.load %arg19[%c0_573, %c39_574] : memref<2x81xf32, #tpu.memory_space<vmem>>, vector<2x1xf32>
    %1102 = vector.broadcast %1101 : vector<2x1xf32> to vector<2x256xf32>
    %1103 = arith.mulf %1102, %1100 : vector<2x256xf32>
    %1104 = arith.addf %1099, %1103 : vector<2x256xf32>
    %c4_575 = arith.constant 4 : index
    %c444_576 = arith.constant 444 : index
    %1105 = vector.load %arg24[%c4_575, %c444_576] : memref<6x1024xf32, #tpu.memory_space<vmem>>, vector<2x256xf32>
    %c0_577 = arith.constant 0 : index
    %c48_578 = arith.constant 48 : index
    %1106 = vector.load %arg19[%c0_577, %c48_578] : memref<2x81xf32, #tpu.memory_space<vmem>>, vector<2x1xf32>
    %1107 = vector.broadcast %1106 : vector<2x1xf32> to vector<2x256xf32>
    %1108 = arith.mulf %1107, %1105 : vector<2x256xf32>
    %1109 = arith.addf %1104, %1108 : vector<2x256xf32>
    %c4_579 = arith.constant 4 : index
    %c508 = arith.constant 508 : index
    %1110 = vector.load %arg24[%c4_579, %c508] : memref<6x1024xf32, #tpu.memory_space<vmem>>, vector<2x256xf32>
    %c0_580 = arith.constant 0 : index
    %c57 = arith.constant 57 : index
    %1111 = vector.load %arg19[%c0_580, %c57] : memref<2x81xf32, #tpu.memory_space<vmem>>, vector<2x1xf32>
    %1112 = vector.broadcast %1111 : vector<2x1xf32> to vector<2x256xf32>
    %1113 = arith.mulf %1112, %1110 : vector<2x256xf32>
    %1114 = arith.addf %1109, %1113 : vector<2x256xf32>
    %c4_581 = arith.constant 4 : index
    %c572 = arith.constant 572 : index
    %1115 = vector.load %arg24[%c4_581, %c572] : memref<6x1024xf32, #tpu.memory_space<vmem>>, vector<2x256xf32>
    %c0_582 = arith.constant 0 : index
    %c66 = arith.constant 66 : index
    %1116 = vector.load %arg19[%c0_582, %c66] : memref<2x81xf32, #tpu.memory_space<vmem>>, vector<2x1xf32>
    %1117 = vector.broadcast %1116 : vector<2x1xf32> to vector<2x256xf32>
    %1118 = arith.mulf %1117, %1115 : vector<2x256xf32>
    %1119 = arith.addf %1114, %1118 : vector<2x256xf32>
    %1120 = arith.mulf %575, %1119 : vector<2x256xf32>
    %1121 = arith.addf %1085, %1120 : vector<2x256xf32>
    %c4_583 = arith.constant 4 : index
    %c192 = arith.constant 192 : index
    %1122 = vector.load %arg24[%c4_583, %c192] : memref<6x1024xf32, #tpu.memory_space<vmem>>, vector<2x256xf32>
    %c0_584 = arith.constant 0 : index
    %c13_585 = arith.constant 13 : index
    %1123 = vector.load %arg19[%c0_584, %c13_585] : memref<2x81xf32, #tpu.memory_space<vmem>>, vector<2x1xf32>
    %1124 = vector.broadcast %1123 : vector<2x1xf32> to vector<2x256xf32>
    %1125 = arith.mulf %1124, %1122 : vector<2x256xf32>
    %c4_586 = arith.constant 4 : index
    %c256 = arith.constant 256 : index
    %1126 = vector.load %arg24[%c4_586, %c256] : memref<6x1024xf32, #tpu.memory_space<vmem>>, vector<2x256xf32>
    %c0_587 = arith.constant 0 : index
    %c22_588 = arith.constant 22 : index
    %1127 = vector.load %arg19[%c0_587, %c22_588] : memref<2x81xf32, #tpu.memory_space<vmem>>, vector<2x1xf32>
    %1128 = vector.broadcast %1127 : vector<2x1xf32> to vector<2x256xf32>
    %1129 = arith.mulf %1128, %1126 : vector<2x256xf32>
    %1130 = arith.addf %1125, %1129 : vector<2x256xf32>
    %c4_589 = arith.constant 4 : index
    %c320_590 = arith.constant 320 : index
    %1131 = vector.load %arg24[%c4_589, %c320_590] : memref<6x1024xf32, #tpu.memory_space<vmem>>, vector<2x256xf32>
    %c0_591 = arith.constant 0 : index
    %c31_592 = arith.constant 31 : index
    %1132 = vector.load %arg19[%c0_591, %c31_592] : memref<2x81xf32, #tpu.memory_space<vmem>>, vector<2x1xf32>
    %1133 = vector.broadcast %1132 : vector<2x1xf32> to vector<2x256xf32>
    %1134 = arith.mulf %1133, %1131 : vector<2x256xf32>
    %1135 = arith.addf %1130, %1134 : vector<2x256xf32>
    %c4_593 = arith.constant 4 : index
    %c384_594 = arith.constant 384 : index
    %1136 = vector.load %arg24[%c4_593, %c384_594] : memref<6x1024xf32, #tpu.memory_space<vmem>>, vector<2x256xf32>
    %c0_595 = arith.constant 0 : index
    %c40_596 = arith.constant 40 : index
    %1137 = vector.load %arg19[%c0_595, %c40_596] : memref<2x81xf32, #tpu.memory_space<vmem>>, vector<2x1xf32>
    %1138 = vector.broadcast %1137 : vector<2x1xf32> to vector<2x256xf32>
    %1139 = arith.mulf %1138, %1136 : vector<2x256xf32>
    %1140 = arith.addf %1135, %1139 : vector<2x256xf32>
    %c4_597 = arith.constant 4 : index
    %c448_598 = arith.constant 448 : index
    %1141 = vector.load %arg24[%c4_597, %c448_598] : memref<6x1024xf32, #tpu.memory_space<vmem>>, vector<2x256xf32>
    %c0_599 = arith.constant 0 : index
    %c49 = arith.constant 49 : index
    %1142 = vector.load %arg19[%c0_599, %c49] : memref<2x81xf32, #tpu.memory_space<vmem>>, vector<2x1xf32>
    %1143 = vector.broadcast %1142 : vector<2x1xf32> to vector<2x256xf32>
    %1144 = arith.mulf %1143, %1141 : vector<2x256xf32>
    %1145 = arith.addf %1140, %1144 : vector<2x256xf32>
    %c4_600 = arith.constant 4 : index
    %c512 = arith.constant 512 : index
    %1146 = vector.load %arg24[%c4_600, %c512] : memref<6x1024xf32, #tpu.memory_space<vmem>>, vector<2x256xf32>
    %c0_601 = arith.constant 0 : index
    %c58 = arith.constant 58 : index
    %1147 = vector.load %arg19[%c0_601, %c58] : memref<2x81xf32, #tpu.memory_space<vmem>>, vector<2x1xf32>
    %1148 = vector.broadcast %1147 : vector<2x1xf32> to vector<2x256xf32>
    %1149 = arith.mulf %1148, %1146 : vector<2x256xf32>
    %1150 = arith.addf %1145, %1149 : vector<2x256xf32>
    %c4_602 = arith.constant 4 : index
    %c576 = arith.constant 576 : index
    %1151 = vector.load %arg24[%c4_602, %c576] : memref<6x1024xf32, #tpu.memory_space<vmem>>, vector<2x256xf32>
    %c0_603 = arith.constant 0 : index
    %c67 = arith.constant 67 : index
    %1152 = vector.load %arg19[%c0_603, %c67] : memref<2x81xf32, #tpu.memory_space<vmem>>, vector<2x1xf32>
    %1153 = vector.broadcast %1152 : vector<2x1xf32> to vector<2x256xf32>
    %1154 = arith.mulf %1153, %1151 : vector<2x256xf32>
    %1155 = arith.addf %1150, %1154 : vector<2x256xf32>
    %1156 = arith.addf %1121, %1155 : vector<2x256xf32>
    %c4_604 = arith.constant 4 : index
    %c196 = arith.constant 196 : index
    %1157 = vector.load %arg24[%c4_604, %c196] : memref<6x1024xf32, #tpu.memory_space<vmem>>, vector<2x256xf32>
    %c0_605 = arith.constant 0 : index
    %c14_606 = arith.constant 14 : index
    %1158 = vector.load %arg19[%c0_605, %c14_606] : memref<2x81xf32, #tpu.memory_space<vmem>>, vector<2x1xf32>
    %1159 = vector.broadcast %1158 : vector<2x1xf32> to vector<2x256xf32>
    %1160 = arith.mulf %1159, %1157 : vector<2x256xf32>
    %c4_607 = arith.constant 4 : index
    %c260 = arith.constant 260 : index
    %1161 = vector.load %arg24[%c4_607, %c260] : memref<6x1024xf32, #tpu.memory_space<vmem>>, vector<2x256xf32>
    %c0_608 = arith.constant 0 : index
    %c23_609 = arith.constant 23 : index
    %1162 = vector.load %arg19[%c0_608, %c23_609] : memref<2x81xf32, #tpu.memory_space<vmem>>, vector<2x1xf32>
    %1163 = vector.broadcast %1162 : vector<2x1xf32> to vector<2x256xf32>
    %1164 = arith.mulf %1163, %1161 : vector<2x256xf32>
    %1165 = arith.addf %1160, %1164 : vector<2x256xf32>
    %c4_610 = arith.constant 4 : index
    %c324_611 = arith.constant 324 : index
    %1166 = vector.load %arg24[%c4_610, %c324_611] : memref<6x1024xf32, #tpu.memory_space<vmem>>, vector<2x256xf32>
    %c0_612 = arith.constant 0 : index
    %c32_613 = arith.constant 32 : index
    %1167 = vector.load %arg19[%c0_612, %c32_613] : memref<2x81xf32, #tpu.memory_space<vmem>>, vector<2x1xf32>
    %1168 = vector.broadcast %1167 : vector<2x1xf32> to vector<2x256xf32>
    %1169 = arith.mulf %1168, %1166 : vector<2x256xf32>
    %1170 = arith.addf %1165, %1169 : vector<2x256xf32>
    %c4_614 = arith.constant 4 : index
    %c388_615 = arith.constant 388 : index
    %1171 = vector.load %arg24[%c4_614, %c388_615] : memref<6x1024xf32, #tpu.memory_space<vmem>>, vector<2x256xf32>
    %c0_616 = arith.constant 0 : index
    %c41_617 = arith.constant 41 : index
    %1172 = vector.load %arg19[%c0_616, %c41_617] : memref<2x81xf32, #tpu.memory_space<vmem>>, vector<2x1xf32>
    %1173 = vector.broadcast %1172 : vector<2x1xf32> to vector<2x256xf32>
    %1174 = arith.mulf %1173, %1171 : vector<2x256xf32>
    %1175 = arith.addf %1170, %1174 : vector<2x256xf32>
    %c4_618 = arith.constant 4 : index
    %c452_619 = arith.constant 452 : index
    %1176 = vector.load %arg24[%c4_618, %c452_619] : memref<6x1024xf32, #tpu.memory_space<vmem>>, vector<2x256xf32>
    %c0_620 = arith.constant 0 : index
    %c50 = arith.constant 50 : index
    %1177 = vector.load %arg19[%c0_620, %c50] : memref<2x81xf32, #tpu.memory_space<vmem>>, vector<2x1xf32>
    %1178 = vector.broadcast %1177 : vector<2x1xf32> to vector<2x256xf32>
    %1179 = arith.mulf %1178, %1176 : vector<2x256xf32>
    %1180 = arith.addf %1175, %1179 : vector<2x256xf32>
    %c4_621 = arith.constant 4 : index
    %c516 = arith.constant 516 : index
    %1181 = vector.load %arg24[%c4_621, %c516] : memref<6x1024xf32, #tpu.memory_space<vmem>>, vector<2x256xf32>
    %c0_622 = arith.constant 0 : index
    %c59 = arith.constant 59 : index
    %1182 = vector.load %arg19[%c0_622, %c59] : memref<2x81xf32, #tpu.memory_space<vmem>>, vector<2x1xf32>
    %1183 = vector.broadcast %1182 : vector<2x1xf32> to vector<2x256xf32>
    %1184 = arith.mulf %1183, %1181 : vector<2x256xf32>
    %1185 = arith.addf %1180, %1184 : vector<2x256xf32>
    %c4_623 = arith.constant 4 : index
    %c580 = arith.constant 580 : index
    %1186 = vector.load %arg24[%c4_623, %c580] : memref<6x1024xf32, #tpu.memory_space<vmem>>, vector<2x256xf32>
    %c0_624 = arith.constant 0 : index
    %c68 = arith.constant 68 : index
    %1187 = vector.load %arg19[%c0_624, %c68] : memref<2x81xf32, #tpu.memory_space<vmem>>, vector<2x1xf32>
    %1188 = vector.broadcast %1187 : vector<2x1xf32> to vector<2x256xf32>
    %1189 = arith.mulf %1188, %1186 : vector<2x256xf32>
    %1190 = arith.addf %1185, %1189 : vector<2x256xf32>
    %1191 = arith.mulf %698, %1190 : vector<2x256xf32>
    %1192 = arith.addf %1156, %1191 : vector<2x256xf32>
    %c4_625 = arith.constant 4 : index
    %c200 = arith.constant 200 : index
    %1193 = vector.load %arg24[%c4_625, %c200] : memref<6x1024xf32, #tpu.memory_space<vmem>>, vector<2x256xf32>
    %c0_626 = arith.constant 0 : index
    %c15_627 = arith.constant 15 : index
    %1194 = vector.load %arg19[%c0_626, %c15_627] : memref<2x81xf32, #tpu.memory_space<vmem>>, vector<2x1xf32>
    %1195 = vector.broadcast %1194 : vector<2x1xf32> to vector<2x256xf32>
    %1196 = arith.mulf %1195, %1193 : vector<2x256xf32>
    %c4_628 = arith.constant 4 : index
    %c264 = arith.constant 264 : index
    %1197 = vector.load %arg24[%c4_628, %c264] : memref<6x1024xf32, #tpu.memory_space<vmem>>, vector<2x256xf32>
    %c0_629 = arith.constant 0 : index
    %c24_630 = arith.constant 24 : index
    %1198 = vector.load %arg19[%c0_629, %c24_630] : memref<2x81xf32, #tpu.memory_space<vmem>>, vector<2x1xf32>
    %1199 = vector.broadcast %1198 : vector<2x1xf32> to vector<2x256xf32>
    %1200 = arith.mulf %1199, %1197 : vector<2x256xf32>
    %1201 = arith.addf %1196, %1200 : vector<2x256xf32>
    %c4_631 = arith.constant 4 : index
    %c328 = arith.constant 328 : index
    %1202 = vector.load %arg24[%c4_631, %c328] : memref<6x1024xf32, #tpu.memory_space<vmem>>, vector<2x256xf32>
    %c0_632 = arith.constant 0 : index
    %c33_633 = arith.constant 33 : index
    %1203 = vector.load %arg19[%c0_632, %c33_633] : memref<2x81xf32, #tpu.memory_space<vmem>>, vector<2x1xf32>
    %1204 = vector.broadcast %1203 : vector<2x1xf32> to vector<2x256xf32>
    %1205 = arith.mulf %1204, %1202 : vector<2x256xf32>
    %1206 = arith.addf %1201, %1205 : vector<2x256xf32>
    %c4_634 = arith.constant 4 : index
    %c392 = arith.constant 392 : index
    %1207 = vector.load %arg24[%c4_634, %c392] : memref<6x1024xf32, #tpu.memory_space<vmem>>, vector<2x256xf32>
    %c0_635 = arith.constant 0 : index
    %c42_636 = arith.constant 42 : index
    %1208 = vector.load %arg19[%c0_635, %c42_636] : memref<2x81xf32, #tpu.memory_space<vmem>>, vector<2x1xf32>
    %1209 = vector.broadcast %1208 : vector<2x1xf32> to vector<2x256xf32>
    %1210 = arith.mulf %1209, %1207 : vector<2x256xf32>
    %1211 = arith.addf %1206, %1210 : vector<2x256xf32>
    %c4_637 = arith.constant 4 : index
    %c456 = arith.constant 456 : index
    %1212 = vector.load %arg24[%c4_637, %c456] : memref<6x1024xf32, #tpu.memory_space<vmem>>, vector<2x256xf32>
    %c0_638 = arith.constant 0 : index
    %c51 = arith.constant 51 : index
    %1213 = vector.load %arg19[%c0_638, %c51] : memref<2x81xf32, #tpu.memory_space<vmem>>, vector<2x1xf32>
    %1214 = vector.broadcast %1213 : vector<2x1xf32> to vector<2x256xf32>
    %1215 = arith.mulf %1214, %1212 : vector<2x256xf32>
    %1216 = arith.addf %1211, %1215 : vector<2x256xf32>
    %c4_639 = arith.constant 4 : index
    %c520 = arith.constant 520 : index
    %1217 = vector.load %arg24[%c4_639, %c520] : memref<6x1024xf32, #tpu.memory_space<vmem>>, vector<2x256xf32>
    %c0_640 = arith.constant 0 : index
    %c60 = arith.constant 60 : index
    %1218 = vector.load %arg19[%c0_640, %c60] : memref<2x81xf32, #tpu.memory_space<vmem>>, vector<2x1xf32>
    %1219 = vector.broadcast %1218 : vector<2x1xf32> to vector<2x256xf32>
    %1220 = arith.mulf %1219, %1217 : vector<2x256xf32>
    %1221 = arith.addf %1216, %1220 : vector<2x256xf32>
    %c4_641 = arith.constant 4 : index
    %c584 = arith.constant 584 : index
    %1222 = vector.load %arg24[%c4_641, %c584] : memref<6x1024xf32, #tpu.memory_space<vmem>>, vector<2x256xf32>
    %c0_642 = arith.constant 0 : index
    %c69 = arith.constant 69 : index
    %1223 = vector.load %arg19[%c0_642, %c69] : memref<2x81xf32, #tpu.memory_space<vmem>>, vector<2x1xf32>
    %1224 = vector.broadcast %1223 : vector<2x1xf32> to vector<2x256xf32>
    %1225 = arith.mulf %1224, %1222 : vector<2x256xf32>
    %1226 = arith.addf %1221, %1225 : vector<2x256xf32>
    %c8_i32_643 = arith.constant 8 : i32
    %1227 = vector.broadcast %c8_i32_643 : i32 to vector<1x256xi32>
    %1228 = arith.cmpi slt, %43, %1227 : vector<1x256xi32>
    %cst_644 = arith.constant 1.000000e+00 : f32
    %cst_645 = arith.constant 0.000000e+00 : f32
    %1229 = vector.broadcast %cst_644 : f32 to vector<1x256xf32>
    %1230 = vector.broadcast %cst_645 : f32 to vector<1x256xf32>
    %1231 = arith.select %1228, %1229, %1230 : vector<1x256xi1>, vector<1x256xf32>
    %1232 = vector.shape_cast %1231 : vector<1x256xf32> to vector<1x256xf32>
    %1233 = vector.broadcast %1232 : vector<1x256xf32> to vector<2x256xf32>
    %1234 = arith.mulf %1233, %1226 : vector<2x256xf32>
    %1235 = arith.addf %1192, %1234 : vector<2x256xf32>
    %c4_646 = arith.constant 4 : index
    %c204 = arith.constant 204 : index
    %1236 = vector.load %arg24[%c4_646, %c204] : memref<6x1024xf32, #tpu.memory_space<vmem>>, vector<2x256xf32>
    %c0_647 = arith.constant 0 : index
    %c16_648 = arith.constant 16 : index
    %1237 = vector.load %arg19[%c0_647, %c16_648] : memref<2x81xf32, #tpu.memory_space<vmem>>, vector<2x1xf32>
    %1238 = vector.broadcast %1237 : vector<2x1xf32> to vector<2x256xf32>
    %1239 = arith.mulf %1238, %1236 : vector<2x256xf32>
    %c4_649 = arith.constant 4 : index
    %c268 = arith.constant 268 : index
    %1240 = vector.load %arg24[%c4_649, %c268] : memref<6x1024xf32, #tpu.memory_space<vmem>>, vector<2x256xf32>
    %c0_650 = arith.constant 0 : index
    %c25_651 = arith.constant 25 : index
    %1241 = vector.load %arg19[%c0_650, %c25_651] : memref<2x81xf32, #tpu.memory_space<vmem>>, vector<2x1xf32>
    %1242 = vector.broadcast %1241 : vector<2x1xf32> to vector<2x256xf32>
    %1243 = arith.mulf %1242, %1240 : vector<2x256xf32>
    %1244 = arith.addf %1239, %1243 : vector<2x256xf32>
    %c4_652 = arith.constant 4 : index
    %c332 = arith.constant 332 : index
    %1245 = vector.load %arg24[%c4_652, %c332] : memref<6x1024xf32, #tpu.memory_space<vmem>>, vector<2x256xf32>
    %c0_653 = arith.constant 0 : index
    %c34_654 = arith.constant 34 : index
    %1246 = vector.load %arg19[%c0_653, %c34_654] : memref<2x81xf32, #tpu.memory_space<vmem>>, vector<2x1xf32>
    %1247 = vector.broadcast %1246 : vector<2x1xf32> to vector<2x256xf32>
    %1248 = arith.mulf %1247, %1245 : vector<2x256xf32>
    %1249 = arith.addf %1244, %1248 : vector<2x256xf32>
    %c4_655 = arith.constant 4 : index
    %c396 = arith.constant 396 : index
    %1250 = vector.load %arg24[%c4_655, %c396] : memref<6x1024xf32, #tpu.memory_space<vmem>>, vector<2x256xf32>
    %c0_656 = arith.constant 0 : index
    %c43_657 = arith.constant 43 : index
    %1251 = vector.load %arg19[%c0_656, %c43_657] : memref<2x81xf32, #tpu.memory_space<vmem>>, vector<2x1xf32>
    %1252 = vector.broadcast %1251 : vector<2x1xf32> to vector<2x256xf32>
    %1253 = arith.mulf %1252, %1250 : vector<2x256xf32>
    %1254 = arith.addf %1249, %1253 : vector<2x256xf32>
    %c4_658 = arith.constant 4 : index
    %c460 = arith.constant 460 : index
    %1255 = vector.load %arg24[%c4_658, %c460] : memref<6x1024xf32, #tpu.memory_space<vmem>>, vector<2x256xf32>
    %c0_659 = arith.constant 0 : index
    %c52 = arith.constant 52 : index
    %1256 = vector.load %arg19[%c0_659, %c52] : memref<2x81xf32, #tpu.memory_space<vmem>>, vector<2x1xf32>
    %1257 = vector.broadcast %1256 : vector<2x1xf32> to vector<2x256xf32>
    %1258 = arith.mulf %1257, %1255 : vector<2x256xf32>
    %1259 = arith.addf %1254, %1258 : vector<2x256xf32>
    %c4_660 = arith.constant 4 : index
    %c524 = arith.constant 524 : index
    %1260 = vector.load %arg24[%c4_660, %c524] : memref<6x1024xf32, #tpu.memory_space<vmem>>, vector<2x256xf32>
    %c0_661 = arith.constant 0 : index
    %c61 = arith.constant 61 : index
    %1261 = vector.load %arg19[%c0_661, %c61] : memref<2x81xf32, #tpu.memory_space<vmem>>, vector<2x1xf32>
    %1262 = vector.broadcast %1261 : vector<2x1xf32> to vector<2x256xf32>
    %1263 = arith.mulf %1262, %1260 : vector<2x256xf32>
    %1264 = arith.addf %1259, %1263 : vector<2x256xf32>
    %c4_662 = arith.constant 4 : index
    %c588 = arith.constant 588 : index
    %1265 = vector.load %arg24[%c4_662, %c588] : memref<6x1024xf32, #tpu.memory_space<vmem>>, vector<2x256xf32>
    %c0_663 = arith.constant 0 : index
    %c70 = arith.constant 70 : index
    %1266 = vector.load %arg19[%c0_663, %c70] : memref<2x81xf32, #tpu.memory_space<vmem>>, vector<2x1xf32>
    %1267 = vector.broadcast %1266 : vector<2x1xf32> to vector<2x256xf32>
    %1268 = arith.mulf %1267, %1265 : vector<2x256xf32>
    %1269 = arith.addf %1264, %1268 : vector<2x256xf32>
    %c4_i32_664 = arith.constant 4 : i32
    %1270 = vector.broadcast %c4_i32_664 : i32 to vector<1x256xi32>
    %1271 = arith.cmpi slt, %43, %1270 : vector<1x256xi32>
    %cst_665 = arith.constant 1.000000e+00 : f32
    %cst_666 = arith.constant 0.000000e+00 : f32
    %1272 = vector.broadcast %cst_665 : f32 to vector<1x256xf32>
    %1273 = vector.broadcast %cst_666 : f32 to vector<1x256xf32>
    %1274 = arith.select %1271, %1272, %1273 : vector<1x256xi1>, vector<1x256xf32>
    %1275 = vector.shape_cast %1274 : vector<1x256xf32> to vector<1x256xf32>
    %1276 = vector.broadcast %1275 : vector<1x256xf32> to vector<2x256xf32>
    %1277 = arith.mulf %1276, %1269 : vector<2x256xf32>
    %1278 = arith.addf %1235, %1277 : vector<2x256xf32>
    %c0_667 = arith.constant 0 : index
    %c0_668 = arith.constant 0 : index
    %1279 = vector.load %arg20[%c0_667, %c0_668] : memref<2x1xf32, #tpu.memory_space<vmem>>, vector<2x1xf32>
    %1280 = vector.broadcast %1279 : vector<2x1xf32> to vector<2x256xf32>
    %1281 = arith.addf %1278, %1280 : vector<2x256xf32>
    %c4_669 = arith.constant 4 : index
    %c0_670 = arith.constant 0 : index
    %1282 = vector.load %arg27[%c4_669, %c0_670] : memref<6x256xf32, #tpu.memory_space<vmem>>, vector<2x256xf32>
    tpu.vector_store %arg27[%c4_669, %c0_670], %1281 {strides = array<i32>} : memref<6x256xf32, #tpu.memory_space<vmem>>, vector<2x256xf32>,
    %c0_671 = arith.constant 0 : index
    %c0_672 = arith.constant 0 : index
    %1283 = vector.load %arg21[%c0_671, %c0_672] : memref<6x6xf32, #tpu.memory_space<vmem>>, vector<6x6xf32>
    %c0_673 = arith.constant 0 : index
    %c0_674 = arith.constant 0 : index
    %1284 = vector.load %arg27[%c0_673, %c0_674] : memref<6x256xf32, #tpu.memory_space<vmem>>, vector<6x256xf32>
    %cst_675 = arith.constant dense<0.000000e+00> : vector<6x256xf32>
    %1285 = tpu.matmul %1283, %1284, %cst_675 {dimension_numbers = #tpu.dot_dimension_numbers<[1], [0], [0], [1], [0, 0, 1, 1], [], []>} : vector<6x6xf32>, vector<6x256xf32>, vector<6x256xf32> -> vector<6x256xf32>
    %c0_676 = arith.constant 0 : index
    %c0_677 = arith.constant 0 : index
    %1286 = vector.load %arg22[%c0_676, %c0_677] : memref<6x1xf32, #tpu.memory_space<vmem>>, vector<6x1xf32>
    %1287 = vector.broadcast %1286 : vector<6x1xf32> to vector<6x256xf32>
    %1288 = arith.addf %1285, %1287 : vector<6x256xf32>
    %c0_678 = arith.constant 0 : index
    %c0_679 = arith.constant 0 : index
    %1289 = vector.load %arg25[%c0_678, %c0_679] : memref<6x256xf32, #tpu.memory_space<vmem>>, vector<6x256xf32>
    %c0_680 = arith.constant 0 : index
    %c0_681 = arith.constant 0 : index
    %1290 = vector.load %arg26[%c0_680, %c0_681] : memref<6x256xf32, #tpu.memory_space<vmem>>, vector<6x256xf32>
    %1291 = arith.mulf %1288, %1290 : vector<6x256xf32>
    %1292 = arith.mulf %1289, %1291 : vector<6x256xf32>
    %c0_682 = arith.constant 0 : index
    %c0_683 = arith.constant 0 : index
    %1293 = vector.load %arg9[%c0_682, %c0_683] : memref<6x6xf32, #tpu.memory_space<vmem>>, vector<6x6xf32>
    %cst_684 = arith.constant dense<0.000000e+00> : vector<6x256xf32>
    %1294 = tpu.matmul %1293, %1292, %cst_684 {dimension_numbers = #tpu.dot_dimension_numbers<[1], [0], [0], [1], [0, 0, 1, 1], [], []>} : vector<6x6xf32>, vector<6x256xf32>, vector<6x256xf32> -> vector<6x256xf32>
    %c0_685 = arith.constant 0 : index
    %c0_686 = arith.constant 0 : index
    %1295 = vector.load %arg10[%c0_685, %c0_686] : memref<6x1xf32, #tpu.memory_space<vmem>>, vector<6x1xf32>
    %1296 = vector.broadcast %1295 : vector<6x1xf32> to vector<6x256xf32>
    %1297 = arith.addf %1294, %1296 : vector<6x256xf32>
    %c0_687 = arith.constant 0 : index
    %c0_688 = arith.constant 0 : index
    %1298 = vector.load %arg4[%c0_687, %c0_688] : memref<6x1xf32, #tpu.memory_space<vmem>>, vector<6x1xf32>
    %1299 = vector.broadcast %1298 : vector<6x1xf32> to vector<6x256xf32>
    %1300 = arith.mulf %1297, %1299 : vector<6x256xf32>
    %c0_689 = arith.constant 0 : index
    %c0_690 = arith.constant 0 : index
    %c0_691 = arith.constant 0 : index
    %1301 = vector.load %arg1[%c0_689, %c0_690, %c0_691] : memref<1x6x256xf32, #tpu.memory_space<vmem>>, vector<1x6x256xf32>
    %1302 = vector.shape_cast %1301 : vector<1x6x256xf32> to vector<6x256xf32>
    %1303 = arith.addf %1300, %1302 : vector<6x256xf32>
    %c0_692 = arith.constant 0 : index
    %c0_693 = arith.constant 0 : index
    %c0_694 = arith.constant 0 : index
    %1304 = vector.load %arg23[%c0_692, %c0_693, %c0_694] : memref<1x6x256xf32, #tpu.memory_space<vmem>>, vector<1x6x256xf32>
    %1305 = vector.shape_cast %1304 : vector<1x6x256xf32> to vector<6x256xf32>
    %1306 = vector.shape_cast %1303 : vector<6x256xf32> to vector<1x6x256xf32>
    tpu.vector_store %arg23[%c0_692, %c0_693, %c0_694], %1306 {strides = array<i32>} : memref<1x6x256xf32, #tpu.memory_space<vmem>>, vector<1x6x256xf32>,
    return
  }
  func.func @transform_0(%arg0: i32) -> (i32, i32, i32) {
    %c0_i32 = arith.constant 0 : i32
    %c0_i32_0 = arith.constant 0 : i32
    %c0_i32_1 = arith.constant 0 : i32
    return %arg0, %c0_i32, %c0_i32_0 : i32, i32, i32
  }
  func.func @transform_1(%arg0: i32) -> (i32, i32) {
    %c0_i32 = arith.constant 0 : i32
    %c0_i32_0 = arith.constant 0 : i32
    %c0_i32_1 = arith.constant 0 : i32
    return %c0_i32, %c0_i32_0 : i32, i32
  }
  func.func @transform_2(%arg0: i32) -> (i32, i32) {
    %c0_i32 = arith.constant 0 : i32
    %c0_i32_0 = arith.constant 0 : i32
    %c0_i32_1 = arith.constant 0 : i32
    return %c0_i32, %c0_i32_0 : i32, i32
  }
  func.func @transform_3(%arg0: i32) -> (i32, i32) {
    %c0_i32 = arith.constant 0 : i32
    %c0_i32_0 = arith.constant 0 : i32
    %c0_i32_1 = arith.constant 0 : i32
    return %c0_i32, %c0_i32_0 : i32, i32
  }
  func.func @transform_4(%arg0: i32) -> (i32, i32) {
    %c0_i32 = arith.constant 0 : i32
    %c0_i32_0 = arith.constant 0 : i32
    %c0_i32_1 = arith.constant 0 : i32
    return %c0_i32, %c0_i32_0 : i32, i32
  }
  func.func @transform_5(%arg0: i32) -> (i32, i32) {
    %c0_i32 = arith.constant 0 : i32
    %c0_i32_0 = arith.constant 0 : i32
    %c0_i32_1 = arith.constant 0 : i32
    return %c0_i32, %c0_i32_0 : i32, i32
  }
  func.func @transform_6(%arg0: i32) -> (i32, i32) {
    %c0_i32 = arith.constant 0 : i32
    %c0_i32_0 = arith.constant 0 : i32
    %c0_i32_1 = arith.constant 0 : i32
    return %c0_i32, %c0_i32_0 : i32, i32
  }
  func.func @transform_7(%arg0: i32) -> (i32, i32) {
    %c0_i32 = arith.constant 0 : i32
    %c0_i32_0 = arith.constant 0 : i32
    %c0_i32_1 = arith.constant 0 : i32
    return %c0_i32, %c0_i32_0 : i32, i32
  }
  func.func @transform_8(%arg0: i32) -> (i32, i32) {
    %c0_i32 = arith.constant 0 : i32
    %c0_i32_0 = arith.constant 0 : i32
    %c0_i32_1 = arith.constant 0 : i32
    return %c0_i32, %c0_i32_0 : i32, i32
  }
  func.func @transform_9(%arg0: i32) -> (i32, i32) {
    %c0_i32 = arith.constant 0 : i32
    %c0_i32_0 = arith.constant 0 : i32
    %c0_i32_1 = arith.constant 0 : i32
    return %c0_i32, %c0_i32_0 : i32, i32
  }
  func.func @transform_10(%arg0: i32) -> (i32, i32) {
    %c0_i32 = arith.constant 0 : i32
    %c0_i32_0 = arith.constant 0 : i32
    %c0_i32_1 = arith.constant 0 : i32
    return %c0_i32, %c0_i32_0 : i32, i32
  }
  func.func @transform_11(%arg0: i32) -> (i32, i32) {
    %c0_i32 = arith.constant 0 : i32
    %c0_i32_0 = arith.constant 0 : i32
    %c0_i32_1 = arith.constant 0 : i32
    return %c0_i32, %c0_i32_0 : i32, i32
  }
  func.func @transform_12(%arg0: i32) -> (i32, i32) {
    %c0_i32 = arith.constant 0 : i32
    %c0_i32_0 = arith.constant 0 : i32
    %c0_i32_1 = arith.constant 0 : i32
    return %c0_i32, %c0_i32_0 : i32, i32
  }
  func.func @transform_13(%arg0: i32) -> (i32, i32) {
    %c0_i32 = arith.constant 0 : i32
    %c0_i32_0 = arith.constant 0 : i32
    %c0_i32_1 = arith.constant 0 : i32
    return %c0_i32, %c0_i32_0 : i32, i32
  }
  func.func @transform_14(%arg0: i32) -> (i32, i32) {
    %c0_i32 = arith.constant 0 : i32
    %c0_i32_0 = arith.constant 0 : i32
    %c0_i32_1 = arith.constant 0 : i32
    return %c0_i32, %c0_i32_0 : i32, i32
  }
  func.func @transform_15(%arg0: i32) -> (i32, i32) {
    %c0_i32 = arith.constant 0 : i32
    %c0_i32_0 = arith.constant 0 : i32
    %c0_i32_1 = arith.constant 0 : i32
    return %c0_i32, %c0_i32_0 : i32, i32
  }
  func.func @transform_16(%arg0: i32) -> (i32, i32) {
    %c0_i32 = arith.constant 0 : i32
    %c0_i32_0 = arith.constant 0 : i32
    %c0_i32_1 = arith.constant 0 : i32
    return %c0_i32, %c0_i32_0 : i32, i32
  }
  func.func @transform_17(%arg0: i32) -> (i32, i32) {
    %c0_i32 = arith.constant 0 : i32
    %c0_i32_0 = arith.constant 0 : i32
    %c0_i32_1 = arith.constant 0 : i32
    return %c0_i32, %c0_i32_0 : i32, i32
  }
  func.func @transform_18(%arg0: i32) -> (i32, i32) {
    %c0_i32 = arith.constant 0 : i32
    %c0_i32_0 = arith.constant 0 : i32
    %c0_i32_1 = arith.constant 0 : i32
    return %c0_i32, %c0_i32_0 : i32, i32
  }
  func.func @transform_19(%arg0: i32) -> (i32, i32) {
    %c0_i32 = arith.constant 0 : i32
    %c0_i32_0 = arith.constant 0 : i32
    %c0_i32_1 = arith.constant 0 : i32
    return %c0_i32, %c0_i32_0 : i32, i32
  }
  func.func @transform_20(%arg0: i32) -> (i32, i32) {
    %c0_i32 = arith.constant 0 : i32
    %c0_i32_0 = arith.constant 0 : i32
    %c0_i32_1 = arith.constant 0 : i32
    return %c0_i32, %c0_i32_0 : i32, i32
  }
  func.func @transform_21(%arg0: i32) -> (i32, i32) {
    %c0_i32 = arith.constant 0 : i32
    %c0_i32_0 = arith.constant 0 : i32
    %c0_i32_1 = arith.constant 0 : i32
    return %c0_i32, %c0_i32_0 : i32, i32
  }
  func.func @transform_22(%arg0: i32) -> (i32, i32, i32) {
    %c0_i32 = arith.constant 0 : i32
    %c0_i32_0 = arith.constant 0 : i32
    %c0_i32_1 = arith.constant 0 : i32
    return %arg0, %c0_i32, %c0_i32_0 : i32, i32, i32
  }
}

</mosaic_0001>

<bundles_post_ra>
// kernel: tpu_custom_call.1
= control target key start
LH: loop header
LB: loop body
LE: loop exit
PB: predicated region body
PF: predicated region fallthrough
CT: control target
= control target key end

     0   :  { %s11452_s0 = inlined_call_operand.vmem [shape: f32[2,6,256], index: 0, kind: input, shape index: {}]   ;;  %s11453_s1 = inlined_call_operand.vmem [shape: f32[6,1], index: 1, kind: input, shape index: {}]   ;;  %s11454_s2 = inlined_call_operand.vmem [shape: f32[6,1], index: 2, kind: input, shape index: {}]   ;;  %s11455_s3 = inlined_call_operand.vmem [shape: f32[6,1], index: 3, kind: input, shape index: {}]   ;;  %s11456_s4 = inlined_call_operand.vmem [shape: f32[6,6], index: 4, kind: input, shape index: {}]   ;;  %s11457_s5 = inlined_call_operand.vmem [shape: f32[6,1], index: 5, kind: input, shape index: {}]   ;;  %s11458_s6 = inlined_call_operand.vmem [shape: f32[6,6], index: 6, kind: input, shape index: {}]   ;;  %s11459_s7 = inlined_call_operand.vmem [shape: f32[6,1], index: 7, kind: input, shape index: {}]   ;;  %s11460_s8 = inlined_call_operand.vmem [shape: f32[6,6], index: 8, kind: input, shape index: {}]   ;;  %s11461_s9 = inlined_call_operand.vmem [shape: f32[6,1], index: 9, kind: input, shape index: {}]   ;;  %s11462_s10 = inlined_call_operand.vmem [shape: f32[6,49], index: 10, kind: input, shape index: {}]   ;;  %s11463_s11 = inlined_call_operand.vmem [shape: f32[6,1], index: 11, kind: input, shape index: {}]   ;;  %s11464_s12 = inlined_call_operand.vmem [shape: f32[6,49], index: 12, kind: input, shape index: {}]   ;;  %s11465_s13 = inlined_call_operand.vmem [shape: f32[6,1], index: 13, kind: input, shape index: {}]   ;;  %s11466_s14 = inlined_call_operand.vmem [shape: f32[2,25], index: 14, kind: input, shape index: {}]   ;;  %s11467_s15 = inlined_call_operand.vmem [shape: f32[2,1], index: 15, kind: input, shape index: {}]   ;;  %s11468_s16 = inlined_call_operand.vmem [shape: f32[2,49], index: 16, kind: input, shape index: {}]   ;;  %s11469_s17 = inlined_call_operand.vmem [shape: f32[2,1], index: 17, kind: input, shape index: {}]   ;;  %s11470_s18 = inlined_call_operand.vmem [shape: f32[2,81], index: 18, kind: input, shape index: {}]   ;;  %s11471_s19 = inlined_call_operand.vmem [shape: f32[2,1], index: 19, kind: input, shape index: {}]   ;;  %s11472_s20 = inlined_call_operand.vmem [shape: f32[6,6], index: 20, kind: input, shape index: {}]   ;;  %s11473_s21 = inlined_call_operand.vmem [shape: f32[6,1], index: 21, kind: input, shape index: {}]   ;;  %s11474_s22 = inlined_call_operand.vmem [shape: f32[2,6,256], index: 22, kind: output, shape index: {}]  }
   0x1   :  { %11786 = sst [smem:[#allocation232_spill]] %s11452_s0 }
   0x2   :  { %11787 = sst [smem:[#allocation233_spill]] %s11453_s1 }
   0x3   :  { %11788 = sst [smem:[#allocation234_spill]] %s11454_s2 }
   0x4   :  { %11789 = sst [smem:[#allocation235_spill]] %s11455_s3  ;;  %s6891_s3 = smov 0  }
   0x5   :  { %11790 = sst [smem:[#allocation236_spill]] %s11456_s4 }
   0x6   :  { %11791 = sst [smem:[#allocation237_spill]] %s11457_s5 }
   0x7   :  { %11792 = sst [smem:[#allocation238_spill]] %s11458_s6 }
   0x8 LB: > { %s5976_s28 = sadd.s32 4294967295, %s6638_s3   ;;  %p5980_p0 = scmp.ge.s32.totalorder %s6638_s3, 1  ;;  %s6638_s3 = sphi %s6891_s3, %s32_s3  }
   0x9   : > { %p612_p1 = scmp.lt.s32.totalorder %s6638_s3, 3 }
   0xb   : > { %p613_p2 = pnand %p5980_p0, %p612_p1 }
   0xd   : > { %616 = sbr.rel (%p613_p2) target bundleno = 11013 (0x2b05), region = 108 }
  0x12   : > { %v6902_v0 = vld [vmem:[%s11462_s10] sm:$0x3f]  ;;  %s11793_s23 = sld [smem:[#allocation233_spill]]  ;;  %v11501_v2 = vmov 0   ;;  %p674_p3 = scmp.lt.s32.totalorder %s5976_s28, 1  ;;  %v11495_v5 = vmov 7  }
  0x13   : > { %6151 = vset.pattern.permute.xlu2 %v11501_v2  ;;  %6149 = vset.pattern.permute.xlu0 %v11501_v2  ;;  %v6914_v3 = vld [vmem:[%s11464_s12] sm:$0x3f]  ;;  %s11794_s25 = sld [smem:[#allocation234_spill]]  ;;  %v6642_v6 = vmov 6.0   ;;  %v11485_v7 = vmov 14   ;;  %vm11606_vm0 = vcmask 1045504  }
  0x14   : > { %898 = vperm.xlu2 %6151, %v6902_v0   ;;  %6150 = vset.pattern.permute.xlu1 %v11501_v2  ;;  %s12500_s28 = smov (!%p674_p3, %s5976_s28), 1  ;;  %s11795_s29 = sld [smem:[#allocation232_spill]]  ;;  %6606 = vrcp.f32 %v6642_v6  ;;  %v11491_v21 = vmov 21   ;;  %v11483_v35 = vmov 28   ;;  %v11478_v40 = vmov 35  }
  0x15   : > { %s11605_s26 = sshll.u32 %s12500_s28, 4  ;;  %v11497_v45 = vmov 0.0   ;;  %v11481_v47 = vmov 42   ;;  %v11487_v53 = vmov 8   ;;  %v11499_v59 = vmov 15   ;;  %s6651_s24 = smov 112  }
  0x16   : > { %686 = vst [vmem:[#allocation2 + $0x28] sm:$0x3f] %v11497_v45  ;;  %v834_v62 = vld [vmem:[%s11459_s7] sm:$0x3f]  ;;  %s6653_s6 = smov 96   ;;  %s11797_s27 = sld [smem:[#allocation236_spill]] }
  0x17   : > { %685 = vst [vmem:[#allocation2] sm:$0x3f] %v11497_v45  ;;  %vm11763_vm8 = vcmask 48128   ;;  %s11798_s0 = sld [smem:[#allocation238_spill]]  ;;  %s11623_s1 = smov 64   ;;  %vm929_vm9 = vcmask 916480  }
  0x18   : > { %v736_v1 = vld [vmem:[%s11793_s23] sm:$0x3f]  ;;  %687 = vst [vmem:[#allocation2 + $0x10] sm:$0x3f] %v11497_v45  ;;  %s11796_s23 = sld [smem:[#allocation237_spill]]  ;;  %s6656_s5 = smov 48  }
  0x19   : > { %763 = vperm.xlu0 %6149, %v736_v1   ;;  %v768_v4 = vld [vmem:[%s11794_s25] sm:$0x3f]  ;;  %688 = vst [vmem:[#allocation2 + $0x8] sm:$0x3f] %v11497_v45  ;;  %s11631_s25 = smov 32   ;;  %vm978_vm10 = vcmask 785408  }
  0x1a   : > { %s6932_s30 = scalar_lea.vmem %s11795_s29, %s11605_s26  ;;  %v6607_v14 = vpop.eup %6606  ;;  %vm1027_vm11 = vcmask 654336   ;;  %vm11756_vm12 = vcmask 523264   ;;  %vm1128_vm13 = vcmask 392192   ;;  %vm1177_vm14 = vcmask 261120   ;;  %s6665_s2 = smov 51  }
  0x1b   : > { %v690_v8 = vld [vmem:[%s6932_s30] sm:$0x3f]  ;;  %v691_v9 = vld [vmem:[%s6932_s30 + $0x8] sm:$0x3f]  ;;  %v708_v17 = vmul.f32 6.0, %v6607_v14  ;;  %vm712_vm1 = vweird.f32 %v6607_v14  ;;  %s6671_s29 = smov 49  }
  0x1c   : > { %907 = vperm.xlu2 %6151, %v6914_v3   ;;  %v693_v10 = vsel %vm11606_vm0, %v690_v8, 0.0  ;;  %v700_v11 = vsel %vm11606_vm0, %v691_v9, 0.0  ;;  %s6686_s4 = smov 47   ;;  %s11627_s26 = smov 68  }
  0x1d   : > { %v694_v12 = vrot.slane %v693_v10, 4  ;;  %v701_v13 = vrot.slane %v700_v11, 4  ;;  %v709_v20 = vsub.f32 1.0, %v708_v17 }
  0x1e   : > { %v777_v56 = vld [vmem:[%s11796_s23] sm:$0x3f]  ;;  %s11633_s23 = smov 80  }
  0x1f   : > { %v695_v15 = vadd.f32 %v694_v12, %v693_v10  ;;  %v702_v16 = vadd.f32 %v701_v13, %v700_v11  ;;  %v710_v24 = vmul.f32 %v6607_v14, %v709_v20  ;;  %780 = vperm.xlu1 %6150, %v777_v56   ;;  %v7055_v56 = vld [vmem:[#allocation2 + $0x10] sm:$0x3f] }
  0x20   : > { %11799 = vst [vmem:[#allocation6_spill] sm:$0xff] %v7055_v56 }
  0x21   : > { %771 = vperm.xlu0 %6149, %v768_v4   ;;  %v696_v18 = vrot.slane %v695_v15, 2  ;;  %v703_v19 = vrot.slane %v702_v16, 2  ;;  %v711_v27 = vadd.f32 %v6607_v14, %v710_v24 }
  0x23   : > { %v697_v22 = vadd.f32 %v696_v18, %v695_v15  ;;  %v704_v23 = vadd.f32 %v703_v19, %v702_v16  ;;  %v713_v30 = vsel %vm712_vm1, %v6607_v14, %v711_v27  ;;  %v6985_v14 = vld [vmem:[#allocation2 + $0x28] sm:$0x3f] }
  0x24   : > { %6153 = vset.pattern.permute.xlu2 %v11495_v5 }
  0x25   : > { %939 = vperm.xlu2 %6153, %v6914_v3   ;;  %v698_v25 = vrot.slane %v697_v22, 1  ;;  %v705_v26 = vrot.slane %v704_v23, 1 }
  0x27   : > { %v699_v28 = vadd.f32 %v698_v25, %v697_v22  ;;  %v706_v29 = vadd.f32 %v705_v26, %v704_v23  ;;  %837 = vperm.xlu1 %6150, %v834_v62   ;;  %v11493_v22 = vmov 1  }
  0x29   : > { %6152 = vset.pattern.permute.xlu0 %v11495_v5  ;;  %v714_v31 = vmul.f32 %v713_v30, %v699_v28  ;;  %v715_v32 = vmul.f32 %v713_v30, %v706_v29 }
  0x2a   : > { %914 = vperm.xlu0 %6152, %v6902_v0  }
  0x2b   : > { %v6946_v33 = vsub.f32 %v690_v8, %v714_v31  ;;  %v6948_v34 = vsub.f32 %v691_v9, %v715_v32 }
  0x2d   : > { %6155 = vset.pattern.permute.xlu2 %v11485_v7  ;;  %v718_v36 = vmul.f32 %v6946_v33, %v6946_v33  ;;  %v719_v37 = vmul.f32 %v6948_v34, %v6948_v34 }
  0x2e   : > { %988 = vperm.xlu2 %6155, %v6914_v3  }
  0x2f   : > { %v720_v38 = vsel %vm11606_vm0, %v718_v36, 0.0  ;;  %v727_v39 = vsel %vm11606_vm0, %v719_v37, 0.0  ;;  %6165 = vset.pattern.permute.xlu1 %v11493_v22 }
  0x30   : > { %v721_v41 = vrot.slane %v720_v38, 4  ;;  %v728_v42 = vrot.slane %v727_v39, 4 }
  0x32   : > { %6154 = vset.pattern.permute.xlu0 %v11485_v7  ;;  %v722_v43 = vadd.f32 %v721_v41, %v720_v38  ;;  %v729_v44 = vadd.f32 %v728_v42, %v727_v39  ;;  %v776_v38 = vld [vmem:[%s11797_s27] sm:$0x3f]  ;;  %s6666_s27 = smov 50  }
  0x33   : > { %963 = vperm.xlu0 %6154, %v6902_v0  }
  0x34   : > { %v723_v46 = vrot.slane %v722_v43, 2  ;;  %v730_v48 = vrot.slane %v729_v44, 2 }
  0x36   : > { %6157 = vset.pattern.permute.xlu2 %v11491_v21  ;;  %v724_v49 = vadd.f32 %v723_v46, %v722_v43  ;;  %v731_v50 = vadd.f32 %v730_v48, %v729_v44 }
  0x37   : > { %1037 = vperm.xlu2 %6157, %v6914_v3  }
  0x38   : > { %v725_v51 = vrot.slane %v724_v49, 1  ;;  %v732_v52 = vrot.slane %v731_v50, 1 }
  0x3a   : > { %v726_v54 = vadd.f32 %v725_v51, %v724_v49  ;;  %v733_v55 = vadd.f32 %v732_v52, %v731_v50 }
  0x3b   : > { %6156 = vset.pattern.permute.xlu0 %v11491_v21  ;;  %v11508_v21 = vmov 9  }
  0x3c   : > { %1012 = vperm.xlu0 %6156, %v6902_v0   ;;  %v734_v57 = vmul.f32 %v726_v54, %v713_v30  ;;  %v735_v58 = vmul.f32 %v733_v55, %v713_v30 }
  0x3e   : > { %v737_v60 = vadd.f32 1e-06, %v734_v57  ;;  %v738_v61 = vadd.f32 1e-06, %v735_v58 }
  0x3f   : > { %6159 = vset.pattern.permute.xlu2 %v11483_v35 }
  0x40   : > { %1089 = vperm.xlu2 %6159, %v6914_v3   ;;  %6608 = vrsqrt.f32 %v737_v60  ;;  %vm745_vm2 = vweird.f32 %v737_v60  ;;  %vm755_vm4 = vweird.f32 %v738_v61 }
  0x41   : > { %6610 = vrsqrt.f32 %v738_v61 }
  0x44   : > { %6158 = vset.pattern.permute.xlu0 %v11483_v35 }
  0x45   : > { %1064 = vperm.xlu0 %6158, %v6902_v0  }
  0x46   : > { %v6609_v63 = vpop.eup %6608 }
  0x47   : > { %v6611_v4 = vpop.eup %6610  ;;  %v740_v6 = vmul.f32 %v6609_v63, %v737_v60  ;;  %vm746_vm3 = vweird.f32 %v6609_v63 }
  0x48   : > { %6161 = vset.pattern.permute.xlu2 %v11478_v40  ;;  %v750_v8 = vmul.f32 %v6611_v4, %v738_v61  ;;  %vm756_vm5 = vweird.f32 %v6611_v4  ;;  %vm747_vm6 = vmor %vm745_vm2, %vm746_vm3 }
  0x49   : > { %1138 = vperm.xlu2 %6161, %v6914_v3   ;;  %v741_v10 = vmul.f32 %v6609_v63, %v740_v6  ;;  %vm757_vm7 = vmor %vm755_vm4, %vm756_vm5  ;;  %vm11608_vm4 = vcmask 408576   ;;  %vm1223_vm5 = vcmask 416768  }
  0x4a   : > { %v751_v11 = vmul.f32 %v6611_v4, %v750_v8 }
  0x4b   : > { %v742_v12 = vmul.f32 0.5, %v741_v10 }
  0x4c   : > { %v752_v13 = vmul.f32 0.5, %v751_v11 }
  0x4d   : > { %6160 = vset.pattern.permute.xlu0 %v11478_v40  ;;  %v743_v15 = vsub.f32 1.5, %v742_v12 }
  0x4e   : > { %1113 = vperm.xlu0 %6160, %v6902_v0   ;;  %v753_v16 = vsub.f32 1.5, %v752_v13 }
  0x4f   : > { %v744_v19 = vmul.f32 %v6609_v63, %v743_v15  ;;  %v11489_v15 = vmov 22  }
  0x50   : > { %v754_v20 = vmul.f32 %v6611_v4, %v753_v16 }
  0x51   : > { %6163 = vset.pattern.permute.xlu2 %v11481_v47  ;;  %v748_v24 = vsel %vm747_vm6, %v6609_v63, %v744_v19 }
  0x52   : > { %1187 = vperm.xlu2 %6163, %v6914_v3   ;;  %v758_v25 = vsel %vm757_vm7, %v6611_v4, %v754_v20  ;;  %v759_v28 = vmul.f32 %v748_v24, %v6946_v33  ;;  %v833_v33 = vld [vmem:[%s11798_s0] sm:$0x3f]  ;;  %s6694_s0 = smov 46   ;;  %vm11607_vm7 = vcmask 400384  }
  0x53   : > { %v760_v29 = vmul.f32 %v758_v25, %v6948_v34 }
  0x56   : > { %6162 = vset.pattern.permute.xlu0 %v11481_v47 }
  0x5a   : > { %6166 = vset.pattern.permute.xlu2 %v11487_v53 }
  0x5b   : > { %1260 = vperm.xlu2 %6166, %v6902_v0  }
  0x63   : > { %6168 = vset.pattern.permute.xlu2 %v11499_v59 }
  0x64   : > { %1308 = vperm.xlu2 %6168, %v6902_v0  }
  0x6c   : > { %6170 = vset.pattern.permute.xlu2 %v11489_v15 }
  0x6e   : > { %v6981_v1 = vpop.permute.xlu2 %898 }
  0x76   : > { %v6983_v9 = vpop.permute.xlu2 %907 }
  0x7f   : > { %v6987_v17 = vpop.permute.xlu2 %939 }
  0x80   : > { %v942_v18 = vmul.f32 %v6987_v17, %v6985_v14 }
  0x82   : > { %948 = vrot.lane.b32.xlu0 %v942_v18, %s6651_s24 }
  0x88   : > { %v6993_v26 = vpop.permute.xlu2 %988 }
  0x89   : > { %v991_v27 = vmul.f32 %v6993_v26, %v6985_v14 }
  0x8b   : > { %v764_v23 = vpop.permute.xlu0 %763  ;;  %997 = vrot.lane.b32.xlu0 %v991_v27, %s6653_s6 }
  0x8c   : > { %v766_v30 = vmul.f32 %v764_v23, %v759_v28  ;;  %v767_v31 = vmul.f32 %v764_v23, %v760_v29 }
  0x91   : > { %v7008_v34 = vpop.permute.xlu2 %1037  ;;  %v781_v58 = vpop.permute.xlu1 %780 }
  0x92   : > { %v1040_v39 = vmul.f32 %v7008_v34, %v6985_v14 }
  0x93   : > { %v772_v32 = vpop.permute.xlu0 %771 }
  0x94   : > { %v774_v36 = vadd.f32 %v772_v32, %v766_v30  ;;  %v775_v37 = vadd.f32 %v772_v32, %v767_v31  ;;  %1046 = vrot.lane.b32.xlu0 %v1040_v39, %s11633_s23 }
  0x96   : > { %5985 = vmatpush.msk.msra.mxu0 %vm11606_vm0, %v774_v36  ;;  %5987 = vmatpush.msk.msra.mxu1 %vm11606_vm0, %v775_v37 }
  0x97   : > { %5989 = vmatpush.msk.msra.mxu2 %vm11606_vm0, %v774_v36  ;;  %5991 = vmatpush.msk.msra.mxu3 %vm11606_vm0, %v775_v37 }
  0x98   : > { %5986 = vmatmul.msk.f32.vlgmr.msra.gmra.mxu0 %vm11763_vm8, %v776_v38  ;;  %5988 = vmatmul.msk.f32.vlgmr.msra.gmra.mxu1 %vm11763_vm8, %v776_v38 }
  0x99   : > { %5990 = vmatmul.msk.f32.vlgmr.msra.gmra.mxu2 %vm11763_vm8, %v833_v33  ;;  %5992 = vmatmul.msk.f32.vlgmr.msra.gmra.mxu3 %vm11763_vm8, %v833_v33  ;;  %v838_v62 = vpop.permute.xlu1 %837  ;;  %v11475_v33 = vmov 29  }
  0x9a   : > { %v7024_v43 = vpop.permute.xlu2 %1089 }
  0x9b   : > { %v1094_v57 = vmul.f32 %v7024_v43, %v7055_v56 }
  0x9c   : > { %v7019_v41 = vpop.permute.xlu0 %914  ;;  %1162 = vperm.xlu0 %6162, %v6902_v0  }
  0x9d   : > { %v917_v42 = vmul.f32 %v7019_v41, %v6985_v14  ;;  %1102 = vrot.lane.b32.xlu2 %v1094_v57, %s11623_s1 }
  0x9f   : > { %923 = vrot.lane.b32.xlu1 %v917_v42, %s6651_s24 }
  0xa3   : > { %v7032_v48 = vpop.permute.xlu2 %1138 }
  0xa4   : > { %6164 = vset.pattern.permute.xlu0 %v11493_v22  ;;  %v1143_v61 = vmul.f32 %v7032_v48, %v7055_v56 }
  0xa5   : > { %v7027_v44 = vpop.permute.xlu0 %963  ;;  %1246 = vperm.xlu0 %6164, %v6902_v0  }
  0xa6   : > { %v966_v46 = vmul.f32 %v7027_v44, %v6985_v14  ;;  %1151 = vrot.lane.b32.xlu2 %v1143_v61, %s6656_s5 }
  0xa8   : > { %972 = vrot.lane.b32.xlu1 %v966_v46, %s6653_s6  ;;  %v11477_v46 = vmov 36  }
  0xac   : > { %v7041_v51 = vpop.permute.xlu2 %1187 }
  0xad   : > { %6169 = vset.pattern.permute.xlu0 %v11499_v59  ;;  %v1192_v63 = vmul.f32 %v7041_v51, %v7055_v56 }
  0xae   : > { %v7036_v49 = vpop.permute.xlu0 %1012 }
  0xaf   : > { %v1015_v50 = vmul.f32 %v7036_v49, %v6985_v14  ;;  %1200 = vrot.lane.b32.xlu2 %v1192_v63, %s11631_s25 }
  0xb1   : > { %1021 = vrot.lane.b32.xlu1 %v1015_v50, %s11633_s23 }
  0xb5   : > { %v7045_v52 = vpop.permute.xlu2 %1260 }
  0xb6   : > { %v1263_v38 = vmul.f32 %v7045_v52, %v6985_v14 }
  0xb7   : > { %v7060_v60 = vpop.permute.xlu0 %1064 }
  0xb8   : > { %v1069_v27 = vmul.f32 %v7060_v60, %v7055_v56 }
  0xb9   : > { %1253 = vperm.xlu1 %6165, %v6914_v3  }
  0xbe   : > { %v7049_v54 = vpop.permute.xlu2 %1308 }
  0xbf   : > { %v1311_v55 = vmul.f32 %v7049_v54, %v6985_v14 }
  0xc0   : > { %v7067_v4 = vpop.permute.xlu0 %1113 }
  0xc1   : > { %6167 = vset.pattern.permute.xlu1 %v11487_v53  ;;  %1317 = vrot.lane.b32.xlu0 %v1311_v55, %s6653_s6  ;;  %v1118_v30 = vmul.f32 %v7067_v4, %v7055_v56 }
  0xc2   : > { %1284 = vperm.xlu1 %6167, %v6914_v3  }
  0xc9   : > { %1332 = vperm.xlu0 %6169, %v6914_v3  }
  0xca   : > { %1077 = vrot.lane.b32.xlu1 %v1069_v27, %s11623_s1 }
  0xcb   : > { %6180 = vset.pattern.permute.xlu1 %v11508_v21 }
  0xd1   : > { %6171 = vset.pattern.permute.xlu0 %v11489_v15 }
  0xd2   : > { %1126 = vrot.lane.b32.xlu1 %v1118_v30, %s6656_s5 }
  0xf4   : > { %v7072_v13 = vpop.permute.xlu0 %948 }
  0xf7   : > { %v7108_v39 = vpop.permute.xlu2 %1102 }
  0xfd   : > { %v7078_v24 = vpop.permute.xlu0 %997 }
 0x100   : > { %v7110_v42 = vpop.permute.xlu2 %1151 }
 0x101   : > { %11800 = vst [vmem:[#allocation7_spill] sm:$0xff] %v7110_v42 }
 0x106   : > { %v7085_v28 = vpop.permute.xlu0 %1046 }
 0x109   : > { %v7113_v50 = vpop.permute.xlu2 %1200 }
 0x10a   : > { %11801 = vst [vmem:[#allocation8_spill] sm:$0xff] %v7113_v50 }
 0x10e   : > { %v7094_v32 = vpop.permute.xlu0 %1162 }
 0x10f   : > { %v1167_v37 = vmul.f32 %v7094_v32, %v7055_v56 }
 0x111   : > { %v7070_v6 = vpop.permute.xlu1 %923  ;;  %1175 = vrot.lane.b32.xlu1 %v1167_v37, %s11631_s25 }
 0x115   : > { %v810_v8 = vpop.f32.mrf.mxu0  ;;  %v830_v10 = vpop.f32.mrf.mxu1 }
 0x116   : > { %v811_v11 = vadd.f32 %v810_v8, %v781_v58  ;;  %v831_v12 = vadd.f32 %v830_v10, %v781_v58 }
 0x118   : > { %885 = vst [vmem:[#allocation2 + $0x38] sm:$0x3f] %v811_v11 }
 0x119   : > { %886 = vst [vmem:[#allocation2 + $0x20] sm:$0x3f] %v831_v12  ;;  %1269 = vrot.lane.b32.xlu1 %v1263_v38, %s6651_s24 }
 0x11a   : > { %v7076_v16 = vpop.permute.xlu1 %972 }
 0x11c   : > { %v860_v18 = vpop.f32.mrf.mxu2  ;;  %v880_v19 = vpop.f32.mrf.mxu3 }
 0x11d   : > { %v861_v20 = vadd.f32 %v860_v18, %v838_v62  ;;  %v881_v23 = vadd.f32 %v880_v19, %v838_v62  ;;  %v7144_v18 = vpop.permute.xlu0 %1246 }
 0x11f   : > { %883 = vst [vmem:[#allocation3] sm:$0x3f] %v861_v20  ;;  %v7131_v63 = vld [vmem:[#allocation2 + $0x38] sm:$0x3f] }
 0x120   : > { %884 = vst [vmem:[#allocation3 + $0x8] sm:$0x3f] %v881_v23  ;;  %v7133_v8 = vld [vmem:[#allocation2 + $0x38] sm:$0x3f]  ;;  %v918_v11 = vmul.f32 %v7019_v41, %v7131_v63  ;;  %v7142_v12 = vld [vmem:[#allocation2 + $0x20] sm:$0x3f]  ;;  %v967_v30 = vmul.f32 %v7027_v44, %v7131_v63 }
 0x121   : > { %11802 = vst [vmem:[#allocation9_spill] sm:$0xff] %v7133_v8  ;;  %v1092_v10 = vmul.f32 %v7024_v43, %v7133_v8  ;;  %v1141_v19 = vmul.f32 %v7032_v48, %v7133_v8  ;;  %v944_v20 = vmul.f32 %v6987_v17, %v7142_v12  ;;  %v1190_v27 = vmul.f32 %v7041_v51, %v7133_v8 }
 0x122   : > { %v993_v37 = vmul.f32 %v6993_v26, %v7142_v12 }
 0x123   : > { %v7080_v25 = vpop.permute.xlu1 %1021 }
 0x12b   : > { %v7087_v29 = vpop.permute.xlu1 %1253 }
 0x133   : > { %v7152_v23 = vpop.permute.xlu0 %1317 }
 0x134   : > { %v7092_v31 = vpop.permute.xlu1 %1284 }
 0x135   : > { %v1287_v36 = vmul.f32 %v7092_v31, %v6985_v14  ;;  %v1289_v47 = vmul.f32 %v7092_v31, %v7142_v12 }
 0x137   : > { %1293 = vrot.lane.b32.xlu2 %v1287_v36, %s6651_s24  ;;  %v1265_v36 = vmul.f32 %v7045_v52, %v7142_v12 }
 0x13b   : > { %v7164_v38 = vpop.permute.xlu0 %1332 }
 0x13f   : > { %1356 = vperm.xlu2 %6170, %v6902_v0  }
 0x147   : > { %6172 = vset.pattern.permute.xlu2 %v11475_v33 }
 0x148   : > { %1404 = vperm.xlu2 %6172, %v6902_v0  }
 0x150   : > { %6174 = vset.pattern.permute.xlu2 %v11477_v46 }
 0x191   : > { %v7115_v55 = vpop.permute.xlu2 %1293 }
 0x199   : > { %v7117_v57 = vpop.permute.xlu2 %1356 }
 0x19a   : > { %v1359_v58 = vmul.f32 %v7117_v57, %v6985_v14 }
 0x19c   : > { %1365 = vrot.lane.b32.xlu0 %v1359_v58, %s11633_s23  ;;  %v1335_v58 = vmul.f32 %v7164_v38, %v6985_v14 }
 0x19e   : > { %1341 = vrot.lane.b32.xlu1 %v1335_v58, %s6653_s6 }
 0x1a2   : > { %v7122_v61 = vpop.permute.xlu2 %1404 }
 0x1a3   : > { %v1409_v62 = vmul.f32 %v7122_v61, %v7055_v56 }
 0x1a4   : > { %1380 = vperm.xlu0 %6171, %v6914_v3  }
 0x1a5   : > { %1417 = vrot.lane.b32.xlu2 %v1409_v62, %s11623_s1  ;;  %v1288_v62 = vmul.f32 %v7092_v31, %v7131_v63  ;;  %v1360_v31 = vmul.f32 %v7117_v57, %v7131_v63 }
 0x1ac   : > { %6173 = vset.pattern.permute.xlu0 %v11475_v33 }
 0x1ad   : > { %1428 = vperm.xlu0 %6173, %v6914_v3   ;;  %1452 = vperm.xlu2 %6174, %v6902_v0  }
 0x1b5   : > { %1098 = vrot.lane.b32.xlu0 %v1092_v10, %s11623_s1  ;;  %925 = vrot.lane.b32.xlu2 %v918_v11, %s6651_s24  ;;  %v1016_v10 = vmul.f32 %v7036_v49, %v7131_v63  ;;  %v1407_v11 = vmul.f32 %v7122_v61, %v7133_v8 }
 0x1b6   : > { %6175 = vset.pattern.permute.xlu0 %v11477_v46 }
 0x1bd   : > { %1147 = vrot.lane.b32.xlu0 %v1141_v19, %s6656_s5  ;;  %952 = vrot.lane.b32.xlu2 %v944_v20, %s6651_s24  ;;  %v1042_v19 = vmul.f32 %v7008_v34, %v7142_v12  ;;  %v7183_v20 = vld [vmem:[#allocation2 + $0x20] sm:$0x3f] }
 0x1be   : > { %11803 = vst [vmem:[#allocation10_spill] sm:$0xff] %v7183_v20 }
 0x1c5   : > { %1196 = vrot.lane.b32.xlu0 %v1190_v27, %s11631_s25  ;;  %974 = vrot.lane.b32.xlu2 %v967_v30, %s6653_s6  ;;  %v1068_v27 = vmul.f32 %v7060_v60, %v7183_v20  ;;  %v1117_v30 = vmul.f32 %v7067_v4, %v7183_v20 }
 0x1cd   : > { %1273 = vrot.lane.b32.xlu0 %v1265_v36, %s6651_s24  ;;  %1001 = vrot.lane.b32.xlu2 %v993_v37, %s6653_s6  ;;  %v1166_v36 = vmul.f32 %v7094_v32, %v7183_v20  ;;  %v1264_v37 = vmul.f32 %v7045_v52, %v7131_v63 }
 0x1d5   : > { %1295 = vrot.lane.b32.xlu0 %v1288_v62, %s6651_s24  ;;  %1023 = vrot.lane.b32.xlu2 %v1016_v10, %s11633_s23  ;;  %v1313_v62 = vmul.f32 %v7049_v54, %v7142_v12 }
 0x1dd   : > { %1413 = vrot.lane.b32.xlu0 %v1407_v11, %s11623_s1  ;;  %1050 = vrot.lane.b32.xlu2 %v1042_v19, %s11633_s23  ;;  %v1336_v19 = vmul.f32 %v7164_v38, %v7131_v63 }
 0x1e5   : > { %1075 = vrot.lane.b32.xlu2 %v1068_v27, %s11623_s1  ;;  %v1361_v27 = vmul.f32 %v7117_v57, %v7142_v12 }
 0x1ed   : > { %1124 = vrot.lane.b32.xlu2 %v1117_v30, %s6656_s5 }
 0x1f5   : > { %1173 = vrot.lane.b32.xlu2 %v1166_v36, %s11631_s25 }
 0x1fd   : > { %1271 = vrot.lane.b32.xlu2 %v1264_v37, %s6651_s24 }
 0x1ff   : > { %v7197_v58 = vpop.permute.xlu2 %1417 }
 0x205   : > { %1321 = vrot.lane.b32.xlu2 %v1313_v62, %s6653_s6 }
 0x207   : > { %v7202_v10 = vpop.permute.xlu2 %1452 }
 0x208   : > { %v1455_v11 = vmul.f32 %v7202_v10, %v7133_v8 }
 0x20a   : > { %1461 = vrot.lane.b32.xlu0 %v1455_v11, %s6656_s5 }
 0x20d   : > { %1343 = vrot.lane.b32.xlu2 %v1336_v19, %s6653_s6 }
 0x20e   : > { %v7210_v52 = vpop.permute.xlu0 %1365 }
 0x20f   : > { %11804 = vst [vmem:[#allocation11_spill] sm:$0xff] %v7210_v52 }
 0x212   : > { %1476 = vperm.xlu0 %6175, %v6914_v3  }
 0x215   : > { %1369 = vrot.lane.b32.xlu2 %v1361_v27, %s11633_s23  ;;  %v919_v27 = vmul.f32 %v7019_v41, %v7142_v12  ;;  %v992_v41 = vmul.f32 %v6993_v26, %v7131_v63 }
 0x216   : > { %v7216_v30 = vpop.permute.xlu0 %1380 }
 0x217   : > { %v1383_v36 = vmul.f32 %v7216_v30, %v6985_v14  ;;  %v1384_v37 = vmul.f32 %v7216_v30, %v7131_v63 }
 0x219   : > { %1389 = vrot.lane.b32.xlu1 %v1383_v36, %s11633_s23  ;;  %v1457_v36 = vmul.f32 %v7202_v10, %v7055_v56 }
 0x21d   : > { %1391 = vrot.lane.b32.xlu2 %v1384_v37, %s11633_s23  ;;  %v943_v37 = vmul.f32 %v6987_v17, %v7131_v63 }
 0x21f   : > { %v7224_v62 = vpop.permute.xlu0 %1428 }
 0x220   : > { %v1433_v11 = vmul.f32 %v7224_v62, %v7055_v56  ;;  %v1432_v19 = vmul.f32 %v7224_v62, %v7183_v20  ;;  %v1431_v57 = vmul.f32 %v7224_v62, %v7133_v8 }
 0x222   : > { %1441 = vrot.lane.b32.xlu1 %v1433_v11, %s11623_s1  ;;  %v968_v11 = vmul.f32 %v7027_v44, %v7142_v12  ;;  %v1041_v44 = vmul.f32 %v7008_v34, %v7131_v63  ;;  %v1116_v34 = vmul.f32 %v7067_v4, %v7133_v8  ;;  %v1165_v4 = vmul.f32 %v7094_v32, %v7133_v8 }
 0x225   : > { %1439 = vrot.lane.b32.xlu2 %v1432_v19, %s11623_s1 }
 0x227   : > { %v7246_v19 = vpop.permute.xlu0 %1098 }
 0x22a   : > { %927 = vrot.lane.b32.xlu1 %v919_v27, %s6651_s24  ;;  %v7249_v27 = vpop.permute.xlu2 %925 }
 0x22d   : > { %1465 = vrot.lane.b32.xlu2 %v1457_v36, %s6656_s5  ;;  %v1017_v36 = vmul.f32 %v7036_v49, %v7142_v12 }
 0x22f   : > { %v7254_v17 = vpop.permute.xlu0 %1147 }
 0x230   : > { %11805 = vst [vmem:[#allocation12_spill] sm:$0xff] %v7254_v17 }
 0x232   : > { %950 = vrot.lane.b32.xlu1 %v943_v37, %s6651_s24  ;;  %v7256_v37 = vpop.permute.xlu2 %952 }
 0x237   : > { %v7261_v26 = vpop.permute.xlu0 %1196 }
 0x238   : > { %11806 = vst [vmem:[#allocation13_spill] sm:$0xff] %v7261_v26 }
 0x23a   : > { %976 = vrot.lane.b32.xlu1 %v968_v11, %s6653_s6  ;;  %v7263_v11 = vpop.permute.xlu2 %974 }
 0x23b   : > { %11807 = vst [vmem:[#allocation14_spill] sm:$0xff] %v7263_v11 }
 0x23f   : > { %v7268_v49 = vpop.permute.xlu0 %1273 }
 0x242   : > { %999 = vrot.lane.b32.xlu1 %v992_v41, %s6653_s6  ;;  %v1067_v41 = vmul.f32 %v7060_v60, %v7133_v8  ;;  %v7272_v33 = vpop.permute.xlu2 %1001  ;;  %v11479_v60 = vmov 43  }
 0x243   : > { %6176 = vset.pattern.permute.xlu2 %v11479_v60  ;;  %6177 = vset.pattern.permute.xlu0 %v11479_v60  ;;  %v1191_v60 = vmul.f32 %v7041_v51, %v7183_v20 }
 0x24a   : > { %1025 = vrot.lane.b32.xlu1 %v1017_v36, %s11633_s23  ;;  %v1093_v36 = vmul.f32 %v7024_v43, %v7183_v20  ;;  %v7280_v46 = vpop.permute.xlu2 %1023  ;;  %v1142_v43 = vmul.f32 %v7032_v48, %v7183_v20 }
 0x252   : > { %1048 = vrot.lane.b32.xlu1 %v1041_v44, %s11633_s23  ;;  %v7277_v44 = vpop.permute.xlu0 %1295 }
 0x25a   : > { %1073 = vrot.lane.b32.xlu1 %v1067_v41, %s11623_s1  ;;  %v7287_v41 = vpop.permute.xlu0 %1413 }
 0x25b   : > { %11808 = vst [vmem:[#allocation15_spill] sm:$0xff] %v7287_v41 }
 0x262   : > { %1100 = vrot.lane.b32.xlu1 %v1093_v36, %s11623_s1  ;;  %v7289_v36 = vpop.permute.xlu2 %1050 }
 0x26a   : > { %1122 = vrot.lane.b32.xlu1 %v1116_v34, %s6656_s5  ;;  %v7296_v40 = vpop.permute.xlu2 %1075 }
 0x26b   : > { %11810 = vst [vmem:[#allocation17_spill] sm:$0xff] %v7296_v40 }
 0x272   : > { %1149 = vrot.lane.b32.xlu1 %v1142_v43, %s6656_s5  ;;  %v7305_v32 = vpop.permute.xlu2 %1124 }
 0x27a   : > { %1171 = vrot.lane.b32.xlu1 %v1165_v4, %s11631_s25  ;;  %v1312_v4 = vmul.f32 %v7049_v54, %v7131_v63  ;;  %v7312_v51 = vpop.permute.xlu2 %1173  ;;  %v1385_v54 = vmul.f32 %v7216_v30, %v7142_v12  ;;  %v1456_v30 = vmul.f32 %v7202_v10, %v7183_v20 }
 0x27c   : > { %v7294_v34 = vpop.permute.xlu0 %1461 }
 0x27d   : > { %11809 = vst [vmem:[#allocation16_spill] sm:$0xff] %v7294_v34 }
 0x282   : > { %1198 = vrot.lane.b32.xlu1 %v1191_v60, %s11631_s25  ;;  %v1337_v60 = vmul.f32 %v7164_v38, %v7142_v12 }
 0x284   : > { %v1477_v48 = vpop.permute.xlu0 %1476 }
 0x285   : > { %v1480_v43 = vmul.f32 %v1477_v48, %v7183_v20 }
 0x287   : > { %1487 = vrot.lane.b32.xlu2 %v1480_v43, %s6656_s5  ;;  %v7317_v43 = vpop.permute.xlu2 %1271 }
 0x28a   : > { %1297 = vrot.lane.b32.xlu1 %v1289_v47, %s6651_s24 }
 0x28f   : > { %1500 = vperm.xlu2 %6176, %v6902_v0   ;;  %v7322_v47 = vpop.permute.xlu2 %1321 }
 0x292   : > { %1319 = vrot.lane.b32.xlu1 %v1312_v4, %s6653_s6  ;;  %v1408_v4 = vmul.f32 %v7122_v61, %v7183_v20 }
 0x297   : > { %v7329_v38 = vpop.permute.xlu2 %1343 }
 0x298   : > { %11811 = vst [vmem:[#allocation18_spill] sm:$0xff] %v7329_v38 }
 0x29a   : > { %1345 = vrot.lane.b32.xlu1 %v1337_v60, %s6653_s6  ;;  %v7332_v60 = vpop.permute.xlu1 %1077 }
 0x2a2   : > { %1367 = vrot.lane.b32.xlu1 %v1360_v31, %s11633_s23  ;;  %v7337_v31 = vpop.permute.xlu2 %1369 }
 0x2aa   : > { %1393 = vrot.lane.b32.xlu1 %v1385_v54, %s11633_s23  ;;  %v7341_v54 = vpop.permute.xlu1 %1126  ;;  %v7344_v61 = vpop.permute.xlu2 %1391 }
 0x2ab   : > { %11812 = vst [vmem:[#allocation19_spill] sm:$0xff] %v7344_v61 }
 0x2b2   : > { %1415 = vrot.lane.b32.xlu1 %v1408_v4, %s11623_s1  ;;  %v1479_v4 = vmul.f32 %v1477_v48, %v7133_v8  ;;  %v7348_v35 = vpop.permute.xlu1 %1175  ;;  %v7350_v62 = vpop.permute.xlu2 %1439 }
 0x2b3   : > { %11813 = vst [vmem:[#allocation20_spill] sm:$0xff] %v7350_v62 }
 0x2ba   : > { %1437 = vrot.lane.b32.xlu1 %v1431_v57, %s11623_s1  ;;  %v1481_v57 = vmul.f32 %v1477_v48, %v7055_v56  ;;  %v7354_v7 = vpop.permute.xlu1 %1269  ;;  %v7356_v10 = vpop.permute.xlu2 %1465 }
 0x2c2   : > { %1463 = vrot.lane.b32.xlu1 %v1456_v30, %s6656_s5  ;;  %v7358_v53 = vpop.permute.xlu1 %1341  ;;  %v11504_v30 = vmov 2  }
 0x2c3   : > { %11814 = vst [vmem:[#allocation21_spill] sm:$0xff] %v7358_v53  ;;  %6178 = vset.pattern.permute.xlu2 %v11504_v30 }
 0x2ca   : > { %1485 = vrot.lane.b32.xlu1 %v1479_v4, %s6656_s5  ;;  %v7363_v4 = vpop.permute.xlu1 %1389 }
 0x2cb   : > { %11816 = vst [vmem:[#allocation23_spill] sm:$0xff] %v7363_v4 }
 0x2d2   : > { %1489 = vrot.lane.b32.xlu1 %v1481_v57, %s6656_s5  ;;  %v7372_v45 = vpop.permute.xlu1 %1441 }
 0x2d3   : > { %11817 = vst [vmem:[#allocation24_spill] sm:$0xff] %v7372_v45 }
 0x2da   : > { %v7375_v59 = vpop.permute.xlu1 %927 }
 0x2e1   : > { %v7361_v15 = vpop.permute.xlu2 %1487 }
 0x2e2   : > { %11815 = vst [vmem:[#allocation22_spill] sm:$0xff] %v7361_v15  ;;  %v7379_v2 = vpop.permute.xlu1 %950 }
 0x2e3   : > { %11818 = vst [vmem:[#allocation25_spill] sm:$0xff] %v7379_v2 }
 0x2e9   : > { %v1501_v22 = vpop.permute.xlu2 %1500 }
 0x2ea   : > { %v1505_v48 = vmul.f32 %v1501_v22, %v7055_v56  ;;  %v1504_v57 = vmul.f32 %v1501_v22, %v7183_v20  ;;  %v1503_v5 = vmul.f32 %v1501_v22, %v7133_v8  ;;  %v7383_v22 = vpop.permute.xlu1 %976 }
 0x2eb   : > { %11819 = vst [vmem:[#allocation26_spill] sm:$0xff] %v7383_v22 }
 0x2ec   : > { %1513 = vrot.lane.b32.xlu2 %v1505_v48, %s11631_s25  ;;  %1511 = vrot.lane.b32.xlu1 %v1504_v57, %s11631_s25 }
 0x2ed   : > { %1509 = vrot.lane.b32.xlu0 %v1503_v5, %s11631_s25 }
 0x2f2   : > { %v7385_v48 = vpop.permute.xlu1 %999 }
 0x2f5   : > { %1524 = vperm.xlu0 %6177, %v6914_v3  }
 0x2fa   : > { %v7387_v5 = vpop.permute.xlu1 %1025 }
 0x2fb   : > { %11820 = vst [vmem:[#allocation27_spill] sm:$0xff] %v7387_v5 }
 0x2fd   : > { %6179 = vset.pattern.permute.xlu0 %v11504_v30 }
 0x2fe   : > { %1594 = vperm.xlu0 %6179, %v6914_v3  }
 0x302   : > { %v7389_v57 = vpop.permute.xlu1 %1048 }
 0x306   : > { %6181 = vset.pattern.permute.xlu0 %v11508_v21 }
 0x307   : > { %1625 = vperm.xlu0 %6181, %v6914_v3  }
 0x30a   : > { %v7391_v4 = vpop.permute.xlu1 %1073 }
 0x312   : > { %v7393_v61 = vpop.permute.xlu1 %1100 }
 0x31a   : > { %v7395_v30 = vpop.permute.xlu1 %1122 }
 0x322   : > { %v7397_v34 = vpop.permute.xlu1 %1149 }
 0x323   : > { %11821 = vst [vmem:[#allocation28_spill] sm:$0xff] %v7397_v34  ;;  %v11527_v34 = vmov 16  }
 0x324   : > { %6183 = vset.pattern.permute.xlu0 %v11527_v34 }
 0x32a   : > { %v7399_v41 = vpop.permute.xlu1 %1171 }
 0x332   : > { %v7403_v53 = vpop.permute.xlu1 %1198 }
 0x333   : > { %11823 = vst [vmem:[#allocation30_spill] sm:$0xff] %v7403_v53 }
 0x33a   : > { %v7410_v17 = vpop.permute.xlu1 %1297 }
 0x35f   : > { %v7401_v21 = vpop.permute.xlu0 %1509 }
 0x360   : > { %11822 = vst [vmem:[#allocation29_spill] sm:$0xff] %v7401_v21  ;;  %v7415_v21 = vpop.permute.xlu1 %1319 }
 0x367   : > { %v1525_v3 = vpop.permute.xlu0 %1524 }
 0x368   : > { %v1528_v38 = vmul.f32 %v1525_v3, %v7183_v20  ;;  %v1527_v26 = vmul.f32 %v1525_v3, %v7133_v8  ;;  %v1529_v50 = vmul.f32 %v1525_v3, %v7055_v56  ;;  %v7417_v53 = vpop.permute.xlu1 %1345 }
 0x36a   : > { %1535 = vrot.lane.b32.xlu2 %v1528_v38, %s11631_s25  ;;  %1533 = vrot.lane.b32.xlu1 %v1527_v26, %s11631_s25 }
 0x370   : > { %v7419_v20 = vpop.permute.xlu1 %1367  ;;  %v7441_v42 = vpop.permute.xlu0 %1594 }
 0x371   : > { %11824 = vst [vmem:[#allocation31_spill] sm:$0xff] %v7419_v20 }
 0x372   : > { %1587 = vperm.xlu2 %6178, %v6902_v0   ;;  %1537 = vrot.lane.b32.xlu1 %v1529_v50, %s11631_s25  ;;  %11830 = vst [vmem:[#allocation37_spill] sm:$0xff] %v7441_v42 }
 0x378   : > { %v7421_v8 = vpop.permute.xlu1 %1393 }
 0x37a   : > { %1601 = vperm.xlu1 %6180, %v6902_v0   ;;  %6182 = vset.pattern.permute.xlu2 %v11527_v34 }
 0x380   : > { %v7423_v38 = vpop.permute.xlu1 %1415 }
 0x388   : > { %v7425_v26 = vpop.permute.xlu1 %1437 }
 0x389   : > { %11825 = vst [vmem:[#allocation32_spill] sm:$0xff] %v7425_v26 }
 0x390   : > { %v7427_v3 = vpop.permute.xlu1 %1463 }
 0x398   : > { %v7429_v56 = vpop.permute.xlu1 %1485 }
 0x399   : > { %11826 = vst [vmem:[#allocation33_spill] sm:$0xff] %v7429_v56 }
 0x3a0   : > { %v7431_v15 = vpop.permute.xlu1 %1489 }
 0x3a1   : > { %11827 = vst [vmem:[#allocation34_spill] sm:$0xff] %v7431_v15  ;;  %v1626_v15 = vpop.permute.xlu0 %1625 }
 0x3a2   : > { %v1629_v34 = vmul.f32 %v1626_v15, %v7131_v63  ;;  %v1630_v42 = vmul.f32 %v1626_v15, %v7142_v12 }
 0x3a8   : > { %v7433_v50 = vpop.permute.xlu1 %1511 }
 0x3dc   : > { %v7435_v52 = vpop.permute.xlu1 %1533 }
 0x3dd   : > { %11828 = vst [vmem:[#allocation35_spill] sm:$0xff] %v7435_v52  ;;  %v1628_v52 = vmul.f32 %v1626_v15, %v6985_v14 }
 0x3e4   : > { %v7439_v20 = vpop.permute.xlu1 %1537 }
 0x3e5   : > { %11829 = vst [vmem:[#allocation36_spill] sm:$0xff] %v7439_v20 }
 0x3ec   : > { %v1602_v26 = vpop.permute.xlu1 %1601 }
 0x3ed   : > { %v1605_v62 = vmul.f32 %v1602_v26, %v7131_v63  ;;  %v1604_v56 = vmul.f32 %v1602_v26, %v6985_v14  ;;  %v1606_v45 = vmul.f32 %v1602_v26, %v7142_v12 }
 0x3ef   : > { %1612 = vrot.lane.b32.xlu1 %v1605_v62, %s6651_s24  ;;  %1610 = vrot.lane.b32.xlu2 %v1604_v56, %s6651_s24  ;;  %v1514_v56 = vpop.permute.xlu2 %1513 }
 0x3f7   : > { %1614 = vrot.lane.b32.xlu2 %v1606_v45, %s6651_s24  ;;  %1634 = vrot.lane.b32.xlu1 %v1628_v52, %s6651_s24  ;;  %v7456_v62 = vpop.permute.xlu2 %1535  ;;  %v903_v52 = vmul.f32 %v6981_v1, %v7142_v12 }
 0x3f8   : > { %11831 = vst [vmem:[#allocation38_spill] sm:$0xff] %v7456_v62  ;;  %v1251_v62 = vmul.f32 %v7144_v18, %v7142_v12 }
 0x3ff   : > { %1636 = vrot.lane.b32.xlu2 %v1629_v34, %s6651_s24  ;;  %1638 = vrot.lane.b32.xlu1 %v1630_v42, %s6651_s24  ;;  %v7458_v20 = vpop.permute.xlu2 %1587  ;;  %v937_v42 = vadd.f32 %v7375_v59, %v903_v52  ;;  %v901_v34 = vmul.f32 %v6981_v1, %v6985_v14  ;;  %v910_v52 = vmul.f32 %v6983_v9, %v6985_v14 }
 0x400   : > { %11832 = vst [vmem:[#allocation39_spill] sm:$0xff] %v7458_v20  ;;  %v979_v20 = vsel %vm978_vm10, %v7076_v16, %v7263_v11  ;;  %v7490_v16 = vmul.f32 %v6981_v1, %v7131_v63  ;;  %v1081_v11 = vsel %vm11756_vm12, %v7296_v40, %v7332_v60  ;;  %v1003_v1 = vsel %vm978_vm10, %v7078_v24, %v7385_v48 }
 0x401   : > { %v1258_v60 = vmul.f32 %v7087_v29, %v7142_v12 }
 0x402   : > { %11836 = vst [vmem:[#allocation43_spill] sm:$0xff] %v7490_v16 }
 0x407   : > { %1649 = vperm.xlu2 %6182, %v6902_v0   ;;  %v930_v0 = vsel %vm929_vm9, %v7070_v6, %v7249_v27  ;;  %v1249_v6 = vmul.f32 %v7144_v18, %v6985_v14 }
 0x449   : > { %v7460_v26 = vpop.permute.xlu2 %1610 }
 0x44a   : > { %11833 = vst [vmem:[#allocation40_spill] sm:$0xff] %v7460_v26  ;;  %v986_v26 = vadd.f32 %v7383_v22, %v937_v42  ;;  %v954_v42 = vsel %vm929_vm9, %v7072_v13, %v7379_v2 }
 0x44b   : > { %v959_v2 = vadd.f32 %v954_v42, %v910_v52 }
 0x44d   : > { %v1008_v24 = vadd.f32 %v1003_v1, %v959_v2 }
 0x451   : > { %v7462_v45 = vpop.permute.xlu2 %1614 }
 0x452   : > { %11834 = vst [vmem:[#allocation41_spill] sm:$0xff] %v7462_v45  ;;  %v935_v45 = vadd.f32 %v930_v0, %v901_v34  ;;  %v1028_v34 = vsel %vm1027_vm11, %v7080_v25, %v7280_v46  ;;  %v1052_v25 = vsel %vm1027_vm11, %v7085_v28, %v7389_v57  ;;  %v1130_v28 = vsel %vm1128_vm13, %v7305_v32, %v7341_v54 }
 0x453   : > { %v1057_v2 = vadd.f32 %v1052_v25, %v1008_v24  ;;  %v1250_v54 = vmul.f32 %v7144_v18, %v7131_v63  ;;  %v1275_v18 = vsel %vm929_vm9, %v7354_v7, %v7317_v43  ;;  %v1276_v24 = vsel %vm929_vm9, %v7317_v43, %v7268_v49 }
 0x454   : > { %v984_v0 = vadd.f32 %v979_v20, %v935_v45 }
 0x456   : > { %v1033_v40 = vadd.f32 %v1028_v34, %v984_v0  ;;  %v1306_v0 = vadd.f32 %v7410_v17, %v1258_v60  ;;  %v1256_v34 = vmul.f32 %v7087_v29, %v6985_v14 }
 0x458   : > { %v1085_v52 = vadd.f32 %v7391_v4, %v1033_v40 }
 0x459   : > { %v7466_v15 = vpop.permute.xlu2 %1636 }
 0x45a   : > { %11835 = vst [vmem:[#allocation42_spill] sm:$0xff] %v7466_v15  ;;  %v1035_v15 = vadd.f32 %v7387_v5, %v986_v26  ;;  %v912_v26 = vmul.f32 %v6983_v9, %v7142_v12  ;;  %v1282_v5 = vadd.f32 %v7268_v49, %v1251_v62  ;;  %v1134_v1 = vadd.f32 %v7395_v30, %v1085_v52  ;;  %v11841_v52 = vld [vmem:[#allocation31_spill] sm:$0xff] }
 0x45b   : > { %v11842_v49 = vld [vmem:[#allocation11_spill] sm:$0xff] }
 0x45c   : > { %v1087_v16 = vadd.f32 %v1081_v11, %v1035_v15  ;;  %v1330_v22 = vadd.f32 %v7322_v47, %v1282_v5  ;;  %v1420_v11 = vsel %vm11756_vm12, %v7423_v38, %v7197_v58  ;;  %v961_v5 = vadd.f32 %v7256_v37, %v912_v26 }
 0x45d   : > { %v1468_v58 = vsel %vm1128_vm13, %v7427_v3, %v7356_v10  ;;  %v7530_v26 = vmul.f32 %v6983_v9, %v7131_v63  ;;  %v1516_v10 = vsel %vm1177_vm14, %v7433_v50, %v1514_v56  ;;  %v1179_v9 = vsel %vm1177_vm14, %v7312_v51, %v7348_v35 }
 0x45e   : > { %v1378_v15 = vadd.f32 %v7337_v31, %v1330_v22  ;;  %v1136_v42 = vadd.f32 %v1130_v28, %v1087_v16  ;;  %v1010_v40 = vadd.f32 %v7272_v33, %v961_v5  ;;  %v1354_v16 = vadd.f32 %v7417_v53, %v1306_v0  ;;  %v11838_v5 = vld [vmem:[#allocation20_spill] sm:$0xff]  ;;  %v11844_v0 = vld [vmem:[#allocation22_spill] sm:$0xff] }
 0x45f   : > { %v1105_v56 = vsel %vm11756_vm12, %v7393_v61, %v7108_v39  ;;  %v1323_v35 = vsel %vm978_vm10, %v7152_v23, %v7415_v21  ;;  %v11837_v39 = vld [vmem:[#allocation24_spill] sm:$0xff]  ;;  %v931_v28 = vsel %vm929_vm9, %v7249_v27, %v7375_v59  ;;  %v1371_v43 = vsel %vm1027_vm11, %v11842_v49, %v11841_v52 }
 0x460   : > { %v1426_v22 = vadd.f32 %v1420_v11, %v1378_v15  ;;  %v1185_v25 = vadd.f32 %v1179_v9, %v1136_v42  ;;  %v1402_v7 = vadd.f32 %v7421_v8, %v1354_v16  ;;  %v1280_v11 = vadd.f32 %v1275_v18, %v1249_v6  ;;  %v11839_v15 = vld [vmem:[#allocation7_spill] sm:$0xff]  ;;  %v11843_v42 = vld [vmem:[#allocation34_spill] sm:$0xff]  ;;  %v11846_v27 = vld [vmem:[#allocation8_spill] sm:$0xff] }
 0x461   : > { %v1650_v13 = vpop.permute.xlu2 %1649  ;;  %v1444_v23 = vsel %vm11756_vm12, %v11838_v5, %v11837_v39  ;;  %v1281_v59 = vadd.f32 %v1276_v24, %v1250_v54  ;;  %v1324_v18 = vsel %vm978_vm10, %v7415_v21, %v7322_v47  ;;  %v11852_v24 = vld [vmem:[#allocation43_spill] sm:$0xff]  ;;  %v1372_v39 = vsel %vm1027_vm11, %v11841_v52, %v7337_v31  ;;  %v11858_v31 = vld [vmem:[#allocation17_spill] sm:$0xff] }
 0x462   : > { %v1654_v20 = vmul.f32 %v1650_v13, %v7142_v12  ;;  %v1652_v45 = vmul.f32 %v1650_v13, %v6985_v14  ;;  %v1653_v62 = vmul.f32 %v1650_v13, %v7131_v63  ;;  %v1474_v13 = vadd.f32 %v1468_v58, %v1426_v22  ;;  %v11853_v21 = vld [vmem:[#allocation27_spill] sm:$0xff] }
 0x463   : > { %v1059_v14 = vadd.f32 %v7289_v36, %v1010_v40  ;;  %v1328_v58 = vadd.f32 %v1323_v35, %v1280_v11  ;;  %v1492_v22 = vsel %vm1128_vm13, %v11844_v0, %v11843_v42  ;;  %v11845_v40 = vld [vmem:[#allocation12_spill] sm:$0xff]  ;;  %v1450_v16 = vadd.f32 %v1444_v23, %v1402_v7 }
 0x464   : > { %1662 = vrot.lane.b32.xlu2 %v1654_v20, %s6653_s6  ;;  %1658 = vrot.lane.b32.xlu0 %v1652_v45, %s6653_s6  ;;  %v1109_v20 = vadd.f32 %v7246_v19, %v1057_v2  ;;  %v1183_v45 = vadd.f32 %v7399_v41, %v1134_v1  ;;  %v1522_v60 = vadd.f32 %v1516_v10, %v1474_v13  ;;  %v11847_v10 = vld [vmem:[#allocation30_spill] sm:$0xff]  ;;  %v11850_v35 = vld [vmem:[#allocation36_spill] sm:$0xff] }
 0x465   : > { %1660 = vrot.lane.b32.xlu1 %v1653_v62, %s6653_s6  ;;  %v1299_v62 = vsel %vm929_vm9, %v7115_v55, %v7277_v44  ;;  %v11840_v55 = vld [vmem:[#allocation28_spill] sm:$0xff]  ;;  %v1111_v6 = vadd.f32 %v1105_v56, %v1059_v14  ;;  %v1203_v9 = vsel %vm1177_vm14, %v11847_v10, %v11846_v27  ;;  %v11848_v13 = vld [vmem:[#allocation26_spill] sm:$0xff]  ;;  %v1376_v56 = vadd.f32 %v1371_v43, %v1328_v58 }
 0x466   : > { %v1154_v2 = vsel %vm1128_vm13, %v11840_v55, %v11839_v15  ;;  %v1158_v1 = vadd.f32 %v11845_v40, %v1109_v20  ;;  %v1304_v54 = vadd.f32 %v1299_v62, %v1256_v34  ;;  %v936_v11 = vadd.f32 %v931_v28, %v11852_v24  ;;  %v11855_v43 = vld [vmem:[#allocation18_spill] sm:$0xff]  ;;  %v11857_v62 = vld [vmem:[#allocation15_spill] sm:$0xff]  ;;  %v11859_v27 = vld [vmem:[#allocation16_spill] sm:$0xff] }
 0x467   : > { %v1498_v15 = vadd.f32 %v1492_v22, %v1450_v16  ;;  %v1029_v47 = vsel %vm1027_vm11, %v7280_v46, %v11853_v21  ;;  %v1329_v7 = vadd.f32 %v1324_v18, %v1281_v59  ;;  %v1419_v28 = vsel %vm11756_vm12, %v11857_v62, %v7423_v38  ;;  %v11860_v18 = vld [vmem:[#allocation25_spill] sm:$0xff] }
 0x468   : > { %v1080_v52 = vsel %vm11756_vm12, %v7391_v4, %v11858_v31  ;;  %v1424_v46 = vadd.f32 %v11857_v62, %v1376_v56  ;;  %v1300_v38 = vsel %vm929_vm9, %v7277_v44, %v7410_v17  ;;  %v955_v16 = vsel %vm929_vm9, %v11860_v18, %v7256_v37  ;;  %v11862_v56 = vld [vmem:[#allocation19_spill] sm:$0xff] }
 0x469   : > { %v1377_v22 = vadd.f32 %v1372_v39, %v1329_v7  ;;  %v1004_v17 = vsel %vm978_vm10, %v7385_v48, %v7272_v33  ;;  %v1178_v37 = vsel %vm1177_vm14, %v7399_v41, %v7312_v51  ;;  %v960_v48 = vadd.f32 %v955_v16, %v7530_v26 }
 0x46a   : > { %v1104_v21 = vsel %vm11756_vm12, %v7246_v19, %v7393_v61  ;;  %v11866_v61 = vld [vmem:[#allocation35_spill] sm:$0xff] }
 0x46b   : > { %v1009_v24 = vadd.f32 %v1004_v17, %v960_v48  ;;  %v11871_v48 = vld [vmem:[#allocation10_spill] sm:$0xff] }
 0x46c   : > { %1221 = vrot.lane.b32.xlu2 %v1185_v25, %s6665_s2  ;;  %1217 = vrot.lane.b32.xlu0 %v1183_v45, %s6665_s2  ;;  %v11849_v45 = vld [vmem:[#allocation14_spill] sm:$0xff]  ;;  %v1160_v25 = vadd.f32 %v1154_v2, %v1111_v6  ;;  %v11854_v2 = vld [vmem:[#allocation13_spill] sm:$0xff] }
 0x46d   : > { %1558 = vrot.lane.b32.xlu1 %v1522_v60, %s6666_s27  ;;  %v980_v14 = vsel %vm978_vm10, %v11849_v45, %v11848_v13  ;;  %v11851_v60 = vld [vmem:[#allocation38_spill] sm:$0xff]  ;;  %v1207_v49 = vadd.f32 %v11854_v2, %v1158_v1  ;;  %v11856_v6 = vld [vmem:[#allocation21_spill] sm:$0xff]  ;;  %v1257_v1 = vmul.f32 %v7087_v29, %v7131_v63  ;;  %v1129_v29 = vsel %vm1128_vm13, %v7395_v30, %v7305_v32 }
 0x46e   : > { %v1540_v20 = vsel %vm1177_vm14, %v11851_v60, %v11850_v35  ;;  %v1209_v23 = vadd.f32 %v1203_v9, %v1160_v25  ;;  %v1347_v58 = vsel %vm978_vm10, %v11856_v6, %v11855_v43  ;;  %v985_v34 = vadd.f32 %v980_v14, %v936_v11  ;;  %v11861_v45 = vld [vmem:[#allocation29_spill] sm:$0xff]  ;;  %v11863_v35 = vld [vmem:[#allocation23_spill] sm:$0xff]  ;;  %v11864_v11 = vld [vmem:[#allocation32_spill] sm:$0xff] }
 0x46f   : > { %v1546_v42 = vadd.f32 %v1540_v20, %v1498_v15  ;;  %v1467_v9 = vsel %vm1128_vm13, %v11859_v27, %v7427_v3  ;;  %v1352_v4 = vadd.f32 %v1347_v58, %v1304_v54  ;;  %v1425_v13 = vadd.f32 %v1419_v28, %v1377_v22 }
 0x470   : > { %v1034_v59 = vadd.f32 %v1029_v47, %v985_v34  ;;  %v1348_v3 = vsel %vm978_vm10, %v11855_v43, %v7417_v53  ;;  %v1515_v14 = vsel %vm1177_vm14, %v11861_v45, %v7433_v50  ;;  %v1305_v25 = vadd.f32 %v1300_v38, %v1257_v1  ;;  %v7709_v38 = vld [vmem:[%s11462_s10] sm:$0x3f] }
 0x471   : > { %v1473_v32 = vadd.f32 %v1467_v9, %v1425_v13  ;;  %v1472_v30 = vadd.f32 %v11859_v27, %v1424_v46  ;;  %v1395_v33 = vsel %vm1027_vm11, %v11863_v35, %v11862_v56  ;;  %v1396_v53 = vsel %vm1027_vm11, %v11862_v56, %v7421_v8  ;;  %v7700_v46 = vld [vmem:[#allocation2 + $0x28] sm:$0x3f] }
 0x472   : > { %v1086_v44 = vadd.f32 %v1080_v52, %v1034_v59  ;;  %v1053_v50 = vsel %vm1027_vm11, %v7389_v57, %v7289_v36  ;;  %v1353_v41 = vadd.f32 %v1348_v3, %v1305_v25  ;;  %v1443_v39 = vsel %vm11756_vm12, %v11864_v11, %v11838_v5  ;;  %v11865_v57 = vld [vmem:[#allocation33_spill] sm:$0xff] }
 0x473   : > { %v1520_v51 = vadd.f32 %v11861_v45, %v1472_v30  ;;  %v1521_v54 = vadd.f32 %v1515_v14, %v1473_v32  ;;  %v1400_v26 = vadd.f32 %v1395_v33, %v1352_v4  ;;  %v1058_v36 = vadd.f32 %v1053_v50, %v1009_v24 }
 0x474   : > { %1237 = vrot.lane.b32.xlu2 %v1209_v23, %s6665_s2  ;;  %1233 = vrot.lane.b32.xlu0 %v1207_v49, %s6665_s2  ;;  %v1135_v20 = vadd.f32 %v1129_v29, %v1086_v44  ;;  %v1401_v8 = vadd.f32 %v1396_v53, %v1353_v41  ;;  %v1491_v47 = vsel %vm1128_vm13, %v11865_v57, %v11844_v0  ;;  %v11546_v45 = vmov 30   ;;  %v11872_v53 = vld [vmem:[#allocation6_spill] sm:$0xff]  ;;  %v11873_v41 = vld [vmem:[#allocation9_spill] sm:$0xff] }
 0x475   : > { %1576 = vrot.lane.b32.xlu1 %v1546_v42, %s6666_s27  ;;  %v1153_v5 = vsel %vm1128_vm13, %v11845_v40, %v11840_v55  ;;  %v1448_v7 = vadd.f32 %v11864_v11, %v1400_v26  ;;  %v1110_v19 = vadd.f32 %v1104_v21, %v1058_v36  ;;  %v1539_v49 = vsel %vm1177_vm14, %v11866_v61, %v11851_v60  ;;  %v7684_v40 = vld [vmem:[%s11464_s12] sm:$0x3f] }
 0x476   : > { %v1184_v15 = vadd.f32 %v1178_v37, %v1135_v20  ;;  %v1449_v23 = vadd.f32 %v1443_v39, %v1401_v8  ;;  %v1202_v43 = vsel %vm1177_vm14, %v11854_v2, %v11847_v10  ;;  %v11550_v2 = vmov 23  }
 0x477   : > { %v1496_v0 = vadd.f32 %v11865_v57, %v1448_v7  ;;  %v1159_v58 = vadd.f32 %v1153_v5, %v1110_v19  ;;  %6184 = vset.pattern.permute.xlu2 %v11550_v2  ;;  %v11545_v7 = vmov 44  }
 0x478   : > { %v1497_v6 = vadd.f32 %v1491_v47, %v1449_v23 }
 0x479   : > { %v1544_v34 = vadd.f32 %v11866_v61, %v1496_v0  ;;  %v1208_v55 = vadd.f32 %v1202_v43, %v1159_v58  ;;  %v1613_v0 = vpop.permute.xlu1 %1612 }
 0x47a   : > { %v1545_v62 = vadd.f32 %v1539_v49, %v1497_v6 }
 0x47c   : > { %1554 = vrot.lane.b32.xlu2 %v1520_v51, %s6666_s27  ;;  %1556 = vrot.lane.b32.xlu0 %v1521_v54, %s6666_s27 }
 0x47d   : > { %1219 = vrot.lane.b32.xlu1 %v1184_v15, %s6665_s2  ;;  %v7762_v15 = vld [vmem:[#allocation2 + $0x10] sm:$0x3f] }
 0x481   : > { %v7789_v6 = vpop.permute.xlu1 %1634 }
 0x484   : > { %1572 = vrot.lane.b32.xlu2 %v1544_v34, %s6666_s27  ;;  %1574 = vrot.lane.b32.xlu0 %v1545_v62, %s6666_s27  ;;  %s6705_s27 = smov 62  }
 0x485   : > { %1235 = vrot.lane.b32.xlu1 %v1208_v55, %s6665_s2 }
 0x489   : > { %v7791_v58 = vpop.permute.xlu1 %1638 }
 0x48c   : > { %1673 = vperm.xlu0 %6183, %v7684_v40  }
 0x494   : > { %6185 = vset.pattern.permute.xlu0 %v11550_v2 }
 0x4be   : > { %v7713_v27 = vpop.permute.xlu2 %1662 }
 0x4c6   : > { %v7715_v9 = vpop.permute.xlu2 %1221 }
 0x4ce   : > { %v7717_v4 = vpop.permute.xlu2 %1237 }
 0x4cf   : > { %11869 = vst [vmem:[#allocation7_spill] sm:$0xff] %v7717_v4 }
 0x4d6   : > { %v7687_v10 = vpop.permute.xlu0 %1658  ;;  %v7719_v18 = vpop.permute.xlu2 %1554 }
 0x4d7   : > { %v1661_v34 = vpop.permute.xlu1 %1660 }
 0x4de   : > { %v7689_v60 = vpop.permute.xlu0 %1217  ;;  %v7721_v16 = vpop.permute.xlu2 %1572 }
 0x4df   : > { %11870 = vst [vmem:[#allocation28_spill] sm:$0xff] %v7721_v16  ;;  %v7793_v62 = vpop.permute.xlu1 %1558 }
 0x4e6   : > { %v7693_v28 = vpop.permute.xlu0 %1233 }
 0x4e7   : > { %11867 = vst [vmem:[#allocation24_spill] sm:$0xff] %v7693_v28 }
 0x4ee   : > { %v7695_v42 = vpop.permute.xlu0 %1556 }
 0x4f6   : > { %v7697_v31 = vpop.permute.xlu0 %1574 }
 0x4f7   : > { %11868 = vst [vmem:[#allocation20_spill] sm:$0xff] %v7697_v31 }
 0x4fe   : > { %v1674_v52 = vpop.permute.xlu0 %1673 }
 0x4ff   : > { %v1677_v22 = vmul.f32 %v1674_v52, %v7131_v63  ;;  %v1676_v1 = vmul.f32 %v7700_v46, %v1674_v52  ;;  %v1678_v59 = vmul.f32 %v1674_v52, %v7142_v12 }
 0x501   : > { %1684 = vrot.lane.b32.xlu2 %v1677_v22, %s6653_s6  ;;  %1682 = vrot.lane.b32.xlu1 %v1676_v1, %s6653_s6  ;;  %v7799_v22 = vpop.permute.xlu1 %1576 }
 0x502   : > { %11874 = vst [vmem:[#allocation31_spill] sm:$0xff] %v7799_v22 }
 0x509   : > { %1697 = vperm.xlu2 %6184, %v7709_v38   ;;  %1686 = vrot.lane.b32.xlu1 %v1678_v59, %s6653_s6 }
 0x511   : > { %6186 = vset.pattern.permute.xlu2 %v11546_v45 }
 0x55b   : > { %v7723_v29 = vpop.permute.xlu2 %1684 }
 0x563   : > { %v1698_v13 = vpop.permute.xlu2 %1697 }
 0x564   : > { %v1701_v17 = vmul.f32 %v1698_v13, %v7131_v63  ;;  %v1702_v44 = vmul.f32 %v1698_v13, %v7142_v12  ;;  %v1700_v3 = vmul.f32 %v7700_v46, %v1698_v13 }
 0x566   : > { %1710 = vrot.lane.b32.xlu2 %v1702_v44, %s11633_s23  ;;  %1706 = vrot.lane.b32.xlu0 %v1700_v3, %s11633_s23  ;;  %v7806_v44 = vpop.permute.xlu1 %1219 }
 0x567   : > { %1708 = vrot.lane.b32.xlu1 %v1701_v17, %s11633_s23 }
 0x56e   : > { %1721 = vperm.xlu0 %6185, %v7684_v40   ;;  %v7810_v3 = vpop.permute.xlu1 %1235 }
 0x56f   : > { %11875 = vst [vmem:[#allocation11_spill] sm:$0xff] %v7810_v3 }
 0x576   : > { %6187 = vset.pattern.permute.xlu0 %v11546_v45 }
 0x5c0   : > { %v7743_v56 = vpop.permute.xlu2 %1710 }
 0x5d8   : > { %v7734_v14 = vpop.permute.xlu0 %1706 }
 0x5e0   : > { %v1722_v37 = vpop.permute.xlu0 %1721 }
 0x5e1   : > { %v1724_v25 = vmul.f32 %v7700_v46, %v1722_v37  ;;  %v1725_v32 = vmul.f32 %v1722_v37, %v7131_v63  ;;  %v1726_v30 = vmul.f32 %v1722_v37, %v7142_v12  ;;  %v11539_v12 = vmov 37   ;;  %v7812_v37 = vpop.permute.xlu1 %1682 }
 0x5e3   : > { %1732 = vrot.lane.b32.xlu2 %v1725_v32, %s11633_s23  ;;  %1730 = vrot.lane.b32.xlu1 %v1724_v25, %s11633_s23 }
 0x5e9   : > { %v7814_v25 = vpop.permute.xlu1 %1686 }
 0x5eb   : > { %1745 = vperm.xlu2 %6186, %v7709_v38   ;;  %1734 = vrot.lane.b32.xlu1 %v1726_v30, %s11633_s23 }
 0x5f1   : > { %v1709_v32 = vpop.permute.xlu1 %1708 }
 0x5f3   : > { %6188 = vset.pattern.permute.xlu2 %v11539_v12 }
 0x63d   : > { %v7745_v35 = vpop.permute.xlu2 %1732 }
 0x645   : > { %v1746_v33 = vpop.permute.xlu2 %1745 }
 0x646   : > { %v1749_v20 = vmul.f32 %v1746_v33, %v11871_v48  ;;  %v1750_v50 = vmul.f32 %v1746_v33, %v11872_v53  ;;  %v1748_v51 = vmul.f32 %v1746_v33, %v11873_v41 }
 0x648   : > { %1758 = vrot.lane.b32.xlu2 %v1750_v50, %s11623_s1  ;;  %1754 = vrot.lane.b32.xlu0 %v1748_v51, %s11623_s1 }
 0x649   : > { %1756 = vrot.lane.b32.xlu1 %v1749_v20, %s11623_s1 }
 0x650   : > { %1769 = vperm.xlu0 %6187, %v7684_v40  }
 0x655   : > { %v7816_v30 = vpop.permute.xlu1 %1730 }
 0x658   : > { %6189 = vset.pattern.permute.xlu0 %v11539_v12 }
 0x65d   : > { %v7818_v33 = vpop.permute.xlu1 %1734 }
 0x6a2   : > { %v7767_v21 = vpop.permute.xlu2 %1758 }
 0x6ba   : > { %v7756_v54 = vpop.permute.xlu0 %1754 }
 0x6bb   : > { %v1757_v20 = vpop.permute.xlu1 %1756 }
 0x6c2   : > { %v1770_v24 = vpop.permute.xlu0 %1769 }
 0x6c3   : > { %v1772_v11 = vmul.f32 %v1770_v24, %v11873_v41  ;;  %v1773_v39 = vmul.f32 %v1770_v24, %v11871_v48  ;;  %v1774_v26 = vmul.f32 %v7762_v15, %v1770_v24  ;;  %v11876_v24 = vld [vmem:[#allocation41_spill] sm:$0xff] }
 0x6c5   : > { %1780 = vrot.lane.b32.xlu2 %v1773_v39, %s11623_s1  ;;  %1778 = vrot.lane.b32.xlu1 %v1772_v11, %s11623_s1  ;;  %v1617_v11 = vsel %vm929_vm9, %v1613_v0, %v11876_v24  ;;  %v11877_v39 = vld [vmem:[#allocation39_spill] sm:$0xff] }
 0x6cd   : > { %1793 = vperm.xlu2 %6188, %v7709_v38   ;;  %1782 = vrot.lane.b32.xlu1 %v1774_v26, %s11623_s1  ;;  %v1591_v26 = vmul.f32 %v11877_v39, %v7131_v63 }
 0x6d5   : > { %6190 = vset.pattern.permute.xlu2 %v11545_v7 }
 0x71f   : > { %v7769_v8 = vpop.permute.xlu2 %1780 }
 0x727   : > { %v1794_v36 = vpop.permute.xlu2 %1793 }
 0x728   : > { %v1797_v57 = vmul.f32 %v1794_v36, %v11871_v48  ;;  %v1798_v47 = vmul.f32 %v7762_v15, %v1794_v36  ;;  %v1796_v5 = vmul.f32 %v1794_v36, %v11873_v41  ;;  %v1665_v36 = vsel %vm978_vm10, %v1661_v34, %v7713_v27 }
 0x72a   : > { %1806 = vrot.lane.b32.xlu2 %v1798_v47, %s6656_s5  ;;  %1802 = vrot.lane.b32.xlu0 %v1796_v5, %s6656_s5  ;;  %v1713_v5 = vsel %vm1027_vm11, %v1709_v32, %v7743_v56 }
 0x72b   : > { %1804 = vrot.lane.b32.xlu1 %v1797_v57, %s6656_s5  ;;  %v1622_v57 = vadd.f32 %v1617_v11, %v1591_v26  ;;  %v11878_v26 = vld [vmem:[#allocation40_spill] sm:$0xff] }
 0x72c   : > { %v1616_v12 = vsel %vm929_vm9, %v11878_v26, %v1613_v0  ;;  %v1761_v26 = vsel %vm11756_vm12, %v1757_v20, %v7767_v21  ;;  %v11879_v21 = vld [vmem:[#allocation42_spill] sm:$0xff] }
 0x732   : > { %1817 = vperm.xlu0 %6189, %v7684_v40  }
 0x737   : > { %v7820_v53 = vpop.permute.xlu1 %1778 }
 0x73a   : > { %6191 = vset.pattern.permute.xlu0 %v11545_v7 }
 0x73f   : > { %v7822_v50 = vpop.permute.xlu1 %1782 }
 0x784   : > { %v7795_v55 = vpop.permute.xlu2 %1806 }
 0x79c   : > { %v7780_v23 = vpop.permute.xlu0 %1802 }
 0x7a4   : > { %v1818_v19 = vpop.permute.xlu0 %1817 }
 0x7a5   : > { %v1820_v61 = vmul.f32 %v1818_v19, %v11873_v41  ;;  %v1821_v49 = vmul.f32 %v1818_v19, %v11871_v48  ;;  %v1822_v43 = vmul.f32 %v7762_v15, %v1818_v19  ;;  %v1670_v19 = vadd.f32 %v1665_v36, %v1622_v57 }
 0x7a6   : > { %v1590_v36 = vmul.f32 %v7700_v46, %v11877_v39  ;;  %v1664_v57 = vsel %vm978_vm10, %v7687_v10, %v1661_v34 }
 0x7a7   : > { %1828 = vrot.lane.b32.xlu2 %v1821_v49, %s6656_s5  ;;  %1826 = vrot.lane.b32.xlu1 %v1820_v61, %s6656_s5  ;;  %v1760_v61 = vsel %vm11756_vm12, %v7756_v54, %v1757_v20  ;;  %v1718_v49 = vadd.f32 %v1713_v5, %v1670_v19  ;;  %v1712_v19 = vsel %vm1027_vm11, %v7734_v14, %v1709_v32  ;;  %v11880_v20 = vld [vmem:[#allocation37_spill] sm:$0xff] }
 0x7a8   : > { %v1621_v5 = vadd.f32 %v1616_v12, %v1590_v36 }
 0x7af   : > { %1841 = vperm.xlu2 %6190, %v7709_v38   ;;  %1830 = vrot.lane.b32.xlu1 %v1822_v43, %s6656_s5 }
 0x801   : > { %v7797_v52 = vpop.permute.xlu2 %1828 }
 0x809   : > { %v1842_v1 = vpop.permute.xlu2 %1841 }
 0x80a   : > { %v1845_v59 = vmul.f32 %v1842_v1, %v11871_v48  ;;  %v1846_v13 = vmul.f32 %v7762_v15, %v1842_v1  ;;  %v1844_v17 = vmul.f32 %v1842_v1, %v11873_v41  ;;  %v1805_v41 = vpop.permute.xlu1 %1804  ;;  %v1766_v1 = vadd.f32 %v1760_v61, %v1718_v49 }
 0x80b   : > { %v1808_v43 = vsel %vm1128_vm13, %v7780_v23, %v1805_v41  ;;  %v1669_v49 = vadd.f32 %v1664_v57, %v1621_v5  ;;  %v11552_v57 = vmov 3   ;;  %v7885_v5 = vld [vmem:[#allocation2 + $0x38] sm:$0x3f] }
 0x80c   : > { %1854 = vrot.lane.b32.xlu2 %v1846_v13, %s11631_s25  ;;  %1850 = vrot.lane.b32.xlu0 %v1844_v17, %s11631_s25  ;;  %v1814_v63 = vadd.f32 %v1808_v43, %v1766_v1  ;;  %v7850_v43 = vld [vmem:[#allocation2 + $0x38] sm:$0x3f] }
 0x80d   : > { %1852 = vrot.lane.b32.xlu1 %v1845_v59, %s11631_s25  ;;  %6192 = vset.pattern.permute.xlu2 %v11552_v57 }
 0x814   : > { %1865 = vperm.xlu0 %6191, %v7684_v40  }
 0x819   : > { %v7824_v51 = vpop.permute.xlu1 %1826 }
 0x81c   : > { %6193 = vset.pattern.permute.xlu0 %v11552_v57 }
 0x821   : > { %v7832_v47 = vpop.permute.xlu1 %1830 }
 0x87e   : > { %v1851_v59 = vpop.permute.xlu0 %1850 }
 0x87f   : > { %v1853_v13 = vpop.permute.xlu1 %1852 }
 0x880   : > { %v1856_v17 = vsel %vm1177_vm14, %v1851_v59, %v1853_v13 }
 0x881   : > { %v1862_v11 = vadd.f32 %v1856_v17, %v1814_v63  ;;  %v1717_v63 = vadd.f32 %v1712_v19, %v1669_v49  ;;  %v7856_v17 = vld [vmem:[#allocation2 + $0x20] sm:$0x3f]  ;;  %v1598_v19 = vmul.f32 %v7885_v5, %v11880_v20 }
 0x882   : > { %v1592_v10 = vmul.f32 %v7856_v17, %v11877_v39  ;;  %v1855_v39 = vpop.permute.xlu2 %1854 }
 0x883   : > { %1897 = vrot.lane.b32.xlu0 %v1862_v11, %s6671_s29  ;;  %v1765_v14 = vadd.f32 %v7756_v54, %v1717_v63  ;;  %v1809_v54 = vsel %vm1128_vm13, %v1805_v41, %v7795_v55  ;;  %v1640_v55 = vsel %vm929_vm9, %v7789_v6, %v11879_v21  ;;  %v1597_v41 = vmul.f32 %v7700_v46, %v11880_v20 }
 0x884   : > { %v1623_v12 = vadd.f32 %v11876_v24, %v1592_v10  ;;  %v1689_v6 = vsel %vm978_vm10, %v7723_v29, %v7814_v25  ;;  %v1737_v10 = vsel %vm1027_vm11, %v7745_v35, %v7818_v33 }
 0x885   : > { %v1813_v34 = vadd.f32 %v7780_v23, %v1765_v14  ;;  %v1857_v23 = vsel %vm1177_vm14, %v1853_v13, %v1855_v39  ;;  %v1641_v13 = vsel %vm929_vm9, %v11879_v21, %v7791_v58  ;;  %v1645_v49 = vadd.f32 %v1640_v55, %v1597_v41 }
 0x886   : > { %v1866_v61 = vpop.permute.xlu0 %1865  ;;  %v1671_v32 = vadd.f32 %v7713_v27, %v1623_v12 }
 0x887   : > { %v1868_v1 = vmul.f32 %v7850_v43, %v1866_v61  ;;  %v1869_v0 = vmul.f32 %v1866_v61, %v11871_v48  ;;  %v1861_v11 = vadd.f32 %v1851_v59, %v1813_v34  ;;  %v1870_v48 = vmul.f32 %v7762_v15, %v1866_v61 }
 0x888   : > { %v1719_v36 = vadd.f32 %v7743_v56, %v1671_v32  ;;  %v11556_v56 = vmov 10   ;;  %v1688_v61 = vsel %vm978_vm10, %v7812_v37, %v7723_v29  ;;  %v1784_v37 = vsel %vm11756_vm12, %v7820_v53, %v7769_v8 }
 0x889   : > { %1876 = vrot.lane.b32.xlu2 %v1869_v0, %s11631_s25  ;;  %1874 = vrot.lane.b32.xlu1 %v1868_v1, %s11631_s25  ;;  %v1646_v1 = vadd.f32 %v1641_v13, %v1598_v19  ;;  %v1736_v0 = vsel %vm1027_vm11, %v7816_v30, %v7745_v35  ;;  %v1693_v63 = vadd.f32 %v1688_v61, %v1645_v49 }
 0x88a   : > { %v1767_v24 = vadd.f32 %v1761_v26, %v1719_v36  ;;  %6194 = vset.pattern.permute.xlu1 %v11556_v56  ;;  %v1832_v29 = vsel %vm1128_vm13, %v7824_v51, %v7797_v52  ;;  %v1599_v30 = vmul.f32 %v7856_v17, %v11880_v20 }
 0x88b   : > { %v1694_v14 = vadd.f32 %v1689_v6, %v1646_v1  ;;  %v1741_v12 = vadd.f32 %v1736_v0, %v1693_v63 }
 0x88c   : > { %v1815_v27 = vadd.f32 %v1809_v54, %v1767_v24  ;;  %v1647_v35 = vadd.f32 %v7791_v58, %v1599_v30  ;;  %v1833_v58 = vsel %vm1128_vm13, %v7797_v52, %v7832_v47 }
 0x88d   : > { %v1742_v34 = vadd.f32 %v1737_v10, %v1694_v14  ;;  %v1789_v32 = vadd.f32 %v7820_v53, %v1741_v12 }
 0x88e   : > { %v1863_v59 = vadd.f32 %v1857_v23, %v1815_v27  ;;  %v1695_v53 = vadd.f32 %v7814_v25, %v1647_v35  ;;  %v1785_v27 = vsel %vm11756_vm12, %v7769_v8, %v7822_v50  ;;  %v11554_v50 = vmov 17  }
 0x88f   : > { %v11548_v35 = vmov 24  }
 0x891   : > { %1878 = vrot.lane.b32.xlu1 %v1870_v48, %s11631_s25  ;;  %1895 = vrot.lane.b32.xlu2 %v1861_v11, %s6671_s29  ;;  %v1790_v11 = vadd.f32 %v1784_v37, %v1742_v34  ;;  %v1837_v48 = vadd.f32 %v7824_v51, %v1789_v32 }
 0x893   : > { %v1838_v26 = vadd.f32 %v1832_v29, %v1790_v11 }
 0x899   : > { %1899 = vrot.lane.b32.xlu1 %v1863_v59, %s6671_s29  ;;  %v1743_v59 = vadd.f32 %v7818_v33, %v1695_v53 }
 0x89b   : > { %v1791_v51 = vadd.f32 %v1785_v27, %v1743_v59 }
 0x89d   : > { %v1839_v21 = vadd.f32 %v1833_v58, %v1791_v51 }
 0x8e3   : > { %v1877_v36 = vpop.permute.xlu2 %1876 }
 0x8eb   : > { %v7955_v10 = vpop.permute.xlu2 %1895 }
 0x8f5   : > { %v7930_v8 = vpop.permute.xlu0 %1897 }
 0x8fb   : > { %v1875_v54 = vpop.permute.xlu1 %1874 }
 0x8fc   : > { %v1880_v24 = vsel %vm1177_vm14, %v1875_v54, %v1877_v36  ;;  %v1885_v39 = vadd.f32 %v1875_v54, %v1837_v48 }
 0x8fd   : > { %v1886_v23 = vadd.f32 %v1880_v24, %v1838_v26  ;;  %v11543_v26 = vmov 31  }
 0x8fe   : > { %1913 = vrot.lane.b32.xlu2 %v1885_v39, %s6671_s29 }
 0x8ff   : > { %1915 = vrot.lane.b32.xlu0 %v1886_v23, %s6671_s29 }
 0x903   : > { %v1879_v55 = vpop.permute.xlu1 %1878 }
 0x904   : > { %v1881_v25 = vsel %vm1177_vm14, %v1877_v36, %v1879_v55 }
 0x905   : > { %v1887_v20 = vadd.f32 %v1881_v25, %v1839_v21 }
 0x906   : > { %1928 = vperm.xlu2 %6192, %v7709_v38  }
 0x907   : > { %1935 = vperm.xlu0 %6193, %v7684_v40   ;;  %1917 = vrot.lane.b32.xlu1 %v1887_v20, %s6671_s29  ;;  %s11625_s29 = smov 60  }
 0x90b   : > { %v7932_v52 = vpop.permute.xlu1 %1899 }
 0x90e   : > { %6196 = vset.pattern.permute.xlu2 %v11554_v50 }
 0x90f   : > { %6195 = vset.pattern.permute.xlu0 %v11556_v56  ;;  %1942 = vperm.xlu1 %6194, %v7709_v38  }
 0x910   : > { %1966 = vperm.xlu0 %6195, %v7684_v40  }
 0x918   : > { %6197 = vset.pattern.permute.xlu0 %v11554_v50 }
 0x958   : > { %v7957_v14 = vpop.permute.xlu2 %1913 }
 0x959   : > { %11883 = vst [vmem:[#allocation12_spill] sm:$0xff] %v7957_v14 }
 0x960   : > { %v7959_v12 = vpop.permute.xlu2 %1928 }
 0x971   : > { %v7934_v33 = vpop.permute.xlu0 %1915 }
 0x972   : > { %11881 = vst [vmem:[#allocation34_spill] sm:$0xff] %v7934_v33 }
 0x979   : > { %v7938_v47 = vpop.permute.xlu1 %1917  ;;  %v7940_v41 = vpop.permute.xlu0 %1935 }
 0x97a   : > { %11882 = vst [vmem:[#allocation22_spill] sm:$0xff] %v7938_v47 }
 0x981   : > { %v1943_v13 = vpop.permute.xlu1 %1942 }
 0x982   : > { %v1945_v19 = vmul.f32 %v7700_v46, %v1943_v13  ;;  %v1946_v61 = vmul.f32 %v7885_v5, %v1943_v13  ;;  %v1967_v49 = vpop.permute.xlu0 %1966  ;;  %v1947_v1 = vmul.f32 %v7856_v17, %v1943_v13 }
 0x983   : > { %v1969_v6 = vmul.f32 %v7700_v46, %v1967_v49  ;;  %v1970_v0 = vmul.f32 %v7885_v5, %v1967_v49  ;;  %v1971_v63 = vmul.f32 %v7856_v17, %v1967_v49 }
 0x984   : > { %1953 = vrot.lane.b32.xlu1 %v1946_v61, %s6651_s24  ;;  %1951 = vrot.lane.b32.xlu2 %v1945_v19, %s6651_s24  ;;  %v8001_v19 = vld [vmem:[#allocation2 + $0x20] sm:$0x3f] }
 0x98c   : > { %1975 = vrot.lane.b32.xlu1 %v1969_v6, %s6651_s24  ;;  %1955 = vrot.lane.b32.xlu2 %v1947_v1, %s6651_s24  ;;  %v11541_v6 = vmov 38  }
 0x994   : > { %1979 = vrot.lane.b32.xlu1 %v1971_v63, %s6651_s24  ;;  %1977 = vrot.lane.b32.xlu2 %v1970_v0, %s6651_s24 }
 0x99c   : > { %1990 = vperm.xlu2 %6196, %v7709_v38  }
 0x9a4   : > { %6198 = vset.pattern.permute.xlu2 %v11548_v35 }
 0x9de   : > { %v7961_v37 = vpop.permute.xlu2 %1951 }
 0x9e6   : > { %v7963_v34 = vpop.permute.xlu2 %1955 }
 0x9ee   : > { %v7965_v32 = vpop.permute.xlu2 %1977 }
 0x9f6   : > { %v1991_v29 = vpop.permute.xlu2 %1990 }
 0x9f7   : > { %v1994_v30 = vmul.f32 %v7885_v5, %v1991_v29  ;;  %v1995_v11 = vmul.f32 %v7856_v17, %v1991_v29  ;;  %v1993_v48 = vmul.f32 %v7700_v46, %v1991_v29 }
 0x9f9   : > { %2003 = vrot.lane.b32.xlu2 %v1995_v11, %s6653_s6  ;;  %2001 = vrot.lane.b32.xlu1 %v1994_v30, %s6653_s6 }
 0x9fa   : > { %1999 = vrot.lane.b32.xlu0 %v1993_v48, %s6653_s6 }
 0xa02   : > { %2014 = vperm.xlu0 %6197, %v7684_v40  }
 0xa0a   : > { %6200 = vset.pattern.permute.xlu0 %v11543_v26 }
 0xa53   : > { %v7988_v23 = vpop.permute.xlu2 %2003 }
 0xa6c   : > { %v7976_v36 = vpop.permute.xlu0 %1999 }
 0xa74   : > { %v2015_v54 = vpop.permute.xlu0 %2014 }
 0xa75   : > { %v2017_v24 = vmul.f32 %v7700_v46, %v2015_v54  ;;  %v2018_v39 = vmul.f32 %v7885_v5, %v2015_v54  ;;  %v2019_v53 = vmul.f32 %v7856_v17, %v2015_v54 }
 0xa77   : > { %2025 = vrot.lane.b32.xlu2 %v2018_v39, %s6653_s6  ;;  %2023 = vrot.lane.b32.xlu1 %v2017_v24, %s6653_s6 }
 0xa7f   : > { %2038 = vperm.xlu2 %6198, %v7709_v38   ;;  %2027 = vrot.lane.b32.xlu1 %v2019_v53, %s6653_s6 }
 0xa87   : > { %2057 = vperm.xlu2 %6198, %v7684_v40  }
 0xa8f   : > { %6199 = vset.pattern.permute.xlu2 %v11543_v26  ;;  %v1932_v26 = vmul.f32 %v7885_v5, %v7959_v12 }
 0xa90   : > { %2076 = vperm.xlu2 %6199, %v7709_v38  }
 0xa98   : > { %6201 = vset.pattern.permute.xlu2 %v11541_v6 }
 0xad1   : > { %v7990_v27 = vpop.permute.xlu2 %2025 }
 0xad9   : > { %v2039_v59 = vpop.permute.xlu2 %2038 }
 0xada   : > { %v2041_v58 = vmul.f32 %v7885_v5, %v2039_v59  ;;  %v2042_v51 = vmul.f32 %v7856_v17, %v2039_v59 }
 0xadc   : > { %2045 = vrot.lane.b32.xlu0 %v2041_v58, %s11633_s23  ;;  %2047 = vrot.lane.b32.xlu1 %v2042_v51, %s11633_s23  ;;  %v11542_v51 = vmov 45  }
 0xae1   : > { %v2058_v21 = vpop.permute.xlu2 %2057 }
 0xae2   : > { %v2060_v55 = vmul.f32 %v7885_v5, %v2058_v21  ;;  %v2061_v25 = vmul.f32 %v7856_v17, %v2058_v21 }
 0xae4   : > { %2064 = vrot.lane.b32.xlu0 %v2060_v55, %s11633_s23  ;;  %2066 = vrot.lane.b32.xlu1 %v2061_v25, %s11633_s23 }
 0xaea   : > { %v2077_v20 = vpop.permute.xlu2 %2076 }
 0xaeb   : > { %v2079_v13 = vmul.f32 %v7850_v43, %v2077_v20  ;;  %v2080_v61 = vmul.f32 %v8001_v19, %v2077_v20  ;;  %v2081_v49 = vmul.f32 %v7762_v15, %v2077_v20 }
 0xaed   : > { %2089 = vrot.lane.b32.xlu2 %v2081_v49, %s11623_s1  ;;  %2085 = vrot.lane.b32.xlu0 %v2079_v13, %s11623_s1  ;;  %v1954_v49 = vpop.permute.xlu1 %1953 }
 0xaee   : > { %2087 = vrot.lane.b32.xlu1 %v2080_v61, %s11623_s1 }
 0xaf5   : > { %2100 = vperm.xlu0 %6200, %v7684_v40  }
 0xafd   : > { %6202 = vset.pattern.permute.xlu0 %v11541_v6 }
 0xb47   : > { %v8024_v54 = vpop.permute.xlu2 %2089 }
 0xb4e   : > { %v8011_v1 = vpop.permute.xlu0 %2045 }
 0xb56   : > { %v8013_v0 = vpop.permute.xlu0 %2064 }
 0xb5f   : > { %v8015_v63 = vpop.permute.xlu0 %2085 }
 0xb67   : > { %v2101_v29 = vpop.permute.xlu0 %2100 }
 0xb68   : > { %v2103_v30 = vmul.f32 %v7850_v43, %v2101_v29  ;;  %v2104_v11 = vmul.f32 %v8001_v19, %v2101_v29  ;;  %v2105_v48 = vmul.f32 %v7762_v15, %v2101_v29 }
 0xb6a   : > { %2111 = vrot.lane.b32.xlu2 %v2104_v11, %s11623_s1  ;;  %2109 = vrot.lane.b32.xlu1 %v2103_v30, %s11623_s1 }
 0xb72   : > { %2124 = vperm.xlu2 %6201, %v7709_v38   ;;  %2113 = vrot.lane.b32.xlu1 %v2105_v48, %s11623_s1 }
 0xb7a   : > { %6203 = vset.pattern.permute.xlu2 %v11542_v51 }
 0xbc4   : > { %v8026_v24 = vpop.permute.xlu2 %2111 }
 0xbcc   : > { %v2125_v39 = vpop.permute.xlu2 %2124 }
 0xbcd   : > { %v2127_v53 = vmul.f32 %v7850_v43, %v2125_v39  ;;  %v2128_v59 = vmul.f32 %v8001_v19, %v2125_v39  ;;  %v2129_v58 = vmul.f32 %v7762_v15, %v2125_v39 }
 0xbcf   : > { %2137 = vrot.lane.b32.xlu2 %v2129_v58, %s6656_s5  ;;  %2133 = vrot.lane.b32.xlu0 %v2127_v53, %s6656_s5  ;;  %v8053_v53 = vpop.permute.xlu1 %1975 }
 0xbd0   : > { %2135 = vrot.lane.b32.xlu1 %v2128_v59, %s6656_s5 }
 0xbd7   : > { %2148 = vperm.xlu0 %6202, %v7684_v40   ;;  %v8059_v59 = vpop.permute.xlu1 %1979 }
 0xbdf   : > { %6204 = vset.pattern.permute.xlu0 %v11542_v51  ;;  %v2002_v58 = vpop.permute.xlu1 %2001 }
 0xbe0   : > { %v2006_v7 = vsel %vm978_vm10, %v2002_v58, %v7988_v23 }
 0xc29   : > { %v8046_v61 = vpop.permute.xlu2 %2137 }
 0xc41   : > { %v8037_v21 = vpop.permute.xlu0 %2133 }
 0xc49   : > { %v2149_v55 = vpop.permute.xlu0 %2148 }
 0xc4a   : > { %v2151_v25 = vmul.f32 %v7850_v43, %v2149_v55  ;;  %v2152_v20 = vmul.f32 %v8001_v19, %v2149_v55  ;;  %v2153_v13 = vmul.f32 %v7762_v15, %v2149_v55  ;;  %v8061_v55 = vpop.permute.xlu1 %2023 }
 0xc4c   : > { %2159 = vrot.lane.b32.xlu2 %v2152_v20, %s6656_s5  ;;  %2157 = vrot.lane.b32.xlu1 %v2151_v25, %s6656_s5 }
 0xc52   : > { %v8063_v25 = vpop.permute.xlu1 %2027 }
 0xc54   : > { %2172 = vperm.xlu2 %6203, %v7709_v38   ;;  %2161 = vrot.lane.b32.xlu1 %v2153_v13, %s6656_s5 }
 0xc5a   : > { %v2048_v20 = vpop.permute.xlu1 %2047 }
 0xc5b   : > { %v2049_v2 = vsel %vm1027_vm11, %v8011_v1, %v2048_v20 }
 0xc62   : > { %v8065_v13 = vpop.permute.xlu1 %2066 }
 0xca6   : > { %v8048_v29 = vpop.permute.xlu2 %2159 }
 0xcae   : > { %v2173_v30 = vpop.permute.xlu2 %2172 }
 0xcaf   : > { %v2175_v11 = vmul.f32 %v7850_v43, %v2173_v30  ;;  %v2176_v48 = vmul.f32 %v8001_v19, %v2173_v30  ;;  %v2177_v39 = vmul.f32 %v7762_v15, %v2173_v30  ;;  %v2088_v30 = vpop.permute.xlu1 %2087 }
 0xcb0   : > { %v2091_v50 = vsel %vm11756_vm12, %v8015_v63, %v2088_v30 }
 0xcb1   : > { %2185 = vrot.lane.b32.xlu2 %v2177_v39, %s11631_s25  ;;  %2181 = vrot.lane.b32.xlu0 %v2175_v11, %s11631_s25 }
 0xcb2   : > { %2183 = vrot.lane.b32.xlu1 %v2176_v48, %s11631_s25  ;;  %v1958_v48 = vsel %vm929_vm9, %v1954_v49, %v7963_v34 }
 0xcb3   : > { %v1963_v45 = vadd.f32 %v1958_v48, %v1932_v26  ;;  %v1957_v48 = vsel %vm929_vm9, %v7961_v37, %v1954_v49 }
 0xcb5   : > { %v2011_v57 = vadd.f32 %v2006_v7, %v1963_v45  ;;  %v1931_v45 = vmul.f32 %v7700_v46, %v7959_v12 }
 0xcb7   : > { %v8067_v6 = vpop.permute.xlu1 %2109  ;;  %v2054_v56 = vadd.f32 %v2049_v2, %v2011_v57  ;;  %v2005_v2 = vsel %vm978_vm10, %v7976_v36, %v2002_v58  ;;  %v1962_v7 = vadd.f32 %v1957_v48, %v1931_v45 }
 0xcb9   : > { %2196 = vperm.xlu0 %6204, %v7684_v40   ;;  %v2097_v14 = vadd.f32 %v2091_v50, %v2054_v56  ;;  %v2010_v56 = vadd.f32 %v2005_v2, %v1962_v7  ;;  %v2030_v7 = vsel %vm978_vm10, %v7990_v27, %v8063_v25 }
 0xcbf   : > { %v8069_v39 = vpop.permute.xlu1 %2113 }
 0xcc7   : > { %v2136_v11 = vpop.permute.xlu1 %2135 }
 0xcc8   : > { %v2139_v47 = vsel %vm1128_vm13, %v8037_v21, %v2136_v11 }
 0xcc9   : > { %v2145_v4 = vadd.f32 %v2139_v47, %v2097_v14 }
 0xccf   : > { %v8071_v51 = vpop.permute.xlu1 %2157 }
 0xcd7   : > { %v8079_v35 = vpop.permute.xlu1 %2161 }
 0xd23   : > { %v2182_v33 = vpop.permute.xlu0 %2181 }
 0xd24   : > { %v2184_v28 = vpop.permute.xlu1 %2183 }
 0xd25   : > { %v2187_v3 = vsel %vm1177_vm14, %v2182_v33, %v2184_v28 }
 0xd26   : > { %v2193_v26 = vadd.f32 %v2187_v3, %v2145_v4  ;;  %v2053_v4 = vadd.f32 %v8011_v1, %v2010_v56  ;;  %v1933_v3 = vmul.f32 %v7856_v17, %v7959_v12  ;;  %v2092_v1 = vsel %vm11756_vm12, %v2088_v30, %v8024_v54 }
 0xd27   : > { %v2140_v12 = vsel %vm1128_vm13, %v2136_v11, %v8046_v61  ;;  %v11572_v54 = vmov 11   ;;  %v1981_v61 = vsel %vm929_vm9, %v8053_v53, %v7965_v32  ;;  %v1939_v30 = vmul.f32 %v7885_v5, %v7940_v41 }
 0xd28   : > { %2224 = vrot.lane.b32.xlu0 %v2193_v26, %s6656_s5  ;;  %v2096_v14 = vadd.f32 %v8015_v63, %v2053_v4  ;;  %v1964_v37 = vadd.f32 %v7963_v34, %v1933_v3  ;;  %v2186_v34 = vpop.permute.xlu2 %2185  ;;  %6207 = vset.pattern.permute.xlu1 %v11572_v54  ;;  %v2029_v11 = vsel %vm978_vm10, %v8061_v55, %v7990_v27 }
 0xd29   : > { %v2068_v56 = vsel %vm1027_vm11, %v8013_v0, %v8065_v13  ;;  %v2163_v27 = vsel %vm1128_vm13, %v8071_v51, %v8048_v29  ;;  %v1940_v3 = vmul.f32 %v7856_v17, %v7940_v41 }
 0xd2a   : > { %v2144_v36 = vadd.f32 %v8037_v21, %v2096_v14  ;;  %v2012_v49 = vadd.f32 %v7988_v23, %v1964_v37  ;;  %v2188_v21 = vsel %vm1177_vm14, %v2184_v28, %v2186_v34  ;;  %v1982_v28 = vsel %vm929_vm9, %v7965_v32, %v8059_v59 }
 0xd2b   : > { %v2197_v57 = vpop.permute.xlu0 %2196  ;;  %v1987_v53 = vadd.f32 %v1982_v28, %v1939_v30 }
 0xd2c   : > { %v2199_v50 = vmul.f32 %v7850_v43, %v2197_v57  ;;  %v2200_v47 = vmul.f32 %v8001_v19, %v2197_v57  ;;  %v2192_v58 = vadd.f32 %v2182_v33, %v2144_v36  ;;  %v2201_v26 = vmul.f32 %v7762_v15, %v2197_v57 }
 0xd2d   : > { %v2055_v48 = vadd.f32 %v2048_v20, %v2012_v49  ;;  %v11568_v33 = vmov 4   ;;  %v1938_v20 = vmul.f32 %v7700_v46, %v7940_v41  ;;  %v1988_v36 = vadd.f32 %v8059_v59, %v1940_v3 }
 0xd2e   : > { %2207 = vrot.lane.b32.xlu2 %v2200_v47, %s11631_s25  ;;  %2205 = vrot.lane.b32.xlu1 %v2199_v50, %s11631_s25  ;;  %v2035_v50 = vadd.f32 %v2030_v7, %v1987_v53  ;;  %v2115_v47 = vsel %vm11756_vm12, %v8067_v6, %v8026_v24 }
 0xd2f   : > { %v2098_v63 = vadd.f32 %v2092_v1, %v2055_v48  ;;  %6205 = vset.pattern.permute.xlu2 %v11568_v33  ;;  %6206 = vset.pattern.permute.xlu0 %v11568_v33  ;;  %v1986_v2 = vadd.f32 %v1981_v61, %v1938_v20 }
 0xd30   : > { %v2073_v4 = vadd.f32 %v2068_v56, %v2035_v50 }
 0xd31   : > { %v2146_v45 = vadd.f32 %v2140_v12, %v2098_v63  ;;  %v2034_v57 = vadd.f32 %v2029_v11, %v1986_v2  ;;  %v2116_v12 = vsel %vm11756_vm12, %v8026_v24, %v8069_v39 }
 0xd32   : > { %v2121_v14 = vadd.f32 %v2115_v47, %v2073_v4 }
 0xd33   : > { %v2194_v23 = vadd.f32 %v2188_v21, %v2146_v45  ;;  %v2072_v32 = vadd.f32 %v8013_v0, %v2034_v57 }
 0xd34   : > { %v2169_v0 = vadd.f32 %v2163_v27, %v2121_v14  ;;  %v11562_v14 = vmov 25  }
 0xd35   : > { %v2120_v55 = vadd.f32 %v8067_v6, %v2072_v32  ;;  %v2036_v6 = vadd.f32 %v8063_v25, %v1988_v36 }
 0xd36   : > { %2222 = vrot.lane.b32.xlu2 %v2192_v58, %s6656_s5  ;;  %2209 = vrot.lane.b32.xlu1 %v2201_v26, %s11631_s25 }
 0xd37   : > { %v2168_v37 = vadd.f32 %v8071_v51, %v2120_v55  ;;  %v2074_v41 = vadd.f32 %v8065_v13, %v2036_v6  ;;  %v2164_v51 = vsel %vm1128_vm13, %v8048_v29, %v8079_v35  ;;  %v11570_v13 = vmov 18  }
 0xd39   : > { %v2122_v59 = vadd.f32 %v2116_v12, %v2074_v41  ;;  %v11566_v41 = vmov 32  }
 0xd3b   : > { %v2170_v63 = vadd.f32 %v2164_v51, %v2122_v59 }
 0xd3e   : > { %2226 = vrot.lane.b32.xlu1 %v2194_v23, %s6656_s5 }
 0xd88   : > { %v2208_v49 = vpop.permute.xlu2 %2207 }
 0xd90   : > { %v8192_v53 = vpop.permute.xlu2 %2222 }
 0xd91   : > { %11887 = vst [vmem:[#allocation14_spill] sm:$0xff] %v8192_v53 }
 0xd9a   : > { %v8167_v24 = vpop.permute.xlu0 %2224 }
 0xda0   : > { %v2206_v58 = vpop.permute.xlu1 %2205 }
 0xda1   : > { %v2211_v26 = vsel %vm1177_vm14, %v2206_v58, %v2208_v49  ;;  %v2216_v1 = vadd.f32 %v2206_v58, %v2168_v37 }
 0xda2   : > { %v2217_v48 = vadd.f32 %v2211_v26, %v2169_v0 }
 0xda3   : > { %2237 = vrot.lane.b32.xlu2 %v2216_v1, %s6656_s5 }
 0xda4   : > { %2239 = vrot.lane.b32.xlu0 %v2217_v48, %s6656_s5 }
 0xda8   : > { %v2210_v34 = vpop.permute.xlu1 %2209 }
 0xda9   : > { %v2212_v25 = vsel %vm1177_vm14, %v2208_v49, %v2210_v34 }
 0xdaa   : > { %v2218_v21 = vadd.f32 %v2212_v25, %v2170_v63 }
 0xdab   : > { %2250 = vperm.xlu2 %6205, %v7709_v38  }
 0xdac   : > { %2257 = vperm.xlu0 %6206, %v7684_v40   ;;  %2241 = vrot.lane.b32.xlu1 %v2218_v21, %s6656_s5 }
 0xdb0   : > { %v8169_v35 = vpop.permute.xlu1 %2226 }
 0xdb1   : > { %11884 = vst [vmem:[#allocation8_spill] sm:$0xff] %v8169_v35  ;;  %v8344_v35 = vld [vmem:[#allocation2 + $0x28] sm:$0x3f] }
 0xdb3   : > { %6209 = vset.pattern.permute.xlu2 %v11570_v13 }
 0xdb4   : > { %6208 = vset.pattern.permute.xlu0 %v11572_v54  ;;  %2264 = vperm.xlu1 %6207, %v7709_v38  }
 0xdb5   : > { %2288 = vperm.xlu0 %6208, %v7684_v40  }
 0xdbd   : > { %6210 = vset.pattern.permute.xlu0 %v11570_v13 }
 0xdfd   : > { %v8194_v57 = vpop.permute.xlu2 %2237 }
 0xdfe   : > { %11888 = vst [vmem:[#allocation36_spill] sm:$0xff] %v8194_v57 }
 0xe05   : > { %v8196_v56 = vpop.permute.xlu2 %2250 }
 0xe16   : > { %v8171_v29 = vpop.permute.xlu0 %2239 }
 0xe17   : > { %11885 = vst [vmem:[#allocation30_spill] sm:$0xff] %v8171_v29 }
 0xe1e   : > { %v8175_v39 = vpop.permute.xlu1 %2241  ;;  %v8177_v45 = vpop.permute.xlu0 %2257 }
 0xe1f   : > { %11886 = vst [vmem:[#allocation26_spill] sm:$0xff] %v8175_v39 }
 0xe26   : > { %v2265_v23 = vpop.permute.xlu1 %2264 }
 0xe27   : > { %v2267_v61 = vmul.f32 %v7700_v46, %v2265_v23  ;;  %v2268_v20 = vmul.f32 %v7885_v5, %v2265_v23  ;;  %v2289_v28 = vpop.permute.xlu0 %2288  ;;  %v2269_v11 = vmul.f32 %v7856_v17, %v2265_v23 }
 0xe28   : > { %v2291_v30 = vmul.f32 %v7700_v46, %v2289_v28  ;;  %v2292_v2 = vmul.f32 %v7885_v5, %v2289_v28  ;;  %v2293_v7 = vmul.f32 %v7856_v17, %v2289_v28 }
 0xe29   : > { %2275 = vrot.lane.b32.xlu1 %v2268_v20, %s6651_s24  ;;  %2273 = vrot.lane.b32.xlu2 %v2267_v61, %s6651_s24 }
 0xe31   : > { %2297 = vrot.lane.b32.xlu1 %v2291_v30, %s6651_s24  ;;  %2277 = vrot.lane.b32.xlu2 %v2269_v11, %s6651_s24  ;;  %v11560_v30 = vmov 39  }
 0xe39   : > { %2301 = vrot.lane.b32.xlu1 %v2293_v7, %s6651_s24  ;;  %2299 = vrot.lane.b32.xlu2 %v2292_v2, %s6651_s24 }
 0xe41   : > { %2312 = vperm.xlu2 %6209, %v7709_v38  }
 0xe49   : > { %6211 = vset.pattern.permute.xlu2 %v11562_v14 }
 0xe83   : > { %v8198_v50 = vpop.permute.xlu2 %2273 }
 0xe8b   : > { %v8200_v32 = vpop.permute.xlu2 %2277 }
 0xe93   : > { %v8202_v47 = vpop.permute.xlu2 %2299 }
 0xe9b   : > { %v2313_v4 = vpop.permute.xlu2 %2312 }
 0xe9c   : > { %v2315_v55 = vmul.f32 %v7700_v46, %v2313_v4  ;;  %v2316_v27 = vmul.f32 %v7885_v5, %v2313_v4  ;;  %v2317_v3 = vmul.f32 %v7856_v17, %v2313_v4 }
 0xe9e   : > { %2323 = vrot.lane.b32.xlu1 %v2316_v27, %s6653_s6  ;;  %2321 = vrot.lane.b32.xlu0 %v2315_v55, %s6653_s6  ;;  %v8272_v27 = vld [vmem:[%s11462_s10] sm:$0x3f] }
 0xe9f   : > { %2325 = vrot.lane.b32.xlu2 %v2317_v3, %s6653_s6 }
 0xea6   : > { %2336 = vperm.xlu0 %6210, %v7684_v40  }
 0xeae   : > { %6212 = vset.pattern.permute.xlu0 %v11562_v14 }
 0xef9   : > { %v8222_v26 = vpop.permute.xlu2 %2325 }
 0xf10   : > { %v8213_v37 = vpop.permute.xlu0 %2321 }
 0xf18   : > { %v2337_v36 = vpop.permute.xlu0 %2336 }
 0xf19   : > { %v2339_v0 = vmul.f32 %v7700_v46, %v2337_v36  ;;  %v2340_v49 = vmul.f32 %v7885_v5, %v2337_v36  ;;  %v2341_v58 = vmul.f32 %v7856_v17, %v2337_v36 }
 0xf1b   : > { %2347 = vrot.lane.b32.xlu2 %v2340_v49, %s6653_s6  ;;  %2345 = vrot.lane.b32.xlu1 %v2339_v0, %s6653_s6 }
 0xf23   : > { %2360 = vperm.xlu2 %6211, %v7709_v38   ;;  %2349 = vrot.lane.b32.xlu1 %v2341_v58, %s6653_s6 }
 0xf2b   : > { %6213 = vset.pattern.permute.xlu2 %v11566_v41 }
 0xf75   : > { %v8224_v1 = vpop.permute.xlu2 %2347 }
 0xf7d   : > { %v2361_v6 = vpop.permute.xlu2 %2360 }
 0xf7e   : > { %v2363_v48 = vmul.f32 %v7850_v43, %v2361_v6  ;;  %v2364_v46 = vmul.f32 %v8001_v19, %v2361_v6  ;;  %v2365_v12 = vmul.f32 %v7762_v15, %v2361_v6 }
 0xf80   : > { %2373 = vrot.lane.b32.xlu2 %v2365_v12, %s11633_s23  ;;  %2369 = vrot.lane.b32.xlu0 %v2363_v48, %s11633_s23  ;;  %v11564_v48 = vmov 46  }
 0xf81   : > { %2371 = vrot.lane.b32.xlu1 %v2364_v46, %s11633_s23 }
 0xf88   : > { %2384 = vperm.xlu0 %6212, %v7684_v40  }
 0xf90   : > { %6214 = vset.pattern.permute.xlu0 %v11566_v41 }
 0xfda   : > { %v8244_v40 = vpop.permute.xlu2 %2373 }
 0xff2   : > { %v8235_v51 = vpop.permute.xlu0 %2369 }
 0xffa   : > { %v2385_v59 = vpop.permute.xlu0 %2384 }
 0xffb   : > { %v2387_v63 = vmul.f32 %v7850_v43, %v2385_v59  ;;  %v2388_v34 = vmul.f32 %v8001_v19, %v2385_v59  ;;  %v2389_v25 = vmul.f32 %v7762_v15, %v2385_v59 }
 0xffd   : > { %2395 = vrot.lane.b32.xlu2 %v2388_v34, %s11633_s23  ;;  %2393 = vrot.lane.b32.xlu1 %v2387_v63, %s11633_s23 }
0x1005   : > { %2408 = vperm.xlu2 %6213, %v7709_v38   ;;  %2397 = vrot.lane.b32.xlu1 %v2389_v25, %s11633_s23  ;;  %v8257_v38 = vld [vmem:[%s11464_s12] sm:$0x3f] }
0x100d   : > { %6215 = vset.pattern.permute.xlu2 %v11560_v30 }
0x1057   : > { %v8246_v21 = vpop.permute.xlu2 %2395 }
0x105f   : > { %v2409_v23 = vpop.permute.xlu2 %2408 }
0x1060   : > { %v2411_v61 = vmul.f32 %v7850_v43, %v2409_v23  ;;  %v2412_v20 = vmul.f32 %v8001_v19, %v2409_v23  ;;  %v2413_v28 = vmul.f32 %v7762_v15, %v2409_v23  ;;  %v2276_v23 = vpop.permute.xlu1 %2275 }
0x1062   : > { %2421 = vrot.lane.b32.xlu2 %v2413_v28, %s11623_s1  ;;  %2417 = vrot.lane.b32.xlu0 %v2411_v61, %s11623_s1 }
0x1063   : > { %2419 = vrot.lane.b32.xlu1 %v2412_v20, %s11623_s1 }
0x1068   : > { %v8302_v20 = vpop.permute.xlu1 %2297 }
0x106a   : > { %2432 = vperm.xlu0 %6214, %v8257_v38  }
0x1072   : > { %6216 = vset.pattern.permute.xlu0 %v11560_v30 }
0x10bc   : > { %v8276_v3 = vpop.permute.xlu2 %2421 }
0x10d4   : > { %v8262_v11 = vpop.permute.xlu0 %2417 }
0x10dc   : > { %v2433_v2 = vpop.permute.xlu0 %2432 }
0x10dd   : > { %v2435_v7 = vmul.f32 %v7850_v43, %v2433_v2  ;;  %v2436_v4 = vmul.f32 %v8001_v19, %v2433_v2  ;;  %v2437_v55 = vmul.f32 %v7762_v15, %v2433_v2 }
0x10df   : > { %2443 = vrot.lane.b32.xlu2 %v2436_v4, %s11623_s1  ;;  %2441 = vrot.lane.b32.xlu1 %v2435_v7, %s11623_s1 }
0x10e7   : > { %2456 = vperm.xlu2 %6215, %v8272_v27   ;;  %2445 = vrot.lane.b32.xlu1 %v2437_v55, %s11623_s1  ;;  %v8310_v55 = vpop.permute.xlu1 %2301 }
0x10ef   : > { %6217 = vset.pattern.permute.xlu2 %v11564_v48 }
0x1139   : > { %v8278_v36 = vpop.permute.xlu2 %2443 }
0x1141   : > { %v2457_v0 = vpop.permute.xlu2 %2456 }
0x1142   : > { %v2459_v49 = vmul.f32 %v7850_v43, %v2457_v0  ;;  %v2460_v58 = vmul.f32 %v8001_v19, %v2457_v0  ;;  %v2461_v6 = vmul.f32 %v7762_v15, %v2457_v0  ;;  %v2324_v0 = vpop.permute.xlu1 %2323 }
0x1143   : > { %v2328_v30 = vsel %vm978_vm10, %v2324_v0, %v8222_v26 }
0x1144   : > { %2469 = vrot.lane.b32.xlu2 %v2461_v6, %s6656_s5  ;;  %2465 = vrot.lane.b32.xlu0 %v2459_v49, %s6656_s5 }
0x1145   : > { %2467 = vrot.lane.b32.xlu1 %v2460_v58, %s6656_s5 }
0x114a   : > { %v8313_v49 = vpop.permute.xlu1 %2345 }
0x114c   : > { %2480 = vperm.xlu0 %6216, %v8257_v38  }
0x1152   : > { %v8315_v58 = vpop.permute.xlu1 %2349 }
0x1154   : > { %6218 = vset.pattern.permute.xlu0 %v11564_v48 }
0x115a   : > { %v2372_v6 = vpop.permute.xlu1 %2371 }
0x115b   : > { %v2375_v41 = vsel %vm1027_vm11, %v8235_v51, %v2372_v6 }
0x119e   : > { %v8298_v25 = vpop.permute.xlu2 %2469 }
0x11b6   : > { %v8289_v46 = vpop.permute.xlu0 %2465 }
0x11be   : > { %v2481_v12 = vpop.permute.xlu0 %2480 }
0x11bf   : > { %v2483_v59 = vmul.f32 %v7850_v43, %v2481_v12  ;;  %v2484_v63 = vmul.f32 %v8001_v19, %v2481_v12  ;;  %v2485_v34 = vmul.f32 %v7762_v15, %v2481_v12  ;;  %v8317_v12 = vpop.permute.xlu1 %2393 }
0x11c1   : > { %2491 = vrot.lane.b32.xlu2 %v2484_v63, %s6656_s5  ;;  %2489 = vrot.lane.b32.xlu1 %v2483_v59, %s6656_s5 }
0x11c7   : > { %v8319_v59 = vpop.permute.xlu1 %2397 }
0x11c9   : > { %2504 = vperm.xlu2 %6217, %v8272_v27   ;;  %2493 = vrot.lane.b32.xlu1 %v2485_v34, %s6656_s5 }
0x121b   : > { %v8300_v61 = vpop.permute.xlu2 %2491 }
0x1223   : > { %v2505_v28 = vpop.permute.xlu2 %2504 }
0x1224   : > { %v2507_v2 = vmul.f32 %v7850_v43, %v2505_v28  ;;  %v2508_v7 = vmul.f32 %v8001_v19, %v2505_v28  ;;  %v2509_v4 = vmul.f32 %v7762_v15, %v2505_v28  ;;  %v2420_v15 = vpop.permute.xlu1 %2419 }
0x1225   : > { %v2423_v13 = vsel %vm11756_vm12, %v8262_v11, %v2420_v15 }
0x1226   : > { %2517 = vrot.lane.b32.xlu2 %v2509_v4, %s11631_s25  ;;  %2513 = vrot.lane.b32.xlu0 %v2507_v2, %s11631_s25  ;;  %v2254_v4 = vmul.f32 %v7885_v5, %v8196_v56 }
0x1227   : > { %2515 = vrot.lane.b32.xlu1 %v2508_v7, %s11631_s25  ;;  %v2280_v7 = vsel %vm929_vm9, %v2276_v23, %v8200_v32 }
0x1228   : > { %v2285_v14 = vadd.f32 %v2280_v7, %v2254_v4  ;;  %v2279_v4 = vsel %vm929_vm9, %v8198_v50, %v2276_v23  ;;  %v2255_v50 = vmul.f32 %v7856_v17, %v8196_v56 }
0x122a   : > { %v2333_v33 = vadd.f32 %v2328_v30, %v2285_v14  ;;  %v2253_v14 = vmul.f32 %v8344_v35, %v8196_v56 }
0x122c   : > { %v8321_v63 = vpop.permute.xlu1 %2441  ;;  %v2381_v54 = vadd.f32 %v2375_v41, %v2333_v33  ;;  %v2327_v33 = vsel %vm978_vm10, %v8213_v37, %v2324_v0  ;;  %v2286_v37 = vadd.f32 %v8200_v32, %v2255_v50 }
0x122e   : > { %2528 = vperm.xlu0 %6218, %v8257_v38   ;;  %v2429_v57 = vadd.f32 %v2423_v13, %v2381_v54  ;;  %v2284_v54 = vadd.f32 %v2279_v4, %v2253_v14  ;;  %v2334_v23 = vadd.f32 %v8222_v26, %v2286_v37  ;;  %v2424_v4 = vsel %vm11756_vm12, %v2420_v15, %v8276_v3 }
0x122f   : > { %v2303_v3 = vsel %vm929_vm9, %v8302_v20, %v8202_v47  ;;  %v11585_v15 = vmov 12   ;;  %v2351_v14 = vsel %vm978_vm10, %v8313_v49, %v8224_v1  ;;  %v2352_v20 = vsel %vm978_vm10, %v8224_v1, %v8315_v58 }
0x1230   : > { %6221 = vset.pattern.permute.xlu1 %v11585_v15 }
0x1234   : > { %v8323_v34 = vpop.permute.xlu1 %2445 }
0x123c   : > { %v2468_v28 = vpop.permute.xlu1 %2467 }
0x123d   : > { %v2471_v39 = vsel %vm1128_vm13, %v8289_v46, %v2468_v28  ;;  %v2472_v32 = vsel %vm1128_vm13, %v2468_v28, %v8298_v25  ;;  %v2260_v25 = vmul.f32 %v8344_v35, %v8177_v45  ;;  %v2261_v28 = vmul.f32 %v7885_v5, %v8177_v45 }
0x123e   : > { %v2477_v22 = vadd.f32 %v2471_v39, %v2429_v57  ;;  %v2332_v39 = vadd.f32 %v2327_v33, %v2284_v54  ;;  %v2447_v5 = vsel %vm11756_vm12, %v8321_v63, %v8278_v36 }
0x123f   : > { %v2308_v33 = vadd.f32 %v2303_v3, %v2260_v25 }
0x1244   : > { %v8325_v2 = vpop.permute.xlu1 %2489 }
0x1245   : > { %v2495_v1 = vsel %vm1128_vm13, %v8325_v2, %v8300_v61 }
0x124c   : > { %v8333_v48 = vpop.permute.xlu1 %2493 }
0x1298   : > { %v2514_v29 = vpop.permute.xlu0 %2513 }
0x1299   : > { %v2516_v16 = vpop.permute.xlu1 %2515 }
0x129a   : > { %v2519_v31 = vsel %vm1177_vm14, %v2514_v29, %v2516_v16 }
0x129b   : > { %v2525_v7 = vadd.f32 %v2519_v31, %v2477_v22  ;;  %v2380_v22 = vadd.f32 %v8235_v51, %v2332_v39  ;;  %v8364_v51 = vld [vmem:[#allocation2 + $0x10] sm:$0x3f] }
0x129d   : > { %2560 = vrot.lane.b32.xlu0 %v2525_v7, %s6686_s4  ;;  %v2428_v41 = vadd.f32 %v8262_v11, %v2380_v22  ;;  %v2262_v22 = vmul.f32 %v7856_v17, %v8177_v45  ;;  %v2448_v17 = vsel %vm11756_vm12, %v8278_v36, %v8323_v34  ;;  %v11583_v34 = vmov 19  }
0x129f   : > { %v2476_v30 = vadd.f32 %v8289_v46, %v2428_v41  ;;  %v2310_v37 = vadd.f32 %v8310_v55, %v2262_v22  ;;  %v11582_v22 = vmov 26  }
0x12a0   : > { %v2529_v13 = vpop.permute.xlu0 %2528 }
0x12a1   : > { %v2531_v57 = vmul.f32 %v7850_v43, %v2529_v13  ;;  %v2532_v31 = vmul.f32 %v8001_v19, %v2529_v13  ;;  %v2376_v43 = vsel %vm1027_vm11, %v2372_v6, %v8244_v40  ;;  %v2524_v0 = vadd.f32 %v2514_v29, %v2476_v30  ;;  %v2518_v40 = vpop.permute.xlu2 %2517 }
0x12a2   : > { %v2533_v7 = vmul.f32 %v8364_v51, %v2529_v13  ;;  %v2382_v56 = vadd.f32 %v2376_v43, %v2334_v23  ;;  %v2520_v26 = vsel %vm1177_vm14, %v2516_v16, %v2518_v40  ;;  %v11587_v6 = vmov 5  }
0x12a3   : > { %2539 = vrot.lane.b32.xlu2 %v2532_v31, %s11631_s25  ;;  %2537 = vrot.lane.b32.xlu1 %v2531_v57, %s11631_s25  ;;  %v2304_v16 = vsel %vm929_vm9, %v8202_v47, %v8310_v55  ;;  %v2356_v13 = vadd.f32 %v2351_v14, %v2308_v33  ;;  %v2399_v47 = vsel %vm1027_vm11, %v8317_v12, %v8246_v21 }
0x12a4   : > { %v2430_v11 = vadd.f32 %v2424_v4, %v2382_v56  ;;  %6219 = vset.pattern.permute.xlu2 %v11587_v6  ;;  %6220 = vset.pattern.permute.xlu0 %v11587_v6  ;;  %v2309_v54 = vadd.f32 %v2304_v16, %v2261_v28  ;;  %v2400_v23 = vsel %vm1027_vm11, %v8246_v21, %v8319_v59  ;;  %v8448_v16 = vld [vmem:[#allocation2 + $0x20] sm:$0x3f] }
0x12a5   : > { %v2404_v57 = vadd.f32 %v8317_v12, %v2356_v13  ;;  %v2496_v55 = vsel %vm1128_vm13, %v8300_v61, %v8333_v48 }
0x12a6   : > { %v2478_v29 = vadd.f32 %v2472_v32, %v2430_v11  ;;  %v2357_v39 = vadd.f32 %v2352_v20, %v2309_v54 }
0x12a7   : > { %v2452_v49 = vadd.f32 %v8321_v63, %v2404_v57 }
0x12a8   : > { %v2526_v46 = vadd.f32 %v2520_v26, %v2478_v29  ;;  %v2405_v31 = vadd.f32 %v2399_v47, %v2357_v39  ;;  %v8442_v29 = vld [vmem:[#allocation2 + $0x38] sm:$0x3f] }
0x12a9   : > { %v2500_v41 = vadd.f32 %v8325_v2, %v2452_v49 }
0x12aa   : > { %v2453_v50 = vadd.f32 %v2447_v5, %v2405_v31 }
0x12ab   : > { %2558 = vrot.lane.b32.xlu2 %v2524_v0, %s6686_s4  ;;  %2541 = vrot.lane.b32.xlu1 %v2533_v7, %s11631_s25  ;;  %v2358_v7 = vadd.f32 %v8315_v58, %v2310_v37 }
0x12ac   : > { %v2501_v12 = vadd.f32 %v2495_v1, %v2453_v50 }
0x12ad   : > { %v2406_v45 = vadd.f32 %v2400_v23, %v2358_v7 }
0x12af   : > { %v2454_v21 = vadd.f32 %v2448_v17, %v2406_v45  ;;  %v11578_v45 = vmov 33  }
0x12b1   : > { %v2502_v59 = vadd.f32 %v2496_v55, %v2454_v21 }
0x12b3   : > { %2562 = vrot.lane.b32.xlu1 %v2526_v46, %s6686_s4 }
0x12fd   : > { %v2540_v30 = vpop.permute.xlu2 %2539 }
0x1305   : > { %v8458_v20 = vpop.permute.xlu2 %2558 }
0x1306   : > { %11893 = vst [vmem:[#allocation18_spill] sm:$0xff] %v8458_v20 }
0x130f   : > { %v8429_v36 = vpop.permute.xlu0 %2560 }
0x1310   : > { %11889 = vst [vmem:[#allocation38_spill] sm:$0xff] %v8429_v36 }
0x1315   : > { %v2538_v43 = vpop.permute.xlu1 %2537 }
0x1316   : > { %v2543_v63 = vsel %vm1177_vm14, %v2538_v43, %v2540_v30  ;;  %v2548_v0 = vadd.f32 %v2538_v43, %v2500_v41 }
0x1317   : > { %v2549_v4 = vadd.f32 %v2543_v63, %v2501_v12 }
0x1318   : > { %2576 = vrot.lane.b32.xlu2 %v2548_v0, %s6686_s4  ;;  %v8492_v0 = vld [vmem:[#allocation2 + $0x38] sm:$0x3f] }
0x1319   : > { %2578 = vrot.lane.b32.xlu0 %v2549_v4, %s6686_s4 }
0x131d   : > { %v2542_v2 = vpop.permute.xlu1 %2541 }
0x131e   : > { %v2544_v56 = vsel %vm1177_vm14, %v2540_v30, %v2542_v2 }
0x131f   : > { %v2550_v58 = vadd.f32 %v2544_v56, %v2502_v59 }
0x1320   : > { %2591 = vperm.xlu2 %6219, %v8272_v27  }
0x1321   : > { %2598 = vperm.xlu0 %6220, %v8257_v38   ;;  %2580 = vrot.lane.b32.xlu1 %v2550_v58, %s6686_s4  ;;  %s11629_s4 = smov 45  }
0x1325   : > { %v8431_v48 = vpop.permute.xlu1 %2562 }
0x1326   : > { %11890 = vst [vmem:[#allocation43_spill] sm:$0xff] %v8431_v48 }
0x1328   : > { %6223 = vset.pattern.permute.xlu2 %v11583_v34 }
0x1329   : > { %6222 = vset.pattern.permute.xlu0 %v11585_v15  ;;  %2605 = vperm.xlu1 %6221, %v8272_v27  }
0x132a   : > { %2629 = vperm.xlu0 %6222, %v8257_v38  }
0x1332   : > { %6224 = vset.pattern.permute.xlu0 %v11583_v34 }
0x1372   : > { %v8460_v54 = vpop.permute.xlu2 %2576 }
0x1373   : > { %11894 = vst [vmem:[#allocation21_spill] sm:$0xff] %v8460_v54 }
0x137a   : > { %v8462_v13 = vpop.permute.xlu2 %2591 }
0x138b   : > { %v8433_v61 = vpop.permute.xlu0 %2578 }
0x138c   : > { %11891 = vst [vmem:[#allocation27_spill] sm:$0xff] %v8433_v61 }
0x1393   : > { %v8437_v32 = vpop.permute.xlu1 %2580  ;;  %v8439_v11 = vpop.permute.xlu0 %2598 }
0x1394   : > { %11892 = vst [vmem:[#allocation13_spill] sm:$0xff] %v8437_v32 }
0x139b   : > { %v2606_v40 = vpop.permute.xlu1 %2605 }
0x139c   : > { %v2608_v26 = vmul.f32 %v8344_v35, %v2606_v40  ;;  %v2609_v46 = vmul.f32 %v8442_v29, %v2606_v40  ;;  %v2630_v3 = vpop.permute.xlu0 %2629  ;;  %v2610_v28 = vmul.f32 %v8448_v16, %v2606_v40 }
0x139d   : > { %v2632_v25 = vmul.f32 %v8344_v35, %v2630_v3  ;;  %v2633_v14 = vmul.f32 %v8442_v29, %v2630_v3  ;;  %v2634_v33 = vmul.f32 %v8448_v16, %v2630_v3 }
0x139e   : > { %2616 = vrot.lane.b32.xlu1 %v2609_v46, %s6651_s24  ;;  %2614 = vrot.lane.b32.xlu2 %v2608_v26, %s6651_s24 }
0x13a6   : > { %2638 = vrot.lane.b32.xlu1 %v2632_v25, %s6651_s24  ;;  %2618 = vrot.lane.b32.xlu2 %v2610_v28, %s6651_s24  ;;  %v11580_v28 = vmov 40  }
0x13ae   : > { %2642 = vrot.lane.b32.xlu1 %v2634_v33, %s6651_s24  ;;  %2640 = vrot.lane.b32.xlu2 %v2633_v14, %s6651_s24 }
0x13b6   : > { %2653 = vperm.xlu2 %6223, %v8272_v27  }
0x13be   : > { %6225 = vset.pattern.permute.xlu2 %v11582_v22 }
0x13f8   : > { %v8464_v47 = vpop.permute.xlu2 %2614 }
0x1400   : > { %v8466_v39 = vpop.permute.xlu2 %2618 }
0x1408   : > { %v8468_v57 = vpop.permute.xlu2 %2640 }
0x1410   : > { %v2654_v5 = vpop.permute.xlu2 %2653 }
0x1411   : > { %v2656_v31 = vmul.f32 %v8344_v35, %v2654_v5  ;;  %v2657_v49 = vmul.f32 %v8442_v29, %v2654_v5  ;;  %v2658_v1 = vmul.f32 %v8448_v16, %v2654_v5 }
0x1413   : > { %2664 = vrot.lane.b32.xlu1 %v2657_v49, %s6653_s6  ;;  %2662 = vrot.lane.b32.xlu0 %v2656_v31, %s6653_s6 }
0x1414   : > { %2666 = vrot.lane.b32.xlu2 %v2658_v1, %s6653_s6 }
0x141b   : > { %2677 = vperm.xlu0 %6224, %v8257_v38  }
0x1423   : > { %6226 = vset.pattern.permute.xlu0 %v11582_v22 }
0x146e   : > { %v8488_v43 = vpop.permute.xlu2 %2666 }
0x1485   : > { %v8479_v50 = vpop.permute.xlu0 %2662 }
0x148d   : > { %v2678_v41 = vpop.permute.xlu0 %2677 }
0x148e   : > { %v2680_v37 = vmul.f32 %v8344_v35, %v2678_v41  ;;  %v2681_v12 = vmul.f32 %v8442_v29, %v2678_v41  ;;  %v2682_v30 = vmul.f32 %v8448_v16, %v2678_v41 }
0x1490   : > { %2688 = vrot.lane.b32.xlu2 %v2681_v12, %s6653_s6  ;;  %2686 = vrot.lane.b32.xlu1 %v2680_v37, %s6653_s6 }
0x1498   : > { %2701 = vperm.xlu2 %6225, %v8272_v27   ;;  %2690 = vrot.lane.b32.xlu1 %v2682_v30, %s6653_s6 }
0x14a0   : > { %6227 = vset.pattern.permute.xlu2 %v11578_v45 }
0x14ea   : > { %v8490_v23 = vpop.permute.xlu2 %2688 }
0x14f2   : > { %v2702_v63 = vpop.permute.xlu2 %2701 }
0x14f3   : > { %v2704_v7 = vmul.f32 %v8492_v0, %v2702_v63  ;;  %v2705_v4 = vmul.f32 %v8001_v19, %v2702_v63  ;;  %v2706_v17 = vmul.f32 %v8364_v51, %v2702_v63 }
0x14f5   : > { %2714 = vrot.lane.b32.xlu2 %v2706_v17, %s11633_s23  ;;  %2710 = vrot.lane.b32.xlu0 %v2704_v7, %s11633_s23  ;;  %v11576_v7 = vmov 47  }
0x14f6   : > { %2712 = vrot.lane.b32.xlu1 %v2705_v4, %s11633_s23 }
0x14fd   : > { %2725 = vperm.xlu0 %6226, %v8257_v38  }
0x1505   : > { %6228 = vset.pattern.permute.xlu0 %v11578_v45 }
0x154f   : > { %v8512_v58 = vpop.permute.xlu2 %2714 }
0x1567   : > { %v8503_v55 = vpop.permute.xlu0 %2710 }
0x156f   : > { %v2726_v21 = vpop.permute.xlu0 %2725 }
0x1570   : > { %v2728_v59 = vmul.f32 %v8492_v0, %v2726_v21  ;;  %v2729_v2 = vmul.f32 %v8001_v19, %v2726_v21  ;;  %v2730_v56 = vmul.f32 %v8364_v51, %v2726_v21 }
0x1572   : > { %2736 = vrot.lane.b32.xlu2 %v2729_v2, %s11633_s23  ;;  %2734 = vrot.lane.b32.xlu1 %v2728_v59, %s11633_s23 }
0x157a   : > { %2749 = vperm.xlu2 %6227, %v8272_v27   ;;  %2738 = vrot.lane.b32.xlu1 %v2730_v56, %s11633_s23 }
0x1582   : > { %6229 = vset.pattern.permute.xlu2 %v11580_v28 }
0x15cc   : > { %v8514_v40 = vpop.permute.xlu2 %2736 }
0x15d4   : > { %v2750_v26 = vpop.permute.xlu2 %2749 }
0x15d5   : > { %v2752_v46 = vmul.f32 %v8492_v0, %v2750_v26  ;;  %v2753_v3 = vmul.f32 %v8001_v19, %v2750_v26  ;;  %v2754_v25 = vmul.f32 %v8364_v51, %v2750_v26  ;;  %v2617_v26 = vpop.permute.xlu1 %2616 }
0x15d7   : > { %2762 = vrot.lane.b32.xlu2 %v2754_v25, %s11623_s1  ;;  %2758 = vrot.lane.b32.xlu0 %v2752_v46, %s11623_s1 }
0x15d8   : > { %2760 = vrot.lane.b32.xlu1 %v2753_v3, %s11623_s1 }
0x15dd   : > { %v8560_v3 = vpop.permute.xlu1 %2638 }
0x15df   : > { %2773 = vperm.xlu0 %6228, %v8257_v38  }
0x15e7   : > { %6230 = vset.pattern.permute.xlu0 %v11580_v28 }
0x1631   : > { %v8534_v1 = vpop.permute.xlu2 %2762 }
0x1649   : > { %v8525_v14 = vpop.permute.xlu0 %2758 }
0x1651   : > { %v2774_v33 = vpop.permute.xlu0 %2773 }
0x1652   : > { %v2776_v5 = vmul.f32 %v8492_v0, %v2774_v33  ;;  %v2777_v31 = vmul.f32 %v8001_v19, %v2774_v33  ;;  %v2778_v49 = vmul.f32 %v8364_v51, %v2774_v33  ;;  %v8563_v33 = vld [vmem:[#allocation2 + $0x20] sm:$0x3f] }
0x1654   : > { %2784 = vrot.lane.b32.xlu2 %v2777_v31, %s11623_s1  ;;  %2782 = vrot.lane.b32.xlu1 %v2776_v5, %s11623_s1 }
0x165c   : > { %2797 = vperm.xlu2 %6229, %v8272_v27   ;;  %2786 = vrot.lane.b32.xlu1 %v2778_v49, %s11623_s1  ;;  %v8570_v49 = vpop.permute.xlu1 %2642 }
0x1664   : > { %6231 = vset.pattern.permute.xlu2 %v11576_v7 }
0x16ae   : > { %v8536_v41 = vpop.permute.xlu2 %2784 }
0x16b6   : > { %v2798_v37 = vpop.permute.xlu2 %2797 }
0x16b7   : > { %v2800_v12 = vmul.f32 %v8492_v0, %v2798_v37  ;;  %v2801_v30 = vmul.f32 %v8001_v19, %v2798_v37  ;;  %v2802_v63 = vmul.f32 %v8364_v51, %v2798_v37  ;;  %v2665_v37 = vpop.permute.xlu1 %2664 }
0x16b8   : > { %v2669_v45 = vsel %vm978_vm10, %v2665_v37, %v8488_v43 }
0x16b9   : > { %2810 = vrot.lane.b32.xlu2 %v2802_v63, %s6656_s5  ;;  %2806 = vrot.lane.b32.xlu0 %v2800_v12, %s6656_s5 }
0x16ba   : > { %2808 = vrot.lane.b32.xlu1 %v2801_v30, %s6656_s5 }
0x16bf   : > { %v8573_v12 = vpop.permute.xlu1 %2686 }
0x16c1   : > { %2821 = vperm.xlu0 %6230, %v8257_v38  }
0x16c7   : > { %v8575_v30 = vpop.permute.xlu1 %2690 }
0x16c9   : > { %6232 = vset.pattern.permute.xlu0 %v11576_v7  ;;  %v2595_v7 = vmul.f32 %v8442_v29, %v8462_v13 }
0x16cf   : > { %v2713_v63 = vpop.permute.xlu1 %2712 }
0x16d0   : > { %v2716_v34 = vsel %vm1027_vm11, %v8503_v55, %v2713_v63 }
0x1713   : > { %v8556_v56 = vpop.permute.xlu2 %2810 }
0x172b   : > { %v8547_v4 = vpop.permute.xlu0 %2806 }
0x1733   : > { %v2822_v17 = vpop.permute.xlu0 %2821 }
0x1734   : > { %v2824_v21 = vmul.f32 %v8492_v0, %v2822_v17  ;;  %v2825_v59 = vmul.f32 %v8001_v19, %v2822_v17  ;;  %v2826_v2 = vmul.f32 %v8364_v51, %v2822_v17  ;;  %v8577_v17 = vpop.permute.xlu1 %2734 }
0x1736   : > { %2832 = vrot.lane.b32.xlu2 %v2825_v59, %s6656_s5  ;;  %2830 = vrot.lane.b32.xlu1 %v2824_v21, %s6656_s5 }
0x173c   : > { %v8579_v21 = vpop.permute.xlu1 %2738 }
0x173e   : > { %2845 = vperm.xlu2 %6231, %v8272_v27   ;;  %2834 = vrot.lane.b32.xlu1 %v2826_v2, %s6656_s5 }
0x1744   : > { %v2761_v59 = vpop.permute.xlu1 %2760 }
0x1745   : > { %v2764_v6 = vsel %vm11756_vm12, %v8525_v14, %v2761_v59 }
0x174c   : > { %v8581_v2 = vpop.permute.xlu1 %2782 }
0x1790   : > { %v8558_v46 = vpop.permute.xlu2 %2832 }
0x1798   : > { %v2846_v25 = vpop.permute.xlu2 %2845 }
0x1799   : > { %v2848_v19 = vmul.f32 %v8492_v0, %v2846_v25  ;;  %v2849_v5 = vmul.f32 %v8563_v33, %v2846_v25  ;;  %v2850_v31 = vmul.f32 %v8364_v51, %v2846_v25  ;;  %v8583_v25 = vpop.permute.xlu1 %2786 }
0x179b   : > { %2858 = vrot.lane.b32.xlu2 %v2850_v31, %s11631_s25  ;;  %2854 = vrot.lane.b32.xlu0 %v2848_v19, %s11631_s25  ;;  %v2621_v31 = vsel %vm929_vm9, %v2617_v26, %v8466_v39 }
0x179c   : > { %2856 = vrot.lane.b32.xlu1 %v2849_v5, %s11631_s25  ;;  %v2626_v28 = vadd.f32 %v2621_v31, %v2595_v7  ;;  %v2620_v31 = vsel %vm929_vm9, %v8464_v47, %v2617_v26  ;;  %v2717_v26 = vsel %vm1027_vm11, %v2713_v63, %v8512_v58  ;;  %v11599_v63 = vmov 13  }
0x179d   : > { %6235 = vset.pattern.permute.xlu1 %v11599_v63 }
0x179e   : > { %v2674_v15 = vadd.f32 %v2669_v45, %v2626_v28  ;;  %v2594_v45 = vmul.f32 %v8344_v35, %v8462_v13 }
0x17a0   : > { %v2722_v32 = vadd.f32 %v2716_v34, %v2674_v15  ;;  %v2668_v15 = vsel %vm978_vm10, %v8479_v50, %v2665_v37  ;;  %v2625_v34 = vadd.f32 %v2620_v31, %v2594_v45  ;;  %v2765_v31 = vsel %vm11756_vm12, %v2761_v59, %v8534_v1 }
0x17a1   : > { %v2809_v19 = vpop.permute.xlu1 %2808  ;;  %v2644_v1 = vsel %vm929_vm9, %v8560_v3, %v8468_v57  ;;  %v2602_v59 = vmul.f32 %v8442_v29, %v8439_v11  ;;  %v2693_v3 = vsel %vm978_vm10, %v8490_v23, %v8575_v30 }
0x17a2   : > { %v2812_v54 = vsel %vm1128_vm13, %v8547_v4, %v2809_v19  ;;  %v2770_v61 = vadd.f32 %v2764_v6, %v2722_v32  ;;  %v2673_v32 = vadd.f32 %v2668_v15, %v2625_v34 }
0x17a3   : > { %2869 = vperm.xlu0 %6232, %v8257_v38  }
0x17a4   : > { %v2818_v20 = vadd.f32 %v2812_v54, %v2770_v61 }
0x17a9   : > { %v8585_v5 = vpop.permute.xlu1 %2830 }
0x17b1   : > { %v8593_v22 = vpop.permute.xlu1 %2834 }
0x180d   : > { %v2855_v48 = vpop.permute.xlu0 %2854 }
0x180e   : > { %v2857_v36 = vpop.permute.xlu1 %2856 }
0x180f   : > { %v2860_v53 = vsel %vm1177_vm14, %v2855_v48, %v2857_v36 }
0x1810   : > { %v2866_v7 = vadd.f32 %v2860_v53, %v2818_v20  ;;  %v2721_v53 = vadd.f32 %v8503_v55, %v2673_v32  ;;  %v2596_v20 = vmul.f32 %v8448_v16, %v8462_v13  ;;  %v2813_v13 = vsel %vm1128_vm13, %v2809_v19, %v8556_v56 }
0x1811   : > { %v2601_v56 = vmul.f32 %v8344_v35, %v8439_v11  ;;  %v2692_v19 = vsel %vm978_vm10, %v8573_v12, %v8490_v23  ;;  %v2836_v23 = vsel %vm1128_vm13, %v8585_v5, %v8558_v46 }
0x1812   : > { %2901 = vrot.lane.b32.xlu0 %v2866_v7, %s6694_s0  ;;  %v2769_v47 = vadd.f32 %v8525_v14, %v2721_v53  ;;  %v2627_v50 = vadd.f32 %v8466_v39, %v2596_v20  ;;  %v2859_v14 = vpop.permute.xlu2 %2858  ;;  %v2603_v20 = vmul.f32 %v8448_v16, %v8439_v11  ;;  %v2789_v11 = vsel %vm11756_vm12, %v8536_v41, %v8583_v25 }
0x1813   : > { %v2861_v58 = vsel %vm1177_vm14, %v2857_v36, %v2859_v14  ;;  %v2645_v36 = vsel %vm929_vm9, %v8468_v57, %v8570_v49  ;;  %v2649_v15 = vadd.f32 %v2644_v1, %v2601_v56  ;;  %v2740_v57 = vsel %vm1027_vm11, %v8577_v17, %v8514_v40 }
0x1814   : > { %v2817_v28 = vadd.f32 %v8547_v4, %v2769_v47  ;;  %v2675_v37 = vadd.f32 %v8488_v43, %v2627_v50  ;;  %v2650_v34 = vadd.f32 %v2645_v36, %v2602_v59  ;;  %v11597_v14 = vmov 20  }
0x1815   : > { %v2870_v6 = vpop.permute.xlu0 %2869 }
0x1816   : > { %v2872_v61 = vmul.f32 %v8492_v0, %v2870_v6  ;;  %v2873_v54 = vmul.f32 %v8563_v33, %v2870_v6  ;;  %v2865_v7 = vadd.f32 %v2855_v48, %v2817_v28  ;;  %v2874_v55 = vmul.f32 %v8364_v51, %v2870_v6 }
0x1817   : > { %v2723_v45 = vadd.f32 %v2717_v26, %v2675_v37  ;;  %v11601_v48 = vmov 6   ;;  %v2697_v6 = vadd.f32 %v2692_v19, %v2649_v15  ;;  %v2698_v32 = vadd.f32 %v2693_v3, %v2650_v34 }
0x1818   : > { %2880 = vrot.lane.b32.xlu2 %v2873_v54, %s11631_s25  ;;  %2878 = vrot.lane.b32.xlu1 %v2872_v61, %s11631_s25  ;;  %v2788_v54 = vsel %vm11756_vm12, %v8581_v2, %v8536_v41  ;;  %v2651_v28 = vadd.f32 %v8570_v49, %v2603_v20  ;;  %v11895_v41 = vmov 0  }
0x1819   : > { %v2771_v39 = vadd.f32 %v2765_v31, %v2723_v45  ;;  %6233 = vset.pattern.permute.xlu2 %v11601_v48  ;;  %6234 = vset.pattern.permute.xlu0 %v11601_v48  ;;  %v2745_v61 = vadd.f32 %v8577_v17, %v2697_v6  ;;  %v2746_v53 = vadd.f32 %v2740_v57, %v2698_v32 }
0x181a   : > { %v2699_v31 = vadd.f32 %v8575_v30, %v2651_v28 }
0x181b   : > { %v2819_v4 = vadd.f32 %v2813_v13, %v2771_v39  ;;  %v2793_v12 = vadd.f32 %v8581_v2, %v2745_v61  ;;  %v2794_v47 = vadd.f32 %v2788_v54, %v2746_v53 }
0x181d   : > { %v2867_v43 = vadd.f32 %v2861_v58, %v2819_v4  ;;  %v2841_v50 = vadd.f32 %v8585_v5, %v2793_v12  ;;  %v2842_v17 = vadd.f32 %v2836_v23, %v2794_v47  ;;  %v2837_v5 = vsel %vm1128_vm13, %v8558_v46, %v8593_v22 }
0x181e   : > { %v11594_v47 = vmov 27  }
0x1820   : > { %2899 = vrot.lane.b32.xlu2 %v2865_v7, %s6694_s0  ;;  %2882 = vrot.lane.b32.xlu1 %v2874_v55, %s11631_s25  ;;  %v2741_v7 = vsel %vm1027_vm11, %v8514_v40, %v8579_v21 }
0x1821   : > { %v2747_v49 = vadd.f32 %v2741_v7, %v2699_v31 }
0x1823   : > { %v2795_v40 = vadd.f32 %v2789_v11, %v2747_v49  ;;  %v11591_v49 = vmov 34  }
0x1825   : > { %v2843_v21 = vadd.f32 %v2837_v5, %v2795_v40 }
0x1828   : > { %2903 = vrot.lane.b32.xlu1 %v2867_v43, %s6694_s0 }
0x1872   : > { %v2881_v26 = vpop.permute.xlu2 %2880 }
0x187a   : > { %v8711_v34 = vpop.permute.xlu2 %2899 }
0x1884   : > { %v8686_v22 = vpop.permute.xlu0 %2901 }
0x188a   : > { %v2879_v37 = vpop.permute.xlu1 %2878 }
0x188b   : > { %v2884_v2 = vsel %vm1177_vm14, %v2879_v37, %v2881_v26  ;;  %v2889_v55 = vadd.f32 %v2879_v37, %v2841_v50 }
0x188c   : > { %v2890_v45 = vadd.f32 %v2884_v2, %v2842_v17 }
0x188d   : > { %2917 = vrot.lane.b32.xlu2 %v2889_v55, %s6694_s0 }
0x188e   : > { %2919 = vrot.lane.b32.xlu0 %v2890_v45, %s6694_s0 }
0x1892   : > { %v2883_v13 = vpop.permute.xlu1 %2882 }
0x1893   : > { %v2885_v39 = vsel %vm1177_vm14, %v2881_v26, %v2883_v13 }
0x1894   : > { %v2891_v30 = vadd.f32 %v2885_v39, %v2843_v21 }
0x1895   : > { %2932 = vperm.xlu2 %6233, %v8272_v27  }
0x1896   : > { %2939 = vperm.xlu0 %6234, %v8257_v38   ;;  %2921 = vrot.lane.b32.xlu1 %v2891_v30, %s6694_s0  ;;  %s6704_s0 = smov 66  }
0x189a   : > { %v8688_v46 = vpop.permute.xlu1 %2903 }
0x189b   : > { %11896 = vst [vmem:[#allocation15_spill] sm:$0xff] %v8688_v46 }
0x189d   : > { %6237 = vset.pattern.permute.xlu2 %v11597_v14 }
0x189e   : > { %6236 = vset.pattern.permute.xlu0 %v11599_v63  ;;  %2946 = vperm.xlu1 %6235, %v8272_v27  }
0x189f   : > { %2970 = vperm.xlu0 %6236, %v8257_v38  }
0x18a6   : > { %6248 = vset.pattern.permute.xlu1 %v11895_v41 }
0x18a7   : > { %6238 = vset.pattern.permute.xlu0 %v11597_v14 }
0x18e7   : > { %v8713_v6 = vpop.permute.xlu2 %2917 }
0x18e8   : > { %11899 = vst [vmem:[#allocation25_spill] sm:$0xff] %v8713_v6 }
0x18ef   : > { %v8715_v57 = vpop.permute.xlu2 %2932 }
0x1900   : > { %v8690_v25 = vpop.permute.xlu0 %2919 }
0x1901   : > { %11897 = vst [vmem:[#allocation17_spill] sm:$0xff] %v8690_v25 }
0x1908   : > { %v8694_v58 = vpop.permute.xlu1 %2921  ;;  %v8696_v4 = vpop.permute.xlu0 %2939 }
0x1909   : > { %11898 = vst [vmem:[#allocation16_spill] sm:$0xff] %v8694_v58 }
0x1910   : > { %v2947_v43 = vpop.permute.xlu1 %2946 }
0x1911   : > { %v2949_v1 = vmul.f32 %v8344_v35, %v2947_v43  ;;  %v2950_v56 = vmul.f32 %v8442_v29, %v2947_v43  ;;  %v2971_v36 = vpop.permute.xlu0 %2970  ;;  %v2951_v19 = vmul.f32 %v8448_v16, %v2947_v43 }
0x1912   : > { %v2973_v59 = vmul.f32 %v8344_v35, %v2971_v36  ;;  %v2974_v15 = vmul.f32 %v8442_v29, %v2971_v36  ;;  %v2975_v3 = vmul.f32 %v8448_v16, %v2971_v36 }
0x1913   : > { %2957 = vrot.lane.b32.xlu1 %v2950_v56, %s6651_s24  ;;  %2955 = vrot.lane.b32.xlu2 %v2949_v1, %s6651_s24 }
0x191b   : > { %2979 = vrot.lane.b32.xlu1 %v2973_v59, %s6651_s24  ;;  %2959 = vrot.lane.b32.xlu2 %v2951_v19, %s6651_s24  ;;  %v11592_v19 = vmov 41  }
0x1923   : > { %2983 = vrot.lane.b32.xlu1 %v2975_v3, %s6651_s24  ;;  %2981 = vrot.lane.b32.xlu2 %v2974_v15, %s6651_s24 }
0x192b   : > { %2994 = vperm.xlu2 %6237, %v8272_v27  }
0x1933   : > { %6239 = vset.pattern.permute.xlu2 %v11594_v47 }
0x196d   : > { %v8717_v32 = vpop.permute.xlu2 %2955 }
0x1975   : > { %v8719_v61 = vpop.permute.xlu2 %2959 }
0x197d   : > { %v8721_v54 = vpop.permute.xlu2 %2981 }
0x1985   : > { %v2995_v53 = vpop.permute.xlu2 %2994 }
0x1986   : > { %v2997_v12 = vmul.f32 %v8344_v35, %v2995_v53  ;;  %v2998_v23 = vmul.f32 %v8442_v29, %v2995_v53  ;;  %v2999_v20 = vmul.f32 %v8448_v16, %v2995_v53 }
0x1988   : > { %3005 = vrot.lane.b32.xlu1 %v2998_v23, %s6653_s6  ;;  %3003 = vrot.lane.b32.xlu0 %v2997_v12, %s6653_s6 }
0x1989   : > { %3007 = vrot.lane.b32.xlu2 %v2999_v20, %s6653_s6 }
0x1990   : > { %3018 = vperm.xlu0 %6238, %v8257_v38  }
0x1998   : > { %6240 = vset.pattern.permute.xlu0 %v11594_v47 }
0x19e3   : > { %v8741_v7 = vpop.permute.xlu2 %3007 }
0x19fa   : > { %v8732_v50 = vpop.permute.xlu0 %3003 }
0x1a02   : > { %v3019_v28 = vpop.permute.xlu0 %3018 }
0x1a03   : > { %v3021_v17 = vmul.f32 %v8344_v35, %v3019_v28  ;;  %v3022_v26 = vmul.f32 %v8442_v29, %v3019_v28  ;;  %v3023_v37 = vmul.f32 %v8448_v16, %v3019_v28 }
0x1a05   : > { %3029 = vrot.lane.b32.xlu2 %v3022_v26, %s6653_s6  ;;  %3027 = vrot.lane.b32.xlu1 %v3021_v17, %s6653_s6 }
0x1a0d   : > { %3042 = vperm.xlu2 %6239, %v8272_v27   ;;  %3031 = vrot.lane.b32.xlu1 %v3023_v37, %s6653_s6 }
0x1a15   : > { %6241 = vset.pattern.permute.xlu2 %v11591_v49 }
0x1a5f   : > { %v8743_v2 = vpop.permute.xlu2 %3029 }
0x1a67   : > { %v3043_v55 = vpop.permute.xlu2 %3042 }
0x1a68   : > { %v3045_v31 = vmul.f32 %v8492_v0, %v3043_v55  ;;  %v3046_v45 = vmul.f32 %v8563_v33, %v3043_v55  ;;  %v3047_v11 = vmul.f32 %v8364_v51, %v3043_v55 }
0x1a6a   : > { %3055 = vrot.lane.b32.xlu2 %v3047_v11, %s11633_s23  ;;  %3051 = vrot.lane.b32.xlu0 %v3045_v31, %s11633_s23  ;;  %v11595_v31 = vmov 48  }
0x1a6b   : > { %3053 = vrot.lane.b32.xlu1 %v3046_v45, %s11633_s23 }
0x1a72   : > { %3066 = vperm.xlu0 %6240, %v8257_v38  }
0x1a7a   : > { %6242 = vset.pattern.permute.xlu0 %v11591_v49 }
0x1ac4   : > { %v8763_v30 = vpop.permute.xlu2 %3055 }
0x1adc   : > { %v8754_v5 = vpop.permute.xlu0 %3051 }
0x1ae4   : > { %v3067_v40 = vpop.permute.xlu0 %3066 }
0x1ae5   : > { %v3069_v21 = vmul.f32 %v8492_v0, %v3067_v40  ;;  %v3070_v13 = vmul.f32 %v8563_v33, %v3067_v40  ;;  %v3071_v39 = vmul.f32 %v8364_v51, %v3067_v40 }
0x1ae7   : > { %3077 = vrot.lane.b32.xlu2 %v3070_v13, %s11633_s23  ;;  %3075 = vrot.lane.b32.xlu1 %v3069_v21, %s11633_s23 }
0x1aef   : > { %3090 = vperm.xlu2 %6241, %v8272_v27   ;;  %3079 = vrot.lane.b32.xlu1 %v3071_v39, %s11633_s23  ;;  %v2958_v39 = vpop.permute.xlu1 %2957  ;;  %s6725_s23 = smov 16  }
0x1af7   : > { %6243 = vset.pattern.permute.xlu2 %v11592_v19 }
0x1b41   : > { %v8765_v43 = vpop.permute.xlu2 %3077 }
0x1b49   : > { %v3091_v1 = vpop.permute.xlu2 %3090 }
0x1b4a   : > { %v3093_v56 = vmul.f32 %v8492_v0, %v3091_v1  ;;  %v3094_v36 = vmul.f32 %v8563_v33, %v3091_v1  ;;  %v3095_v59 = vmul.f32 %v8364_v51, %v3091_v1 }
0x1b4c   : > { %3103 = vrot.lane.b32.xlu2 %v3095_v59, %s11623_s1  ;;  %3099 = vrot.lane.b32.xlu0 %v3093_v56, %s11623_s1  ;;  %v8812_v56 = vpop.permute.xlu1 %2979 }
0x1b4d   : > { %3101 = vrot.lane.b32.xlu1 %v3094_v36, %s11623_s1 }
0x1b54   : > { %3114 = vperm.xlu0 %6242, %v8257_v38  }
0x1b5c   : > { %6244 = vset.pattern.permute.xlu0 %v11592_v19 }
0x1ba6   : > { %v8785_v20 = vpop.permute.xlu2 %3103 }
0x1bbe   : > { %v8776_v15 = vpop.permute.xlu0 %3099 }
0x1bc6   : > { %v3115_v3 = vpop.permute.xlu0 %3114 }
0x1bc7   : > { %v3117_v53 = vmul.f32 %v8492_v0, %v3115_v3  ;;  %v3118_v12 = vmul.f32 %v8563_v33, %v3115_v3  ;;  %v3119_v23 = vmul.f32 %v8364_v51, %v3115_v3 }
0x1bc9   : > { %3125 = vrot.lane.b32.xlu2 %v3118_v12, %s11623_s1  ;;  %3123 = vrot.lane.b32.xlu1 %v3117_v53, %s11623_s1  ;;  %v6628_v12 = vld [vmem:[%s11464_s12] sm:$0x3f] }
0x1bd1   : > { %3138 = vperm.xlu2 %6243, %v8272_v27   ;;  %3127 = vrot.lane.b32.xlu1 %v3119_v23, %s11623_s1 }
0x1bd9   : > { %6245 = vset.pattern.permute.xlu2 %v11595_v31 }
0x1c23   : > { %v8787_v28 = vpop.permute.xlu2 %3125 }
0x1c2b   : > { %v3139_v17 = vpop.permute.xlu2 %3138 }
0x1c2c   : > { %v3141_v26 = vmul.f32 %v8492_v0, %v3139_v17  ;;  %v3142_v37 = vmul.f32 %v8563_v33, %v3139_v17  ;;  %v3143_v55 = vmul.f32 %v8364_v51, %v3139_v17 }
0x1c2e   : > { %3151 = vrot.lane.b32.xlu2 %v3143_v55, %s6656_s5  ;;  %3147 = vrot.lane.b32.xlu0 %v3141_v26, %s6656_s5 }
0x1c2f   : > { %3149 = vrot.lane.b32.xlu1 %v3142_v37, %s6656_s5 }
0x1c36   : > { %3162 = vperm.xlu0 %6244, %v8257_v38  }
0x1c3e   : > { %6246 = vset.pattern.permute.xlu0 %v11595_v31 }
0x1c88   : > { %v8808_v38 = vpop.permute.xlu2 %3151 }
0x1ca0   : > { %v8798_v45 = vpop.permute.xlu0 %3147 }
0x1ca8   : > { %v3163_v11 = vpop.permute.xlu0 %3162 }
0x1ca9   : > { %v3165_v40 = vmul.f32 %v8492_v0, %v3163_v11  ;;  %v3166_v21 = vmul.f32 %v8563_v33, %v3163_v11  ;;  %v3167_v13 = vmul.f32 %v8364_v51, %v3163_v11 }
0x1cab   : > { %3173 = vrot.lane.b32.xlu2 %v3166_v21, %s6656_s5  ;;  %3171 = vrot.lane.b32.xlu1 %v3165_v40, %s6656_s5 }
0x1cb3   : > { %3186 = vperm.xlu2 %6245, %v8272_v27   ;;  %3175 = vrot.lane.b32.xlu1 %v3167_v13, %s6656_s5  ;;  %v8820_v27 = vpop.permute.xlu1 %2983 }
0x1cbb   : > { %6247 = vset.pattern.permute.xlu2 %v11895_v41  ;;  %v3006_v23 = vpop.permute.xlu1 %3005 }
0x1cc3   : > { %v8826_v17 = vpop.permute.xlu1 %3027 }
0x1ccb   : > { %v8828_v26 = vpop.permute.xlu1 %3031 }
0x1cd3   : > { %v3054_v37 = vpop.permute.xlu1 %3053 }
0x1cd4   : > { %v3057_v47 = vsel %vm1027_vm11, %v8754_v5, %v3054_v37 }
0x1cdb   : > { %v8830_v55 = vpop.permute.xlu1 %3075 }
0x1ce3   : > { %v8832_v11 = vpop.permute.xlu1 %3079 }
0x1ceb   : > { %v3102_v40 = vpop.permute.xlu1 %3101 }
0x1cf3   : > { %v8834_v21 = vpop.permute.xlu1 %3123 }
0x1cfb   : > { %v8836_v13 = vpop.permute.xlu1 %3127 }
0x1d05   : > { %v8810_v1 = vpop.permute.xlu2 %3173 }
0x1d0d   : > { %v3187_v36 = vpop.permute.xlu2 %3186 }
0x1d0e   : > { %v3189_v59 = vmul.f32 %v8492_v0, %v3187_v36  ;;  %v3190_v3 = vmul.f32 %v8563_v33, %v3187_v36  ;;  %v3191_v53 = vmul.f32 %v8364_v51, %v3187_v36  ;;  %v3150_v36 = vpop.permute.xlu1 %3149 }
0x1d0f   : > { %v3153_v48 = vsel %vm1128_vm13, %v8798_v45, %v3150_v36 }
0x1d10   : > { %3199 = vrot.lane.b32.xlu2 %v3191_v53, %s11631_s25  ;;  %3195 = vrot.lane.b32.xlu0 %v3189_v59, %s11631_s25  ;;  %v2936_v53 = vmul.f32 %v8442_v29, %v8715_v57 }
0x1d11   : > { %3197 = vrot.lane.b32.xlu1 %v3190_v3, %s11631_s25  ;;  %v2962_v3 = vsel %vm929_vm9, %v2958_v39, %v8719_v61 }
0x1d12   : > { %v2967_v49 = vadd.f32 %v2962_v3, %v2936_v53  ;;  %v2961_v53 = vsel %vm929_vm9, %v8717_v32, %v2958_v39 }
0x1d18   : > { %3210 = vperm.xlu0 %6246, %v6628_v12   ;;  %v3010_v12 = vsel %vm978_vm10, %v3006_v23, %v8741_v7 }
0x1d19   : > { %v3015_v31 = vadd.f32 %v3010_v12, %v2967_v49  ;;  %v2935_v49 = vmul.f32 %v8344_v35, %v8715_v57  ;;  %v3106_v12 = vsel %vm11756_vm12, %v3102_v40, %v8785_v20  ;;  %v2986_v20 = vsel %vm929_vm9, %v8721_v54, %v8820_v27 }
0x1d1b   : > { %v3063_v63 = vadd.f32 %v3057_v47, %v3015_v31  ;;  %v3009_v47 = vsel %vm978_vm10, %v8732_v50, %v3006_v23  ;;  %v2966_v31 = vadd.f32 %v2961_v53, %v2935_v49 }
0x1d1d   : > { %v8838_v59 = vpop.permute.xlu1 %3171 }
0x1d20   : > { %6252 = vset.pattern.permute.xlu0 %v11597_v14  ;;  %v3105_v14 = vsel %vm11756_vm12, %v8776_v15, %v3102_v40  ;;  %v3034_v40 = vsel %vm978_vm10, %v8743_v2, %v8828_v26 }
0x1d21   : > { %v3111_v58 = vadd.f32 %v3105_v14, %v3063_v63  ;;  %v3014_v14 = vadd.f32 %v3009_v47, %v2966_v31  ;;  %v2944_v47 = vmul.f32 %v8448_v16, %v8696_v4 }
0x1d23   : > { %v3159_v25 = vadd.f32 %v3153_v48, %v3111_v58 }
0x1d25   : > { %v8846_v19 = vpop.permute.xlu1 %3175 }
0x1d82   : > { %v3196_v6 = vpop.permute.xlu0 %3195 }
0x1d83   : > { %v3198_v41 = vpop.permute.xlu1 %3197 }
0x1d84   : > { %v3201_v46 = vsel %vm1177_vm14, %v3196_v6, %v3198_v41 }
0x1d85   : > { %v3207_v3 = vadd.f32 %v3201_v46, %v3159_v25  ;;  %v3062_v46 = vadd.f32 %v8754_v5, %v3014_v14  ;;  %v2937_v25 = vmul.f32 %v8448_v16, %v8715_v57  ;;  %v3154_v57 = vsel %vm1128_vm13, %v3150_v36, %v8808_v38 }
0x1d86   : > { %v2943_v38 = vmul.f32 %v8442_v29, %v8696_v4  ;;  %v3129_v29 = vsel %vm11756_vm12, %v8834_v21, %v8787_v28  ;;  %v2992_v14 = vadd.f32 %v8820_v27, %v2944_v47  ;;  %v3130_v16 = vsel %vm11756_vm12, %v8787_v28, %v8836_v13  ;;  %v8936_v28 = vld [vmem:[%s11466_s14] sm:$0x3] }
0x1d87   : > { %3242 = vrot.lane.b32.xlu0 %v3207_v3, %s11629_s4  ;;  %v3110_v32 = vadd.f32 %v8776_v15, %v3062_v46  ;;  %v2968_v50 = vadd.f32 %v8719_v61, %v2937_v25  ;;  %v3200_v15 = vpop.permute.xlu2 %3199  ;;  %v3082_v46 = vsel %vm1027_vm11, %v8765_v43, %v8832_v11  ;;  %v3178_v27 = vsel %vm1128_vm13, %v8810_v1, %v8846_v19  ;;  %v11918_v47 = vld [vmem:[#allocation8_spill] sm:$0xff] }
0x1d88   : > { %v11900_v13 = vmov 5   ;;  %v11901_v19 = vmov 10  }
0x1d89   : > { %v3158_v39 = vadd.f32 %v8798_v45, %v3110_v32  ;;  %v3040_v32 = vadd.f32 %v8828_v26, %v2992_v14  ;;  %v3272_v26 = vld [vmem:[%s11463_s11] sm:$0x3f] }
0x1d8a   : > { %v3211_v63 = vpop.permute.xlu0 %3210 }
0x1d8b   : > { %v3213_v48 = vmul.f32 %v8492_v0, %v3211_v63  ;;  %v3214_v58 = vmul.f32 %v8563_v33, %v3211_v63  ;;  %v3058_v0 = vsel %vm1027_vm11, %v3054_v37, %v8763_v30  ;;  %v3016_v33 = vadd.f32 %v8741_v7, %v2968_v50 }
0x1d8c   : > { %v3206_v23 = vadd.f32 %v3196_v6, %v3158_v39  ;;  %v3215_v5 = vmul.f32 %v8364_v51, %v3211_v63  ;;  %v3202_v30 = vsel %vm1177_vm14, %v3198_v41, %v3200_v15  ;;  %v2985_v51 = vsel %vm929_vm9, %v8812_v56, %v8721_v54 }
0x1d8d   : > { %3221 = vrot.lane.b32.xlu2 %v3214_v58, %s11631_s25  ;;  %3219 = vrot.lane.b32.xlu1 %v3213_v48, %s11631_s25  ;;  %v3064_v3 = vadd.f32 %v3058_v0, %v3016_v33  ;;  %v2942_v6 = vmul.f32 %v8344_v35, %v8696_v4  ;;  %v3033_v41 = vsel %vm978_vm10, %v8826_v17, %v8743_v2  ;;  %v887_v33 = vlaneseq }
0x1d8e   : > { %v2991_v56 = vadd.f32 %v2986_v20, %v2943_v38  ;;  %v3081_v35 = vsel %vm1027_vm11, %v8830_v55, %v8765_v43  ;;  %v3177_v2 = vsel %vm1128_vm13, %v8838_v59, %v8810_v1  ;;  %v3088_v4 = vadd.f32 %v3082_v46, %v3040_v32  ;;  %v11921_v46 = vld [vmem:[#allocation15_spill] sm:$0xff] }
0x1d8f   : > { %v3112_v61 = vadd.f32 %v3106_v12, %v3064_v3  ;;  %v2990_v37 = vadd.f32 %v2985_v51, %v2942_v6  ;;  %v11902_v1 = vmov 15   ;;  %v1562_v51 = vsel %vm11608_vm4, %v7695_v42, %v7793_v62 }
0x1d90   : > { %v3039_v53 = vadd.f32 %v3034_v40, %v2991_v56  ;;  %v3136_v43 = vadd.f32 %v3130_v16, %v3088_v4  ;;  %v1224_v6 = vsel %vm1223_vm5, %v7689_v60, %v7806_v44  ;;  %v1225_v20 = vsel %vm1223_vm5, %v7806_v44, %v7715_v9 }
0x1d91   : > { %v3160_v45 = vadd.f32 %v3154_v57, %v3112_v61  ;;  %v3038_v36 = vadd.f32 %v3033_v41, %v2990_v37  ;;  %v11905_v57 = vmov 0.0   ;;  %v1902_v60 = vsel %vm11607_vm7, %v7955_v10, %v7930_v8  ;;  %v11912_v10 = vld [vmem:[#allocation14_spill] sm:$0xff] }
0x1d92   : > { %v3087_v49 = vadd.f32 %v3081_v35, %v3039_v53  ;;  %v3184_v11 = vadd.f32 %v3178_v27, %v3136_v43  ;;  %v1903_v44 = vsel %vm11607_vm7, %v7930_v8, %v7932_v52  ;;  %v2228_v53 = vsel %vm1128_vm13, %v11912_v10, %v8167_v24  ;;  %v11914_v52 = vld [vmem:[#allocation38_spill] sm:$0xff] }
0x1d93   : > { %v3208_v7 = vadd.f32 %v3202_v30, %v3160_v45  ;;  %v3086_v54 = vadd.f32 %v8830_v55, %v3038_v36 }
0x1d94   : > { %v3135_v31 = vadd.f32 %v3129_v29, %v3087_v49 }
0x1d95   : > { %3240 = vrot.lane.b32.xlu2 %v3206_v23, %s11629_s4  ;;  %3223 = vrot.lane.b32.xlu1 %v3215_v5, %s11631_s25  ;;  %v3134_v17 = vadd.f32 %v8834_v21, %v3086_v54  ;;  %v888_v23 = vand.u32 127, %v887_v33  ;;  %v11915_v54 = vld [vmem:[#allocation18_spill] sm:$0xff] }
0x1d96   : > { %v3183_v55 = vadd.f32 %v3177_v2, %v3135_v31  ;;  %v2229_v31 = vsel %vm1128_vm13, %v8167_v24, %v11918_v47 }
0x1d97   : > { %v3182_v63 = vadd.f32 %v8838_v59, %v3134_v17  ;;  %v889_v5 = vadd.s32 128, %v888_v23  ;;  %v8943_v12 = vand.u32 15, %v888_v23  ;;  %v11917_v17 = vld [vmem:[#allocation43_spill] sm:$0xff] }
0x1d99   : > { %11903 = vst [vmem:[#allocation29_spill] sm:$0xff] %v8943_v12  ;;  %v8945_v3 = vand.u32 15, %v889_v5  ;;  %vm1547_vm15 = vcmp.ge.s32.totalorder %v8943_v12, 2  ;;  %vm1210_vm2 = vcmp.ge.s32.totalorder %v8943_v12, 3  ;;  %vm1888_vm6 = vcmp.ge.s32.totalorder %v8943_v12, 1 }
0x1d9a   : > { %v8952_v61 = vsel %vm1547_vm15, 1.0, %v11905_v57  ;;  %v8958_v30 = vsel %vm1210_vm2, 1.0, %v11905_v57  ;;  %v8982_v62 = vsel %vm1888_vm6, 1.0, %v11905_v57  ;;  %vm2564_vm2 = vcmask 384000  }
0x1d9b   : > { %11904 = vst [vmem:[#allocation19_spill] sm:$0xff] %v8945_v3  ;;  %vm1548_vm1 = vcmp.ge.s32.totalorder %v8945_v3, 2  ;;  %vm1211_vm3 = vcmp.ge.s32.totalorder %v8945_v3, 3  ;;  %vm1889_vm15 = vcmp.ge.s32.totalorder %v8945_v3, 1  ;;  %v1228_v41 = vmul.f32 %v1224_v6, %v8958_v30 }
0x1d9c   : > { %11906 = vst [vmem:[#allocation23_spill] sm:$0xff] %v8952_v61  ;;  %v8955_v15 = vsel %vm1548_vm1, 1.0, %v11905_v57  ;;  %v8961_v45 = vsel %vm1211_vm3, 1.0, %v11905_v57  ;;  %v8988_v9 = vsel %vm1889_vm15, 1.0, %v11905_v57  ;;  %vm2551_vm1 = vcmp.lt.s32.totalorder %v8943_v12, 15 }
0x1d9d   : > { %3244 = vrot.lane.b32.xlu1 %v3208_v7, %s11629_s4  ;;  %11907 = vst [vmem:[#allocation32_spill] sm:$0xff] %v8955_v15  ;;  %v1561_v7 = vsel %vm11608_vm4, %v7719_v18, %v7695_v42  ;;  %v1566_v18 = vmul.f32 %v1562_v51, %v8955_v15  ;;  %v1229_v42 = vmul.f32 %v1225_v20, %v8961_v45  ;;  %vm2552_vm3 = vcmp.lt.s32.totalorder %v8945_v3, 15 }
0x1d9e   : > { %11908 = vst [vmem:[#allocation33_spill] sm:$0xff] %v8958_v30  ;;  %v1565_v38 = vmul.f32 %v1561_v7, %v8952_v61  ;;  %v1906_v36 = vmul.f32 %v1902_v60, %v8982_v62  ;;  %v1907_v35 = vmul.f32 %v1903_v44, %v8988_v9  ;;  %vm2892_vm6 = vcmp.lt.s32.totalorder %v8943_v12, 14 }
0x1d9f   : > { %11909 = vst [vmem:[#allocation35_spill] sm:$0xff] %v8961_v45  ;;  %v1568_v56 = vadd.f32 %v1566_v18, %v1229_v42  ;;  %vm11764_vm15 = vcmask 375808   ;;  %vm2893_vm0 = vcmp.lt.s32.totalorder %v8945_v3, 14  ;;  %v9003_v8 = vsel %vm2551_vm1, 1.0, %v11905_v57 }
0x1da0   : > { %11910 = vst [vmem:[#allocation10_spill] sm:$0xff] %v8982_v62  ;;  %v1567_v40 = vadd.f32 %v1565_v38, %v1228_v41  ;;  %v2565_v29 = vsel %vm2564_vm2, %v11915_v54, %v11914_v52  ;;  %v9009_v49 = vsel %vm2552_vm3, 1.0, %v11905_v57  ;;  %v2566_v2 = vsel %vm2564_vm2, %v11914_v52, %v11917_v17  ;;  %v9047_v41 = vld [vmem:[#allocation2 + $0x28] sm:$0x3] }
0x1da1   : > { %11911 = vst [vmem:[#allocation6_spill] sm:$0xff] %v8988_v9  ;;  %vm3233_vm7 = vcmp.lt.s32.totalorder %v8943_v12, 13  ;;  %vm3246_vm4 = vcmask 367616   ;;  %vm3234_vm1 = vcmp.lt.s32.totalorder %v8945_v3, 13  ;;  %v2907_v24 = vsel %vm11764_vm15, %v8686_v22, %v11921_v46 }
0x1da2   : > { %11913 = vst [vmem:[#allocation9_spill] sm:$0xff] %v9003_v8  ;;  %v2569_v32 = vmul.f32 %v2565_v29, %v9003_v8  ;;  %v9034_v16 = vsel %vm3233_vm7, 1.0, %v11905_v57  ;;  %vm3864_vm7 = vcmask 203776   ;;  %vm3928_vm3 = vcmask 72704  }
0x1da3   : > { %11916 = vst [vmem:[#allocation41_spill] sm:$0xff] %v9009_v49 }
0x1da4   : > { %11922 = vst [vmem:[#allocation42_spill] sm:$0xff] %v9034_v16 }
0x1de7   : > { %v3222_v48 = vpop.permute.xlu2 %3221 }
0x1def   : > { %v3241_v37 = vpop.permute.xlu2 %3240 }
0x1dff   : > { %v3220_v58 = vpop.permute.xlu1 %3219 }
0x1e00   : > { %v3225_v21 = vsel %vm1177_vm14, %v3220_v58, %v3222_v48  ;;  %v3230_v25 = vadd.f32 %v3220_v58, %v3182_v63  ;;  %v3243_v63 = vpop.permute.xlu0 %3242  ;;  %v9026_v58 = vsel %vm2893_vm0, 1.0, %v11905_v57  ;;  %vm3890_vm0 = vcmask 859136  }
0x1e01   : > { %v3231_v50 = vadd.f32 %v3225_v21, %v3183_v55  ;;  %v9020_v55 = vsel %vm2892_vm6, 1.0, %v11905_v57  ;;  %11920 = vst [vmem:[#allocation40_spill] sm:$0xff] %v9026_v58  ;;  %v1908_v21 = vadd.f32 %v1906_v36, %v1567_v40  ;;  %v3247_v4 = vsel %vm3246_vm4, %v3241_v37, %v3243_v63 }
0x1e02   : > { %3258 = vrot.lane.b32.xlu2 %v3230_v25, %s11629_s4  ;;  %11919 = vst [vmem:[#allocation39_spill] sm:$0xff] %v9020_v55  ;;  %v1909_v25 = vadd.f32 %v1907_v35, %v1568_v56  ;;  %v3251_v33 = vmul.f32 %v3247_v4, %v9034_v16  ;;  %v11925_v36 = vmov 7   ;;  %vm3909_vm6 = vcmask 465920  }
0x1e03   : > { %3260 = vrot.lane.b32.xlu0 %v3231_v50, %s11629_s4  ;;  %v2570_v50 = vmul.f32 %v2566_v2, %v9009_v49  ;;  %v11927_v2 = vmov 1  }
0x1e07   : > { %v3224_v59 = vpop.permute.xlu1 %3223 }
0x1e08   : > { %v3226_v39 = vsel %vm1177_vm14, %v3222_v48, %v3224_v59  ;;  %v2906_v48 = vsel %vm11764_vm15, %v8711_v34, %v8686_v22  ;;  %v9038_v34 = vsel %vm3234_vm1, 1.0, %v11905_v57  ;;  %v2233_v22 = vadd.f32 %v2229_v31, %v1909_v25 }
0x1e09   : > { %v3232_v0 = vadd.f32 %v3226_v39, %v3184_v11  ;;  %11923 = vst [vmem:[#allocation37_spill] sm:$0xff] %v9038_v34  ;;  %v2232_v11 = vadd.f32 %v2228_v53, %v1908_v21  ;;  %v2910_v59 = vmul.f32 %v2906_v48, %v9020_v55  ;;  %vm3956_vm1 = vcmask 728064  }
0x1e0a   : > { %3275 = vperm.xlu2 %6247, %v3272_v26   ;;  %v2911_v26 = vmul.f32 %v2907_v24, %v9026_v58 }
0x1e0b   : > { %3262 = vrot.lane.b32.xlu1 %v3232_v0, %s11629_s4  ;;  %v2571_v39 = vadd.f32 %v2569_v32, %v2232_v11  ;;  %v2572_v0 = vadd.f32 %v2570_v50, %v2233_v22  ;;  %v11928_v32 = vmov 6   ;;  %v11929_v50 = vmov 16   ;;  %s6714_s4 = smov 89  }
0x1e0d   : > { %v2912_v5 = vadd.f32 %v2910_v59, %v2571_v39  ;;  %v2913_v7 = vadd.f32 %v2911_v26, %v2572_v0 }
0x1e0f   : > { %v3245_v14 = vpop.permute.xlu1 %3244  ;;  %v3253_v6 = vadd.f32 %v3251_v33, %v2912_v5 }
0x1e10   : > { %v3248_v27 = vsel %vm3246_vm4, %v3243_v63, %v3245_v14  ;;  %v9071_v63 = vld [vmem:[#allocation2 + $0x10] sm:$0x3] }
0x1e11   : > { %v3252_v23 = vmul.f32 %v3248_v27, %v9038_v34 }
0x1e12   : > { %6249 = vset.pattern.permute.xlu2 %v11900_v13 }
0x1e13   : > { %3305 = vperm.xlu2 %6249, %v8936_v28   ;;  %3298 = vperm.xlu1 %6248, %v8936_v28   ;;  %v3254_v51 = vadd.f32 %v3252_v23, %v2913_v7 }
0x1e1b   : > { %6250 = vset.pattern.permute.xlu1 %v11901_v19  ;;  %6251 = vset.pattern.permute.xlu2 %v11902_v1 }
0x1e5c   : > { %v9041_v43 = vpop.permute.xlu2 %3258 }
0x1e5d   : > { %11924 = vst [vmem:[#allocation14_spill] sm:$0xff] %v9041_v43 }
0x1e64   : > { %v3276_v20 = vpop.permute.xlu2 %3275 }
0x1e65   : > { %v3278_v38 = vadd.f32 %v3276_v20, %v3253_v6  ;;  %v3279_v18 = vadd.f32 %v3276_v20, %v3254_v51 }
0x1e67   : > { %3290 = vst [vmem:[#allocation2 + $0x38] sm:$0x3f] %v3278_v38 }
0x1e68   : > { %3291 = vst [vmem:[#allocation2 + $0x20] sm:$0x3f] %v3279_v18 }
0x1e6d   : > { %v3306_v42 = vpop.permute.xlu2 %3305 }
0x1e6e   : > { %v9049_v60 = vld [vmem:[#allocation2 + $0x38] sm:$0x3]  ;;  %v3308_v44 = vmul.f32 %v3306_v42, %v9047_v41 }
0x1e6f   : > { %v9052_v37 = vld [vmem:[#allocation2 + $0x20] sm:$0x3]  ;;  %v3309_v40 = vmul.f32 %v3306_v42, %v9049_v60  ;;  %v9073_v14 = vld [vmem:[#allocation2 + $0x38] sm:$0x3] }
0x1e70   : > { %v3310_v56 = vmul.f32 %v3306_v42, %v9052_v37  ;;  %3314 = vrot.lane.b32.xlu1 %v3308_v44, %s6653_s6  ;;  %v9075_v48 = vld [vmem:[#allocation2 + $0x20] sm:$0x3] }
0x1e71   : > { %3316 = vrot.lane.b32.xlu2 %v3309_v40, %s6653_s6 }
0x1e72   : > { %3318 = vrot.lane.b32.xlu0 %v3310_v56, %s6653_s6 }
0x1e75   : > { %v9087_v4 = vpop.permute.xlu0 %3260 }
0x1e76   : > { %11930 = vst [vmem:[#allocation18_spill] sm:$0xff] %v9087_v4 }
0x1e78   : > { %3329 = vperm.xlu1 %6250, %v8936_v28  }
0x1e7d   : > { %v9061_v35 = vpop.permute.xlu1 %3262 }
0x1e7e   : > { %11926 = vst [vmem:[#allocation38_spill] sm:$0xff] %v9061_v35 }
0x1e80   : > { %6259 = vset.pattern.permute.xlu1 %v11925_v36 }
0x1e85   : > { %v3299_v10 = vpop.permute.xlu1 %3298 }
0x1e86   : > { %v3302_v0 = vmul.f32 %v3299_v10, %v9049_v60  ;;  %v3301_v33 = vmul.f32 %v3299_v10, %v9047_v41 }
0x1ecb   : > { %v3317_v47 = vpop.permute.xlu2 %3316 }
0x1ee2   : > { %v3315_v53 = vpop.permute.xlu1 %3314 }
0x1ee3   : > { %v3320_v26 = vsel %vm978_vm10, %v3315_v53, %v3317_v47 }
0x1ee4   : > { %v3319_v27 = vpop.permute.xlu0 %3318  ;;  %v3325_v51 = vadd.f32 %v3320_v26, %v3301_v33  ;;  %v11932_v26 = vmov 21  }
0x1ee5   : > { %v3321_v39 = vsel %vm978_vm10, %v3317_v47, %v3319_v27 }
0x1ee6   : > { %v3326_v6 = vadd.f32 %v3321_v39, %v3302_v0 }
0x1eea   : > { %v3330_v52 = vpop.permute.xlu1 %3329 }
0x1eeb   : > { %v3332_v54 = vmul.f32 %v3330_v52, %v9047_v41  ;;  %v3333_v29 = vmul.f32 %v3330_v52, %v9049_v60  ;;  %v3334_v17 = vmul.f32 %v3330_v52, %v9052_v37  ;;  %v3303_v52 = vmul.f32 %v3299_v10, %v9052_v37 }
0x1eed   : > { %3342 = vrot.lane.b32.xlu1 %v3334_v17, %s11623_s1  ;;  %3340 = vrot.lane.b32.xlu0 %v3333_v29, %s11623_s1  ;;  %v3327_v17 = vadd.f32 %v3319_v27, %v3303_v52 }
0x1eee   : > { %3338 = vrot.lane.b32.xlu2 %v3332_v54, %s11623_s1 }
0x1ef6   : > { %3356 = vperm.xlu2 %6251, %v8936_v28  }
0x1efe   : > { %6253 = vset.pattern.permute.xlu2 %v11927_v2 }
0x1f48   : > { %v3339_v31 = vpop.permute.xlu2 %3338 }
0x1f50   : > { %v3357_v46 = vpop.permute.xlu2 %3356 }
0x1f51   : > { %v3359_v24 = vmul.f32 %v3357_v46, %v9073_v14  ;;  %v3360_v21 = vmul.f32 %v3357_v46, %v9075_v48  ;;  %v3361_v25 = vmul.f32 %v3357_v46, %v9071_v63 }
0x1f53   : > { %3369 = vrot.lane.b32.xlu2 %v3361_v25, %s11631_s25  ;;  %3367 = vrot.lane.b32.xlu1 %v3360_v21, %s11631_s25 }
0x1f54   : > { %3365 = vrot.lane.b32.xlu0 %v3359_v24, %s11631_s25 }
0x1f5c   : > { %3380 = vperm.xlu0 %6252, %v8936_v28  }
0x1f5f   : > { %v3341_v11 = vpop.permute.xlu0 %3340  ;;  %v3343_v22 = vpop.permute.xlu1 %3342 }
0x1f60   : > { %v3344_v5 = vsel %vm11756_vm12, %v3339_v31, %v3341_v11  ;;  %v3345_v7 = vsel %vm11756_vm12, %v3341_v11, %v3343_v22  ;;  %v3351_v46 = vadd.f32 %v3343_v22, %v3327_v17 }
0x1f61   : > { %v3349_v38 = vadd.f32 %v3344_v5, %v3325_v51  ;;  %v3350_v18 = vadd.f32 %v3345_v7, %v3326_v6  ;;  %v11934_v6 = vmov 2  }
0x1f64   : > { %6254 = vset.pattern.permute.xlu0 %v11928_v32 }
0x1f65   : > { %3417 = vperm.xlu0 %6254, %v8936_v28  }
0x1f6d   : > { %6256 = vset.pattern.permute.xlu0 %v11929_v50 }
0x1fad   : > { %v3370_v47 = vpop.permute.xlu2 %3369 }
0x1fc5   : > { %v3368_v23 = vpop.permute.xlu1 %3367 }
0x1fc6   : > { %v3366_v59 = vpop.permute.xlu0 %3365  ;;  %v3372_v31 = vsel %vm1177_vm14, %v3368_v23, %v3370_v47 }
0x1fc7   : > { %v3371_v20 = vsel %vm1177_vm14, %v3366_v59, %v3368_v23  ;;  %v3376_v44 = vadd.f32 %v3366_v59, %v3349_v38  ;;  %v3378_v21 = vadd.f32 %v3372_v31, %v3351_v46  ;;  %v11931_v59 = vmov 11  }
0x1fc8   : > { %v3377_v40 = vadd.f32 %v3371_v20, %v3350_v18 }
0x1fce   : > { %v3381_v42 = vpop.permute.xlu0 %3380 }
0x1fcf   : > { %v3383_v56 = vmul.f32 %v3381_v42, %v9073_v14  ;;  %v3384_v53 = vmul.f32 %v3381_v42, %v9075_v48  ;;  %v3385_v24 = vmul.f32 %v3381_v42, %v9071_v63 }
0x1fd1   : > { %v3387_v54 = vadd.f32 %v3384_v53, %v3377_v40  ;;  %v3386_v29 = vadd.f32 %v3383_v56, %v3376_v44  ;;  %v3388_v25 = vadd.f32 %v3385_v24, %v3378_v21  ;;  %v11935_v40 = vmov 22  }
0x1fd3   : > { %3398 = vrot.lane.b32.xlu2 %v3387_v54, %s11627_s26  ;;  %3396 = vrot.lane.b32.xlu1 %v3386_v29, %s11627_s26 }
0x1fd7   : > { %v3418_v10 = vpop.permute.xlu0 %3417 }
0x1fd8   : > { %v3420_v27 = vmul.f32 %v3418_v10, %v9047_v41  ;;  %v3421_v11 = vmul.f32 %v3418_v10, %v9049_v60  ;;  %v3422_v22 = vmul.f32 %v3418_v10, %v9052_v37 }
0x1fdb   : > { %3410 = vperm.xlu2 %6253, %v8936_v28   ;;  %3400 = vrot.lane.b32.xlu1 %v3388_v25, %s11627_s26  ;;  %s6712_s26 = smov 22  }
0x1fe3   : > { %3428 = vrot.lane.b32.xlu2 %v3421_v11, %s6653_s6  ;;  %3426 = vrot.lane.b32.xlu1 %v3420_v27, %s6653_s6 }
0x1fe4   : > { %6255 = vset.pattern.permute.xlu2 %v11931_v59 }
0x1feb   : > { %3441 = vperm.xlu2 %6255, %v8936_v28   ;;  %3430 = vrot.lane.b32.xlu1 %v3422_v22, %s6653_s6 }
0x1ff3   : > { %6257 = vset.pattern.permute.xlu2 %v11932_v26 }
0x202d   : > { %v9114_v39 = vpop.permute.xlu2 %3398 }
0x202e   : > { %11933 = vst [vmem:[#allocation43_spill] sm:$0xff] %v9114_v39 }
0x2035   : > { %v3411_v0 = vpop.permute.xlu2 %3410 }
0x2036   : > { %v3413_v46 = vmul.f32 %v3411_v0, %v9047_v41  ;;  %v3414_v21 = vmul.f32 %v3411_v0, %v9049_v60 }
0x203d   : > { %v3429_v33 = vpop.permute.xlu2 %3428 }
0x2045   : > { %v3442_v23 = vpop.permute.xlu2 %3441  ;;  %v9132_v56 = vpop.permute.xlu1 %3396 }
0x2046   : > { %v3444_v5 = vmul.f32 %v3442_v23, %v9047_v41  ;;  %v3445_v7 = vmul.f32 %v3442_v23, %v9049_v60  ;;  %v3446_v51 = vmul.f32 %v3442_v23, %v9052_v37  ;;  %11936 = vst [vmem:[#allocation8_spill] sm:$0xff] %v9132_v56 }
0x2048   : > { %3454 = vrot.lane.b32.xlu2 %v3446_v51, %s11623_s1  ;;  %3450 = vrot.lane.b32.xlu0 %v3444_v5, %s11623_s1 }
0x2049   : > { %3452 = vrot.lane.b32.xlu1 %v3445_v7, %s11623_s1 }
0x204d   : > { %v9134_v53 = vpop.permute.xlu1 %3400 }
0x204e   : > { %11937 = vst [vmem:[#allocation15_spill] sm:$0xff] %v9134_v53 }
0x2050   : > { %3465 = vperm.xlu0 %6256, %v8936_v28  }
0x2055   : > { %v3427_v52 = vpop.permute.xlu1 %3426 }
0x2056   : > { %v3432_v31 = vsel %vm978_vm10, %v3427_v52, %v3429_v33  ;;  %v3415_v52 = vmul.f32 %v3411_v0, %v9052_v37  ;;  %v11939_v0 = vmov 17  }
0x2057   : > { %v3437_v10 = vadd.f32 %v3432_v31, %v3413_v46 }
0x2058   : > { %6258 = vset.pattern.permute.xlu0 %v11934_v6 }
0x205d   : > { %v3431_v29 = vpop.permute.xlu1 %3430 }
0x205e   : > { %v3433_v24 = vsel %vm978_vm10, %v3429_v33, %v3431_v29 }
0x205f   : > { %v3438_v11 = vadd.f32 %v3433_v24, %v3414_v21 }
0x20a2   : > { %v3455_v54 = vpop.permute.xlu2 %3454 }
0x20ba   : > { %v3451_v20 = vpop.permute.xlu0 %3450 }
0x20bb   : > { %v3453_v47 = vpop.permute.xlu1 %3452 }
0x20bc   : > { %v3456_v25 = vsel %vm11756_vm12, %v3451_v20, %v3453_v47  ;;  %v3457_v27 = vsel %vm11756_vm12, %v3453_v47, %v3455_v54  ;;  %v3439_v47 = vadd.f32 %v3431_v29, %v3415_v52  ;;  %v11940_v29 = vmov 3  }
0x20bd   : > { %v3461_v23 = vadd.f32 %v3456_v25, %v3437_v10  ;;  %v3462_v5 = vadd.f32 %v3457_v27, %v3438_v11  ;;  %v11938_v27 = vmov 12  }
0x20be   : > { %v3463_v31 = vadd.f32 %v3455_v54, %v3439_v47 }
0x20c2   : > { %v3466_v38 = vpop.permute.xlu0 %3465 }
0x20c3   : > { %v3468_v18 = vmul.f32 %v3466_v38, %v9073_v14  ;;  %v3469_v42 = vmul.f32 %v3466_v38, %v9075_v48  ;;  %v3470_v44 = vmul.f32 %v3466_v38, %v9071_v63 }
0x20c5   : > { %3476 = vrot.lane.b32.xlu2 %v3469_v42, %s11631_s25  ;;  %3474 = vrot.lane.b32.xlu1 %v3468_v18, %s11631_s25 }
0x20cd   : > { %3489 = vperm.xlu2 %6257, %v8936_v28   ;;  %3478 = vrot.lane.b32.xlu1 %v3470_v44, %s11631_s25 }
0x20d5   : > { %6262 = vset.pattern.permute.xlu2 %v11935_v40 }
0x211f   : > { %v3477_v17 = vpop.permute.xlu2 %3476 }
0x2127   : > { %v3490_v22 = vpop.permute.xlu2 %3489 }
0x2128   : > { %v3492_v51 = vmul.f32 %v3490_v22, %v9073_v14  ;;  %v3493_v42 = vmul.f32 %v3490_v22, %v9075_v48  ;;  %v3494_v21 = vmul.f32 %v3490_v22, %v9071_v63 }
0x2137   : > { %v3475_v7 = vpop.permute.xlu1 %3474 }
0x2138   : > { %v3480_v38 = vsel %vm1177_vm14, %v3475_v7, %v3477_v17  ;;  %v3485_v18 = vadd.f32 %v3475_v7, %v3461_v23 }
0x2139   : > { %v3486_v33 = vadd.f32 %v3480_v38, %v3462_v5 }
0x213a   : > { %v3495_v44 = vadd.f32 %v3492_v51, %v3485_v18 }
0x213b   : > { %v3496_v20 = vadd.f32 %v3493_v42, %v3486_v33  ;;  %v11943_v42 = vmov 8  }
0x213c   : > { %3501 = vrot.lane.b32.xlu0 %v3495_v44, %s6704_s0 }
0x213d   : > { %3503 = vrot.lane.b32.xlu1 %v3496_v20, %s6704_s0 }
0x213f   : > { %v3479_v46 = vpop.permute.xlu1 %3478 }
0x2140   : > { %v3481_v24 = vsel %vm1177_vm14, %v3477_v17, %v3479_v46  ;;  %v11944_v46 = vmov 18  }
0x2141   : > { %v3487_v25 = vadd.f32 %v3481_v24, %v3463_v31 }
0x2143   : > { %v3497_v10 = vadd.f32 %v3494_v21, %v3487_v25 }
0x2144   : > { %3517 = vperm.xlu0 %6258, %v8936_v28  }
0x2145   : > { %3524 = vperm.xlu1 %6259, %v8936_v28   ;;  %3505 = vrot.lane.b32.xlu2 %v3497_v10, %s6704_s0  ;;  %s6708_s0 = smov 9  }
0x214c   : > { %6260 = vset.pattern.permute.xlu0 %v11938_v27 }
0x214d   : > { %3548 = vperm.xlu0 %6260, %v8936_v28   ;;  %6261 = vset.pattern.permute.xlu1 %v11939_v0 }
0x2155   : > { %6263 = vset.pattern.permute.xlu0 %v11940_v29 }
0x219f   : > { %v9178_v24 = vpop.permute.xlu2 %3505 }
0x21a0   : > { %11945 = vst [vmem:[#allocation46_spill] sm:$0xff] %v9178_v24 }
0x21ae   : > { %v9154_v54 = vpop.permute.xlu0 %3501 }
0x21af   : > { %11941 = vst [vmem:[#allocation44_spill] sm:$0xff] %v9154_v54  ;;  %v9156_v17 = vpop.permute.xlu1 %3503 }
0x21b0   : > { %11942 = vst [vmem:[#allocation45_spill] sm:$0xff] %v9156_v17 }
0x21b6   : > { %v3518_v11 = vpop.permute.xlu0 %3517 }
0x21b7   : > { %v3525_v22 = vpop.permute.xlu1 %3524  ;;  %v3522_v53 = vmul.f32 %v3518_v11, %v9052_v37 }
0x21b8   : > { %v3527_v23 = vmul.f32 %v3525_v22, %v9047_v41  ;;  %v3528_v5 = vmul.f32 %v3525_v22, %v9049_v60  ;;  %v3529_v51 = vmul.f32 %v3525_v22, %v9052_v37 }
0x21ba   : > { %3535 = vrot.lane.b32.xlu1 %v3528_v5, %s6653_s6  ;;  %3533 = vrot.lane.b32.xlu2 %v3527_v23, %s6653_s6  ;;  %v3520_v5 = vmul.f32 %v3518_v11, %v9047_v41 }
0x21bf   : > { %v3549_v7 = vpop.permute.xlu0 %3548 }
0x21c0   : > { %v3551_v38 = vmul.f32 %v3549_v7, %v9049_v60  ;;  %v3552_v18 = vmul.f32 %v3549_v7, %v9052_v37 }
0x21c2   : > { %3555 = vrot.lane.b32.xlu1 %v3551_v38, %s11623_s1  ;;  %3537 = vrot.lane.b32.xlu2 %v3529_v51, %s6653_s6 }
0x21ca   : > { %3567 = vperm.xlu1 %6261, %v8936_v28   ;;  %3557 = vrot.lane.b32.xlu2 %v3552_v18, %s11623_s1 }
0x21d2   : > { %6264 = vset.pattern.permute.xlu1 %v11943_v42 }
0x2214   : > { %v3534_v21 = vpop.permute.xlu2 %3533 }
0x221c   : > { %v3538_v25 = vpop.permute.xlu2 %3537 }
0x2224   : > { %v3558_v10 = vpop.permute.xlu2 %3557 }
0x222c   : > { %v3536_v33 = vpop.permute.xlu1 %3535 }
0x222d   : > { %v3539_v23 = vsel %vm978_vm10, %v3534_v21, %v3536_v33  ;;  %v3546_v21 = vadd.f32 %v3538_v25, %v3522_v53  ;;  %v11946_v53 = vmov 13  }
0x222e   : > { %v3544_v7 = vadd.f32 %v3539_v23, %v3520_v5 }
0x222f   : > { %v3565_v23 = vadd.f32 %v3558_v10, %v3546_v21 }
0x2234   : > { %v3556_v44 = vpop.permute.xlu1 %3555 }
0x2235   : > { %v3563_v51 = vadd.f32 %v3556_v44, %v3544_v7  ;;  %v3559_v56 = vsel %vm11756_vm12, %v3556_v44, %v3558_v10 }
0x223c   : > { %v3568_v52 = vpop.permute.xlu1 %3567 }
0x223d   : > { %v3570_v20 = vmul.f32 %v3568_v52, %v9073_v14  ;;  %v3571_v47 = vmul.f32 %v3568_v52, %v9075_v48  ;;  %v3572_v31 = vmul.f32 %v3568_v52, %v9071_v63 }
0x223f   : > { %3580 = vrot.lane.b32.xlu1 %v3572_v31, %s11631_s25  ;;  %3578 = vrot.lane.b32.xlu0 %v3571_v47, %s11631_s25  ;;  %v3540_v47 = vsel %vm978_vm10, %v3536_v33, %v3538_v25  ;;  %v3521_v31 = vmul.f32 %v3518_v11, %v9049_v60 }
0x2240   : > { %3576 = vrot.lane.b32.xlu2 %v3570_v20, %s11631_s25 }
0x2241   : > { %v3545_v39 = vadd.f32 %v3540_v47, %v3521_v31 }
0x2243   : > { %v3564_v5 = vadd.f32 %v3559_v56, %v3545_v39  ;;  %v11947_v39 = vmov 23   ;;  %v11948_v56 = vmov 0  }
0x2248   : > { %3591 = vperm.xlu2 %6262, %v8936_v28  }
0x2250   : > { %6266 = vset.pattern.permute.xlu2 %v11944_v46 }
0x229a   : > { %v3577_v22 = vpop.permute.xlu2 %3576 }
0x229b   : > { %v3587_v18 = vadd.f32 %v3577_v22, %v3563_v51 }
0x22a2   : > { %v3592_v38 = vpop.permute.xlu2 %3591 }
0x22a3   : > { %v3594_v52 = vmul.f32 %v3592_v38, %v9073_v14  ;;  %v3596_v7 = vmul.f32 %v3592_v38, %v9071_v63 }
0x22a5   : > { %v3597_v20 = vadd.f32 %v3594_v52, %v3587_v18 }
0x22a7   : > { %3603 = vrot.lane.b32.xlu0 %v3597_v20, %s11623_s1  ;;  %v3595_v20 = vmul.f32 %v3592_v38, %v9075_v48 }
0x22af   : > { %3616 = vperm.xlu0 %6263, %v8936_v28  }
0x22b1   : > { %v3581_v51 = vpop.permute.xlu1 %3580  ;;  %v3579_v18 = vpop.permute.xlu0 %3578 }
0x22b2   : > { %v3582_v52 = vsel %vm1177_vm14, %v3577_v22, %v3579_v18  ;;  %v3583_v33 = vsel %vm1177_vm14, %v3579_v18, %v3581_v51 }
0x22b3   : > { %v3588_v24 = vadd.f32 %v3582_v52, %v3564_v5  ;;  %v3589_v11 = vadd.f32 %v3583_v33, %v3565_v23 }
0x22b5   : > { %v3598_v54 = vadd.f32 %v3595_v20, %v3588_v24  ;;  %v3599_v44 = vadd.f32 %v3596_v7, %v3589_v11  ;;  %v11951_v7 = vmov 4  }
0x22b7   : > { %6265 = vset.pattern.permute.xlu0 %v11946_v53  ;;  %3607 = vrot.lane.b32.xlu2 %v3599_v44, %s11623_s1 }
0x22b8   : > { %3605 = vrot.lane.b32.xlu1 %v3598_v54, %s11623_s1  ;;  %3647 = vperm.xlu0 %6265, %v8936_v28  }
0x22c0   : > { %3623 = vperm.xlu1 %6264, %v8936_v28   ;;  %6267 = vset.pattern.permute.xlu0 %v11947_v39 }
0x22c8   : > { %6273 = vset.pattern.permute.xlu1 %v11948_v56 }
0x2311   : > { %v9218_v51 = vpop.permute.xlu2 %3607 }
0x2312   : > { %11952 = vst [vmem:[#allocation49_spill] sm:$0xff] %v9218_v51 }
0x2319   : > { %v9200_v25 = vpop.permute.xlu0 %3603 }
0x231a   : > { %11949 = vst [vmem:[#allocation47_spill] sm:$0xff] %v9200_v25 }
0x2321   : > { %v3617_v24 = vpop.permute.xlu0 %3616 }
0x2322   : > { %v3621_v49 = vmul.f32 %v3617_v24, %v9052_v37 }
0x232a   : > { %v9202_v10 = vpop.permute.xlu1 %3605  ;;  %v3648_v54 = vpop.permute.xlu0 %3647 }
0x232b   : > { %11950 = vst [vmem:[#allocation48_spill] sm:$0xff] %v9202_v10  ;;  %v3650_v31 = vmul.f32 %v3648_v54, %v9073_v14  ;;  %v3652_v23 = vmul.f32 %v3648_v54, %v9071_v63  ;;  %v3651_v5 = vmul.f32 %v3648_v54, %v9075_v48 }
0x2332   : > { %v3624_v22 = vpop.permute.xlu1 %3623 }
0x2333   : > { %v3626_v38 = vmul.f32 %v3624_v22, %v9047_v41  ;;  %v3627_v47 = vmul.f32 %v3624_v22, %v9049_v60  ;;  %v3628_v21 = vmul.f32 %v3624_v22, %v9052_v37 }
0x2335   : > { %3634 = vrot.lane.b32.xlu1 %v3627_v47, %s6653_s6  ;;  %3632 = vrot.lane.b32.xlu2 %v3626_v38, %s6653_s6  ;;  %v11953_v38 = vmov 9   ;;  %v11954_v47 = vmov 19  }
0x233d   : > { %3636 = vrot.lane.b32.xlu2 %v3628_v21, %s6653_s6  ;;  %3656 = vrot.lane.b32.xlu1 %v3650_v31, %s11623_s1 }
0x2345   : > { %3658 = vrot.lane.b32.xlu2 %v3651_v5, %s11623_s1  ;;  %3660 = vrot.lane.b32.xlu1 %v3652_v23, %s11623_s1 }
0x234d   : > { %3671 = vperm.xlu2 %6266, %v8936_v28  }
0x2355   : > { %6268 = vset.pattern.permute.xlu2 %v11951_v7 }
0x238f   : > { %v3633_v18 = vpop.permute.xlu2 %3632 }
0x2397   : > { %v3637_v52 = vpop.permute.xlu2 %3636 }
0x2398   : > { %v3645_v15 = vadd.f32 %v3637_v52, %v3621_v49 }
0x239f   : > { %v3659_v33 = vpop.permute.xlu2 %3658 }
0x23a7   : > { %v3672_v20 = vpop.permute.xlu2 %3671  ;;  %v3635_v54 = vpop.permute.xlu1 %3634 }
0x23a8   : > { %v3674_v11 = vmul.f32 %v3672_v20, %v9073_v14  ;;  %v3675_v44 = vmul.f32 %v3672_v20, %v9075_v48  ;;  %v3676_v22 = vmul.f32 %v3672_v20, %v9071_v63  ;;  %v3638_v5 = vsel %vm978_vm10, %v3633_v18, %v3635_v54 }
0x23a9   : > { %v3639_v20 = vsel %vm978_vm10, %v3635_v54, %v3637_v52 }
0x23aa   : > { %3680 = vrot.lane.b32.xlu0 %v3674_v11, %s11631_s25  ;;  %3682 = vrot.lane.b32.xlu1 %v3675_v44, %s11631_s25  ;;  %v3619_v11 = vmul.f32 %v3617_v24, %v9047_v41  ;;  %v3620_v44 = vmul.f32 %v3617_v24, %v9049_v60 }
0x23ab   : > { %3684 = vrot.lane.b32.xlu2 %v3676_v22, %s11631_s25 }
0x23ac   : > { %v3643_v25 = vadd.f32 %v3638_v5, %v3619_v11  ;;  %v3644_v10 = vadd.f32 %v3639_v20, %v3620_v44 }
0x23af   : > { %v3657_v31 = vpop.permute.xlu1 %3656 }
0x23b0   : > { %v3662_v51 = vsel %vm11756_vm12, %v3657_v31, %v3659_v33  ;;  %v3667_v58 = vadd.f32 %v3657_v31, %v3643_v25 }
0x23b1   : > { %v3668_v55 = vadd.f32 %v3662_v51, %v3644_v10 }
0x23b2   : > { %3695 = vperm.xlu0 %6267, %v8936_v28  }
0x23b7   : > { %v3661_v21 = vpop.permute.xlu1 %3660 }
0x23b8   : > { %v3663_v62 = vsel %vm11756_vm12, %v3659_v33, %v3661_v21  ;;  %v11958_v21 = vmov 28  }
0x23b9   : > { %v3669_v10 = vadd.f32 %v3663_v62, %v3645_v15  ;;  %v11956_v62 = vmov 24  }
0x23ba   : > { %6269 = vset.pattern.permute.xlu0 %v11953_v38 }
0x23bb   : > { %3730 = vperm.xlu0 %6269, %v8936_v28  }
0x23c3   : > { %6271 = vset.pattern.permute.xlu0 %v11954_v47 }
0x2405   : > { %v3685_v5 = vpop.permute.xlu2 %3684 }
0x241c   : > { %v3681_v23 = vpop.permute.xlu0 %3680  ;;  %v3683_v22 = vpop.permute.xlu1 %3682 }
0x241d   : > { %v3686_v17 = vsel %vm1177_vm14, %v3681_v23, %v3683_v22  ;;  %v3691_v43 = vadd.f32 %v3681_v23, %v3667_v58  ;;  %v3687_v25 = vsel %vm1177_vm14, %v3683_v22, %v3685_v5 }
0x241e   : > { %v3692_v4 = vadd.f32 %v3686_v17, %v3668_v55  ;;  %v3693_v58 = vadd.f32 %v3687_v25, %v3669_v10 }
0x2424   : > { %v3696_v35 = vpop.permute.xlu0 %3695 }
0x2425   : > { %v3698_v18 = vmul.f32 %v3696_v35, %v9073_v14  ;;  %v3699_v54 = vmul.f32 %v3696_v35, %v9075_v48  ;;  %v3700_v55 = vmul.f32 %v3696_v35, %v9071_v63 }
0x2427   : > { %v3701_v8 = vadd.f32 %v3698_v18, %v3691_v43  ;;  %v3702_v9 = vadd.f32 %v3699_v54, %v3692_v4  ;;  %v3703_v17 = vadd.f32 %v3700_v55, %v3693_v58 }
0x2429   : > { %3707 = vrot.lane.b32.xlu1 %v3701_v8, %s6705_s27  ;;  %3709 = vrot.lane.b32.xlu2 %v3702_v9, %s6705_s27  ;;  %v11955_v9 = vmov 14  }
0x242d   : > { %v3731_v24 = vpop.permute.xlu0 %3730 }
0x242e   : > { %v3733_v43 = vmul.f32 %v3731_v24, %v9047_v41  ;;  %v3734_v4 = vmul.f32 %v3731_v24, %v9049_v60  ;;  %v3735_v15 = vmul.f32 %v3731_v24, %v9052_v37 }
0x2431   : > { %3711 = vrot.lane.b32.xlu1 %v3703_v17, %s6705_s27  ;;  %3723 = vperm.xlu2 %6268, %v8936_v28   ;;  %s6709_s27 = smov 25  }
0x2439   : > { %3739 = vrot.lane.b32.xlu1 %v3733_v43, %s6653_s6  ;;  %3741 = vrot.lane.b32.xlu2 %v3734_v4, %s6653_s6 }
0x243a   : > { %6270 = vset.pattern.permute.xlu2 %v11955_v9 }
0x2441   : > { %3743 = vrot.lane.b32.xlu1 %v3735_v15, %s6653_s6  ;;  %3754 = vperm.xlu2 %6270, %v8936_v28  }
0x2449   : > { %6272 = vset.pattern.permute.xlu2 %v11956_v62 }
0x2483   : > { %v9252_v8 = vpop.permute.xlu2 %3709 }
0x2484   : > { %11957 = vst [vmem:[#allocation50_spill] sm:$0xff] %v9252_v8 }
0x248b   : > { %v3724_v49 = vpop.permute.xlu2 %3723 }
0x248c   : > { %v3726_v24 = vmul.f32 %v3724_v49, %v9047_v41 }
0x2493   : > { %v3742_v35 = vpop.permute.xlu2 %3741 }
0x249b   : > { %v3755_v51 = vpop.permute.xlu2 %3754  ;;  %v9270_v18 = vpop.permute.xlu1 %3707 }
0x249c   : > { %v3757_v52 = vmul.f32 %v3755_v51, %v9073_v14  ;;  %v3758_v33 = vmul.f32 %v3755_v51, %v9075_v48  ;;  %v3759_v31 = vmul.f32 %v3755_v51, %v9071_v63  ;;  %11959 = vst [vmem:[#allocation51_spill] sm:$0xff] %v9270_v18 }
0x249e   : > { %3767 = vrot.lane.b32.xlu2 %v3759_v31, %s11623_s1  ;;  %3765 = vrot.lane.b32.xlu1 %v3758_v33, %s11623_s1 }
0x249f   : > { %3763 = vrot.lane.b32.xlu0 %v3757_v52, %s11623_s1  ;;  %s6707_s1 = smov 105  }
0x24a3   : > { %v9272_v54 = vpop.permute.xlu1 %3711 }
0x24a4   : > { %11960 = vst [vmem:[#allocation52_spill] sm:$0xff] %v9272_v54 }
0x24a7   : > { %3778 = vperm.xlu0 %6271, %v8936_v28  }
0x24ab   : > { %v3740_v5 = vpop.permute.xlu1 %3739 }
0x24ac   : > { %v3745_v17 = vsel %vm978_vm10, %v3740_v5, %v3742_v35 }
0x24ad   : > { %v3750_v4 = vadd.f32 %v3745_v17, %v3726_v24  ;;  %v3871_v24 = vld [vmem:[#allocation2 + $0x28] sm:$0xc] }
0x24af   : > { %6281 = vset.pattern.permute.xlu0 %v11958_v21 }
0x24b3   : > { %v3744_v10 = vpop.permute.xlu1 %3743 }
0x24b4   : > { %v3746_v43 = vsel %vm978_vm10, %v3742_v35, %v3744_v10  ;;  %v3728_v35 = vmul.f32 %v3724_v49, %v9052_v37  ;;  %v9293_v37 = vld [vmem:[%s11468_s16] sm:$0x3] }
0x24f8   : > { %v3768_v25 = vpop.permute.xlu2 %3767 }
0x2510   : > { %v3766_v58 = vpop.permute.xlu1 %3765 }
0x2511   : > { %v3764_v23 = vpop.permute.xlu0 %3763  ;;  %v3770_v17 = vsel %vm11756_vm12, %v3766_v58, %v3768_v25  ;;  %v3844_v25 = vld [vmem:[#allocation2 + $0x28] sm:$0xc] }
0x2512   : > { %v3774_v52 = vadd.f32 %v3764_v23, %v3750_v4  ;;  %v9287_v4 = vrot.slane %v3871_v24, 2  ;;  %v3986_v24 = vld [vmem:[#allocation2 + $0x8] sm:$0xc] }
0x2519   : > { %v3779_v20 = vpop.permute.xlu0 %3778 }
0x251a   : > { %v3781_v11 = vmul.f32 %v3779_v20, %v9073_v14  ;;  %v3782_v44 = vmul.f32 %v3779_v20, %v9075_v48  ;;  %v3783_v22 = vmul.f32 %v3779_v20, %v9071_v63 }
0x251c   : > { %3789 = vrot.lane.b32.xlu2 %v3782_v44, %s11631_s25  ;;  %3787 = vrot.lane.b32.xlu1 %v3781_v11, %s11631_s25 }
0x2524   : > { %3802 = vperm.xlu2 %6272, %v8936_v28   ;;  %3791 = vrot.lane.b32.xlu1 %v3783_v22, %s11631_s25  ;;  %v3727_v28 = vmul.f32 %v3724_v49, %v9049_v60  ;;  %v3843_v49 = vld [vmem:[#allocation2] sm:$0xc]  ;;  %s6717_s25 = smov 121  }
0x2526   : > { %v3751_v15 = vadd.f32 %v3746_v43, %v3727_v28 }
0x252c   : > { %6279 = vset.pattern.permute.xlu2 %v11925_v36  ;;  %v3769_v36 = vsel %vm11756_vm12, %v3764_v23, %v3766_v58  ;;  %v3752_v23 = vadd.f32 %v3744_v10, %v3728_v35  ;;  %v3856_v58 = vrot.slane %v3844_v25, 2  ;;  %vm4064_vm12 = vcmask 441344  }
0x252d   : > { %v3775_v33 = vadd.f32 %v3769_v36, %v3751_v15  ;;  %v3845_v15 = vld [vmem:[#allocation2 + $0x38] sm:$0xc] }
0x2576   : > { %v3790_v55 = vpop.permute.xlu2 %3789 }
0x257e   : > { %v3803_v51 = vpop.permute.xlu2 %3802 }
0x257f   : > { %v3805_v20 = vmul.f32 %v3803_v51, %v9073_v14  ;;  %v3806_v22 = vmul.f32 %v3803_v51, %v9075_v48  ;;  %v3776_v14 = vadd.f32 %v3770_v17, %v3752_v23  ;;  %v3807_v48 = vmul.f32 %v3803_v51, %v9071_v63  ;;  %v3984_v17 = vld [vmem:[#allocation2 + $0x20] sm:$0xc]  ;;  %v3985_v23 = vld [vmem:[#allocation2 + $0x10] sm:$0xc] }
0x2580   : > { %v9300_v51 = vrot.slane %v3845_v15, 2  ;;  %v11968_v15 = vmov 29  }
0x258e   : > { %v3788_v31 = vpop.permute.xlu1 %3787 }
0x258f   : > { %v3793_v11 = vsel %vm1177_vm14, %v3788_v31, %v3790_v55  ;;  %v3798_v44 = vadd.f32 %v3788_v31, %v3774_v52  ;;  %v3872_v52 = vld [vmem:[#allocation2 + $0x38] sm:$0xc] }
0x2590   : > { %v3799_v41 = vadd.f32 %v3793_v11, %v3775_v33  ;;  %v9307_v33 = vrot.slane %v3872_v52, 2  ;;  %v3937_v31 = vld [vmem:[#allocation2 + $0x38] sm:$0xc] }
0x2591   : > { %v3808_v5 = vadd.f32 %v3805_v20, %v3798_v44  ;;  %v3873_v20 = vld [vmem:[#allocation2 + $0x20] sm:$0xc]  ;;  %v9312_v11 = vrot.slane %v3937_v31, 2 }
0x2592   : > { %v3809_v60 = vadd.f32 %v3806_v22, %v3799_v41  ;;  %v9314_v44 = vrot.slane %v3873_v20, 2  ;;  %v3939_v22 = vld [vmem:[#allocation2 + $0x10] sm:$0xc]  ;;  %v11962_v41 = vmov 35  }
0x2593   : > { %3818 = vrot.lane.b32.xlu0 %v3808_v5, %s11625_s29  ;;  %v3938_v5 = vld [vmem:[#allocation2 + $0x20] sm:$0xc]  ;;  %v9337_v35 = vrot.slane %v3939_v22, 2 }
0x2594   : > { %3820 = vrot.lane.b32.xlu1 %v3809_v60, %s11625_s29  ;;  %v9339_v60 = vrot.slane %v3938_v5, 2  ;;  %v11969_v5 = vmov 44  }
0x2596   : > { %v3792_v43 = vpop.permute.xlu1 %3791 }
0x2597   : > { %v3794_v28 = vsel %vm1177_vm14, %v3790_v55, %v3792_v43  ;;  %v3855_v55 = vrot.slane %v3843_v49, 2  ;;  %v3995_v43 = vrot.slane %v3985_v23, 2  ;;  %v11964_v49 = vmov 30  }
0x2598   : > { %v3800_v36 = vadd.f32 %v3794_v28, %v3776_v14  ;;  %v9349_v14 = vrot.slane %v3984_v17, 2  ;;  %v3996_v28 = vrot.slane %v3986_v24, 2 }
0x2599   : > { %v9298_v63 = vpack.i.bf16 %v3856_v58, %v3855_v55 }
0x259a   : > { %v3810_v10 = vadd.f32 %v3807_v48, %v3800_v36  ;;  %v11963_v48 = vmov 36   ;;  %v9358_v36 = vpack.i.bf16 %v3996_v28, %v3995_v43  ;;  %v11971_v28 = vmov 43  }
0x259b   : > { %3884 = vrot.lane.b32.xlu0 %v9287_v4, %s6707_s1 }
0x259c   : > { %3849 = vperm.xlu1 %6273, %v9293_v37   ;;  %3822 = vrot.lane.b32.xlu2 %v3810_v10, %s11625_s29  ;;  %s6710_s29 = smov 41  }
0x25a3   : > { %3922 = vrot.lane.b32.xlu0 %v9287_v4, %s6708_s0 }
0x25a4   : > { %3862 = vrot.lane.b32.xlu1 %v9300_v51, %s6709_s27  ;;  %6275 = vrot.lane.b32.xlu2 %v9298_v63, %s6709_s27  ;;  %s6711_s27 = smov 57  }
0x25a5   : > { %6289 = vset.pattern.permute.xlu1 %v11927_v2  ;;  %v11961_v2 = vmov 42  }
0x25ab   : > { %3941 = vperm.xlu0 %6281, %v9293_v37  }
0x25ac   : > { %3886 = vrot.lane.b32.xlu1 %v9307_v33, %s6707_s1  ;;  %3875 = vperm.xlu2 %6279, %v9293_v37  }
0x25b3   : > { %3969 = vrot.lane.b32.xlu0 %v9312_v11, %s6710_s29 }
0x25b4   : > { %3903 = vrot.lane.b32.xlu1 %v9287_v4, %s6711_s27  ;;  %3888 = vrot.lane.b32.xlu2 %v9314_v44, %s6707_s1  ;;  %s6713_s1 = smov 102  }
0x25b5   : > { %6283 = vset.pattern.permute.xlu0 %v11961_v2  ;;  %6280 = vset.pattern.permute.xlu2 %v11932_v26 }
0x25bb   : > { %3988 = vperm.xlu0 %6283, %v9293_v37  }
0x25bc   : > { %3907 = vrot.lane.b32.xlu1 %v9314_v44, %s6711_s27  ;;  %3905 = vrot.lane.b32.xlu2 %v9307_v33, %s6711_s27  ;;  %s6715_s27 = smov 54  }
0x25c3   : > { %4026 = vrot.lane.b32.xlu0 %v9300_v51, %s6712_s26 }
0x25c4   : > { %3924 = vrot.lane.b32.xlu1 %v9307_v33, %s6708_s0  ;;  %3919 = vperm.xlu2 %6280, %v9293_v37  }
0x25c5   : > { %6297 = vset.pattern.permute.xlu0 %v11935_v40 }
0x25cb   : > { %4041 = vrot.lane.b32.xlu0 %v9307_v33, %s6713_s1 }
0x25cc   : > { %3950 = vrot.lane.b32.xlu1 %v9312_v11, %s6714_s4  ;;  %3926 = vrot.lane.b32.xlu2 %v9314_v44, %s6708_s0  ;;  %s6716_s0 = smov 86  }
0x25cd   : > { %6282 = vset.pattern.permute.xlu2 %v11962_v41 }
0x25d3   : > { %4058 = vrot.lane.b32.xlu0 %v9287_v4, %s6715_s27 }
0x25d4   : > { %3954 = vrot.lane.b32.xlu1 %v9337_v35, %s6714_s4  ;;  %3952 = vrot.lane.b32.xlu2 %v9339_v60, %s6714_s4  ;;  %s6718_s4 = smov 118  }
0x25db   : > { %4074 = vperm.xlu0 %6297, %v9293_v37  }
0x25dc   : > { %3971 = vrot.lane.b32.xlu1 %v9339_v60, %s6710_s29  ;;  %3966 = vperm.xlu2 %6282, %v9293_v37  }
0x25e3   : > { %4095 = vrot.lane.b32.xlu0 %v9312_v11, %s6716_s0 }
0x25e4   : > { %3997 = vrot.lane.b32.xlu1 %v9349_v14, %s6717_s25  ;;  %3973 = vrot.lane.b32.xlu2 %v9337_v35, %s6710_s29  ;;  %s6719_s29 = smov 19  }
0x25e5   : > { %6299 = vset.pattern.permute.xlu0 %v11963_v48  ;;  %6296 = vset.pattern.permute.xlu2 %v11902_v1 }
0x25eb   : > { %4111 = vperm.xlu0 %6299, %v9293_v37  }
0x25ec   : > { %4019 = vperm.xlu1 %6289, %v9293_v37   ;;  %6285 = vrot.lane.b32.xlu2 %v9358_v36, %s6717_s25  ;;  %s6720_s25 = smov 99  }
0x25f3   : > { %4133 = vrot.lane.b32.xlu0 %v9349_v14, %s6718_s4 }
0x25f4   : > { %6295 = vset.pattern.permute.xlu1 %v11943_v42  ;;  %6291 = vrot.lane.b32.xlu2 %v9298_v63, %s6712_s26  ;;  %s6721_s26 = smov 3  }
0x25f5   : > { %4036 = vperm.xlu1 %6295, %v9293_v37   ;;  %6314 = vset.pattern.permute.xlu0 %v11964_v49 }
0x25f6   : > { %v9370_v25 = vpop.permute.xlu2 %3822 }
0x25f7   : > { %11965 = vst [vmem:[#allocation53_spill] sm:$0xff] %v9370_v25 }
0x25fb   : > { %6308 = vrot.lane.b32.xlu0 %v9298_v63, %s6719_s29 }
0x25fc   : > { %4039 = vrot.lane.b32.xlu2 %v9287_v4, %s6713_s1 }
0x25fd   : > { %4043 = vrot.lane.b32.xlu1 %v9314_v44, %s6713_s1  ;;  %s6722_s1 = smov 6  }
0x25fe   : > { %v9378_v42 = vpop.permute.xlu2 %6275  ;;  %6322 = vset.pattern.permute.xlu1 %v11940_v29 }
0x2603   : > { %4177 = vrot.lane.b32.xlu0 %v9287_v4, %s6720_s25 }
0x2604   : > { %4055 = vperm.xlu2 %6296, %v9293_v37  }
0x2605   : > { %v9384_v10 = vpop.permute.xlu0 %3818  ;;  %4060 = vrot.lane.b32.xlu1 %v9307_v33, %s6715_s27 }
0x2606   : > { %11966 = vst [vmem:[#allocation54_spill] sm:$0xff] %v9384_v10  ;;  %v9388_v55 = vpop.permute.xlu2 %3875  ;;  %v9390_v58 = vpop.permute.xlu1 %3820 }
0x2607   : > { %11967 = vst [vmem:[#allocation55_spill] sm:$0xff] %v9390_v58 }
0x260b   : > { %4214 = vrot.lane.b32.xlu0 %v9287_v4, %s6721_s26 }
0x260c   : > { %4062 = vrot.lane.b32.xlu2 %v9314_v44, %s6715_s27  ;;  %s6723_s27 = smov 35  }
0x260d   : > { %v9396_v29 = vpop.permute.xlu0 %3884  ;;  %4077 = vrot.lane.b32.xlu1 %v9287_v4, %s6722_s1  ;;  %6298 = vset.pattern.permute.xlu2 %v11968_v15 }
0x260e   : > { %v9400_v52 = vpop.permute.xlu2 %3888  ;;  %v9402_v31 = vpop.permute.xlu1 %3849 }
0x2613   : > { %4230 = vperm.xlu0 %6314, %v9293_v37  }
0x2614   : > { %4079 = vrot.lane.b32.xlu2 %v9307_v33, %s6722_s1 }
0x2615   : > { %v9406_v20 = vpop.permute.xlu0 %3922  ;;  %4081 = vrot.lane.b32.xlu1 %v9314_v44, %s6722_s1  ;;  %s6724_s1 = smov 38  }
0x2616   : > { %v9409_v22 = vpop.permute.xlu2 %3905  ;;  %v9411_v41 = vpop.permute.xlu1 %3862 }
0x261b   : > { %4252 = vrot.lane.b32.xlu0 %v9312_v11, %s6723_s27 }
0x261c   : > { %4092 = vperm.xlu2 %6298, %v9293_v37   ;;  %6316 = vset.pattern.permute.xlu0 %v11969_v5 }
0x261d   : > { %v9417_v17 = vpop.permute.xlu0 %3941  ;;  %4097 = vrot.lane.b32.xlu1 %v9339_v60, %s6716_s0 }
0x261e   : > { %v9421_v23 = vpop.permute.xlu2 %3919  ;;  %v9423_v24 = vpop.permute.xlu1 %3886 }
0x2623   : > { %4268 = vperm.xlu0 %6316, %v9293_v37  }
0x2624   : > { %4099 = vrot.lane.b32.xlu2 %v9337_v35, %s6716_s0  ;;  %s6726_s0 = smov 13  }
0x2625   : > { %v9428_v43 = vpop.permute.xlu0 %3969  ;;  %4114 = vrot.lane.b32.xlu1 %v9312_v11, %s6724_s1  ;;  %6300 = vset.pattern.permute.xlu2 %v11971_v28 }
0x2626   : > { %11970 = vst [vmem:[#allocation56_spill] sm:$0xff] %v9428_v43  ;;  %v9432_v48 = vpop.permute.xlu2 %3926  ;;  %v9434_v5 = vpop.permute.xlu1 %3903 }
0x262b   : > { %4298 = vrot.lane.b32.xlu0 %v9300_v51, %s6725_s23 }
0x262c   : > { %4116 = vrot.lane.b32.xlu2 %v9339_v60, %s6724_s1  ;;  %6330 = vset.pattern.permute.xlu0 %v11956_v62 }
0x262d   : > { %v9440_v2 = vpop.permute.xlu0 %3988  ;;  %4118 = vrot.lane.b32.xlu1 %v9337_v35, %s6724_s1  ;;  %s6732_s1 = smov 10  }
0x262e   : > { %11972 = vst [vmem:[#allocation57_spill] sm:$0xff] %v9440_v2  ;;  %v9443_v25 = vpop.permute.xlu2 %3952  ;;  %v9445_v10 = vpop.permute.xlu1 %3907 }
0x2633   : > { %4313 = vrot.lane.b32.xlu0 %v9307_v33, %s6653_s6 }
0x2634   : > { %4130 = vperm.xlu2 %6300, %v9293_v37  }
0x2635   : > { %v9450_v28 = vpop.permute.xlu0 %4026  ;;  %6302 = vrot.lane.b32.xlu1 %v9358_v36, %s6718_s4  ;;  %s6727_s4 = smov 93  }
0x2636   : > { %v9454_v58 = vpop.permute.xlu2 %3966  ;;  %v9456_v54 = vpop.permute.xlu1 %3924 }
0x2637   : > { %11973 = vst [vmem:[#allocation58_spill] sm:$0xff] %v9454_v58 }
0x263b   : > { %4329 = vrot.lane.b32.xlu0 %v9287_v4, %s6656_s5 }
0x263c   : > { %6306 = vset.pattern.permute.xlu2 %v11934_v6 }
0x263d   : > { %v9461_v18 = vpop.permute.xlu0 %4041  ;;  %4164 = vrot.lane.b32.xlu1 %v9300_v51, %s6719_s29  ;;  %4157 = vperm.xlu2 %6306, %v9293_v37   ;;  %s6729_s29 = smov 125  }
0x263e   : > { %v9466_v8 = vpop.permute.xlu2 %3973  ;;  %v9468_v61 = vpop.permute.xlu1 %3950 }
0x263f   : > { %11974 = vst [vmem:[#allocation59_spill] sm:$0xff] %v9466_v8  ;;  %v11985_v8 = vmov 32  }
0x2643   : > { %4344 = vperm.xlu0 %6330, %v9293_v37  }
0x2645   : > { %v9471_v62 = vpop.permute.xlu0 %4058  ;;  %4179 = vrot.lane.b32.xlu1 %v9307_v33, %s6720_s25  ;;  %6312 = vset.pattern.permute.xlu2 %v11953_v38 }
0x2646   : > { %4174 = vperm.xlu2 %6312, %v9293_v37   ;;  %v9477_v6 = vpop.permute.xlu2 %6285  ;;  %v9479_v40 = vpop.permute.xlu1 %3954 }
0x264b   : > { %4393 = vrot.lane.b32.xlu0 %v9349_v14, %s6651_s24 }
0x264c   : > { %6345 = vset.pattern.permute.xlu0 %v11944_v46 }
0x264d   : > { %v9484_v16 = vpop.permute.xlu0 %4074  ;;  %4196 = vrot.lane.b32.xlu1 %v9287_v4, %s6665_s2 }
0x264e   : > { %11975 = vst [vmem:[#allocation60_spill] sm:$0xff] %v9484_v16  ;;  %4181 = vrot.lane.b32.xlu2 %v9314_v44, %s6720_s25  ;;  %v9490_v38 = vpop.permute.xlu2 %6291  ;;  %v9492_v34 = vpop.permute.xlu1 %3971  ;;  %s6730_s25 = smov 29  }
0x264f   : > { %11976 = vst [vmem:[#allocation61_spill] sm:$0xff] %v9492_v34  ;;  %6313 = vset.pattern.permute.xlu2 %v11947_v39 }
0x2653   : > { %6340 = vrot.lane.b32.xlu0 %v9298_v63, %s6726_s0 }
0x2655   : > { %v9497_v45 = vpop.permute.xlu0 %4095  ;;  %4200 = vrot.lane.b32.xlu1 %v9314_v44, %s6665_s2 }
0x2656   : > { %11977 = vst [vmem:[#allocation62_spill] sm:$0xff] %v9497_v45  ;;  %4198 = vrot.lane.b32.xlu2 %v9307_v33, %s6665_s2  ;;  %v9503_v46 = vpop.permute.xlu2 %4039  ;;  %v9505_v30 = vpop.permute.xlu1 %3997  ;;  %s6728_s2 = smov 83  }
0x2657   : > { %11978 = vst [vmem:[#allocation63_spill] sm:$0xff] %v9505_v30  ;;  %v11984_v30 = vmov 37  }
0x265b   : > { %4430 = vrot.lane.b32.xlu0 %v9287_v4, %s6727_s4 }
0x265d   : > { %v9509_v39 = vpop.permute.xlu0 %4111  ;;  %4216 = vrot.lane.b32.xlu1 %v9307_v33, %s6721_s26 }
0x265e   : > { %11979 = vst [vmem:[#allocation64_spill] sm:$0xff] %v9509_v39  ;;  %4211 = vperm.xlu2 %6313, %v9293_v37   ;;  %v9514_v49 = vpop.permute.xlu2 %4055  ;;  %v9516_v26 = vpop.permute.xlu1 %4019 }
0x265f   : > { %11980 = vst [vmem:[#allocation65_spill] sm:$0xff] %v9514_v49 }
0x2660   : > { %11981 = vst [vmem:[#allocation66_spill] sm:$0xff] %v9516_v26 }
0x2663   : > { %4446 = vperm.xlu0 %6345, %v9293_v37  }
0x2665   : > { %v9519_v2 = vpop.permute.xlu0 %4133  ;;  %4233 = vrot.lane.b32.xlu1 %v9312_v11, %s6728_s2 }
0x2666   : > { %11982 = vst [vmem:[#allocation67_spill] sm:$0xff] %v9519_v2  ;;  %4218 = vrot.lane.b32.xlu2 %v9314_v44, %s6721_s26  ;;  %v9524_v58 = vpop.permute.xlu2 %4062  ;;  %s6731_s26 = smov 115  }
0x2667   : > { %11983 = vst [vmem:[#allocation68_spill] sm:$0xff] %v9524_v58  ;;  %v9526_v57 = vpop.permute.xlu1 %4036  ;;  %6315 = vset.pattern.permute.xlu2 %v11984_v30 }
0x266b   : > { %4467 = vrot.lane.b32.xlu0 %v9312_v11, %s6729_s29 }
0x266c   : > { %6347 = vset.pattern.permute.xlu0 %v11985_v8 }
0x266d   : > { %v9532_v43 = vpop.permute.xlu0 %6308  ;;  %4237 = vrot.lane.b32.xlu1 %v9337_v35, %s6728_s2 }
0x266e   : > { %11986 = vst [vmem:[#allocation69_spill] sm:$0xff] %v9532_v43  ;;  %4235 = vrot.lane.b32.xlu2 %v9339_v60, %s6728_s2  ;;  %v9536_v34 = vpop.permute.xlu2 %4079  ;;  %v11990_v43 = vmov 46   ;;  %s12014_s2 = smov 80  }
0x266f   : > { %11987 = vst [vmem:[#allocation70_spill] sm:$0xff] %v9536_v34  ;;  %v9538_v3 = vpop.permute.xlu1 %4043 }
0x2673   : > { %4483 = vperm.xlu0 %6347, %v9293_v37  }
0x2675   : > { %v9541_v12 = vpop.permute.xlu0 %4177  ;;  %4254 = vrot.lane.b32.xlu1 %v9339_v60, %s6723_s27 }
0x2676   : > { %11988 = vst [vmem:[#allocation71_spill] sm:$0xff] %v9541_v12  ;;  %4249 = vperm.xlu2 %6315, %v9293_v37   ;;  %v9546_v8 = vpop.permute.xlu2 %4092 }
0x2677   : > { %11989 = vst [vmem:[#allocation72_spill] sm:$0xff] %v9546_v8  ;;  %v9548_v39 = vpop.permute.xlu1 %4060 }
0x267b   : > { %4505 = vrot.lane.b32.xlu0 %v9312_v11, %s6730_s25 }
0x267c   : > { %6349 = vset.pattern.permute.xlu0 %v11990_v43 }
0x267d   : > { %v9553_v2 = vpop.permute.xlu0 %4214  ;;  %4271 = vrot.lane.b32.xlu1 %v9349_v14, %s6731_s26 }
0x267e   : > { %11991 = vst [vmem:[#allocation73_spill] sm:$0xff] %v9553_v2  ;;  %4256 = vrot.lane.b32.xlu2 %v9337_v35, %s6723_s27  ;;  %v9558_v12 = vpop.permute.xlu2 %4099  ;;  %s6733_s27 = smov 90  }
0x267f   : > { %11992 = vst [vmem:[#allocation74_spill] sm:$0xff] %v9558_v12  ;;  %v9560_v16 = vpop.permute.xlu1 %4077  ;;  %6329 = vset.pattern.permute.xlu2 %v11939_v0  ;;  %v11997_v12 = vmov 26  }
0x2680   : > { %11993 = vst [vmem:[#allocation75_spill] sm:$0xff] %v9560_v16 }
0x2683   : > { %4521 = vperm.xlu0 %6349, %v9293_v37  }
0x2685   : > { %v9564_v8 = vpop.permute.xlu0 %4230  ;;  %4291 = vperm.xlu1 %6322, %v9293_v37  }
0x2686   : > { %11994 = vst [vmem:[#allocation76_spill] sm:$0xff] %v9564_v8  ;;  %6318 = vrot.lane.b32.xlu2 %v9358_v36, %s6731_s26  ;;  %v9568_v2 = vpop.permute.xlu2 %4116  ;;  %s6736_s26 = smov 106  }
0x2687   : > { %11995 = vst [vmem:[#allocation77_spill] sm:$0xff] %v9568_v2  ;;  %v9570_v45 = vpop.permute.xlu1 %4081 }
0x2688   : > { %11996 = vst [vmem:[#allocation78_spill] sm:$0xff] %v9570_v45  ;;  %v12004_v45 = vmov 31  }
0x268b   : > { %4551 = vrot.lane.b32.xlu0 %v9300_v51, %s6732_s1 }
0x268c   : > { %6363 = vset.pattern.permute.xlu0 %v11997_v12 }
0x268d   : > { %v9575_v16 = vpop.permute.xlu0 %4252  ;;  %6328 = vset.pattern.permute.xlu1 %v11901_v19 }
0x268e   : > { %11998 = vst [vmem:[#allocation79_spill] sm:$0xff] %v9575_v16  ;;  %4308 = vperm.xlu1 %6328, %v9293_v37   ;;  %6324 = vrot.lane.b32.xlu2 %v9298_v63, %s6725_s23  ;;  %v9581_v0 = vpop.permute.xlu2 %4130  ;;  %s6734_s23 = smov 42  }
0x268f   : > { %11999 = vst [vmem:[#allocation80_spill] sm:$0xff] %v9581_v0  ;;  %v9583_v8 = vpop.permute.xlu1 %4097 }
0x2690   : > { %12000 = vst [vmem:[#allocation81_spill] sm:$0xff] %v9583_v8 }
0x2693   : > { %4566 = vrot.lane.b32.xlu0 %v9307_v33, %s6733_s27 }
0x2695   : > { %v9587_v2 = vpop.permute.xlu0 %4268 }
0x2696   : > { %12001 = vst [vmem:[#allocation82_spill] sm:$0xff] %v9587_v2  ;;  %4315 = vrot.lane.b32.xlu1 %v9314_v44, %s6653_s6  ;;  %4311 = vrot.lane.b32.xlu2 %v9287_v4, %s6653_s6  ;;  %s6735_s6 = smov 74  }
0x2697   : > { %v9593_v12 = vpop.permute.xlu1 %4114  ;;  %v9595_v16 = vpop.permute.xlu2 %4157  ;;  %6331 = vset.pattern.permute.xlu1 %v12004_v45 }
0x2698   : > { %12002 = vst [vmem:[#allocation83_spill] sm:$0xff] %v9593_v12 }
0x2699   : > { %12003 = vst [vmem:[#allocation84_spill] sm:$0xff] %v9595_v16 }
0x269b   : > { %4583 = vrot.lane.b32.xlu0 %v9287_v4, %s6734_s23 }
0x269d   : > { %v9600_v0 = vpop.permute.xlu0 %4298 }
0x269e   : > { %12005 = vst [vmem:[#allocation85_spill] sm:$0xff] %v9600_v0  ;;  %4331 = vrot.lane.b32.xlu1 %v9307_v33, %s6656_s5  ;;  %4326 = vperm.xlu2 %6329, %v9293_v37   ;;  %v12010_v0 = vmov 45  }
0x269f   : > { %v9605_v2 = vpop.permute.xlu1 %4118 }
0x26a0   : > { %12006 = vst [vmem:[#allocation86_spill] sm:$0xff] %v9605_v2  ;;  %v9607_v8 = vpop.permute.xlu2 %4174 }
0x26a1   : > { %12007 = vst [vmem:[#allocation87_spill] sm:$0xff] %v9607_v8  ;;  %v12012_v8 = vmov 40  }
0x26a3   : > { %4599 = vperm.xlu0 %6363, %v9293_v37  }
0x26a5   : > { %v9610_v16 = vpop.permute.xlu0 %4313 }
0x26a6   : > { %12008 = vst [vmem:[#allocation88_spill] sm:$0xff] %v9610_v16  ;;  %4354 = vperm.xlu1 %6331, %v9293_v37   ;;  %4333 = vrot.lane.b32.xlu2 %v9314_v44, %s6656_s5  ;;  %s12018_s5 = smov 32  }
0x26a7   : > { %v9615_v12 = vpop.permute.xlu1 %6302  ;;  %6332 = vset.pattern.permute.xlu2 %v12010_v0 }
0x26a8   : > { %12009 = vst [vmem:[#allocation89_spill] sm:$0xff] %v9615_v12  ;;  %v9618_v34 = vpop.permute.xlu2 %4181 }
0x26a9   : > { %12011 = vst [vmem:[#allocation90_spill] sm:$0xff] %v9618_v34 }
0x26ab   : > { %4621 = vrot.lane.b32.xlu0 %v9312_v11, %s6735_s6 }
0x26ac   : > { %6365 = vset.pattern.permute.xlu0 %v12012_v8 }
0x26ad   : > { %v9623_v2 = vpop.permute.xlu0 %4329 }
0x26ae   : > { %12013 = vst [vmem:[#allocation91_spill] sm:$0xff] %v9623_v2  ;;  %4359 = vrot.lane.b32.xlu1 %v9339_v60, %s12014_s2  ;;  %4357 = vrot.lane.b32.xlu2 %v9312_v11, %s12014_s2 }
0x26af   : > { %v9629_v16 = vpop.permute.xlu1 %4164  ;;  %6355 = vset.pattern.permute.xlu1 %v11900_v13  ;;  %v12021_v13 = vmov 20  }
0x26b0   : > { %12015 = vst [vmem:[#allocation92_spill] sm:$0xff] %v9629_v16  ;;  %v9632_v0 = vpop.permute.xlu2 %4198 }
0x26b1   : > { %12016 = vst [vmem:[#allocation93_spill] sm:$0xff] %v9632_v0 }
0x26b3   : > { %4637 = vperm.xlu0 %6365, %v9293_v37  }
0x26b5   : > { %v9635_v34 = vpop.permute.xlu0 %4344 }
0x26b6   : > { %12017 = vst [vmem:[#allocation94_spill] sm:$0xff] %v9635_v34  ;;  %4375 = vrot.lane.b32.xlu1 %v9312_v11, %s12018_s5  ;;  %4361 = vrot.lane.b32.xlu2 %v9337_v35, %s12014_s2  ;;  %s6737_s2 = smov 7  }
0x26b7   : > { %v9641_v8 = vpop.permute.xlu1 %4179 }
0x26b8   : > { %12019 = vst [vmem:[#allocation95_spill] sm:$0xff] %v9641_v8  ;;  %v9643_v2 = vpop.permute.xlu2 %4211 }
0x26b9   : > { %12020 = vst [vmem:[#allocation96_spill] sm:$0xff] %v9643_v2 }
0x26bb   : > { %4659 = vrot.lane.b32.xlu0 %v9349_v14, %s6736_s26 }
0x26bc   : > { %6379 = vset.pattern.permute.xlu0 %v12021_v13 }
0x26bd   : > { %v9648_v0 = vpop.permute.xlu0 %4393 }
0x26be   : > { %12022 = vst [vmem:[#allocation97_spill] sm:$0xff] %v9648_v0  ;;  %4379 = vrot.lane.b32.xlu1 %v9337_v35, %s12018_s5  ;;  %4377 = vrot.lane.b32.xlu2 %v9339_v60, %s12018_s5  ;;  %s11681_s5 = smov 87  }
0x26bf   : > { %v9654_v34 = vpop.permute.xlu1 %4196 }
0x26c0   : > { %12023 = vst [vmem:[#allocation98_spill] sm:$0xff] %v9654_v34  ;;  %v9656_v16 = vpop.permute.xlu2 %4218 }
0x26c1   : > { %12024 = vst [vmem:[#allocation99_spill] sm:$0xff] %v9656_v16 }
0x26c3   : > { %6374 = vrot.lane.b32.xlu0 %v9298_v63, %s6737_s2 }
0x26c5   : > { %v9660_v2 = vpop.permute.xlu0 %6340 }
0x26c6   : > { %12025 = vst [vmem:[#allocation100_spill] sm:$0xff] %v9660_v2  ;;  %6334 = vrot.lane.b32.xlu1 %v9358_v36, %s6651_s24  ;;  %4390 = vperm.xlu2 %6332, %v9293_v37   ;;  %s11698_s24 = smov 119  }
0x26c7   : > { %v9665_v0 = vpop.permute.xlu1 %4200 }
0x26c8   : > { %12026 = vst [vmem:[#allocation101_spill] sm:$0xff] %v9665_v0  ;;  %v9667_v8 = vpop.permute.xlu2 %4235 }
0x26c9   : > { %12027 = vst [vmem:[#allocation102_spill] sm:$0xff] %v9667_v8 }
0x26cb   : > { %4703 = vrot.lane.b32.xlu0 %v9287_v4, %s11681_s5  ;;  %s11691_s5 = smov 23  }
0x26cd   : > { %v9671_v34 = vpop.permute.xlu0 %4430 }
0x26ce   : > { %12028 = vst [vmem:[#allocation103_spill] sm:$0xff] %v9671_v34  ;;  %4417 = vrot.lane.b32.xlu1 %v9300_v51, %s6726_s0  ;;  %6338 = vset.pattern.permute.xlu2 %v11951_v7  ;;  %s12036_s0 = smov 45  }
0x26cf   : > { %4410 = vperm.xlu2 %6338, %v9293_v37   ;;  %v9677_v2 = vpop.permute.xlu1 %4216 }
0x26d0   : > { %12029 = vst [vmem:[#allocation104_spill] sm:$0xff] %v9677_v2  ;;  %v9679_v16 = vpop.permute.xlu2 %4249  ;;  %v12039_v2 = vmov 25  }
0x26d1   : > { %12030 = vst [vmem:[#allocation105_spill] sm:$0xff] %v9679_v16  ;;  %v12034_v16 = vmov 48  }
0x26d3   : > { %4719 = vperm.xlu0 %6379, %v9293_v37  }
0x26d5   : > { %v9682_v8 = vpop.permute.xlu0 %4446 }
0x26d6   : > { %12031 = vst [vmem:[#allocation106_spill] sm:$0xff] %v9682_v8  ;;  %4432 = vrot.lane.b32.xlu1 %v9307_v33, %s6727_s4 }
0x26d7   : > { %6344 = vset.pattern.permute.xlu2 %v11931_v59  ;;  %v9687_v34 = vpop.permute.xlu1 %4233 }
0x26d8   : > { %12032 = vst [vmem:[#allocation107_spill] sm:$0xff] %v9687_v34  ;;  %4427 = vperm.xlu2 %6344, %v9293_v37   ;;  %v9690_v7 = vpop.permute.xlu2 %4256 }
0x26d9   : > { %12033 = vst [vmem:[#allocation108_spill] sm:$0xff] %v9690_v7 }
0x26db   : > { %4741 = vrot.lane.b32.xlu0 %v9312_v11, %s11698_s24  ;;  %s6744_s24 = smov 109  }
0x26dc   : > { %6382 = vset.pattern.permute.xlu0 %v12034_v16 }
0x26dd   : > { %v9695_v0 = vpop.permute.xlu0 %4467 }
0x26de   : > { %12035 = vst [vmem:[#allocation109_spill] sm:$0xff] %v9695_v0  ;;  %4449 = vrot.lane.b32.xlu1 %v9287_v4, %s12036_s0 }
0x26df   : > { %v9699_v8 = vpop.permute.xlu1 %4237 }
0x26e0   : > { %12037 = vst [vmem:[#allocation110_spill] sm:$0xff] %v9699_v8  ;;  %4434 = vrot.lane.b32.xlu2 %v9314_v44, %s6727_s4  ;;  %v9703_v34 = vpop.permute.xlu2 %6318  ;;  %v4837_v8 = vld [vmem:[#allocation2] sm:$0x30]  ;;  %s6741_s4 = smov 76  }
0x26e1   : > { %12038 = vst [vmem:[#allocation111_spill] sm:$0xff] %v9703_v34  ;;  %6346 = vset.pattern.permute.xlu2 %v12039_v2  ;;  %v9718_v34 = vld [vmem:[#allocation2 + $0x28] sm:$0x30]  ;;  %v4849_v2 = vrot.slane %v4837_v8, 4 }
0x26e2   : > { %12043 = vst [vmem:[#allocation115_spill] sm:$0xff] %v9718_v34  ;;  %v11689_v12 = vrot.slane %v9718_v34, 4  ;;  %v9747_v34 = vld [vmem:[#allocation2 + $0x10] sm:$0x30] }
0x26e3   : > { %4779 = vrot.lane.b32.xlu0 %v9312_v11, %s11691_s5  ;;  %12051 = vst [vmem:[#allocation123_spill] sm:$0xff] %v9747_v34  ;;  %s6743_s5 = smov 12  }
0x26e5   : > { %v9708_v7 = vpop.permute.xlu0 %4483 }
0x26e6   : > { %12040 = vst [vmem:[#allocation112_spill] sm:$0xff] %v9708_v7  ;;  %4453 = vrot.lane.b32.xlu1 %v9314_v44, %s12036_s0 }
0x26e7   : > { %v9712_v16 = vpop.permute.xlu1 %4254 }
0x26e8   : > { %12041 = vst [vmem:[#allocation113_spill] sm:$0xff] %v9712_v16  ;;  %4451 = vrot.lane.b32.xlu2 %v9307_v33, %s12036_s0  ;;  %v9716_v0 = vpop.permute.xlu2 %6324  ;;  %v9730_v16 = vpack.i.bf16 %v11689_v12, %v4849_v2  ;;  %s6742_s0 = smov 77   ;;  %v4884_v12 = vld [vmem:[#allocation2 + $0x28] sm:$0x30] }
0x26e9   : > { %12042 = vst [vmem:[#allocation114_spill] sm:$0xff] %v9716_v0 }
0x26ea   : > { %12046 = vst [vmem:[#allocation118_spill] sm:$0xff] %v9730_v16 }
0x26eb   : > { %4795 = vperm.xlu0 %6382, %v9293_v37  }
0x26ed   : > { %v9722_v49 = vpop.permute.xlu0 %4505 }
0x26ee   : > { %12044 = vst [vmem:[#allocation116_spill] sm:$0xff] %v9722_v49  ;;  %4469 = vrot.lane.b32.xlu1 %v9339_v60, %s6729_s29 }
0x26ef   : > { %v9726_v7 = vpop.permute.xlu1 %4271 }
0x26f0   : > { %12045 = vst [vmem:[#allocation117_spill] sm:$0xff] %v9726_v7  ;;  %4464 = vperm.xlu2 %6346, %v9293_v37   ;;  %v9733_v0 = vpop.permute.xlu2 %4311  ;;  %v12052_v7 = vmov 39  }
0x26f1   : > { %12047 = vst [vmem:[#allocation119_spill] sm:$0xff] %v9733_v0 }
0x26f3   : > { %6391 = vrot.lane.b32.xlu0 %v9730_v16, %s6741_s4 }
0x26f4   : > { %6407 = vset.pattern.permute.xlu0 %v11984_v30  ;;  %v4894_v30 = vrot.slane %v4884_v12, 4 }
0x26f5   : > { %v9738_v8 = vpop.permute.xlu0 %4521 }
0x26f6   : > { %12048 = vst [vmem:[#allocation120_spill] sm:$0xff] %v9738_v8  ;;  %4486 = vrot.lane.b32.xlu1 %v9312_v11, %s6742_s0  ;;  %v11696_v8 = vrot.slane %v9747_v34, 4 }
0x26f7   : > { %v9741_v49 = vpop.permute.xlu1 %4291 }
0x26f8   : > { %12049 = vst [vmem:[#allocation121_spill] sm:$0xff] %v9741_v49  ;;  %4471 = vrot.lane.b32.xlu2 %v9337_v35, %s6729_s29  ;;  %v9745_v2 = vpop.permute.xlu2 %4326  ;;  %v9758_v49 = vpack.i.bf16 %v11696_v8, %v4894_v30  ;;  %v9779_v8 = vld [vmem:[%s11470_s18] sm:$0x3]  ;;  %s12108_s29 = smov 119  }
0x26f9   : > { %12050 = vst [vmem:[#allocation122_spill] sm:$0xff] %v9745_v2  ;;  %6348 = vset.pattern.permute.xlu2 %v12052_v7 }
0x26fb   : > { %6397 = vrot.lane.b32.xlu0 %v9730_v16, %s6743_s5 }
0x26fd   : > { %v9753_v0 = vpop.permute.xlu0 %4551 }
0x26fe   : > { %12053 = vst [vmem:[#allocation124_spill] sm:$0xff] %v9753_v0  ;;  %4490 = vrot.lane.b32.xlu1 %v9337_v35, %s6742_s0 }
0x2700   : > { %4488 = vrot.lane.b32.xlu2 %v9339_v60, %s6742_s0  ;;  %v9761_v2 = vpop.permute.xlu2 %4333  ;;  %v9763_v58 = vpop.permute.xlu1 %4308  ;;  %s6751_s0 = smov 71  }
0x2701   : > { %12054 = vst [vmem:[#allocation125_spill] sm:$0xff] %v9761_v2 }
0x2702   : > { %12055 = vst [vmem:[#allocation126_spill] sm:$0xff] %v9763_v58  ;;  %v12062_v58 = vmov 38  }
0x2703   : > { %6403 = vrot.lane.b32.xlu0 %v9758_v49, %s6741_s4 }
0x2705   : > { %v9767_v12 = vpop.permute.xlu0 %4566 }
0x2706   : > { %12056 = vst [vmem:[#allocation127_spill] sm:$0xff] %v9767_v12  ;;  %4507 = vrot.lane.b32.xlu1 %v9339_v60, %s6730_s25 }
0x2708   : > { %4502 = vperm.xlu2 %6348, %v9293_v37   ;;  %v9772_v0 = vpop.permute.xlu2 %4357  ;;  %v9774_v30 = vpop.permute.xlu1 %4315 }
0x2709   : > { %12057 = vst [vmem:[#allocation128_spill] sm:$0xff] %v9772_v0 }
0x270a   : > { %12058 = vst [vmem:[#allocation129_spill] sm:$0xff] %v9774_v30 }
0x270b   : > { %4912 = vperm.xlu0 %6407, %v9779_v8  }
0x270d   : > { %v9782_v34 = vpop.permute.xlu0 %4583 }
0x270e   : > { %12059 = vst [vmem:[#allocation130_spill] sm:$0xff] %v9782_v34  ;;  %4524 = vrot.lane.b32.xlu1 %v9349_v14, %s6744_s24  ;;  %v4929_v34 = vld [vmem:[#allocation2 + $0x38] sm:$0x30] }
0x2710   : > { %4509 = vrot.lane.b32.xlu2 %v9337_v35, %s6730_s25  ;;  %v9787_v12 = vpop.permute.xlu2 %4361  ;;  %v9789_v0 = vpop.permute.xlu1 %4331  ;;  %s6745_s25 = smov 72  }
0x2711   : > { %12060 = vst [vmem:[#allocation131_spill] sm:$0xff] %v9787_v12  ;;  %6362 = vset.pattern.permute.xlu2 %v11954_v47  ;;  %v9802_v12 = vrot.slane %v4929_v34, 4 }
0x2712   : > { %12061 = vst [vmem:[#allocation132_spill] sm:$0xff] %v9789_v0 }
0x2713   : > { %6408 = vset.pattern.permute.xlu0 %v12062_v58  ;;  %12066 = vst [vmem:[#allocation136_spill] sm:$0xff] %v9802_v12 }
0x2714   : > { %4372 = vperm.xlu0 %6408, %v9293_v37  }
0x2715   : > { %v9794_v2 = vpop.permute.xlu0 %4599 }
0x2716   : > { %12063 = vst [vmem:[#allocation133_spill] sm:$0xff] %v9794_v2  ;;  %4544 = vperm.xlu1 %6355, %v9293_v37  }
0x2718   : > { %6351 = vrot.lane.b32.xlu2 %v9358_v36, %s6744_s24  ;;  %v9798_v30 = vpop.permute.xlu2 %4377  ;;  %v9800_v26 = vpop.permute.xlu1 %4354  ;;  %s6750_s24 = smov 39  }
0x2719   : > { %12064 = vst [vmem:[#allocation134_spill] sm:$0xff] %v9798_v30  ;;  %v4974_v30 = vld [vmem:[#allocation2 + $0x20] sm:$0x30] }
0x271a   : > { %12065 = vst [vmem:[#allocation135_spill] sm:$0xff] %v9800_v26  ;;  %v9829_v26 = vrot.slane %v4974_v30, 4 }
0x271c   : > { %4942 = vrot.lane.b32.xlu0 %v9802_v12, %s6741_s4  ;;  %12073 = vst [vmem:[#allocation143_spill] sm:$0xff] %v9829_v26 }
0x271d   : > { %v9806_v0 = vpop.permute.xlu0 %4621 }
0x271e   : > { %12067 = vst [vmem:[#allocation137_spill] sm:$0xff] %v9806_v0  ;;  %6361 = vset.pattern.permute.xlu1 %v11938_v27 }
0x271f   : > { %4561 = vperm.xlu1 %6361, %v9293_v37  }
0x2720   : > { %6357 = vrot.lane.b32.xlu2 %v9298_v63, %s6732_s1  ;;  %v9812_v58 = vpop.permute.xlu1 %4359  ;;  %v9814_v2 = vpop.permute.xlu2 %4390  ;;  %s6746_s1 = smov 122  }
0x2721   : > { %12068 = vst [vmem:[#allocation138_spill] sm:$0xff] %v9812_v58 }
0x2722   : > { %12069 = vst [vmem:[#allocation139_spill] sm:$0xff] %v9814_v2 }
0x2724   : > { %4960 = vrot.lane.b32.xlu0 %v9802_v12, %s6743_s5 }
0x2725   : > { %v9818_v34 = vpop.permute.xlu0 %4637 }
0x2726   : > { %12070 = vst [vmem:[#allocation140_spill] sm:$0xff] %v9818_v34 }
0x2727   : > { %4568 = vrot.lane.b32.xlu1 %v9314_v44, %s6733_s27 }
0x2728   : > { %4564 = vrot.lane.b32.xlu2 %v9287_v4, %s6733_s27  ;;  %v9824_v0 = vpop.permute.xlu1 %4375  ;;  %6388 = vset.pattern.permute.xlu1 %v11948_v56  ;;  %v12079_v56 = vmov 33   ;;  %s6747_s27 = smov 8  }
0x2729   : > { %12071 = vst [vmem:[#allocation141_spill] sm:$0xff] %v9824_v0  ;;  %v9827_v63 = vpop.permute.xlu2 %4410 }
0x272a   : > { %12072 = vst [vmem:[#allocation142_spill] sm:$0xff] %v9827_v63 }
0x272c   : > { %4987 = vrot.lane.b32.xlu0 %v9829_v26, %s6741_s4 }
0x272d   : > { %v9833_v2 = vpop.permute.xlu0 %4659 }
0x272e   : > { %12074 = vst [vmem:[#allocation144_spill] sm:$0xff] %v9833_v2 }
0x272f   : > { %4585 = vrot.lane.b32.xlu1 %v9307_v33, %s6734_s23 }
0x2730   : > { %4580 = vperm.xlu2 %6362, %v9293_v37   ;;  %v9838_v34 = vpop.permute.xlu1 %4379 }
0x2731   : > { %12075 = vst [vmem:[#allocation145_spill] sm:$0xff] %v9838_v34 }
0x2732   : > { %v9840_v58 = vpop.permute.xlu2 %4427 }
0x2733   : > { %12076 = vst [vmem:[#allocation146_spill] sm:$0xff] %v9840_v58 }
0x2734   : > { %6424 = vrot.lane.b32.xlu0 %v9730_v16, %s6745_s25 }
0x2735   : > { %v9844_v30 = vpop.permute.xlu0 %6374 }
0x2736   : > { %12077 = vst [vmem:[#allocation147_spill] sm:$0xff] %v9844_v30 }
0x2737   : > { %4602 = vrot.lane.b32.xlu1 %v9312_v11, %s6746_s1 }
0x2738   : > { %4587 = vrot.lane.b32.xlu2 %v9314_v44, %s6734_s23  ;;  %v9849_v2 = vpop.permute.xlu1 %6334  ;;  %s6748_s23 = smov 26  }
0x2739   : > { %12078 = vst [vmem:[#allocation148_spill] sm:$0xff] %v9849_v2  ;;  %6364 = vset.pattern.permute.xlu2 %v12079_v56 }
0x273a   : > { %v9852_v63 = vpop.permute.xlu2 %4434 }
0x273b   : > { %12080 = vst [vmem:[#allocation149_spill] sm:$0xff] %v9852_v63 }
0x273c   : > { %6430 = vrot.lane.b32.xlu0 %v9730_v16, %s6747_s27 }
0x273d   : > { %v9856_v58 = vpop.permute.xlu0 %4703 }
0x273e   : > { %12081 = vst [vmem:[#allocation150_spill] sm:$0xff] %v9856_v58 }
0x273f   : > { %4606 = vrot.lane.b32.xlu1 %v9337_v35, %s6746_s1 }
0x2740   : > { %4604 = vrot.lane.b32.xlu2 %v9339_v60, %s6746_s1  ;;  %v9860_v30 = vpop.permute.xlu1 %4417  ;;  %s12119_s1 = smov 23  }
0x2741   : > { %12082 = vst [vmem:[#allocation151_spill] sm:$0xff] %v9860_v30 }
0x2742   : > { %v9862_v34 = vpop.permute.xlu2 %4451 }
0x2743   : > { %12083 = vst [vmem:[#allocation152_spill] sm:$0xff] %v9862_v34  ;;  %v12088_v34 = vmov 47  }
0x2744   : > { %6436 = vrot.lane.b32.xlu0 %v9758_v49, %s6745_s25 }
0x2745   : > { %v9866_v56 = vpop.permute.xlu0 %4719 }
0x2746   : > { %12084 = vst [vmem:[#allocation153_spill] sm:$0xff] %v9866_v56 }
0x2747   : > { %4623 = vrot.lane.b32.xlu1 %v9339_v60, %s6735_s6 }
0x2748   : > { %4618 = vperm.xlu2 %6364, %v9293_v37   ;;  %v9871_v2 = vpop.permute.xlu1 %4432 }
0x274a   : > { %v9873_v58 = vpop.permute.xlu2 %4464 }
0x274b   : > { %12085 = vst [vmem:[#allocation154_spill] sm:$0xff] %v9873_v58 }
0x274c   : > { %5062 = vperm.xlu0 %6408, %v9779_v8  }
0x274d   : > { %v9876_v0 = vpop.permute.xlu0 %4741 }
0x274e   : > { %12086 = vst [vmem:[#allocation155_spill] sm:$0xff] %v9876_v0 }
0x274f   : > { %4640 = vrot.lane.b32.xlu1 %v9312_v11, %s6748_s23 }
0x2750   : > { %4625 = vrot.lane.b32.xlu2 %v9337_v35, %s6735_s6  ;;  %v9881_v56 = vpop.permute.xlu1 %4449  ;;  %s12097_s6 = smov 68  }
0x2751   : > { %12087 = vst [vmem:[#allocation156_spill] sm:$0xff] %v9881_v56  ;;  %6366 = vset.pattern.permute.xlu2 %v12088_v34 }
0x2752   : > { %v9884_v30 = vpop.permute.xlu2 %4471 }
0x2753   : > { %12089 = vst [vmem:[#allocation157_spill] sm:$0xff] %v9884_v30 }
0x2754   : > { %5083 = vrot.lane.b32.xlu0 %v9802_v12, %s6745_s25 }
0x2755   : > { %v9888_v58 = vpop.permute.xlu0 %4779  ;;  %6471 = vset.pattern.permute.xlu0 %v12052_v7 }
0x2756   : > { %12090 = vst [vmem:[#allocation158_spill] sm:$0xff] %v9888_v58 }
0x2757   : > { %4644 = vrot.lane.b32.xlu1 %v9337_v35, %s6748_s23 }
0x2758   : > { %4642 = vrot.lane.b32.xlu2 %v9339_v60, %s6748_s23  ;;  %v9893_v0 = vpop.permute.xlu1 %4453  ;;  %s12122_s23 = smov 64  }
0x275a   : > { %v9895_v63 = vpop.permute.xlu2 %4488 }
0x275b   : > { %12091 = vst [vmem:[#allocation159_spill] sm:$0xff] %v9895_v63 }
0x275c   : > { %5101 = vrot.lane.b32.xlu0 %v9802_v12, %s6747_s27 }
0x275d   : > { %v9899_v56 = vpop.permute.xlu0 %4795 }
0x275e   : > { %12092 = vst [vmem:[#allocation160_spill] sm:$0xff] %v9899_v56 }
0x275f   : > { %6368 = vrot.lane.b32.xlu1 %v9358_v36, %s6736_s26  ;;  %s12098_s26 = smov 87  }
0x2760   : > { %4656 = vperm.xlu2 %6366, %v9293_v37   ;;  %v9904_v58 = vpop.permute.xlu1 %4469 }
0x2761   : > { %12093 = vst [vmem:[#allocation161_spill] sm:$0xff] %v9904_v58 }
0x2762   : > { %v9906_v7 = vpop.permute.xlu2 %4502 }
0x2763   : > { %12094 = vst [vmem:[#allocation162_spill] sm:$0xff] %v9906_v7 }
0x2764   : > { %5119 = vrot.lane.b32.xlu0 %v9829_v26, %s6745_s25 }
0x2765   : > { %v9910_v30 = vpop.permute.xlu0 %6391 }
0x2767   : > { %4690 = vrot.lane.b32.xlu1 %v9300_v51, %s6737_s2  ;;  %s6749_s2 = smov 4  }
0x2768   : > { %6372 = vset.pattern.permute.xlu2 %v11928_v32  ;;  %v9915_v56 = vpop.permute.xlu1 %4486 }
0x2769   : > { %12095 = vst [vmem:[#allocation163_spill] sm:$0xff] %v9915_v56  ;;  %4683 = vperm.xlu2 %6372, %v9293_v37  }
0x276a   : > { %v9918_v63 = vpop.permute.xlu2 %4509 }
0x276b   : > { %12096 = vst [vmem:[#allocation164_spill] sm:$0xff] %v9918_v63 }
0x276c   : > { %6455 = vrot.lane.b32.xlu0 %v9730_v16, %s12097_s6 }
0x276d   : > { %v9922_v7 = vpop.permute.xlu0 %6397 }
0x276f   : > { %4705 = vrot.lane.b32.xlu1 %v9307_v33, %s12098_s26 }
0x2770   : > { %v9926_v58 = vpop.permute.xlu1 %4490 }
0x2771   : > { %12099 = vst [vmem:[#allocation165_spill] sm:$0xff] %v9926_v58  ;;  %6378 = vset.pattern.permute.xlu2 %v11946_v53  ;;  %v12103_v53 = vmov 27  }
0x2772   : > { %4700 = vperm.xlu2 %6378, %v9293_v37   ;;  %v9930_v32 = vpop.permute.xlu2 %6351 }
0x2773   : > { %12100 = vst [vmem:[#allocation166_spill] sm:$0xff] %v9930_v32 }
0x2774   : > { %6461 = vrot.lane.b32.xlu0 %v9730_v16, %s6749_s2 }
0x2775   : > { %v9934_v51 = vpop.permute.xlu0 %6403 }
0x2777   : > { %4722 = vrot.lane.b32.xlu1 %v9287_v4, %s6750_s24 }
0x2778   : > { %v9937_v63 = vpop.permute.xlu1 %4507 }
0x2779   : > { %12101 = vst [vmem:[#allocation167_spill] sm:$0xff] %v9937_v63 }
0x277a   : > { %4707 = vrot.lane.b32.xlu2 %v9314_v44, %s12098_s26  ;;  %v9941_v58 = vpop.permute.xlu2 %6357  ;;  %s6752_s26 = smov 103  }
0x277b   : > { %12102 = vst [vmem:[#allocation168_spill] sm:$0xff] %v9941_v58  ;;  %6380 = vset.pattern.permute.xlu2 %v12103_v53 }
0x277c   : > { %6467 = vrot.lane.b32.xlu0 %v9758_v49, %s12097_s6 }
0x277d   : > { %v9946_v32 = vpop.permute.xlu0 %4912 }
0x277e   : > { %12104 = vst [vmem:[#allocation169_spill] sm:$0xff] %v9946_v32 }
0x277f   : > { %4726 = vrot.lane.b32.xlu1 %v9314_v44, %s6750_s24 }
0x2780   : > { %v9949_v56 = vpop.permute.xlu1 %4524 }
0x2781   : > { %12105 = vst [vmem:[#allocation170_spill] sm:$0xff] %v9949_v56 }
0x2782   : > { %4724 = vrot.lane.b32.xlu2 %v9307_v33, %s6750_s24  ;;  %v9952_v4 = vpop.permute.xlu2 %4564  ;;  %s6755_s24 = smov 56  }
0x2783   : > { %12106 = vst [vmem:[#allocation171_spill] sm:$0xff] %v9952_v4 }
0x2784   : > { %5195 = vperm.xlu0 %6471, %v9779_v8  }
0x2786   : > { %v9955_v63 = vpop.permute.xlu0 %4372 }
0x2787   : > { %12107 = vst [vmem:[#allocation172_spill] sm:$0xff] %v9955_v63  ;;  %4743 = vrot.lane.b32.xlu1 %v9339_v60, %s12108_s29  ;;  %v12114_v63 = vmov 41  }
0x2788   : > { %v9959_v53 = vpop.permute.xlu1 %4544 }
0x2789   : > { %12109 = vst [vmem:[#allocation173_spill] sm:$0xff] %v9959_v53 }
0x278a   : > { %4738 = vperm.xlu2 %6380, %v9293_v37   ;;  %v9962_v58 = vpop.permute.xlu2 %4580 }
0x278b   : > { %12110 = vst [vmem:[#allocation174_spill] sm:$0xff] %v9962_v58 }
0x278c   : > { %5216 = vrot.lane.b32.xlu0 %v9802_v12, %s12097_s6 }
0x278d   : > { %6492 = vset.pattern.permute.xlu0 %v12004_v45 }
0x278e   : > { %v9967_v56 = vpop.permute.xlu0 %4942 }
0x278f   : > { %12111 = vst [vmem:[#allocation175_spill] sm:$0xff] %v9967_v56  ;;  %4760 = vrot.lane.b32.xlu1 %v9312_v11, %s6751_s0 }
0x2791   : > { %v9970_v4 = vpop.permute.xlu1 %4561 }
0x2792   : > { %12112 = vst [vmem:[#allocation176_spill] sm:$0xff] %v9970_v4  ;;  %4745 = vrot.lane.b32.xlu2 %v9337_v35, %s12108_s29  ;;  %v9974_v53 = vpop.permute.xlu2 %4587  ;;  %s6756_s29 = smov 120   ;;  %v12187_v4 = vunpack.i.h.bf16 %v9910_v30 }
0x2793   : > { %12113 = vst [vmem:[#allocation177_spill] sm:$0xff] %v9974_v53  ;;  %6381 = vset.pattern.permute.xlu2 %v12114_v63 }
0x2794   : > { %5234 = vrot.lane.b32.xlu0 %v9802_v12, %s6749_s2 }
0x2796   : > { %v9979_v58 = vpop.permute.xlu0 %4960 }
0x2797   : > { %12115 = vst [vmem:[#allocation178_spill] sm:$0xff] %v9979_v58  ;;  %4764 = vrot.lane.b32.xlu1 %v9337_v35, %s6751_s0 }
0x2799   : > { %v9982_v45 = vpop.permute.xlu1 %4568 }
0x279a   : > { %12116 = vst [vmem:[#allocation179_spill] sm:$0xff] %v9982_v45  ;;  %4762 = vrot.lane.b32.xlu2 %v9339_v60, %s6751_s0  ;;  %v9985_v11 = vpop.permute.xlu2 %4604  ;;  %s12498_s0 = sshll.u32 %s12500_s28, 4 }
0x279b   : > { %12117 = vst [vmem:[#allocation180_spill] sm:$0xff] %v9985_v11 }
0x279c   : > { %5252 = vrot.lane.b32.xlu0 %v9829_v26, %s12097_s6 }
0x279e   : > { %v9989_v56 = vpop.permute.xlu0 %4987 }
0x279f   : > { %12118 = vst [vmem:[#allocation181_spill] sm:$0xff] %v9989_v56  ;;  %4781 = vrot.lane.b32.xlu1 %v9339_v60, %s12119_s1 }
0x27a1   : > { %v9993_v63 = vpop.permute.xlu1 %4585 }
0x27a2   : > { %12120 = vst [vmem:[#allocation182_spill] sm:$0xff] %v9993_v63  ;;  %4776 = vperm.xlu2 %6381, %v9293_v37   ;;  %v9996_v58 = vpop.permute.xlu2 %4618  ;;  %v4821_v37 = vld [vmem:[%s11469_s17] sm:$0x3] }
0x27a3   : > { %12121 = vst [vmem:[#allocation183_spill] sm:$0xff] %v9996_v58 }
0x27a4   : > { %6487 = vrot.lane.b32.xlu0 %v9730_v16, %s12122_s23 }
0x27a6   : > { %v10000_v53 = vpop.permute.xlu0 %6424 }
0x27a7   : > { %4798 = vrot.lane.b32.xlu1 %v9349_v14, %s6752_s26  ;;  %v4839_v14 = vld [vmem:[#allocation2 + $0x38] sm:$0x30] }
0x27a9   : > { %v10003_v11 = vpop.permute.xlu1 %4602 }
0x27aa   : > { %12123 = vst [vmem:[#allocation184_spill] sm:$0xff] %v10003_v11  ;;  %4783 = vrot.lane.b32.xlu2 %v9337_v35, %s12119_s1  ;;  %v10007_v60 = vpop.permute.xlu2 %4625  ;;  %v6753_v35 = vmov 49  }
0x27ab   : > { %12124 = vst [vmem:[#allocation185_spill] sm:$0xff] %v10007_v60  ;;  %6389 = vset.pattern.permute.xlu2 %v11901_v19  ;;  %v10021_v60 = vrot.slane %v4839_v14, 4 }
0x27ac   : > { %5297 = vperm.xlu0 %6492, %v9779_v8  }
0x27ad   : > { %12127 = vst [vmem:[#allocation188_spill] sm:$0xff] %v10021_v60 }
0x27ae   : > { %v10014_v56 = vpop.permute.xlu0 %6430 }
0x27af   : > { %4824 = vperm.xlu1 %6388, %v4821_v37  }
0x27b1   : > { %v10016_v58 = vpop.permute.xlu1 %4606 }
0x27b2   : > { %12125 = vst [vmem:[#allocation186_spill] sm:$0xff] %v10016_v58  ;;  %6384 = vrot.lane.b32.xlu2 %v9358_v36, %s6752_s26  ;;  %v10019_v11 = vpop.permute.xlu2 %4642  ;;  %v10037_v36 = vld [vmem:[%s11468_s16] sm:$0x3]  ;;  %s6754_s26 = smov 124   ;;  %v6757_v58 = vmov 55  }
0x27b3   : > { %12126 = vst [vmem:[#allocation187_spill] sm:$0xff] %v10019_v11  ;;  %v4885_v11 = vld [vmem:[#allocation2 + $0x38] sm:$0x30] }
0x27b4   : > { %6499 = vset.pattern.permute.xlu0 %v6753_v35 }
0x27b5   : > { %5325 = vperm.xlu0 %6499, %v9779_v8  }
0x27b6   : > { %v10024_v19 = vpop.permute.xlu0 %6436 }
0x27b7   : > { %12128 = vst [vmem:[#allocation189_spill] sm:$0xff] %v10024_v19  ;;  %4856 = vrot.lane.b32.xlu1 %v10021_v60, %s6741_s4 }
0x27b9   : > { %v10028_v63 = vpop.permute.xlu1 %4623 }
0x27ba   : > { %12129 = vst [vmem:[#allocation190_spill] sm:$0xff] %v10028_v63  ;;  %4843 = vperm.xlu2 %6389, %v9779_v8   ;;  %v10031_v37 = vpop.permute.xlu2 %4656 }
0x27bb   : > { %12130 = vst [vmem:[#allocation191_spill] sm:$0xff] %v10031_v37  ;;  %v10050_v37 = vrot.slane %v4885_v11, 4 }
0x27bd   : > { %6500 = vset.pattern.permute.xlu0 %v11955_v9 }
0x27be   : > { %3900 = vperm.xlu0 %6500, %v10037_v36   ;;  %v10040_v14 = vpop.permute.xlu0 %5062 }
0x27bf   : > { %12131 = vst [vmem:[#allocation192_spill] sm:$0xff] %v10040_v14  ;;  %4873 = vrot.lane.b32.xlu1 %v10021_v60, %s6743_s5 }
0x27c1   : > { %v10044_v35 = vpop.permute.xlu1 %4640 }
0x27c2   : > { %12132 = vst [vmem:[#allocation193_spill] sm:$0xff] %v10044_v35  ;;  %6395 = vset.pattern.permute.xlu2 %v11954_v47 }
0x27c3   : > { %4866 = vperm.xlu2 %6395, %v9779_v8   ;;  %v10048_v9 = vpop.permute.xlu2 %4683 }
0x27c4   : > { %12133 = vst [vmem:[#allocation194_spill] sm:$0xff] %v10048_v9  ;;  %v4886_v9 = vld [vmem:[#allocation2 + $0x20] sm:$0x30] }
0x27c5   : > { %v10072_v35 = vrot.slane %v4886_v9, 4 }
0x27c6   : > { %5356 = vrot.lane.b32.xlu0 %v9829_v26, %s12122_s23  ;;  %v10054_v63 = vpop.permute.xlu0 %5083 }
0x27c7   : > { %12134 = vst [vmem:[#allocation195_spill] sm:$0xff] %v10054_v63  ;;  %4899 = vrot.lane.b32.xlu1 %v10050_v37, %s6741_s4 }
0x27c9   : > { %v10058_v14 = vpop.permute.xlu1 %4644 }
0x27ca   : > { %12135 = vst [vmem:[#allocation196_spill] sm:$0xff] %v10058_v14  ;;  %v4930_v14 = vld [vmem:[#allocation2 + $0x20] sm:$0x30] }
0x27cb   : > { %6401 = vset.pattern.permute.xlu2 %v11958_v21 }
0x27cc   : > { %4888 = vperm.xlu2 %6401, %v9779_v8   ;;  %v10062_v47 = vpop.permute.xlu2 %4700 }
0x27cd   : > { %12136 = vst [vmem:[#allocation197_spill] sm:$0xff] %v10062_v47 }
0x27ce   : > { %6509 = vrot.lane.b32.xlu0 %v9758_v49, %s6754_s26  ;;  %v10066_v11 = vpop.permute.xlu0 %5101 }
0x27cf   : > { %12137 = vst [vmem:[#allocation198_spill] sm:$0xff] %v10066_v11  ;;  %6410 = vrot.lane.b32.xlu1 %v9758_v49, %s6743_s5 }
0x27d1   : > { %v10070_v63 = vpop.permute.xlu1 %6368 }
0x27d2   : > { %12138 = vst [vmem:[#allocation199_spill] sm:$0xff] %v10070_v63  ;;  %v10090_v63 = vrot.slane %v4930_v14, 4  ;;  %v4976_v14 = vld [vmem:[#allocation2 + $0x8] sm:$0x30] }
0x27d4   : > { %4901 = vrot.lane.b32.xlu2 %v10072_v35, %s6741_s4  ;;  %v10076_v21 = vpop.permute.xlu2 %4707 }
0x27d5   : > { %12139 = vst [vmem:[#allocation200_spill] sm:$0xff] %v10076_v21  ;;  %6414 = vset.pattern.permute.xlu2 %v11990_v43  ;;  %v4986_v21 = vrot.slane %v4976_v14, 4  ;;  %v6758_v14 = vmov 64  }
0x27d6   : > { %5373 = vperm.xlu0 %6500, %v9779_v8   ;;  %v10080_v47 = vpop.permute.xlu0 %5119 }
0x27d7   : > { %12140 = vst [vmem:[#allocation201_spill] sm:$0xff] %v10080_v47  ;;  %4919 = vrot.lane.b32.xlu1 %v10072_v35, %s6743_s5 }
0x27d9   : > { %v10084_v11 = vpop.permute.xlu1 %4690 }
0x27da   : > { %12141 = vst [vmem:[#allocation202_spill] sm:$0xff] %v10084_v11 }
0x27dc   : > { %4917 = vrot.lane.b32.xlu2 %v10050_v37, %s6743_s5  ;;  %v10088_v9 = vpop.permute.xlu2 %4724 }
0x27dd   : > { %12142 = vst [vmem:[#allocation203_spill] sm:$0xff] %v10088_v9  ;;  %v4975_v9 = vld [vmem:[#allocation2 + $0x10] sm:$0x30] }
0x27de   : > { %6520 = vrot.lane.b32.xlu0 %v9730_v16, %s6755_s24  ;;  %v10094_v43 = vpop.permute.xlu0 %6455 }
0x27df   : > { %12143 = vst [vmem:[#allocation204_spill] sm:$0xff] %v10094_v43  ;;  %4944 = vrot.lane.b32.xlu1 %v10090_v63, %s6741_s4  ;;  %6530 = vset.pattern.permute.xlu0 %v11902_v1  ;;  %v4985_v43 = vrot.slane %v4975_v9, 4 }
0x27e1   : > { %v10099_v47 = vpop.permute.xlu1 %4705 }
0x27e2   : > { %12144 = vst [vmem:[#allocation205_spill] sm:$0xff] %v10099_v47  ;;  %v10112_v47 = vpack.i.bf16 %v4986_v21, %v4985_v43 }
0x27e4   : > { %4933 = vperm.xlu2 %6414, %v9779_v8   ;;  %v10102_v11 = vpop.permute.xlu2 %4738  ;;  %12148 = vst [vmem:[#allocation209_spill] sm:$0xff] %v10112_v47 }
0x27e5   : > { %12145 = vst [vmem:[#allocation206_spill] sm:$0xff] %v10102_v11 }
0x27e6   : > { %5524 = vrot.lane.b32.xlu0 %v10050_v37, %s6756_s29  ;;  %v10106_v16 = vpop.permute.xlu0 %6461 }
0x27e7   : > { %12146 = vst [vmem:[#allocation207_spill] sm:$0xff] %v10106_v16  ;;  %4962 = vrot.lane.b32.xlu1 %v10090_v63, %s6743_s5  ;;  %s6759_s5 = smov 52  }
0x27e9   : > { %v10110_v1 = vpop.permute.xlu1 %4722 }
0x27ea   : > { %12147 = vst [vmem:[#allocation208_spill] sm:$0xff] %v10110_v1  ;;  %v6405_v1 = vunpack.i.l.bf16 %v9934_v51 }
0x27ec   : > { %6415 = vset.pattern.permute.xlu2 %v6757_v58  ;;  %v10114_v11 = vpop.permute.xlu2 %4745 }
0x27ed   : > { %12149 = vst [vmem:[#allocation210_spill] sm:$0xff] %v10114_v11  ;;  %4957 = vperm.xlu2 %6415, %v9779_v8  }
0x27ee   : > { %5502 = vperm.xlu0 %6530, %v9779_v8   ;;  %v10118_v19 = vpop.permute.xlu0 %6467 }
0x27ef   : > { %12150 = vst [vmem:[#allocation211_spill] sm:$0xff] %v10118_v19  ;;  %6418 = vrot.lane.b32.xlu1 %v10112_v47, %s6741_s4  ;;  %s6760_s4 = smov 116  }
0x27f1   : > { %v10122_v16 = vpop.permute.xlu1 %4726 }
0x27f2   : > { %12151 = vst [vmem:[#allocation212_spill] sm:$0xff] %v10122_v16 }
0x27f4   : > { %v10124_v9 = vpop.permute.xlu2 %4762 }
0x27f5   : > { %12152 = vst [vmem:[#allocation213_spill] sm:$0xff] %v10124_v9  ;;  %6416 = vset.pattern.permute.xlu2 %v6758_v14  ;;  %v12167_v9 = vmov 34  }
0x27f6   : > { %6531 = vset.pattern.permute.xlu0 %v11929_v50  ;;  %v10127_v58 = vpop.permute.xlu0 %5195  ;;  %4978 = vperm.xlu2 %6416, %v9779_v8  }
0x27f7   : > { %12153 = vst [vmem:[#allocation214_spill] sm:$0xff] %v10127_v58  ;;  %4193 = vperm.xlu0 %6531, %v10037_v36   ;;  %5015 = vrot.lane.b32.xlu1 %v10021_v60, %s6745_s25 }
0x27f9   : > { %v10133_v21 = vpop.permute.xlu1 %4743 }
0x27fa   : > { %12154 = vst [vmem:[#allocation215_spill] sm:$0xff] %v10133_v21  ;;  %v12183_v21 = vld [vmem:[#allocation74_spill] sm:$0xff] }
0x27fc   : > { %v10135_v43 = vpop.permute.xlu2 %4776 }
0x27fd   : > { %12155 = vst [vmem:[#allocation216_spill] sm:$0xff] %v10135_v43 }
0x27fe   : > { %v10137_v19 = vpop.permute.xlu0 %5216  ;;  %6422 = vset.pattern.permute.xlu2 %v11931_v59 }
0x27ff   : > { %12156 = vst [vmem:[#allocation217_spill] sm:$0xff] %v10137_v19  ;;  %5543 = vrot.lane.b32.xlu0 %v10050_v37, %s6755_s24  ;;  %5008 = vperm.xlu2 %6422, %v9779_v8  }
0x2800   : > { %5032 = vrot.lane.b32.xlu1 %v10021_v60, %s6747_s27 }
0x2801   : > { %v10145_v50 = vpop.permute.xlu1 %4760 }
0x2802   : > { %12157 = vst [vmem:[#allocation218_spill] sm:$0xff] %v10145_v50 }
0x2804   : > { %v10147_v14 = vpop.permute.xlu2 %4783 }
0x2805   : > { %12158 = vst [vmem:[#allocation219_spill] sm:$0xff] %v10147_v14  ;;  %v6277_v14 = vunpack.i.l.bf16 %v9378_v42 }
0x2806   : > { %v10149_v58 = vpop.permute.xlu0 %5234 }
0x2807   : > { %12159 = vst [vmem:[#allocation220_spill] sm:$0xff] %v10149_v58  ;;  %5643 = vrot.lane.b32.xlu0 %v10021_v60, %s6759_s5  ;;  %6428 = vset.pattern.permute.xlu2 %v12021_v13 }
0x2808   : > { %5049 = vrot.lane.b32.xlu1 %v10050_v37, %s6745_s25  ;;  %5025 = vperm.xlu2 %6428, %v9779_v8  }
0x2809   : > { %v10157_v59 = vpop.permute.xlu1 %4764 }
0x280a   : > { %12160 = vst [vmem:[#allocation221_spill] sm:$0xff] %v10157_v59 }
0x280c   : > { %v10159_v19 = vpop.permute.xlu2 %6384 }
0x280d   : > { %12161 = vst [vmem:[#allocation222_spill] sm:$0xff] %v10159_v19 }
0x280e   : > { %v10161_v43 = vpop.permute.xlu0 %5252 }
0x280f   : > { %12162 = vst [vmem:[#allocation223_spill] sm:$0xff] %v10161_v43  ;;  %5660 = vrot.lane.b32.xlu0 %v10072_v35, %s6760_s4 }
0x2810   : > { %6441 = vrot.lane.b32.xlu1 %v9758_v49, %s6747_s27  ;;  %6434 = vset.pattern.permute.xlu2 %v11968_v15 }
0x2811   : > { %5044 = vperm.xlu2 %6434, %v9779_v8   ;;  %v10169_v13 = vpop.permute.xlu1 %4781 }
0x2812   : > { %12163 = vst [vmem:[#allocation224_spill] sm:$0xff] %v10169_v13 }
0x2814   : > { %v10171_v58 = vpop.permute.xlu2 %4843 }
0x2816   : > { %v10173_v59 = vpop.permute.xlu0 %6487 }
0x2817   : > { %12164 = vst [vmem:[#allocation225_spill] sm:$0xff] %v10173_v59  ;;  %5636 = vperm.xlu0 %6531, %v9779_v8   ;;  %v6278_v59 = vunpack.i.h.bf16 %v9378_v42 }
0x2818   : > { %5069 = vrot.lane.b32.xlu1 %v10072_v35, %s6747_s27 }
0x2819   : > { %5051 = vrot.lane.b32.xlu2 %v10072_v35, %s6745_s25  ;;  %v10180_v43 = vpop.permute.xlu1 %4798  ;;  %v3865_v19 = vsel %vm3864_vm7, %v6277_v14, %v6278_v59  ;;  %v6294_v14 = vunpack.i.h.bf16 %v9490_v38 }
0x281a   : > { %12165 = vst [vmem:[#allocation226_spill] sm:$0xff] %v10180_v43  ;;  %6445 = vset.pattern.permute.xlu2 %v12088_v34  ;;  %v3891_v43 = vsel %vm3890_vm0, %v9396_v29, %v9423_v24  ;;  %v3892_v34 = vsel %vm3890_vm0, %v9423_v24, %v9400_v52  ;;  %v3869_v42 = vmul.f32 %v3865_v19, %v9402_v31  ;;  %vm4045_vm0 = vcmask 834560  }
0x281b   : > { %v3896_v13 = vmul.f32 %v3892_v34, %v9388_v55  ;;  %v3930_v19 = vsel %vm3928_vm3, %v9456_v54, %v9432_v48  ;;  %v6288_v34 = vunpack.i.h.bf16 %v9477_v6 }
0x281c   : > { %v10246_v48 = vmul.f32 %v3930_v19, %v9421_v23  ;;  %v12173_v19 = vld [vmem:[#allocation68_spill] sm:$0xff] }
0x281d   : > { %v10183_v15 = vpop.permute.xlu2 %4866 }
0x281e   : > { %v10185_v50 = vpop.permute.xlu0 %5297  ;;  %12170 = vst [vmem:[#allocation230_spill] sm:$0xff] %v10246_v48 }
0x281f   : > { %12166 = vst [vmem:[#allocation227_spill] sm:$0xff] %v10185_v50  ;;  %6550 = vset.pattern.permute.xlu0 %v12167_v9  ;;  %v3866_v9 = vsel %vm3864_vm7, %v6278_v59, %v9411_v41  ;;  %v6293_v59 = vunpack.i.l.bf16 %v9490_v38  ;;  %vm4003_vm7 = vcmask 990208   ;;  %v4046_v38 = vsel %vm4045_vm0, %v9503_v46, %v9461_v18  ;;  %v12172_v46 = vld [vmem:[#allocation66_spill] sm:$0xff] }
0x2820   : > { %5085 = vrot.lane.b32.xlu1 %v10090_v63, %s6745_s25  ;;  %4757 = vperm.xlu0 %6550, %v10037_v36   ;;  %v3895_v36 = vmul.f32 %v3891_v43, %v9388_v55  ;;  %v3870_v29 = vmul.f32 %v3866_v9, %v9402_v31  ;;  %v10223_v31 = vsel %vm3909_vm6, %v9434_v5, %v9409_v22 }
0x2821   : > { %5067 = vrot.lane.b32.xlu2 %v10050_v37, %s6747_s27  ;;  %v10199_v50 = vpop.permute.xlu1 %4824  ;;  %v10238_v5 = vsel %vm3909_vm6, %v9409_v22, %v9445_v10  ;;  %v11757_v10 = vunpack.i.l.bf16 %v9477_v6  ;;  %v4050_v22 = vmul.f32 %v4046_v38, %v9526_v57  ;;  %vm4101_vm6 = vcmask 703488  }
0x2822   : > { %12168 = vst [vmem:[#allocation228_spill] sm:$0xff] %v10199_v50  ;;  %v3929_v50 = vsel %vm3928_vm3, %v9406_v20, %v9456_v54  ;;  %v10216_v55 = vadd.f32 %v3895_v36, %v3869_v42  ;;  %v10218_v41 = vadd.f32 %v3896_v13, %v3870_v29  ;;  %v3957_v20 = vsel %vm3956_vm1, %v9468_v61, %v9443_v25 }
0x2823   : > { %v10241_v54 = vmul.f32 %v3929_v50, %v9421_v23  ;;  %vm4028_vm3 = vcmask 179200   ;;  %v4047_v61 = vsel %vm4045_vm0, %v9461_v18, %v9538_v3  ;;  %v10249_v13 = vmul.f32 %v3957_v20, %v9417_v17  ;;  %v12174_v20 = vld [vmem:[#allocation65_spill] sm:$0xff] }
0x2824   : > { %v4065_v50 = vsel %vm4064_vm12, %v9471_v62, %v9548_v39  ;;  %v4029_v3 = vsel %vm4028_vm3, %v6293_v59, %v6294_v14  ;;  %v4030_v23 = vsel %vm4028_vm3, %v6294_v14, %v9450_v28  ;;  %v4051_v9 = vmul.f32 %v4047_v61, %v9526_v57  ;;  %v12175_v59 = vld [vmem:[#allocation70_spill] sm:$0xff]  ;;  %v12176_v61 = vld [vmem:[#allocation75_spill] sm:$0xff] }
0x2825   : > { %12171 = vst [vmem:[#allocation231_spill] sm:$0xff] %v10249_v13  ;;  %v10266_v18 = vsel %vm3956_vm1, %v9443_v25, %v9479_v40  ;;  %v4033_v42 = vmul.f32 %v4029_v3, %v12172_v46  ;;  %v4034_v29 = vmul.f32 %v4030_v23, %v12172_v46  ;;  %v4066_v62 = vsel %vm4064_vm12, %v9548_v39, %v12173_v19  ;;  %v12177_v46 = vld [vmem:[#allocation78_spill] sm:$0xff] }
0x2826   : > { %v10206_v52 = vpop.permute.xlu2 %4888  ;;  %v4069_v28 = vmul.f32 %v4065_v50, %v12174_v20  ;;  %v6399_v14 = vunpack.i.l.bf16 %v9922_v7  ;;  %v10285_v25 = vsel %vm4003_vm7, %v11757_v10, %v6288_v34  ;;  %v4083_v38 = vsel %vm11763_vm8, %v12176_v61, %v12175_v59  ;;  %v12179_v61 = vld [vmem:[#allocation62_spill] sm:$0xff] }
0x2827   : > { %v10208_v24 = vpop.permute.xlu0 %5325  ;;  %v4052_v39 = vadd.f32 %v4050_v22, %v4033_v42  ;;  %vm4875_vm12 = vcmask 97280   ;;  %v6761_v50 = vmov 56   ;;  %v4053_v23 = vadd.f32 %v4051_v9, %v4034_v29  ;;  %v12178_v42 = vld [vmem:[#allocation81_spill] sm:$0xff]  ;;  %v12180_v9 = vld [vmem:[#allocation60_spill] sm:$0xff] }
0x2828   : > { %12169 = vst [vmem:[#allocation229_spill] sm:$0xff] %v10208_v24  ;;  %5103 = vrot.lane.b32.xlu1 %v10090_v63, %s6747_s27  ;;  %5561 = vrot.lane.b32.xlu0 %v10090_v63, %s6756_s29  ;;  %v4084_v19 = vsel %vm11763_vm8, %v12175_v59, %v12177_v46  ;;  %v6393_v34 = vunpack.i.l.bf16 %v9910_v30  ;;  %v4070_v22 = vmul.f32 %v4066_v62, %v12174_v20  ;;  %vm4120_vm1 = vcmask 310272   ;;  %v12181_v24 = vld [vmem:[#allocation89_spill] sm:$0xff] }
0x2829   : > { %5080 = vperm.xlu2 %6445, %v9779_v8   ;;  %v10231_v43 = vpop.permute.xlu1 %4856  ;;  %v4102_v10 = vsel %vm4101_vm6, %v12179_v61, %v12178_v42  ;;  %vm4858_vm0 = vcmask 621568   ;;  %v4087_v29 = vmul.f32 %v4083_v38, %v12180_v9  ;;  %v6304_v11 = vunpack.i.l.bf16 %v12181_v24  ;;  %v12184_v61 = vld [vmem:[#allocation72_spill] sm:$0xff] }
0x282a   : > { %v12182_v59 = vunpack.i.h.bf16 %v9922_v7  ;;  %v4088_v57 = vmul.f32 %v4084_v19, %v12180_v9  ;;  %v4103_v62 = vsel %vm4101_vm6, %v12178_v42, %v12183_v21  ;;  %vm4139_vm3 = vcmask 965632  }
0x282b   : > { %v6305_v20 = vunpack.i.h.bf16 %v12181_v24  ;;  %v4106_v16 = vmul.f32 %v4102_v10, %v12184_v61  ;;  %v4072_v9 = vadd.f32 %v4070_v22, %v4053_v23  ;;  %vm3975_vm6 = vcmask 334848   ;;  %v12191_v23 = vld [vmem:[#allocation69_spill] sm:$0xff]  ;;  %v12192_v22 = vld [vmem:[#allocation64_spill] sm:$0xff] }
0x282c   : > { %v4876_v46 = vsel %vm4875_vm12, %v6399_v14, %v12182_v59  ;;  %v4859_v14 = vsel %vm4858_vm0, %v6393_v34, %v12187_v4  ;;  %v12188_v59 = vld [vmem:[#allocation86_spill] sm:$0xff]  ;;  %v4107_v42 = vmul.f32 %v4103_v62, %v12184_v61  ;;  %v6311_v34 = vunpack.i.h.bf16 %v12191_v23 }
0x282d   : > { %v4880_v24 = vmul.f32 %v4876_v46, %v10183_v15  ;;  %v4141_v46 = vsel %vm4139_vm3, %v6304_v11, %v6305_v20  ;;  %v4090_v62 = vadd.f32 %v4088_v57, %v4072_v9  ;;  %v12197_v9 = vld [vmem:[#allocation95_spill] sm:$0xff] }
0x282e   : > { %v10261_v36 = vpop.permute.xlu2 %4901 }
0x282f   : > { %v4109_v20 = vadd.f32 %v4107_v42, %v4090_v62  ;;  %v12201_v42 = vld [vmem:[#allocation61_spill] sm:$0xff]  ;;  %v12205_v62 = vld [vmem:[#allocation63_spill] sm:$0xff] }
0x2830   : > { %6449 = vrot.lane.b32.xlu1 %v10112_v47, %s6745_s25  ;;  %5679 = vrot.lane.b32.xlu0 %v10072_v35, %s6759_s5  ;;  %v10280_v40 = vpop.permute.xlu0 %3900  ;;  %v6762_v47 = vmov 65   ;;  %s12394_s25 = smov 60  }
0x2831   : > { %6446 = vset.pattern.permute.xlu2 %v6761_v50  ;;  %v10290_v3 = vpop.permute.xlu1 %4873  ;;  %v4071_v50 = vadd.f32 %v4069_v28, %v4052_v39  ;;  %v12185_v28 = vld [vmem:[#allocation77_spill] sm:$0xff]  ;;  %v12186_v39 = vld [vmem:[#allocation83_spill] sm:$0xff] }
0x2832   : > { %5098 = vperm.xlu2 %6446, %v9779_v8   ;;  %v4121_v38 = vsel %vm4120_vm1, %v12186_v39, %v12185_v28  ;;  %v4122_v21 = vsel %vm4120_vm1, %v12185_v28, %v12188_v59  ;;  %v12189_v39 = vld [vmem:[#allocation67_spill] sm:$0xff]  ;;  %vm4183_vm1 = vcmask 809984  }
0x2833   : > { %v4089_v10 = vadd.f32 %v4087_v29, %v4071_v50  ;;  %v4140_v45 = vsel %vm4139_vm3, %v12189_v39, %v6304_v11  ;;  %v4125_v28 = vmul.f32 %v4121_v38, %v12192_v22  ;;  %v4863_v50 = vmul.f32 %v4859_v14, %v10171_v58  ;;  %v12194_v14 = vld [vmem:[#allocation29_spill] sm:$0xff] }
0x2834   : > { %v4126_v59 = vmul.f32 %v4122_v21, %v12192_v22  ;;  %v6310_v11 = vunpack.i.l.bf16 %v12191_v23  ;;  %vm4166_vm3 = vcmask 154624   ;;  %vm4148_vm8 = vcmp.ge.s32.totalorder %v12194_v14, 6  ;;  %v12198_v21 = vld [vmem:[#allocation71_spill] sm:$0xff]  ;;  %v12202_v23 = vld [vmem:[#allocation56_spill] sm:$0xff] }
0x2835   : > { %v4108_v61 = vadd.f32 %v4106_v16, %v4089_v10  ;;  %v4882_v48 = vadd.f32 %v4880_v24, %v4863_v50  ;;  %v4184_v24 = vsel %vm4183_vm1, %v12198_v21, %v12197_v9  ;;  %v12199_v10 = vld [vmem:[#allocation90_spill] sm:$0xff]  ;;  %v12207_v21 = vld [vmem:[#allocation92_spill] sm:$0xff] }
0x2836   : > { %v10320_v19 = vpop.permute.xlu2 %4917  ;;  %v4185_v22 = vsel %vm4183_vm1, %v12197_v9, %v12199_v10  ;;  %v4168_v10 = vsel %vm4166_vm3, %v6311_v34, %v12207_v21  ;;  %v12214_v21 = vld [vmem:[#allocation84_spill] sm:$0xff]  ;;  %vm4277_vm1 = vcmask 941056  }
0x2837   : > { %v4127_v57 = vadd.f32 %v4125_v28, %v4108_v61  ;;  %v12203_v28 = vld [vmem:[#allocation59_spill] sm:$0xff] }
0x2838   : > { %5149 = vrot.lane.b32.xlu1 %v10021_v60, %s12097_s6  ;;  %5672 = vperm.xlu0 %6550, %v9779_v8   ;;  %v10332_v4 = vpop.permute.xlu0 %5356 }
0x2839   : > { %12190 = vst [vmem:[#allocation66_spill] sm:$0xff] %v10332_v4  ;;  %v10338_v29 = vpop.permute.xlu1 %4899  ;;  %v12193_v4 = vld [vmem:[#allocation80_spill] sm:$0xff] }
0x283a   : > { %v4903_v39 = vsel %vm4858_vm0, %v6405_v1, %v10338_v29  ;;  %6447 = vset.pattern.permute.xlu2 %v6762_v47  ;;  %v4144_v13 = vmul.f32 %v4140_v45, %v12193_v4  ;;  %v4145_v16 = vmul.f32 %v4141_v46, %v12193_v4  ;;  %v12195_v1 = vld [vmem:[#allocation19_spill] sm:$0xff]  ;;  %v4128_v45 = vadd.f32 %v4126_v59, %v4109_v20 }
0x283b   : > { %v4907_v38 = vmul.f32 %v4903_v39, %v10206_v52  ;;  %5116 = vperm.xlu2 %6447, %v9779_v8   ;;  %vm4149_vm15 = vcmp.ge.s32.totalorder %v12195_v1, 6  ;;  %v3976_v4 = vsel %vm3975_vm6, %v12202_v23, %v12201_v42  ;;  %v3977_v46 = vsel %vm3975_vm6, %v12201_v42, %v12203_v28  ;;  %v12211_v23 = vld [vmem:[#allocation58_spill] sm:$0xff] }
0x283c   : > { %v4146_v59 = vadd.f32 %v4144_v13, %v4127_v57  ;;  %v4167_v39 = vsel %vm4166_vm3, %v6310_v11, %v6311_v34  ;;  %v4147_v9 = vadd.f32 %v4145_v16, %v4128_v45  ;;  %v12209_v13 = vld [vmem:[#allocation87_spill] sm:$0xff]  ;;  %v6763_v34 = vmov 51  }
0x283d   : > { %v10350_v47 = vadd.f32 %v4907_v38, %v4882_v48  ;;  %v12204_v48 = vunpack.i.l.bf16 %v9477_v6  ;;  %v12206_v38 = vmov 0.0   ;;  %v4188_v11 = vmul.f32 %v4184_v24, %v12209_v13 }
0x283e   : > { %v10356_v50 = vpop.permute.xlu2 %4933  ;;  %v4150_v20 = vsel %vm4148_vm8, 1.0, %v12206_v38  ;;  %v4151_v6 = vsel %vm4149_vm15, 1.0, %v12206_v38  ;;  %v4189_v57 = vmul.f32 %v4185_v22, %v12209_v13  ;;  %vm4220_vm8 = vcmask 23552  }
0x283f   : > { %12196 = vst [vmem:[#allocation68_spill] sm:$0xff] %v10350_v47  ;;  %v4004_v61 = vsel %vm4003_vm7, %v12205_v62, %v12204_v48  ;;  %v10387_v45 = vmul.f32 %v10266_v18, %v9417_v17  ;;  %v10390_v28 = vmul.f32 %v3976_v4, %v12211_v23  ;;  %v10393_v48 = vmul.f32 %v3977_v46, %v12211_v23  ;;  %v12212_v62 = vld [vmem:[#allocation57_spill] sm:$0xff]  ;;  %v12217_v4 = vld [vmem:[#allocation94_spill] sm:$0xff] }
0x2840   : > { %12200 = vst [vmem:[#allocation65_spill] sm:$0xff] %v10356_v50  ;;  %5165 = vrot.lane.b32.xlu1 %v10021_v60, %s6749_s2  ;;  %5693 = vrot.lane.b32.xlu0 %v9802_v12, %s6760_s4  ;;  %v10376_v42 = vpop.permute.xlu0 %6509  ;;  %v10397_v24 = vmul.f32 %v10285_v25, %v12212_v62  ;;  %v10400_v22 = vmul.f32 %v4004_v61, %v12212_v62  ;;  %v12218_v61 = vld [vmem:[#allocation104_spill] sm:$0xff]  ;;  %v12219_v23 = vld [vmem:[#allocation73_spill] sm:$0xff]  ;;  %vm4239_vm15 = vcmask 678912   ;;  %vm4258_vm7 = vcmask 285696  }
0x2841   : > { %12208 = vst [vmem:[#allocation70_spill] sm:$0xff] %v10376_v42  ;;  %v10383_v16 = vpop.permute.xlu1 %6410  ;;  %6565 = vset.pattern.permute.xlu0 %v6763_v34  ;;  %v4171_v13 = vmul.f32 %v4167_v39, %v12214_v21  ;;  %v10403_v34 = vmul.f32 %v4150_v20, %v4146_v59  ;;  %v4172_v17 = vmul.f32 %v4168_v10, %v12214_v21  ;;  %v12220_v59 = vld [vmem:[#allocation99_spill] sm:$0xff]  ;;  %v12222_v10 = vld [vmem:[#allocation98_spill] sm:$0xff]  ;;  %v12225_v42 = vld [vmem:[#allocation101_spill] sm:$0xff]  ;;  %vm4300_vm6 = vcmask 130048  }
0x2842   : > { %12210 = vst [vmem:[#allocation75_spill] sm:$0xff] %v10383_v16  ;;  %v10407_v18 = vmul.f32 %v4151_v6, %v4147_v9  ;;  %v10411_v46 = vmul.f32 %v12217_v4, %v9307_v33  ;;  %v10415_v25 = vmul.f32 %v12217_v4, %v9314_v44  ;;  %v4221_v39 = vsel %vm4220_vm8, %v12219_v23, %v12218_v61  ;;  %v12221_v33 = vld [vmem:[#allocation93_spill] sm:$0xff]  ;;  %v12223_v6 = vld [vmem:[#allocation100_spill] sm:$0xff]  ;;  %v12224_v21 = vld [vmem:[#allocation114_spill] sm:$0xff] }
0x2843   : > { %12213 = vst [vmem:[#allocation78_spill] sm:$0xff] %v10397_v24  ;;  %6453 = vset.pattern.permute.xlu2 %v11938_v27  ;;  %v4222_v27 = vsel %vm4220_vm8, %v12218_v61, %v12220_v59  ;;  %v10424_v20 = vadd.f32 %v4188_v11, %v4171_v13  ;;  %v10426_v9 = vadd.f32 %v4189_v57, %v4172_v17  ;;  %v6327_v4 = vunpack.i.h.bf16 %v12224_v21  ;;  %v12226_v11 = vld [vmem:[#allocation96_spill] sm:$0xff]  ;;  %v12230_v59 = vld [vmem:[#allocation102_spill] sm:$0xff]  ;;  %v12236_v47 = vld [vmem:[#allocation129_spill] sm:$0xff] }
0x2844   : > { %12215 = vst [vmem:[#allocation81_spill] sm:$0xff] %v10403_v34  ;;  %5142 = vperm.xlu2 %6453, %v9779_v8   ;;  %v10431_v44 = vsel %vm1223_vm5, %v12222_v10, %v12221_v33  ;;  %v6326_v23 = vunpack.i.l.bf16 %v12224_v21  ;;  %v10439_v61 = vsel %vm1223_vm5, %v12221_v33, %v12225_v42  ;;  %v10442_v13 = vmul.f32 %v4221_v39, %v12226_v11  ;;  %v12231_v10 = vld [vmem:[#allocation107_spill] sm:$0xff]  ;;  %v12234_v33 = vld [vmem:[#allocation110_spill] sm:$0xff]  ;;  %v12237_v12 = vld [vmem:[#allocation88_spill] sm:$0xff] }
0x2845   : > { %12216 = vst [vmem:[#allocation62_spill] sm:$0xff] %v10407_v18  ;;  %v10447_v17 = vmul.f32 %v4222_v27, %v12226_v11  ;;  %v4240_v62 = vsel %vm4239_vm15, %v12231_v10, %v12230_v59  ;;  %v12232_v21 = vunpack.i.h.bf16 %v9922_v7  ;;  %v4241_v27 = vsel %vm4239_vm15, %v12230_v59, %v12234_v33  ;;  %v12235_v11 = vld [vmem:[#allocation111_spill] sm:$0xff]  ;;  %v12238_v16 = vld [vmem:[#allocation85_spill] sm:$0xff]  ;;  %v12241_v34 = vld [vmem:[#allocation132_spill] sm:$0xff] }
0x2846   : > { %12227 = vst [vmem:[#allocation60_spill] sm:$0xff] %v10442_v13  ;;  %v6320_v10 = vunpack.i.l.bf16 %v12235_v11  ;;  %v4318_v7 = vsel %vm978_vm10, %v12237_v12, %v12236_v47  ;;  %v4302_v60 = vsel %vm4300_vm6, %v6327_v4, %v12238_v16  ;;  %v12239_v18 = vunpack.i.h.bf16 %v9910_v30  ;;  %v12240_v33 = vld [vmem:[#allocation119_spill] sm:$0xff] }
0x2847   : > { %v10444_v57 = vpop.permute.xlu2 %4957  ;;  %12229 = vst [vmem:[#allocation74_spill] sm:$0xff] %v10447_v17  ;;  %v4877_v42 = vsel %vm4875_vm12, %v12232_v21, %v10290_v3  ;;  %v4301_v21 = vsel %vm4300_vm6, %v6326_v23, %v6327_v4  ;;  %v4904_v59 = vsel %vm4858_vm0, %v10338_v29, %v10261_v36  ;;  %v12242_v17 = vld [vmem:[#allocation91_spill] sm:$0xff]  ;;  %v12243_v23 = vld [vmem:[#allocation125_spill] sm:$0xff]  ;;  %v12244_v4 = vld [vmem:[#allocation126_spill] sm:$0xff]  ;;  %v12245_v29 = vmov 21  }
0x2848   : > { %12228 = vst [vmem:[#allocation89_spill] sm:$0xff] %v10444_v57  ;;  %5182 = vrot.lane.b32.xlu1 %v10050_v37, %s12097_s6  ;;  %5574 = vperm.xlu0 %6565, %v9779_v8   ;;  %v10459_v39 = vpop.permute.xlu0 %5373  ;;  %v6321_v57 = vunpack.i.h.bf16 %v12235_v11  ;;  %v4317_v11 = vsel %vm978_vm10, %v12240_v33, %v12237_v12  ;;  %v4335_v47 = vsel %vm1128_vm13, %v12242_v17, %v12241_v34  ;;  %v12246_v12 = vld [vmem:[#allocation121_spill] sm:$0xff]  ;;  %vm4419_vm10 = vcmask 105472  }
0x2849   : > { %12233 = vst [vmem:[#allocation72_spill] sm:$0xff] %v10459_v39  ;;  %v4920_v3 = vpop.permute.xlu1 %4919  ;;  %v4860_v39 = vsel %vm4858_vm0, %v12239_v18, %v10231_v43  ;;  %v4336_v16 = vsel %vm1128_vm13, %v12241_v34, %v12243_v23  ;;  %v4881_v30 = vmul.f32 %v4877_v42, %v10183_v15  ;;  %v4321_v43 = vmul.f32 %v4317_v11, %v12244_v4  ;;  %v12247_v15 = vld [vmem:[#allocation122_spill] sm:$0xff]  ;;  %v12248_v11 = vld [vmem:[#allocation113_spill] sm:$0xff] }
0x284a   : > { %v4322_v18 = vmul.f32 %v4318_v7, %v12244_v4  ;;  %v4922_v36 = vsel %vm4875_vm12, %v10320_v19, %v4920_v3  ;;  %v4305_v33 = vmul.f32 %v4301_v21, %v12246_v12  ;;  %v4306_v13 = vmul.f32 %v4302_v60, %v12246_v12  ;;  %v12249_v3 = vld [vmem:[#allocation79_spill] sm:$0xff] }
0x284b   : > { %v4864_v17 = vmul.f32 %v4860_v39, %v10171_v58  ;;  %v4908_v24 = vmul.f32 %v4904_v59, %v10206_v52  ;;  %v4339_v34 = vmul.f32 %v4335_v47, %v12247_v15  ;;  %v4340_v42 = vmul.f32 %v4336_v16, %v12247_v15  ;;  %v12250_v52 = vld [vmem:[#allocation108_spill] sm:$0xff]  ;;  %v12253_v47 = vld [vmem:[#allocation117_spill] sm:$0xff]  ;;  %v12256_v12 = vld [vmem:[#allocation131_spill] sm:$0xff] }
0x284c   : > { %6459 = vset.pattern.permute.xlu2 %v12245_v29  ;;  %v6406_v7 = vunpack.i.h.bf16 %v9934_v51  ;;  %v4259_v23 = vsel %vm4258_vm7, %v12249_v3, %v12248_v11  ;;  %v4279_v21 = vsel %vm4277_vm1, %v6320_v10, %v6321_v57  ;;  %v4926_v60 = vmul.f32 %v4922_v36, %v9946_v32  ;;  %v12255_v36 = vld [vmem:[#allocation128_spill] sm:$0xff] }
0x284d   : > { %5158 = vperm.xlu2 %6459, %v9779_v8   ;;  %v4883_v4 = vadd.f32 %v4881_v30, %v4864_v17  ;;  %v6342_v58 = vunpack.i.l.bf16 %v12223_v6  ;;  %v4260_v8 = vsel %vm4258_vm7, %v12248_v11, %v12250_v52  ;;  %v4323_v39 = vadd.f32 %v4321_v43, %v4305_v33  ;;  %v12254_v30 = vld [vmem:[#allocation138_spill] sm:$0xff] }
0x284e   : > { %v4324_v59 = vadd.f32 %v4322_v18, %v4306_v13  ;;  %v4278_v16 = vsel %vm4277_vm1, %v12253_v47, %v6320_v10  ;;  %v4363_v29 = vsel %vm1027_vm11, %v12255_v36, %v12254_v30  ;;  %v4364_v13 = vsel %vm1027_vm11, %v12254_v30, %v12256_v12  ;;  %v12258_v36 = vld [vmem:[#allocation135_spill] sm:$0xff]  ;;  %v12263_v12 = vld [vmem:[#allocation105_spill] sm:$0xff] }
0x284f   : > { %v4910_v43 = vadd.f32 %v4908_v24, %v4883_v4  ;;  %v6764_v33 = vmov 52   ;;  %v4341_v17 = vadd.f32 %v4339_v34, %v4323_v39  ;;  %v11773_v10 = vunpack.i.h.bf16 %v10000_v53  ;;  %v12259_v4 = vld [vmem:[#allocation76_spill] sm:$0xff] }
0x2850   : > { %6473 = vrot.lane.b32.xlu1 %v9758_v49, %s6749_s2  ;;  %5595 = vrot.lane.b32.xlu0 %v9829_v26, %s6756_s29  ;;  %v10513_v51 = vpop.permute.xlu0 %6520  ;;  %v10515_v57 = vpop.permute.xlu2 %4978  ;;  %v4342_v15 = vadd.f32 %v4340_v42, %v4324_v59  ;;  %v6426_v3 = vunpack.i.l.bf16 %v10000_v53  ;;  %v4367_v30 = vmul.f32 %v4363_v29, %v12258_v36  ;;  %v4368_v24 = vmul.f32 %v4364_v13, %v12258_v36  ;;  %v12270_v36 = vld [vmem:[#allocation142_spill] sm:$0xff] }
0x2851   : > { %12251 = vst [vmem:[#allocation77_spill] sm:$0xff] %v10513_v51  ;;  %v10525_v18 = vpop.permute.xlu1 %4944  ;;  %6584 = vset.pattern.permute.xlu0 %v6764_v33  ;;  %v4928_v52 = vadd.f32 %v4926_v60, %v4910_v43  ;;  %vm4436_vm11 = vcmask 760832   ;;  %vm5017_vm3 = vcmask 588800   ;;  %v10535_v34 = vmul.f32 %v4240_v62, %v12259_v4  ;;  %v12282_v51 = vld [vmem:[#allocation109_spill] sm:$0xff] }
0x2852   : > { %12252 = vst [vmem:[#allocation83_spill] sm:$0xff] %v10515_v57  ;;  %v4949_v11 = vsel %vm4858_vm0, %v10525_v18, %v6406_v7  ;;  %v10538_v42 = vmul.f32 %v4241_v27, %v12259_v4  ;;  %v12260_v7 = vld [vmem:[#allocation82_spill] sm:$0xff]  ;;  %v12262_v60 = vmov 30   ;;  %v10547_v43 = vmul.f32 %v4259_v23, %v12263_v12  ;;  %v10557_v27 = vld [vmem:[%s11470_s18] sm:$0x3] }
0x2853   : > { %12257 = vst [vmem:[#allocation86_spill] sm:$0xff] %v10525_v18  ;;  %v4953_v47 = vmul.f32 %v4949_v11, %v10356_v50  ;;  %v10541_v39 = vmul.f32 %v4279_v21, %v12260_v7  ;;  %v12264_v29 = vunpack.i.h.bf16 %v12223_v6  ;;  %v4351_v62 = vadd.f32 %v10411_v46, %v4341_v17  ;;  %v12265_v11 = vld [vmem:[#allocation103_spill] sm:$0xff] }
0x2854   : > { %v4352_v33 = vadd.f32 %v10415_v25, %v4342_v15  ;;  %v10561_v21 = vmul.f32 %v4260_v8, %v12263_v12  ;;  %v10564_v23 = vmul.f32 %v4278_v16, %v12260_v7  ;;  %v5018_v46 = vsel %vm5017_vm3, %v6426_v3, %v11773_v10  ;;  %v12266_v25 = vld [vmem:[#allocation149_spill] sm:$0xff]  ;;  %v12268_v16 = vld [vmem:[#allocation134_spill] sm:$0xff]  ;;  %v12277_v10 = vld [vmem:[#allocation152_spill] sm:$0xff] }
0x2855   : > { %v10543_v59 = vadd.f32 %v4953_v47, %v4928_v52  ;;  %6465 = vset.pattern.permute.xlu2 %v12262_v60  ;;  %v4420_v13 = vsel %vm4419_vm10, %v6342_v58, %v12264_v29  ;;  %v4437_v58 = vsel %vm4436_vm11, %v12265_v11, %v9871_v2  ;;  %v4438_v17 = vsel %vm4436_vm11, %v9871_v2, %v12266_v25  ;;  %v12269_v47 = vld [vmem:[#allocation141_spill] sm:$0xff]  ;;  %v12271_v2 = vld [vmem:[#allocation151_spill] sm:$0xff] }
0x2856   : > { %5177 = vperm.xlu2 %6465, %v10557_v27   ;;  %v10575_v15 = vadd.f32 %v4367_v30, %v4351_v62  ;;  %v10577_v52 = vadd.f32 %v4368_v24, %v4352_v33  ;;  %v10588_v3 = vsel %vm1177_vm14, %v12269_v47, %v12268_v16  ;;  %v4424_v4 = vmul.f32 %v4420_v13, %v12270_v36  ;;  %v12275_v33 = vld [vmem:[#allocation146_spill] sm:$0xff]  ;;  %v12276_v25 = vld [vmem:[#allocation147_spill] sm:$0xff] }
0x2857   : > { %12261 = vst [vmem:[#allocation67_spill] sm:$0xff] %v10543_v59  ;;  %v12272_v30 = vmov %v12264_v29  ;;  %v3914_v7 = vmul.f32 %v10223_v31, %v10280_v40  ;;  %v12274_v29 = vld [vmem:[#allocation145_spill] sm:$0xff]  ;;  %v4441_v11 = vmul.f32 %v4437_v58, %v12275_v33  ;;  %v3915_v13 = vmul.f32 %v10238_v5, %v10280_v40  ;;  %v12280_v31 = vld [vmem:[#allocation106_spill] sm:$0xff] }
0x2858   : > { %5202 = vrot.lane.b32.xlu1 %v10072_v35, %s6749_s2  ;;  %5713 = vrot.lane.b32.xlu0 %v10090_v63, %s6759_s5  ;;  %v10583_v8 = vpop.permute.xlu0 %5524  ;;  %v4421_v24 = vsel %vm4419_vm10, %v12272_v30, %v12271_v2  ;;  %v10604_v62 = vsel %vm1177_vm14, %v12268_v16, %v12274_v29  ;;  %v4442_v2 = vmul.f32 %v4438_v17, %v12275_v33  ;;  %vm4473_vm8 = vcmask 1022976   ;;  %v12281_v58 = vld [vmem:[#allocation161_spill] sm:$0xff]  ;;  %v12293_v59 = vld [vmem:[#allocation230_spill] sm:$0xff] }
0x2859   : > { %12267 = vst [vmem:[#allocation69_spill] sm:$0xff] %v10583_v8  ;;  %v10597_v60 = vpop.permute.xlu1 %4962  ;;  %v10599_v12 = vpop.permute.xlu2 %5008  ;;  %v4425_v30 = vmul.f32 %v4421_v24, %v12270_v36  ;;  %v12278_v8 = vld [vmem:[#allocation156_spill] sm:$0xff]  ;;  %v6432_v29 = vunpack.i.l.bf16 %v10014_v56  ;;  %v4456_v5 = vsel %vm3246_vm4, %v12277_v10, %v9893_v0  ;;  %vm4492_vm14 = vcmask 629760  }
0x285a   : > { %12273 = vst [vmem:[#allocation64_spill] sm:$0xff] %v10597_v60  ;;  %v5022_v6 = vmul.f32 %v5018_v46, %v10599_v12  ;;  %v4455_v16 = vsel %vm3246_vm4, %v12278_v8, %v12277_v10  ;;  %v3916_v40 = vadd.f32 %v3914_v7, %v10216_v55  ;;  %vm5034_vm15 = vcmask 64512   ;;  %v12279_v46 = vld [vmem:[#allocation148_spill] sm:$0xff]  ;;  %v12283_v10 = vld [vmem:[#allocation157_spill] sm:$0xff] }
0x285b   : > { %v6337_v17 = vunpack.i.h.bf16 %v12279_v46  ;;  %v6336_v36 = vunpack.i.l.bf16 %v12279_v46  ;;  %v4443_v24 = vadd.f32 %v4441_v11, %v4424_v4  ;;  %v3917_v33 = vadd.f32 %v3915_v13, %v10218_v41  ;;  %v12285_v11 = vld [vmem:[#allocation159_spill] sm:$0xff]  ;;  %v12296_v60 = vld [vmem:[#allocation164_spill] sm:$0xff] }
0x285c   : > { %v4444_v8 = vadd.f32 %v4442_v2, %v4425_v30  ;;  %v4459_v47 = vmul.f32 %v4455_v16, %v12280_v31  ;;  %v4474_v0 = vsel %vm4473_vm8, %v12282_v51, %v12281_v58  ;;  %v4475_v55 = vsel %vm4473_vm8, %v12281_v58, %v12283_v10  ;;  %v12286_v41 = vld [vmem:[#allocation163_spill] sm:$0xff]  ;;  %v12289_v16 = vld [vmem:[#allocation165_spill] sm:$0xff]  ;;  %v12290_v58 = vld [vmem:[#allocation166_spill] sm:$0xff] }
0x285d   : > { %v12284_v7 = vmov 48   ;;  %v4460_v4 = vmul.f32 %v4456_v5, %v12280_v31  ;;  %v4493_v13 = vsel %vm4492_vm14, %v12286_v41, %v12285_v11  ;;  %vm4511_vm7 = vcmask 236544   ;;  %v12292_v41 = vld [vmem:[#allocation154_spill] sm:$0xff] }
0x285e   : > { %5184 = vrot.lane.b32.xlu2 %v10072_v35, %s12097_s6  ;;  %v12288_v51 = vunpack.i.h.bf16 %v10014_v56  ;;  %v4494_v31 = vsel %vm4492_vm14, %v12285_v11, %v12289_v16  ;;  %v6354_v5 = vunpack.i.h.bf16 %v12290_v58  ;;  %v6353_v46 = vunpack.i.l.bf16 %v12290_v58 }
0x285f   : > { %6477 = vset.pattern.permute.xlu2 %v12284_v7  ;;  %v3935_v10 = vadd.f32 %v10241_v54, %v3916_v40  ;;  %v4478_v26 = vmul.f32 %v4474_v0, %v12292_v41  ;;  %vm4530_vm6 = vcmask 891904   ;;  %v3936_v57 = vadd.f32 %v12293_v59, %v3917_v33  ;;  %v12295_v40 = vld [vmem:[#allocation112_spill] sm:$0xff]  ;;  %v12298_v33 = vld [vmem:[#allocation231_spill] sm:$0xff] }
0x2860   : > { %5218 = vrot.lane.b32.xlu1 %v10090_v63, %s12097_s6  ;;  %5708 = vperm.xlu0 %6584, %v10557_v27   ;;  %v10643_v2 = vpop.permute.xlu0 %5502  ;;  %v5035_v30 = vsel %vm5034_vm15, %v6432_v29, %v12288_v51  ;;  %v12294_v51 = vld [vmem:[#allocation97_spill] sm:$0xff]  ;;  %v4400_v16 = vsel %vm929_vm9, %v6336_v36, %v6337_v17  ;;  %v4461_v50 = vadd.f32 %v4459_v47, %v4443_v24  ;;  %v12299_v47 = vld [vmem:[#allocation116_spill] sm:$0xff]  ;;  %vm4570_vm1 = vcmask 736256  }
0x2861   : > { %12287 = vst [vmem:[#allocation80_spill] sm:$0xff] %v10643_v2  ;;  %v10654_v7 = vpop.permute.xlu1 %6418  ;;  %v4479_v2 = vmul.f32 %v4475_v55, %v12292_v41  ;;  %v4399_v11 = vsel %vm929_vm9, %v12294_v51, %v6336_v36  ;;  %v4462_v54 = vadd.f32 %v4460_v4, %v4444_v8  ;;  %v4498_v0 = vmul.f32 %v4494_v31, %v12295_v40  ;;  %v12297_v55 = vld [vmem:[#allocation167_spill] sm:$0xff]  ;;  %v12300_v8 = vld [vmem:[#allocation162_spill] sm:$0xff]  ;;  %v12303_v31 = vld [vmem:[#allocation168_spill] sm:$0xff] }
0x2862   : > { %12291 = vst [vmem:[#allocation29_spill] sm:$0xff] %v10654_v7  ;;  %v10659_v29 = vpop.permute.xlu2 %5025  ;;  %v4497_v7 = vmul.f32 %v4493_v13, %v12295_v40  ;;  %v4513_v41 = vsel %vm4511_vm7, %v12297_v55, %v12296_v60  ;;  %v4532_v59 = vsel %vm4530_vm6, %v6353_v46, %v6354_v5  ;;  %v3963_v18 = vadd.f32 %v12298_v33, %v3935_v10  ;;  %v12301_v60 = vld [vmem:[#allocation139_spill] sm:$0xff]  ;;  %v12304_v10 = vld [vmem:[#allocation170_spill] sm:$0xff] }
0x2863   : > { %v5039_v58 = vmul.f32 %v5035_v30, %v10659_v29  ;;  %v4480_v51 = vadd.f32 %v4478_v26, %v4461_v50  ;;  %v4481_v17 = vadd.f32 %v4479_v2, %v4462_v54  ;;  %v4512_v36 = vsel %vm4511_vm7, %v12299_v47, %v12297_v55 }
0x2864   : > { %v3964_v24 = vadd.f32 %v10387_v45, %v3936_v57  ;;  %v4517_v4 = vmul.f32 %v4513_v41, %v12300_v8  ;;  %v10682_v13 = vmul.f32 %v4399_v11, %v12301_v60  ;;  %v10685_v30 = vmul.f32 %v4400_v16, %v12301_v60 }
0x2865   : > { %v10672_v32 = vadd.f32 %v5039_v58, %v5022_v6  ;;  %vm4553_vm9 = vcmask 80896   ;;  %v4499_v26 = vadd.f32 %v4497_v7, %v4480_v51  ;;  %v4500_v50 = vadd.f32 %v4498_v0, %v4481_v17  ;;  %v12302_v6 = vld [vmem:[#allocation120_spill] sm:$0xff] }
0x2866   : > { %5200 = vrot.lane.b32.xlu2 %v10050_v37, %s6749_s2  ;;  %v4536_v2 = vmul.f32 %v4532_v59, %v12302_v6  ;;  %v6765_v45 = vmov 69   ;;  %v4516_v57 = vmul.f32 %v4512_v36, %v12300_v8  ;;  %v6360_v5 = vunpack.i.h.bf16 %v12303_v31  ;;  %v12307_v36 = vld [vmem:[#allocation78_spill] sm:$0xff] }
0x2867   : > { %v4531_v11 = vsel %vm4530_vm6, %v12304_v10, %v6353_v46  ;;  %v3982_v16 = vadd.f32 %v10390_v28, %v3963_v18  ;;  %v3983_v54 = vadd.f32 %v10393_v48, %v3964_v24  ;;  %v12305_v55 = vunpack.i.h.bf16 %v10000_v53  ;;  %v12306_v46 = vld [vmem:[#allocation172_spill] sm:$0xff]  ;;  %v12312_v10 = vld [vmem:[#allocation127_spill] sm:$0xff] }
0x2868   : > { %5236 = vrot.lane.b32.xlu1 %v10090_v63, %s6749_s2  ;;  %6595 = vset.pattern.permute.xlu0 %v6765_v45  ;;  %v4519_v59 = vadd.f32 %v4517_v4, %v4500_v50  ;;  %v6359_v33 = vunpack.i.l.bf16 %v12303_v31  ;;  %vm4012_vm10 = vcmp.ge.s32.totalorder %v12194_v14, 9  ;;  %vm4013_vm11 = vcmp.ge.s32.totalorder %v12195_v1, 9  ;;  %v12308_v24 = vld [vmem:[#allocation60_spill] sm:$0xff]  ;;  %v12309_v4 = vld [vmem:[#allocation74_spill] sm:$0xff] }
0x2869   : > { %5610 = vperm.xlu0 %6595, %v10557_v27   ;;  %v4194_v7 = vpop.permute.xlu0 %4193  ;;  %v5016_v58 = vpop.permute.xlu1 %5015  ;;  %v4535_v53 = vmul.f32 %v4531_v11, %v12302_v6  ;;  %v4385_v51 = vmul.f32 %v10588_v3, %v12306_v46  ;;  %v4010_v17 = vadd.f32 %v10400_v22, %v3982_v16  ;;  %v4014_v47 = vsel %vm4012_vm10, 1.0, %v12206_v38  ;;  %v3280_v50 = vld [vmem:[%s11465_s13] sm:$0x3f] }
0x286a   : > { %v4206_v40 = vmul.f32 %v10431_v44, %v4194_v7  ;;  %v4207_v0 = vmul.f32 %v10439_v61, %v4194_v7  ;;  %v5019_v41 = vsel %vm5017_vm3, %v12305_v55, %v5016_v58  ;;  %v4518_v61 = vadd.f32 %v4516_v57, %v4499_v26  ;;  %v12310_v26 = vld [vmem:[#allocation124_spill] sm:$0xff] }
0x286b   : > { %v5023_v28 = vmul.f32 %v5019_v41, %v10599_v12  ;;  %v10705_v18 = vpop.permute.xlu2 %5044  ;;  %v4011_v12 = vadd.f32 %v12307_v36, %v3983_v54  ;;  %v4555_v3 = vsel %vm4553_vm9, %v6360_v5, %v12310_v26  ;;  %v4015_v22 = vsel %vm4013_vm11, 1.0, %v12206_v38  ;;  %v12315_v54 = vld [vmem:[#allocation179_spill] sm:$0xff]  ;;  %v12320_v36 = vld [vmem:[#allocation62_spill] sm:$0xff] }
0x286c   : > { %v4208_v48 = vadd.f32 %v4206_v40, %v10424_v20  ;;  %v4209_v44 = vadd.f32 %v4207_v0, %v10426_v9  ;;  %v4386_v20 = vmul.f32 %v10604_v62, %v12306_v46  ;;  %v4554_v9 = vsel %vm4553_vm9, %v6359_v33, %v6360_v5  ;;  %v12311_v62 = vld [vmem:[#allocation209_spill] sm:$0xff]  ;;  %v12313_v5 = vld [vmem:[#allocation171_spill] sm:$0xff] }
0x286d   : > { %v10728_v6 = vadd.f32 %v4536_v2, %v4519_v59  ;;  %vm4589_vm8 = vcmask 343040   ;;  %v10734_v31 = vadd.f32 %v4535_v53, %v4518_v61  ;;  %v4571_v11 = vsel %vm4570_vm1, %v12313_v5, %v12312_v10  ;;  %v12316_v59 = vld [vmem:[#allocation176_spill] sm:$0xff]  ;;  %v12318_v46 = vld [vmem:[#allocation173_spill] sm:$0xff] }
0x286e   : > { %v4227_v8 = vadd.f32 %v12308_v24, %v4208_v48  ;;  %v4228_v60 = vadd.f32 %v12309_v4, %v4209_v44  ;;  %5213 = vperm.xlu2 %6477, %v10557_v27   ;;  %v4387_v16 = vadd.f32 %v4385_v51, %v10575_v15  ;;  %v4016_v7 = vmul.f32 %v4014_v47, %v4010_v17  ;;  %v12319_v17 = vld [vmem:[#allocation81_spill] sm:$0xff] }
0x286f   : > { %v12314_v58 = vmov 0   ;;  %v4388_v41 = vadd.f32 %v4386_v20, %v10577_v52  ;;  %v4575_v15 = vmul.f32 %v4571_v11, %v12316_v59  ;;  %v12317_v33 = vunpack.i.h.bf16 %v10014_v56  ;;  %v12328_v11 = vld [vmem:[#allocation180_spill] sm:$0xff] }
0x2870   : > { %v4246_v45 = vadd.f32 %v10535_v34, %v4227_v8  ;;  %v4247_v57 = vadd.f32 %v10538_v42, %v4228_v60  ;;  %6481 = vrot.lane.b32.xlu1 %v12311_v62, %s12097_s6  ;;  %v4572_v34 = vsel %vm4570_vm1, %v12312_v10, %v12315_v54  ;;  %v4017_v42 = vmul.f32 %v4015_v22, %v4011_v12  ;;  %v12321_v12 = vld [vmem:[#allocation33_spill] sm:$0xff]  ;;  %v12322_v8 = vld [vmem:[#allocation35_spill] sm:$0xff]  ;;  %v12324_v22 = vld [vmem:[#allocation182_spill] sm:$0xff] }
0x2871   : > { %6596 = vset.pattern.permute.xlu0 %v12314_v58  ;;  %v10741_v2 = vpop.permute.xlu0 %5543  ;;  %vm4608_vm14 = vcmask 998400   ;;  %v4559_v51 = vmul.f32 %v4555_v3, %v12318_v46  ;;  %v4576_v52 = vmul.f32 %v4572_v34, %v12316_v59  ;;  %v4154_v47 = vadd.f32 %v12319_v17, %v4016_v7  ;;  %v3833_v3 = vld [vmem:[%s11467_s15] sm:$0x3]  ;;  %v12330_v34 = vld [vmem:[#allocation186_spill] sm:$0xff] }
0x2872   : > { %v4265_v40 = vadd.f32 %v10547_v43, %v4246_v45  ;;  %v4266_v0 = vadd.f32 %v10561_v21, %v4247_v57  ;;  %v5033_v55 = vpop.permute.xlu1 %5032  ;;  %3283 = vperm.xlu0 %6596, %v3280_v50   ;;  %v4558_v21 = vmul.f32 %v4554_v9, %v12318_v46  ;;  %v4155_v56 = vadd.f32 %v12320_v36, %v4017_v42  ;;  %v12323_v9 = vld [vmem:[#allocation189_spill] sm:$0xff]  ;;  %v12325_v50 = vld [vmem:[#allocation130_spill] sm:$0xff] }
0x2873   : > { %v5036_v48 = vsel %vm5034_vm15, %v12317_v33, %v5033_v55  ;;  %v5052_v44 = vpop.permute.xlu2 %5051  ;;  %v6438_v26 = vunpack.i.l.bf16 %v12323_v9  ;;  %v4590_v45 = vsel %vm4589_vm8, %v12325_v50, %v12324_v22  ;;  %v4578_v5 = vadd.f32 %v4576_v52, %v4559_v51  ;;  %v12331_v59 = vld [vmem:[#allocation174_spill] sm:$0xff] }
0x2874   : > { %v4284_v61 = vadd.f32 %v10564_v23, %v4265_v40  ;;  %v4285_v53 = vadd.f32 %v10541_v39, %v4266_v0  ;;  %v5040_v43 = vmul.f32 %v5036_v48, %v10659_v29  ;;  %v6766_v23 = vmov 57   ;;  %v12333_v17 = vld [vmem:[#allocation190_spill] sm:$0xff] }
0x2875   : > { %v4405_v39 = vadd.f32 %v10682_v13, %v4387_v16  ;;  %v4406_v29 = vadd.f32 %v10685_v30, %v4388_v41  ;;  %v4577_v20 = vadd.f32 %v4575_v15, %v4558_v21  ;;  %v12327_v30 = vld [vmem:[#allocation188_spill] sm:$0xff]  ;;  %vm4627_vm7 = vcmask 605184   ;;  %v12332_v21 = vld [vmem:[#allocation133_spill] sm:$0xff] }
0x2876   : > { %v4286_v24 = vmul.f32 %v4284_v61, %v12321_v12  ;;  %v4287_v4 = vmul.f32 %v4285_v53, %v12322_v8  ;;  %v5042_v60 = vadd.f32 %v5040_v43, %v5023_v28  ;;  %6478 = vset.pattern.permute.xlu2 %v6766_v23  ;;  %v12326_v28 = vld [vmem:[#allocation177_spill] sm:$0xff]  ;;  %v12329_v16 = vld [vmem:[#allocation184_spill] sm:$0xff]  ;;  %v4610_v42 = vsel %vm4608_vm14, %v12328_v11, %v12330_v34 }
0x2877   : > { %5231 = vperm.xlu2 %6478, %v10557_v27   ;;  %v4591_v57 = vsel %vm4589_vm8, %v12324_v22, %v12326_v28  ;;  %v4609_v7 = vsel %vm4608_vm14, %v12329_v16, %v12328_v11  ;;  %vm4646_vm6 = vcmask 211968   ;;  %v6767_v41 = vmov 58   ;;  %v12338_v22 = vld [vmem:[#allocation193_spill] sm:$0xff]  ;;  %v12339_v28 = vld [vmem:[#allocation183_spill] sm:$0xff] }
0x2878   : > { %v4288_v13 = vadd.f32 %v4286_v24, %v4154_v47  ;;  %v4289_v10 = vadd.f32 %v4287_v4, %v4155_v56  ;;  %5278 = vrot.lane.b32.xlu1 %v12327_v30, %s12122_s23  ;;  %v4594_v15 = vmul.f32 %v4590_v45, %v12331_v59  ;;  %v4595_v33 = vmul.f32 %v4591_v57, %v12331_v59  ;;  %v12334_v47 = vld [vmem:[#allocation137_spill] sm:$0xff]  ;;  %v12336_v4 = vld [vmem:[#allocation199_spill] sm:$0xff] }
0x2879   : > { %v10781_v54 = vpop.permute.xlu0 %5643  ;;  %6501 = vset.pattern.permute.xlu1 %v6767_v41  ;;  %v4613_v51 = vmul.f32 %v4609_v7, %v12332_v21  ;;  %v4614_v52 = vmul.f32 %v4610_v42, %v12332_v21  ;;  %v4628_v36 = vsel %vm4627_vm7, %v12334_v47, %v12333_v17  ;;  %v12335_v56 = vld [vmem:[#allocation185_spill] sm:$0xff]  ;;  %v6370_v23 = vunpack.i.l.bf16 %v12336_v4  ;;  %v12343_v42 = vld [vmem:[#allocation140_spill] sm:$0xff] }
0x287a   : > { %v5050_v40 = vpop.permute.xlu1 %5049  ;;  %3836 = vperm.xlu0 %6596, %v3833_v3   ;;  %v10786_v0 = vadd.f32 %v4405_v39, %v4288_v13  ;;  %v10788_v55 = vadd.f32 %v4406_v29, %v4289_v10  ;;  %v4629_v24 = vsel %vm4627_vm7, %v12333_v17, %v12335_v56  ;;  %v12337_v3 = vld [vmem:[#allocation187_spill] sm:$0xff]  ;;  %vm4665_vm9 = vcmask 867328   ;;  %v12340_v10 = vld [vmem:[#allocation196_spill] sm:$0xff]  ;;  %v12349_v56 = vld [vmem:[#allocation150_spill] sm:$0xff] }
0x287b   : > { %v5053_v48 = vsel %vm5017_vm3, %v6438_v26, %v5050_v40  ;;  %v5054_v61 = vsel %vm5017_vm3, %v5050_v40, %v5052_v44  ;;  %v10794_v53 = vpop.permute.xlu2 %5067  ;;  %v6371_v44 = vunpack.i.h.bf16 %v12336_v4  ;;  %v4597_v26 = vadd.f32 %v4595_v33, %v4578_v5  ;;  %v12342_v5 = vld [vmem:[#allocation42_spill] sm:$0xff]  ;;  %v12344_v41 = vld [vmem:[#allocation144_spill] sm:$0xff] }
0x287c   : > { %v5057_v43 = vmul.f32 %v5053_v48, %v10705_v18  ;;  %v5058_v46 = vmul.f32 %v5054_v61, %v10705_v18  ;;  %v4596_v18 = vadd.f32 %v4594_v15, %v4577_v20  ;;  %v4647_v50 = vsel %vm4646_vm6, %v12338_v22, %v12337_v3 }
0x287d   : > { %v6768_v45 = vmov 66   ;;  %v4632_v57 = vmul.f32 %v4628_v36, %v12339_v28  ;;  %v4633_v13 = vmul.f32 %v4629_v24, %v12339_v28  ;;  %vm4692_vm1 = vcmask 56320   ;;  %v12348_v36 = vld [vmem:[#allocation205_spill] sm:$0xff] }
0x287e   : > { %v5059_v39 = vadd.f32 %v5057_v43, %v10672_v32  ;;  %v10809_v29 = vadd.f32 %v5058_v46, %v5042_v60  ;;  %v4648_v32 = vsel %vm4646_vm6, %v12337_v3, %v12340_v10  ;;  %v12341_v60 = vld [vmem:[#allocation37_spill] sm:$0xff]  ;;  %v10828_v11 = vmul.f32 %v10734_v31, %v12342_v5  ;;  %v12351_v3 = vld [vmem:[#allocation192_spill] sm:$0xff] }
0x287f   : > { %6479 = vset.pattern.permute.xlu2 %v6768_v45  ;;  %v10824_v20 = vmul.f32 %v10728_v6, %v12341_v60  ;;  %v4615_v16 = vadd.f32 %v4613_v51, %v4596_v18  ;;  %v4616_v7 = vadd.f32 %v4614_v52, %v4597_v26  ;;  %v4651_v40 = vmul.f32 %v4647_v50, %v12343_v42  ;;  %v12347_v52 = vld [vmem:[#allocation191_spill] sm:$0xff]  ;;  %v12350_v18 = vld [vmem:[#allocation200_spill] sm:$0xff]  ;;  %v12352_v45 = vld [vmem:[#allocation202_spill] sm:$0xff] }
0x2880   : > { %6494 = vrot.lane.b32.xlu1 %v9758_v49, %s12122_s23  ;;  %5249 = vperm.xlu2 %6479, %v10557_v27   ;;  %v4666_v59 = vsel %vm4665_vm9, %v12344_v41, %v6370_v23  ;;  %v4667_v15 = vsel %vm4665_vm9, %v6370_v23, %v6371_v44  ;;  %vm4709_vm10 = vcmask 711680   ;;  %v12345_v6 = vunpack.i.h.bf16 %v12276_v25  ;;  %v12355_v10 = vld [vmem:[#allocation208_spill] sm:$0xff] }
0x2881   : > { %v10830_v34 = vpop.permute.xlu0 %5660  ;;  %v12346_v48 = vunpack.i.l.bf16 %v12276_v25  ;;  %v4652_v61 = vmul.f32 %v4648_v32, %v12343_v42  ;;  %vm4674_vm11 = vcmp.lt.s32.totalorder %v12194_v14, 10  ;;  %v4634_v21 = vadd.f32 %v4632_v57, %v4615_v16  ;;  %v12359_v25 = vld [vmem:[#allocation194_spill] sm:$0xff] }
0x2882   : > { %v10836_v33 = vpop.permute.xlu1 %6441  ;;  %v4635_v51 = vadd.f32 %v4633_v13, %v4616_v7  ;;  %vm4675_vm8 = vcmp.lt.s32.totalorder %v12195_v1, 10  ;;  %vm4728_vm14 = vcmask 318464   ;;  %v4670_v17 = vmul.f32 %v4666_v59, %v12347_v52  ;;  %v12354_v13 = vld [vmem:[#allocation203_spill] sm:$0xff]  ;;  %v12356_v7 = vld [vmem:[#allocation197_spill] sm:$0xff] }
0x2883   : > { %v4693_v31 = vsel %vm4692_vm1, %v12346_v48, %v12345_v6  ;;  %v6443_v43 = vunpack.i.l.bf16 %v10836_v33  ;;  %v10846_v46 = vpop.permute.xlu2 %5080  ;;  %v4671_v47 = vmul.f32 %v4667_v15, %v12347_v52  ;;  %v4710_v24 = vsel %vm4709_vm10, %v12349_v56, %v12348_v36  ;;  %v12360_v52 = vld [vmem:[#allocation153_spill] sm:$0xff]  ;;  %v12361_v56 = vld [vmem:[#allocation215_spill] sm:$0xff] }
0x2884   : > { %v4653_v44 = vadd.f32 %v4651_v40, %v4634_v21  ;;  %v4676_v23 = vsel %vm4674_vm11, 1.0, %v12206_v38  ;;  %v4711_v26 = vsel %vm4709_vm10, %v12348_v36, %v12350_v18  ;;  %v4654_v50 = vadd.f32 %v4652_v61, %v4635_v51  ;;  %v12357_v40 = vld [vmem:[#allocation212_spill] sm:$0xff] }
0x2885   : > { %v5071_v4 = vsel %vm5034_vm15, %v6443_v43, %v10794_v53  ;;  %v12353_v28 = vmov %v12345_v6  ;;  %v4729_v32 = vsel %vm4728_vm14, %v12355_v10, %v12354_v13  ;;  %vm4747_vm7 = vcmask 973824  }
0x2886   : > { %v5075_v22 = vmul.f32 %v5071_v4, %v12351_v3  ;;  %v4694_v57 = vsel %vm4692_vm1, %v12353_v28, %v12352_v45  ;;  %v4677_v16 = vsel %vm4675_vm8, 1.0, %v12206_v38  ;;  %v4714_v42 = vmul.f32 %v4710_v24, %v12356_v7  ;;  %v12362_v24 = vld [vmem:[#allocation155_spill] sm:$0xff] }
0x2887   : > { %v4730_v41 = vsel %vm4728_vm14, %v12354_v13, %v12357_v40  ;;  %v12358_v59 = vmov 13   ;;  %v4697_v6 = vmul.f32 %v4693_v31, %v12359_v25  ;;  %v4672_v48 = vadd.f32 %v4670_v17, %v4653_v44  ;;  %v12364_v44 = vld [vmem:[#allocation222_spill] sm:$0xff] }
0x2888   : > { %5304 = vrot.lane.b32.xlu1 %v10072_v35, %s12122_s23  ;;  %6485 = vset.pattern.permute.xlu2 %v12358_v59  ;;  %v10874_v15 = vadd.f32 %v5075_v22, %v5059_v39  ;;  %v4673_v61 = vadd.f32 %v4671_v47, %v4654_v50  ;;  %v4715_v43 = vmul.f32 %v4711_v26, %v12356_v7  ;;  %v12363_v39 = vld [vmem:[#allocation210_spill] sm:$0xff]  ;;  %v6387_v18 = vunpack.i.h.bf16 %v12364_v44  ;;  %v12366_v7 = vld [vmem:[#allocation75_spill] sm:$0xff] }
0x2889   : > { %5271 = vperm.xlu2 %6485, %v10557_v27   ;;  %v10879_v21 = vpop.permute.xlu0 %5636  ;;  %v4698_v51 = vmul.f32 %v4694_v57, %v12359_v25  ;;  %v4733_v36 = vmul.f32 %v4729_v32, %v12360_v52  ;;  %v4748_v4 = vsel %vm4747_vm7, %v12362_v24, %v12361_v56  ;;  %v4749_v31 = vsel %vm4747_vm7, %v12361_v56, %v12363_v39  ;;  %v12365_v13 = vld [vmem:[#allocation206_spill] sm:$0xff]  ;;  %v12367_v25 = vld [vmem:[#allocation224_spill] sm:$0xff] }
0x288a   : > { %v5070_v17 = vpop.permute.xlu1 %5069  ;;  %v4734_v47 = vmul.f32 %v4730_v41, %v12360_v52  ;;  %v6386_v26 = vunpack.i.l.bf16 %v12364_v44  ;;  %v4716_v50 = vadd.f32 %v4714_v42, %v4697_v6  ;;  %vm4785_vm6 = vcmask 187392   ;;  %v12368_v6 = vld [vmem:[#allocation158_spill] sm:$0xff] }
0x288b   : > { %v5072_v22 = vsel %vm5034_vm15, %v10794_v53, %v5070_v17  ;;  %vm4804_vm9 = vcmask 842752   ;;  %v4717_v57 = vadd.f32 %v4715_v43, %v4698_v51  ;;  %v4752_v10 = vmul.f32 %v4748_v4, %v12365_v13  ;;  %v12370_v4 = vld [vmem:[#allocation204_spill] sm:$0xff] }
0x288c   : > { %v5076_v45 = vmul.f32 %v5072_v22, %v12351_v3  ;;  %v10895_v28 = vpop.permute.xlu2 %5098  ;;  %v4753_v32 = vmul.f32 %v4749_v31, %v12365_v13  ;;  %v6412_v40 = vunpack.i.l.bf16 %v12366_v7  ;;  %v6439_v41 = vunpack.i.h.bf16 %v12323_v9  ;;  %v12369_v3 = vld [vmem:[#allocation219_spill] sm:$0xff]  ;;  %v12371_v9 = vld [vmem:[#allocation136_spill] sm:$0xff] }
0x288d   : > { %v4735_v59 = vadd.f32 %v4733_v36, %v4716_v50  ;;  %vm4766_vm1 = vcmask 580608   ;;  %v4736_v42 = vadd.f32 %v4734_v47, %v4717_v57  ;;  %v4786_v52 = vsel %vm4785_vm6, %v12368_v6, %v12367_v25  ;;  %v12372_v36 = vld [vmem:[#allocation213_spill] sm:$0xff] }
0x288e   : > { %v5078_v53 = vadd.f32 %v5076_v45, %v10809_v29  ;;  %v4787_v56 = vsel %vm4785_vm6, %v12367_v25, %v12369_v3  ;;  %v4806_v43 = vsel %vm4804_vm9, %v6386_v26, %v6387_v18  ;;  %v4678_v51 = vmul.f32 %v4676_v23, %v4672_v48  ;;  %v12373_v29 = vld [vmem:[#allocation218_spill] sm:$0xff]  ;;  %v12375_v23 = vld [vmem:[#allocation221_spill] sm:$0xff]  ;;  %v12376_v48 = vld [vmem:[#allocation216_spill] sm:$0xff] }
0x288f   : > { %v4679_v24 = vmul.f32 %v4677_v16, %v4673_v61  ;;  %v6458_v39 = vunpack.i.h.bf16 %v12370_v4  ;;  %v6457_v31 = vunpack.i.l.bf16 %v12370_v4  ;;  %v4767_v17 = vsel %vm4766_vm1, %v12373_v29, %v12372_v36  ;;  %v12377_v45 = vld [vmem:[#allocation160_spill] sm:$0xff] }
0x2890   : > { %5328 = vrot.lane.b32.xlu1 %v12371_v9, %s12122_s23  ;;  %v4921_v47 = vsel %vm4875_vm12, %v6412_v40, %v10320_v19  ;;  %v12374_v44 = vmov 22   ;;  %v4754_v22 = vadd.f32 %v4752_v10, %v4735_v59  ;;  %v4755_v18 = vadd.f32 %v4753_v32, %v4736_v42  ;;  %v12378_v19 = vld [vmem:[#allocation195_spill] sm:$0xff]  ;;  %v12379_v42 = vld [vmem:[#allocation226_spill] sm:$0xff] }
0x2891   : > { %6491 = vset.pattern.permute.xlu2 %v12374_v44  ;;  %v4768_v16 = vsel %vm4766_vm1, %v12372_v36, %v12375_v23  ;;  %v4790_v61 = vmul.f32 %v4786_v52, %v12376_v48  ;;  %v4791_v50 = vmul.f32 %v4787_v56, %v12376_v48  ;;  %v4810_v57 = vmul.f32 %v4806_v43, %v12377_v45  ;;  %v12380_v52 = vld [vmem:[#allocation169_spill] sm:$0xff] }
0x2892   : > { %v5086_v13 = vpop.permute.xlu1 %5085  ;;  %v4758_v25 = vpop.permute.xlu0 %4757  ;;  %5287 = vperm.xlu2 %6491, %v10557_v27   ;;  %vm3402_vm10 = vcmask 556032   ;;  %v4805_v6 = vsel %vm4804_vm9, %v12379_v42, %v6386_v26  ;;  %v4925_v3 = vmul.f32 %v4921_v47, %v12380_v52  ;;  %vm4813_vm11 = vcmp.lt.s32.totalorder %v12194_v14, 7 }
0x2893   : > { %v5089_v40 = vsel %vm5017_vm3, %v12378_v19, %v5086_v13  ;;  %v5090_v10 = vsel %vm5017_vm3, %v5086_v13, %v6439_v41  ;;  %v4771_v32 = vmul.f32 %v4767_v17, %v4758_v25  ;;  %v4772_v59 = vmul.f32 %v4768_v16, %v4758_v25  ;;  %v12381_v13 = vld [vmem:[#allocation68_spill] sm:$0xff]  ;;  %v12383_v25 = vld [vmem:[#allocation175_spill] sm:$0xff] }
0x2894   : > { %v5093_v56 = vmul.f32 %v5089_v40, %v10846_v46  ;;  %v5094_v43 = vmul.f32 %v5090_v10, %v10846_v46  ;;  %vm4814_vm8 = vcmp.lt.s32.totalorder %v12195_v1, 7  ;;  %v4541_v26 = vadd.f32 %v10828_v11, %v10786_v0  ;;  %v12384_v0 = vld [vmem:[#allocation64_spill] sm:$0xff] }
0x2895   : > { %v4773_v36 = vadd.f32 %v4771_v32, %v4754_v22  ;;  %v4774_v29 = vadd.f32 %v4772_v59, %v4755_v18  ;;  %v10934_v44 = vpop.permute.xlu2 %5116  ;;  %v4542_v47 = vadd.f32 %v10824_v20, %v10788_v55  ;;  %v4809_v23 = vmul.f32 %v4805_v6, %v12377_v45  ;;  %v12382_v18 = vld [vmem:[#allocation86_spill] sm:$0xff] }
0x2896   : > { %v5095_v41 = vadd.f32 %v5093_v56, %v10874_v15  ;;  %v5096_v17 = vadd.f32 %v5094_v43, %v5078_v53  ;;  %v6413_v46 = vunpack.i.h.bf16 %v12366_v7  ;;  %v4927_v22 = vadd.f32 %v4925_v3, %v12381_v13  ;;  %v12385_v55 = vld [vmem:[#allocation178_spill] sm:$0xff]  ;;  %v12391_v13 = vld [vmem:[#allocation181_spill] sm:$0xff] }
0x2897   : > { %v4792_v16 = vadd.f32 %v4790_v61, %v4773_v36  ;;  %v4793_v48 = vadd.f32 %v4791_v50, %v4774_v29  ;;  %v4948_v19 = vsel %vm4858_vm0, %v12383_v25, %v12382_v18  ;;  %v4815_v15 = vsel %vm4813_vm11, 1.0, %v12206_v38  ;;  %v12386_v50 = vld [vmem:[#allocation29_spill] sm:$0xff]  ;;  %v12387_v3 = vld [vmem:[#allocation198_spill] sm:$0xff] }
0x2898   : > { %v4816_v53 = vsel %vm4814_vm8, 1.0, %v12206_v38  ;;  %5343 = vperm.xlu1 %6501, %v10557_v27   ;;  %v4966_v20 = vsel %vm4875_vm12, %v12385_v55, %v12384_v0  ;;  %v6444_v11 = vunpack.i.h.bf16 %v10836_v33  ;;  %v6421_v45 = vunpack.i.h.bf16 %v12386_v50  ;;  %v12389_v36 = vld [vmem:[#allocation65_spill] sm:$0xff]  ;;  %v12392_v55 = vld [vmem:[#allocation228_spill] sm:$0xff] }
0x2899   : > { %v4811_v7 = vadd.f32 %v4809_v23, %v4792_v16  ;;  %v4812_v61 = vadd.f32 %v4810_v57, %v4793_v48  ;;  %v6420_v40 = vunpack.i.l.bf16 %v12386_v50  ;;  %v4680_v10 = vadd.f32 %v4678_v51, %v4541_v26  ;;  %v12390_v16 = vld [vmem:[#allocation89_spill] sm:$0xff] }
0x289a   : > { %v4681_v32 = vadd.f32 %v4679_v24, %v4542_v47  ;;  %v5104_v59 = vpop.permute.xlu1 %5103  ;;  %v10956_v42 = vpop.permute.xlu0 %5561  ;;  %5302 = vrot.lane.b32.xlu2 %v10050_v37, %s12122_s23  ;;  %v12388_v57 = vmov 40   ;;  %v5151_v24 = vsel %vm3402_vm10, %v6457_v31, %v6458_v39  ;;  %v4952_v29 = vmul.f32 %v4948_v19, %v12389_v36 }
0x289b   : > { %v4817_v6 = vmul.f32 %v4815_v15, %v4811_v7  ;;  %v4818_v52 = vmul.f32 %v4816_v53, %v4812_v61  ;;  %v5107_v56 = vsel %vm5034_vm15, %v12387_v3, %v5104_v59  ;;  %v5108_v33 = vsel %vm5034_vm15, %v5104_v59, %v6444_v11  ;;  %6498 = vset.pattern.permute.xlu2 %v12388_v57  ;;  %v12393_v7 = vld [vmem:[#allocation207_spill] sm:$0xff] }
0x289c   : > { %v5111_v43 = vmul.f32 %v5107_v56, %v10895_v28  ;;  %v5112_v51 = vmul.f32 %v5108_v33, %v10895_v28  ;;  %v4967_v26 = vsel %vm4875_vm12, %v12384_v0, %v6413_v46  ;;  %v4970_v48 = vmul.f32 %v4966_v20, %v12390_v16  ;;  %v12395_v20 = vld [vmem:[#allocation118_spill] sm:$0xff]  ;;  %v12398_v56 = vld [vmem:[#allocation67_spill] sm:$0xff] }
0x289d   : > { %v4819_v47 = vadd.f32 %v4817_v6, %v4680_v10  ;;  %v4820_v23 = vadd.f32 %v4818_v52, %v4681_v32  ;;  %v4993_v18 = vsel %vm4858_vm0, %v12391_v13, %v6420_v40  ;;  %v4994_v28 = vsel %vm4858_vm0, %v6420_v40, %v6421_v45 }
0x289e   : > { %v5113_v25 = vadd.f32 %v5111_v43, %v5095_v41  ;;  %v5114_v15 = vadd.f32 %v5112_v51, %v5096_v17  ;;  %v5143_v53 = vpop.permute.xlu2 %5142  ;;  %v6464_v61 = vunpack.i.h.bf16 %v12393_v7  ;;  %v6463_v46 = vunpack.i.l.bf16 %v12393_v7  ;;  %v12396_v41 = vld [vmem:[#allocation83_spill] sm:$0xff]  ;;  %v12399_v43 = vld [vmem:[#allocation201_spill] sm:$0xff] }
0x289f   : > { %v4827_v11 = vadd.f32 %v12392_v55, %v4819_v47  ;;  %v4828_v31 = vadd.f32 %v12392_v55, %v4820_v23  ;;  %v5155_v19 = vmul.f32 %v5151_v24, %v5143_v53  ;;  %v4971_v0 = vmul.f32 %v4967_v26, %v12390_v16 }
0x28a0   : > { %6504 = vrot.lane.b32.xlu1 %v12395_v20, %s12394_s25  ;;  %v4954_v50 = vadd.f32 %v4952_v29, %v4927_v22  ;;  %v4997_v17 = vmul.f32 %v4993_v18, %v12396_v41  ;;  %v12397_v45 = vmov 23   ;;  %v4998_v40 = vmul.f32 %v4994_v28, %v12396_v41 }
0x28a1   : > { %v4831_v10 = vrot.slane %v4827_v11, 6  ;;  %v4832_v32 = vrot.slane %v4828_v31, 6  ;;  %6513 = vset.pattern.permute.xlu1 %v12397_v45  ;;  %vm5167_vm12 = vcmask 31744   ;;  %vm5001_vm0 = vcmp.ge.s32.totalorder %v12194_v14, 12 }
0x28a2   : > { %v6450_v59 = vpop.permute.xlu1 %6449  ;;  %v10986_v6 = vpop.permute.xlu0 %5679  ;;  %5315 = vperm.xlu2 %6498, %v10557_v27   ;;  %v4972_v52 = vadd.f32 %v4970_v48, %v4954_v50  ;;  %v4973_v33 = vadd.f32 %v4971_v0, %v12398_v56  ;;  %vm5002_vm15 = vcmp.ge.s32.totalorder %v12195_v1, 12  ;;  %vm5133_vm14 = vcmp.ge.s32.totalorder %v12194_v14, 8 }
0x28a3   : > { %4835 = vst [vmem:[#allocation5] sm:$0xc] %v4831_v10  ;;  %v6452_v3 = vunpack.i.h.bf16 %v6450_v59  ;;  %v6451_v22 = vunpack.i.l.bf16 %v6450_v59  ;;  %vm5134_vm7 = vcmp.ge.s32.totalorder %v12195_v1, 8  ;;  %v5168_v36 = vsel %vm5167_vm12, %v6463_v46, %v6464_v61 }
0x28a4   : > { %4836 = vst [vmem:[#allocation5 + $0x8] sm:$0xc] %v4832_v32  ;;  %v4999_v57 = vadd.f32 %v4997_v17, %v4972_v52  ;;  %v5003_v29 = vsel %vm5001_vm0, 1.0, %v12206_v38  ;;  %v5000_v26 = vadd.f32 %v4998_v40, %v4973_v33  ;;  %v5004_v16 = vsel %vm5002_vm15, 1.0, %v12206_v38 }
0x28a5   : > { %v5125_v51 = vsel %vm5017_vm3, %v12399_v43, %v6451_v22  ;;  %v5126_v24 = vsel %vm5017_vm3, %v6451_v22, %v6452_v3  ;;  %v5135_v48 = vsel %vm5133_vm14, 1.0, %v12206_v38  ;;  %v5136_v13 = vsel %vm5134_vm7, 1.0, %v12206_v38 }
0x28a6   : > { %v5129_v47 = vmul.f32 %v5125_v51, %v10934_v44  ;;  %v5130_v23 = vmul.f32 %v5126_v24, %v10934_v44  ;;  %v5005_v31 = vmul.f32 %v5003_v29, %v4999_v57  ;;  %v5006_v7 = vmul.f32 %v5004_v16, %v5000_v26 }
0x28a7   : > { %v5159_v18 = vpop.permute.xlu2 %5158  ;;  %v12402_v56 = vmov 24   ;;  %v12403_v43 = vmov 32   ;;  %vm12407_vm3 = vcmask 408576   ;;  %vm12415_vm9 = vcmask 400384  }
0x28a8   : > { %v5131_v28 = vadd.f32 %v5129_v47, %v5113_v25  ;;  %v5132_v55 = vadd.f32 %v5130_v23, %v5114_v15  ;;  %v5172_v11 = vmul.f32 %v5168_v36, %v5159_v18  ;;  %5394 = vrot.lane.b32.xlu1 %v10050_v37, %s6754_s26  ;;  %v6769_v15 = vmov 67   ;;  %vm12409_vm6 = vmmov %vm12407_vm3 }
0x28a9   : > { %vm12417_vm1 = vmmov %vm12415_vm9  ;;  %vm3507_vm11 = vcmask 539648   ;;  %vm3390_vm8 = vcmp.ge.s32.totalorder %v12195_v1, 4  ;;  %vm3812_vm0 = vcmp.lt.s32.totalorder %v12195_v1, 12  ;;  %vm3824_vm15 = vcmask 490496  }
0x28aa   : > { %v5137_v46 = vmul.f32 %v5135_v48, %v5131_v28  ;;  %v5138_v0 = vmul.f32 %v5136_v13, %v5132_v55  ;;  %v5174_v50 = vadd.f32 %v5172_v11, %v5155_v19  ;;  %v5150_v41 = vpop.permute.xlu1 %5149  ;;  %v11006_v44 = vpop.permute.xlu0 %5672  ;;  %5330 = vrot.lane.b32.xlu2 %v10090_v63, %s12122_s23  ;;  %v12404_v13 = vld [vmem:[#allocation214_spill] sm:$0xff]  ;;  %v12405_v11 = vld [vmem:[#allocation20_spill] sm:$0xff]  ;;  %vm12453_vm14 = vcmask 523264  }
0x28ab   : > { %v5152_v25 = vsel %vm3402_vm10, %v6458_v39, %v5150_v41  ;;  %6502 = vset.pattern.permute.xlu2 %v6769_v15  ;;  %v12401_v39 = vld [vmem:[#allocation211_spill] sm:$0xff]  ;;  %v12411_v41 = vld [vmem:[#allocation24_spill] sm:$0xff]  ;;  %vm12456_vm7 = vmmov %vm12453_vm14 }
0x28ac   : > { %v11013_v17 = vadd.f32 %v5137_v46, %v5005_v31  ;;  %v11015_v10 = vadd.f32 %v5138_v0, %v5006_v7  ;;  %v5156_v32 = vmul.f32 %v5152_v25, %v5143_v53  ;;  %v6469_v3 = vunpack.i.l.bf16 %v12401_v39  ;;  %v12406_v31 = vld [vmem:[#allocation28_spill] sm:$0xff]  ;;  %v12408_v46 = vld [vmem:[#allocation31_spill] sm:$0xff] }
0x28ad   : > { %v1578_v7 = vsel %vm12407_vm3, %v12406_v31, %v12405_v11  ;;  %v1579_v0 = vsel %vm12409_vm6, %v12405_v11, %v12408_v46  ;;  %v12412_v15 = vld [vmem:[#allocation7_spill] sm:$0xff]  ;;  %v6470_v31 = vunpack.i.h.bf16 %v12401_v39  ;;  %vm12458_vm3 = vmmov %vm12456_vm7 }
0x28ae   : > { %vm12467_vm6 = vmmov %vm12458_vm3 }
0x28b0   : > { %5389 = vperm.xlu1 %6513, %v10557_v27   ;;  %v5178_v19 = vpop.permute.xlu2 %5177 }
0x28b2   : > { %v5166_v45 = vpop.permute.xlu1 %5165  ;;  %v11018_v40 = vpop.permute.xlu0 %5693  ;;  %5353 = vperm.xlu2 %6502, %v10557_v27  }
0x28b3   : > { %12400 = vst [vmem:[#allocation19_spill] sm:$0xff] %v11018_v40  ;;  %v5169_v59 = vsel %vm5167_vm12, %v6464_v61, %v5166_v45 }
0x28b4   : > { %v5173_v4 = vmul.f32 %v5169_v59, %v5159_v18 }
0x28b6   : > { %v5175_v52 = vadd.f32 %v5173_v4, %v5156_v32  ;;  %v12413_v4 = vld [vmem:[#allocation34_spill] sm:$0xff] }
0x28b8   : > { %5413 = vrot.lane.b32.xlu1 %v10050_v37, %s12394_s25  ;;  %v5185_v22 = vpop.permute.xlu2 %5184 }
0x28b9   : > { %6532 = vset.pattern.permute.xlu1 %v12402_v56 }
0x28ba   : > { %v5183_v53 = vpop.permute.xlu1 %5182  ;;  %v11026_v33 = vpop.permute.xlu0 %5574  ;;  %5380 = vrot.lane.b32.xlu2 %v12327_v30, %s12394_s25 }
0x28bb   : > { %v5186_v57 = vsel %vm3402_vm10, %v6469_v3, %v5183_v53  ;;  %v5187_v61 = vsel %vm3402_vm10, %v5183_v53, %v5185_v22  ;;  %6529 = vset.pattern.permute.xlu2 %v12403_v43  ;;  %v12416_v22 = vld [vmem:[#allocation22_spill] sm:$0xff]  ;;  %v12419_v43 = vld [vmem:[#allocation32_spill] sm:$0xff] }
0x28bc   : > { %v5190_v51 = vmul.f32 %v5186_v57, %v5178_v19  ;;  %v5191_v24 = vmul.f32 %v5187_v61, %v5178_v19  ;;  %v1920_v56 = vsel %vm12417_vm1, %v12413_v4, %v12416_v22  ;;  %v12418_v57 = vld [vmem:[#allocation23_spill] sm:$0xff]  ;;  %vm12471_vm1 = vmmov %vm12458_vm3 }
0x28bd   : > { %v1582_v61 = vmul.f32 %v1578_v7, %v12418_v57 }
0x28be   : > { %v5192_v36 = vadd.f32 %v5190_v51, %v5174_v50  ;;  %v5193_v29 = vadd.f32 %v5191_v24, %v5175_v52  ;;  %v12410_v50 = vld [vmem:[#allocation11_spill] sm:$0xff]  ;;  %v12414_v52 = vld [vmem:[#allocation12_spill] sm:$0xff]  ;;  %v1583_v51 = vmul.f32 %v1579_v0, %v12419_v43  ;;  %v12424_v0 = vld [vmem:[#allocation13_spill] sm:$0xff] }
0x28bf   : > { %v1239_v25 = vsel %vm1223_vm5, %v12411_v41, %v12410_v50  ;;  %v1240_v32 = vsel %vm1223_vm5, %v12410_v50, %v12412_v15  ;;  %v1919_v3 = vsel %vm12415_vm9, %v12414_v52, %v12413_v4  ;;  %v12423_v41 = vld [vmem:[#allocation21_spill] sm:$0xff]  ;;  %vm12470_vm9 = vmmov %vm12458_vm3 }
0x28c0   : > { %5509 = vrot.lane.b32.xlu1 %v12327_v30, %s6755_s24  ;;  %v5201_v26 = vpop.permute.xlu2 %5200  ;;  %v1243_v24 = vmul.f32 %v1239_v25, %v12321_v12  ;;  %v12426_v25 = vld [vmem:[#allocation36_spill] sm:$0xff]  ;;  %v12428_v52 = vld [vmem:[#allocation217_spill] sm:$0xff] }
0x28c2   : > { %v11035_v47 = vpop.permute.xlu1 %6473  ;;  %v11037_v23 = vpop.permute.xlu0 %5595  ;;  %5396 = vrot.lane.b32.xlu2 %v10072_v35, %s6754_s26  ;;  %v1584_v46 = vadd.f32 %v1582_v61, %v1243_v24  ;;  %v12430_v61 = vld [vmem:[#allocation41_spill] sm:$0xff] }
0x28c3   : > { %v6475_v16 = vunpack.i.l.bf16 %v11035_v47 }
0x28c5   : > { %v5204_v48 = vsel %vm5167_vm12, %v6475_v16, %v5201_v26 }
0x28c6   : > { %v5208_v18 = vmul.f32 %v5204_v48, %v12404_v13 }
0x28c8   : > { %5526 = vrot.lane.b32.xlu1 %v10072_v35, %s6756_s29  ;;  %v5214_v28 = vpop.permute.xlu2 %5213  ;;  %v5210_v55 = vadd.f32 %v5208_v18, %v5192_v36  ;;  %v1244_v36 = vmul.f32 %v1240_v32, %v12322_v8  ;;  %v12421_v18 = vld [vmem:[#allocation6_spill] sm:$0xff] }
0x28c9   : > { %v1924_v11 = vmul.f32 %v1920_v56, %v12421_v18  ;;  %v12427_v32 = vld [vmem:[#allocation26_spill] sm:$0xff]  ;;  %v12429_v56 = vld [vmem:[#allocation9_spill] sm:$0xff] }
0x28ca   : > { %v5203_v19 = vpop.permute.xlu1 %5202  ;;  %v11058_v45 = vpop.permute.xlu0 %5713  ;;  %6515 = vrot.lane.b32.xlu2 %v9758_v49, %s12394_s25  ;;  %v1585_v50 = vadd.f32 %v1583_v51, %v1244_v36 }
0x28cb   : > { %v5205_v59 = vsel %vm5167_vm12, %v5201_v26, %v5203_v19  ;;  %v12420_v26 = vld [vmem:[#allocation10_spill] sm:$0xff] }
0x28cc   : > { %v5209_v53 = vmul.f32 %v5205_v59, %v12404_v13  ;;  %v1923_v48 = vmul.f32 %v1919_v3, %v12420_v26  ;;  %v12422_v13 = vld [vmem:[#allocation27_spill] sm:$0xff]  ;;  %v1926_v4 = vadd.f32 %v1924_v11, %v1585_v50  ;;  %v12436_v11 = vld [vmem:[#allocation18_spill] sm:$0xff] }
0x28cd   : > { %v2582_v7 = vsel %vm2564_vm2, %v12423_v41, %v12422_v13  ;;  %v2583_v12 = vsel %vm2564_vm2, %v12422_v13, %v12424_v0  ;;  %v12431_v13 = vld [vmem:[#allocation17_spill] sm:$0xff]  ;;  %vm3389_vm2 = vcmp.ge.s32.totalorder %v12194_v14, 4 }
0x28ce   : > { %v5211_v16 = vadd.f32 %v5209_v53, %v5193_v29  ;;  %v12425_v29 = vld [vmem:[#allocation30_spill] sm:$0xff]  ;;  %v1925_v59 = vadd.f32 %v1923_v48, %v1584_v46  ;;  %v2586_v53 = vmul.f32 %v2582_v7, %v12429_v56  ;;  %v2587_v51 = vmul.f32 %v2583_v12, %v12430_v61  ;;  %v12432_v41 = vld [vmem:[#allocation25_spill] sm:$0xff]  ;;  %v12443_v56 = vld [vmem:[#allocation44_spill] sm:$0xff] }
0x28cf   : > { %v2243_v15 = vsel %vm1128_vm13, %v12426_v25, %v12425_v29  ;;  %v2244_v39 = vsel %vm1128_vm13, %v12425_v29, %v12427_v32  ;;  %vm12433_vm13 = vcmask 375808   ;;  %v12434_v29 = vld [vmem:[#allocation16_spill] sm:$0xff]  ;;  %v12437_v46 = vld [vmem:[#allocation14_spill] sm:$0xff]  ;;  %v12439_v32 = vld [vmem:[#allocation39_spill] sm:$0xff] }
0x28d0   : > { %5519 = vperm.xlu1 %6532, %v10557_v27   ;;  %v2247_v26 = vadd.f32 %v2243_v15, %v1925_v59  ;;  %v2248_v18 = vadd.f32 %v2244_v39, %v1926_v4  ;;  %v2923_v0 = vsel %vm12433_vm13, %v12432_v41, %v12431_v13  ;;  %vm12435_vm5 = vmmov %vm12433_vm13  ;;  %v12438_v25 = vld [vmem:[#allocation38_spill] sm:$0xff]  ;;  %v12441_v4 = vmov 41  }
0x28d1   : > { %v5232_v8 = vpop.permute.xlu2 %5231  ;;  %v2924_v48 = vsel %vm12435_vm5, %v12431_v13, %v12434_v29  ;;  %v2927_v39 = vmul.f32 %v2923_v0, %v12439_v32  ;;  %v12444_v61 = vld [vmem:[#allocation46_spill] sm:$0xff]  ;;  %v12448_v29 = vld [vmem:[#allocation15_spill] sm:$0xff]  ;;  %vm12472_vm13 = vmmov %vm12471_vm1  ;;  %vm5398_vm5 = vcmask 1014784  }
0x28d2   : > { %v5219_v27 = vpop.permute.xlu1 %5218  ;;  %5415 = vrot.lane.b32.xlu2 %v10072_v35, %s12394_s25  ;;  %v11092_v19 = vpop.permute.xlu0 %5708  ;;  %v2588_v12 = vadd.f32 %v2586_v53, %v2247_v26  ;;  %v2589_v15 = vadd.f32 %v2587_v51, %v2248_v18  ;;  %v12447_v18 = vld [vmem:[#allocation220_spill] sm:$0xff] }
0x28d3   : > { %v5222_v3 = vsel %vm3402_vm10, %v12428_v52, %v5219_v27  ;;  %v5223_v22 = vsel %vm3402_vm10, %v5219_v27, %v6470_v31  ;;  %v3264_v31 = vsel %vm3246_vm4, %v12437_v46, %v12436_v11  ;;  %v12440_v27 = vld [vmem:[#allocation40_spill] sm:$0xff] }
0x28d4   : > { %v5226_v24 = vmul.f32 %v5222_v3, %v5214_v28  ;;  %v5227_v36 = vmul.f32 %v5223_v22, %v5214_v28  ;;  %v3265_v28 = vsel %vm3246_vm4, %v12436_v11, %v12438_v25  ;;  %v2928_v59 = vmul.f32 %v2924_v48, %v12440_v27  ;;  %v12442_v22 = vld [vmem:[#allocation45_spill] sm:$0xff] }
0x28d5   : > { %v3269_v52 = vmul.f32 %v3265_v28, %v12341_v60  ;;  %v11122_v3 = vsel %vm3389_vm2, 1.0, %v12206_v38  ;;  %v3508_v53 = vsel %vm3507_vm11, %v12443_v56, %v12442_v22  ;;  %v3509_v51 = vsel %vm3507_vm11, %v12442_v22, %v12444_v61  ;;  %v12449_v28 = vld [vmem:[#allocation225_spill] sm:$0xff] }
0x28d6   : > { %v5228_v50 = vadd.f32 %v5226_v24, %v5210_v55  ;;  %v5229_v7 = vadd.f32 %v5227_v36, %v5211_v16  ;;  %v3268_v55 = vmul.f32 %v3264_v31, %v12342_v5  ;;  %v6476_v16 = vunpack.i.h.bf16 %v11035_v47  ;;  %v12445_v36 = vld [vmem:[#allocation43_spill] sm:$0xff]  ;;  %v12446_v47 = vld [vmem:[#allocation8_spill] sm:$0xff] }
0x28d7   : > { %v3403_v26 = vsel %vm3402_vm10, %v12446_v47, %v12445_v36  ;;  %v11134_v60 = vsel %vm3390_vm8, 1.0, %v12206_v38  ;;  %v3404_v48 = vsel %vm3402_vm10, %v12445_v36, %v12448_v29  ;;  %vm3713_vm4 = vcmask 506880   ;;  %v12450_v36 = vld [vmem:[#allocation50_spill] sm:$0xff]  ;;  %v12451_v29 = vld [vmem:[#allocation51_spill] sm:$0xff] }
0x28d8   : > { %5431 = vrot.lane.b32.xlu1 %v10090_v63, %s6754_s26  ;;  %v3512_v31 = vmul.f32 %v3508_v53, %v12418_v57  ;;  %v3513_v25 = vmul.f32 %v3509_v51, %v12419_v43  ;;  %v6489_v22 = vunpack.i.l.bf16 %v12449_v28  ;;  %v2930_v56 = vadd.f32 %v2928_v59, %v2589_v15  ;;  %v12455_v59 = vld [vmem:[#allocation47_spill] sm:$0xff]  ;;  %v12457_v51 = vld [vmem:[#allocation49_spill] sm:$0xff] }
0x28d9   : > { %6548 = vset.pattern.permute.xlu1 %v12441_v4  ;;  %v6490_v4 = vunpack.i.h.bf16 %v12449_v28  ;;  %v3407_v47 = vmul.f32 %v3403_v26, %v11122_v3  ;;  %v12460_v28 = vld [vmem:[#allocation54_spill] sm:$0xff]  ;;  %vm5511_vm2 = vcmask 457728   ;;  %vm5528_vm11 = vcmask 982016  }
0x28da   : > { %v5237_v24 = vpop.permute.xlu1 %5236  ;;  %6525 = vrot.lane.b32.xlu2 %v9758_v49, %s6756_s29  ;;  %v5250_v5 = vpop.permute.xlu2 %5249  ;;  %vm5662_vm8 = vcmask 949248  }
0x28db   : > { %v5240_v13 = vsel %vm5167_vm12, %v12447_v18, %v5237_v24  ;;  %v5241_v41 = vsel %vm5167_vm12, %v5237_v24, %v6476_v16  ;;  %v11139_v0 = vpop.permute.xlu0 %5610  ;;  %v2929_v24 = vadd.f32 %v2927_v39, %v2588_v12  ;;  %v3408_v18 = vmul.f32 %v3404_v48, %v11134_v60  ;;  %v12454_v39 = vld [vmem:[#allocation48_spill] sm:$0xff] }
0x28dc   : > { %v5244_v11 = vmul.f32 %v5240_v13, %v5232_v8  ;;  %v5245_v46 = vmul.f32 %v5241_v41, %v5232_v8  ;;  %v3714_v13 = vsel %vm3713_vm4, %v12451_v29, %v12450_v36  ;;  %v12452_v8 = vld [vmem:[#allocation52_spill] sm:$0xff]  ;;  %vm3811_vm12 = vcmp.lt.s32.totalorder %v12194_v14, 12 }
0x28dd   : > { %v3715_v57 = vsel %vm3713_vm4, %v12450_v36, %v12452_v8  ;;  %v3270_v43 = vadd.f32 %v3268_v55, %v2929_v24  ;;  %v3515_v12 = vadd.f32 %v3513_v25, %v3408_v18  ;;  %v5280_v15 = vsel %vm12453_vm14, %v6489_v22, %v6490_v4  ;;  %v11170_v55 = vld [vmem:[%s11470_s18] sm:$0x3]  ;;  %v12459_v25 = vld [vmem:[#allocation55_spill] sm:$0xff] }
0x28de   : > { %v5246_v61 = vadd.f32 %v5244_v11, %v5228_v50  ;;  %v5247_v16 = vadd.f32 %v5245_v46, %v5229_v7  ;;  %v3271_v50 = vadd.f32 %v3269_v52, %v2930_v56  ;;  %v3514_v7 = vadd.f32 %v3512_v31, %v3407_v47  ;;  %v12461_v56 = vld [vmem:[#allocation53_spill] sm:$0xff]  ;;  %v12462_v36 = vld [vmem:[#allocation223_spill] sm:$0xff] }
0x28df   : > { %v3609_v53 = vsel %vm12456_vm7, %v12455_v59, %v12454_v39  ;;  %v3610_v26 = vsel %vm12458_vm3, %v12454_v39, %v12457_v51  ;;  %v3718_v41 = vmul.f32 %v3714_v13, %v12439_v32  ;;  %v3719_v48 = vmul.f32 %v3715_v57, %v12440_v27 }
0x28e0   : > { %5545 = vrot.lane.b32.xlu1 %v10072_v35, %s6755_s24  ;;  %v11176_v52 = vsel %vm3811_vm12, 1.0, %v12206_v38  ;;  %v11181_v46 = vsel %vm3812_vm0, 1.0, %v12206_v38  ;;  %v3825_v22 = vsel %vm3824_vm15, %v12460_v28, %v12459_v25  ;;  %v3826_v24 = vsel %vm3824_vm15, %v12459_v25, %v12461_v56  ;;  %vm12485_vm12 = vmmov %vm12471_vm1 }
0x28e1   : > { %v3613_v51 = vadd.f32 %v3609_v53, %v3514_v7  ;;  %v3829_v40 = vmul.f32 %v3825_v22, %v11176_v52  ;;  %v3830_v28 = vmul.f32 %v3826_v24, %v11181_v46  ;;  %vm5645_vm4 = vcmask 424960   ;;  %vm12486_vm0 = vmmov %vm12471_vm1 }
0x28e2   : > { %v6482_v11 = vpop.permute.xlu1 %6481  ;;  %5408 = vperm.xlu2 %6529, %v11170_v55   ;;  %vm5628_vm14 = vcmp.lt.s32.totalorder %v12195_v1, 8  ;;  %vm5761_vm7 = vcmp.lt.s32.totalorder %v12194_v14, 4 }
0x28e3   : > { %v6484_v32 = vunpack.i.h.bf16 %v6482_v11  ;;  %v6483_v27 = vunpack.i.l.bf16 %v6482_v11  ;;  %v5272_v31 = vpop.permute.xlu2 %5271  ;;  %v3614_v11 = vadd.f32 %v3610_v26, %v3515_v12 }
0x28e4   : > { %v3284_v47 = vpop.permute.xlu0 %3283  ;;  %v5284_v18 = vmul.f32 %v5280_v15, %v5272_v31  ;;  %v3720_v15 = vadd.f32 %v3718_v41, %v3613_v51 }
0x28e5   : > { %v5258_v29 = vsel %vm3402_vm10, %v12462_v36, %v6483_v27  ;;  %v5259_v13 = vsel %vm3402_vm10, %v6483_v27, %v6484_v32  ;;  %v3286_v8 = vadd.f32 %v3284_v47, %v3270_v43  ;;  %v3287_v57 = vadd.f32 %v3284_v47, %v3271_v50  ;;  %vm12463_vm10 = vmmov %vm12458_vm3  ;;  %v12468_v36 = vld [vmem:[#allocation227_spill] sm:$0xff] }
0x28e6   : > { %v5262_v39 = vmul.f32 %v5258_v29, %v5250_v5  ;;  %v5263_v59 = vmul.f32 %v5259_v13, %v5250_v5  ;;  %v3721_v56 = vadd.f32 %v3719_v48, %v3614_v11  ;;  %v3831_v12 = vadd.f32 %v3829_v40, %v3720_v15  ;;  %v12465_v48 = vld [vmem:[#allocation115_spill] sm:$0xff] }
0x28e7   : > { %3288 = vst [vmem:[#allocation4] sm:$0x3f] %v3286_v8  ;;  %v12466_v27 = vrot.slane %v12465_v48, 4  ;;  %v12469_v8 = vmov 25   ;;  %vm5762_vm3 = vcmp.lt.s32.totalorder %v12195_v1, 4 }
0x28e8   : > { %v5264_v38 = vadd.f32 %v5262_v39, %v5246_v61  ;;  %v5265_v25 = vadd.f32 %v5263_v59, %v5247_v16  ;;  %3289 = vst [vmem:[#allocation4 + $0x8] sm:$0x3f] %v3287_v57  ;;  %6544 = vrot.lane.b32.xlu1 %v9758_v49, %s6760_s4  ;;  %v3832_v53 = vadd.f32 %v3830_v28, %v3721_v56  ;;  %v12464_v61 = vmov 33  }
0x28ea   : > { %v5266_v43 = vmul.f32 %v5264_v38, %v11122_v3  ;;  %v5267_v50 = vmul.f32 %v5265_v25, %v11134_v60  ;;  %v5279_v5 = vpop.permute.xlu1 %5278  ;;  %5429 = vrot.lane.b32.xlu2 %v12371_v9, %s6754_s26 }
0x28eb   : > { %v5281_v7 = vsel %vm12463_vm10, %v6490_v4, %v5279_v5  ;;  %6549 = vset.pattern.permute.xlu2 %v12464_v61  ;;  %vm12490_vm10 = vcmask 1045504  }
0x28ec   : > { %v5285_v16 = vmul.f32 %v5281_v7, %v5272_v31  ;;  %v3837_v26 = vpop.permute.xlu0 %3836  ;;  %v5288_v32 = vpop.permute.xlu2 %5287  ;;  %v11203_v41 = vadd.f32 %v5266_v43, %v11013_v17  ;;  %v11206_v38 = vadd.f32 %v5267_v50, %v11015_v10  ;;  %v12473_v7 = vld [vmem:[#allocation229_spill] sm:$0xff] }
0x28ed   : > { %v3839_v3 = vadd.f32 %v3837_v26, %v3831_v12  ;;  %v3840_v60 = vadd.f32 %v3837_v26, %v3832_v53  ;;  %v5292_v22 = vmul.f32 %v5288_v32, %v12466_v27  ;;  %v5293_v4 = vmul.f32 %v5288_v32, %v12327_v30  ;;  %v12474_v32 = vld [vmem:[#allocation123_spill] sm:$0xff] }
0x28ef   : > { %3841 = vst [vmem:[#allocation5] sm:$0x3] %v3839_v3  ;;  %v5294_v40 = vadd.f32 %v5292_v22, %v5284_v18  ;;  %v5295_v24 = vadd.f32 %v5293_v4, %v5285_v16  ;;  %v12475_v3 = vrot.slane %v12474_v32, 4 }
0x28f0   : > { %3842 = vst [vmem:[#allocation5 + $0x8] sm:$0x3] %v3840_v60  ;;  %5426 = vperm.xlu1 %6548, %v11170_v55  }
0x28f2   : > { %v6495_v31 = vpop.permute.xlu1 %6494  ;;  %6534 = vrot.lane.b32.xlu2 %v9758_v49, %s6755_s24 }
0x28f3   : > { %v6496_v17 = vunpack.i.l.bf16 %v6495_v31  ;;  %v6497_v56 = vunpack.i.h.bf16 %v6495_v31 }
0x28f4   : > { %v5303_v10 = vpop.permute.xlu2 %5302 }
0x28f5   : > { %v5306_v47 = vsel %vm12467_vm6, %v6496_v17, %v5303_v10  ;;  %v12477_v17 = vld [vmem:[#allocation70_spill] sm:$0xff]  ;;  %vm12491_vm6 = vmmov %vm12490_vm10 }
0x28f6   : > { %v5310_v29 = vmul.f32 %v5306_v47, %v12468_v36  ;;  %v12478_v47 = vld [vmem:[#allocation143_spill] sm:$0xff] }
0x28f8   : > { %v5312_v13 = vadd.f32 %v5310_v29, %v5294_v40  ;;  %6551 = vset.pattern.permute.xlu1 %v12469_v8  ;;  %v12476_v40 = vmov 42   ;;  %v12479_v29 = vmov 43  }
0x28f9   : > { %5653 = vperm.xlu1 %6551, %v11170_v55  }
0x28fa   : > { %v5305_v30 = vpop.permute.xlu1 %5304  ;;  %6539 = vrot.lane.b32.xlu2 %v12395_v20, %s6759_s5  ;;  %v6770_v20 = vmov 50  }
0x28fb   : > { %v5307_v18 = vsel %vm12470_vm9, %v5303_v10, %v5305_v30  ;;  %v6511_v10 = vunpack.i.l.bf16 %v12477_v17  ;;  %vm12492_vm9 = vcmask 48128  }
0x28fc   : > { %v5311_v57 = vmul.f32 %v5307_v18, %v12468_v36  ;;  %v5316_v39 = vpop.permute.xlu2 %5315 }
0x28fd   : > { %v5320_v59 = vmul.f32 %v5316_v39, %v10050_v37  ;;  %v5321_v51 = vmul.f32 %v5316_v39, %v10072_v35 }
0x28fe   : > { %v5313_v11 = vadd.f32 %v5311_v57, %v5295_v24 }
0x28ff   : > { %v5322_v28 = vadd.f32 %v5320_v59, %v5312_v13  ;;  %v12480_v59 = vld [vmem:[#allocation72_spill] sm:$0xff] }
0x2900   : > { %v5323_v25 = vadd.f32 %v5321_v51, %v5313_v11 }
0x2901   : > { %5449 = vrot.lane.b32.xlu1 %v10090_v63, %s12394_s25 }
0x2902   : > { %v5329_v15 = vpop.permute.xlu1 %5328  ;;  %5658 = vrot.lane.b32.xlu2 %v10050_v37, %s6760_s4  ;;  %6557 = vset.pattern.permute.xlu1 %v6770_v20 }
0x2904   : > { %v5331_v43 = vpop.permute.xlu2 %5330 }
0x2905   : > { %v5334_v50 = vsel %vm12471_vm1, %v5329_v15, %v5331_v43  ;;  %v5335_v5 = vsel %vm12472_vm13, %v5331_v43, %v6497_v56  ;;  %vm12493_vm1 = vmmov %vm12492_vm9 }
0x2906   : > { %v5338_v35 = vmul.f32 %v5334_v50, %v12473_v7  ;;  %v5339_v12 = vmul.f32 %v5335_v5, %v12473_v7  ;;  %vm12494_vm13 = vmmov %vm12491_vm6 }
0x2908   : > { %v5340_v53 = vadd.f32 %v5338_v35, %v5322_v28  ;;  %v5341_v61 = vadd.f32 %v5339_v12, %v5323_v25  ;;  %v12481_v35 = vld [vmem:[#allocation77_spill] sm:$0xff] }
0x2909   : > { %6553 = vrot.lane.b32.xlu1 %v9758_v49, %s6759_s5  ;;  %v6523_v12 = vunpack.i.h.bf16 %v12481_v35  ;;  %v6522_v32 = vunpack.i.l.bf16 %v12481_v35 }
0x290a   : > { %v5344_v16 = vpop.permute.xlu1 %5343  ;;  %5538 = vperm.xlu2 %6549, %v11170_v55  }
0x290b   : > { %v5348_v26 = vmul.f32 %v5344_v16, %v10090_v63  ;;  %v5349_v60 = vmul.f32 %v5344_v16, %v12475_v3  ;;  %v6771_v16 = vmov 59  }
0x290c   : > { %v11238_v48 = vpop.permute.xlu2 %5353 }
0x290d   : > { %v11240_v27 = vadd.f32 %v5348_v26, %v5340_v53  ;;  %v11242_v22 = vadd.f32 %v5349_v60, %v5341_v61  ;;  %v6772_v60 = vmov 68  }
0x2911   : > { %5444 = vperm.xlu1 %6557, %v11170_v55  }
0x2912   : > { %v6505_v4 = vpop.permute.xlu1 %6504  ;;  %5447 = vrot.lane.b32.xlu2 %v12371_v9, %s12394_s25 }
0x2913   : > { %v6507_v49 = vunpack.i.h.bf16 %v6505_v4  ;;  %6558 = vset.pattern.permute.xlu2 %v12476_v40  ;;  %v6506_v8 = vunpack.i.l.bf16 %v6505_v4 }
0x2914   : > { %v5381_v24 = vpop.permute.xlu2 %5380 }
0x2915   : > { %v5383_v31 = vsel %vm3824_vm15, %v6507_v49, %v5381_v24  ;;  %v5382_v57 = vsel %vm3824_vm15, %v6506_v8, %v6507_v49  ;;  %v5512_v24 = vsel %vm5511_vm2, %v6522_v32, %v6523_v12  ;;  %v12483_v8 = vld [vmem:[#allocation69_spill] sm:$0xff] }
0x2916   : > { %v5387_v51 = vmul.f32 %v5383_v31, %v12480_v59  ;;  %v5386_v11 = vmul.f32 %v5382_v57, %v12480_v59 }
0x2919   : > { %5465 = vrot.lane.b32.xlu1 %v12478_v47, %s6754_s26 }
0x291a   : > { %v5395_v36 = vpop.permute.xlu1 %5394  ;;  %5559 = vrot.lane.b32.xlu2 %v12371_v9, %s6756_s29  ;;  %6566 = vset.pattern.permute.xlu1 %v12479_v29  ;;  %v12482_v29 = vld [vmem:[#allocation80_spill] sm:$0xff] }
0x291b   : > { %v5399_v13 = vsel %vm5398_vm5, %v6511_v10, %v5395_v36 }
0x291c   : > { %v5397_v30 = vpop.permute.xlu2 %5396 }
0x291d   : > { %v5400_v18 = vsel %vm5398_vm5, %v5395_v36, %v5397_v30 }
0x2921   : > { %5577 = vrot.lane.b32.xlu1 %v12371_v9, %s6755_s24 }
0x2922   : > { %v5390_v39 = vpop.permute.xlu1 %5389  ;;  %5677 = vrot.lane.b32.xlu2 %v10050_v37, %s6759_s5 }
0x2923   : > { %v5403_v28 = vmul.f32 %v5399_v13, %v5390_v39  ;;  %v5404_v25 = vmul.f32 %v5400_v18, %v5390_v39  ;;  %v5516_v13 = vmul.f32 %v5512_v24, %v12482_v29 }
0x2924   : > { %v11264_v15 = vpop.permute.xlu2 %6515 }
0x2925   : > { %v5405_v20 = vadd.f32 %v5403_v28, %v5386_v11  ;;  %v5406_v56 = vadd.f32 %v5404_v25, %v5387_v51  ;;  %v6517_v43 = vunpack.i.l.bf16 %v11264_v15  ;;  %v5769_v25 = vld [vmem:[%s11471_s19] sm:$0x3] }
0x2926   : > { %5772 = vperm.xlu0 %6596, %v5769_v25  }
0x2929   : > { %5695 = vrot.lane.b32.xlu1 %v10090_v63, %s6760_s4 }
0x292a   : > { %v5414_v50 = vpop.permute.xlu1 %5413  ;;  %5556 = vperm.xlu2 %6558, %v11170_v55  }
0x292b   : > { %v5417_v37 = vsel %vm3824_vm15, %v6517_v43, %v5414_v50 }
0x292c   : > { %v5416_v5 = vpop.permute.xlu2 %5415 }
0x292d   : > { %v5418_v7 = vsel %vm3824_vm15, %v5414_v50, %v5416_v5 }
0x2931   : > { %5690 = vperm.xlu1 %6566, %v11170_v55  }
0x2932   : > { %v5510_v53 = vpop.permute.xlu1 %5509  ;;  %6560 = vrot.lane.b32.xlu2 %v12311_v62, %s6754_s26 }
0x2933   : > { %v5513_v61 = vsel %vm5511_vm2, %v6523_v12, %v5510_v53  ;;  %6564 = vset.pattern.permute.xlu2 %v6771_v16 }
0x2934   : > { %v11277_v26 = vpop.permute.xlu2 %6525  ;;  %v5517_v57 = vmul.f32 %v5513_v61, %v12482_v29 }
0x2935   : > { %v6527_v31 = vunpack.i.l.bf16 %v11277_v26 }
0x2937   : > { %v5529_v30 = vsel %vm5528_vm11, %v6527_v31, %v12483_v8 }
0x2939   : > { %5483 = vrot.lane.b32.xlu1 %v12478_v47, %s12394_s25 }
0x293a   : > { %v5527_v3 = vpop.permute.xlu1 %5526  ;;  %5579 = vrot.lane.b32.xlu2 %v10090_v63, %s6755_s24  ;;  %6582 = vset.pattern.permute.xlu1 %v6772_v60 }
0x293b   : > { %v5530_v63 = vsel %vm5528_vm11, %v12483_v8, %v5527_v3 }
0x293c   : > { %v5409_v4 = vpop.permute.xlu2 %5408 }
0x293d   : > { %v5421_v49 = vmul.f32 %v5417_v37, %v5409_v4  ;;  %v5422_v40 = vmul.f32 %v5418_v7, %v5409_v4  ;;  %v6773_v37 = vmov 60  }
0x293f   : > { %v5423_v10 = vadd.f32 %v5421_v49, %v5405_v20  ;;  %v5424_v36 = vadd.f32 %v5422_v40, %v5406_v56  ;;  %v6512_v20 = vunpack.i.h.bf16 %v12477_v17  ;;  %v6774_v17 = vmov 61  }
0x2941   : > { %6578 = vrot.lane.b32.xlu1 %v12311_v62, %s6756_s29  ;;  %s683_s29 = scalar_lea.vmem %s11474_s22, %s12498_s0 }
0x2942   : > { %v5520_v18 = vpop.permute.xlu1 %5519  ;;  %5462 = vperm.xlu2 %6564, %v11170_v55  }
0x2943   : > { %v5533_v39 = vmul.f32 %v5529_v30, %v5520_v18  ;;  %v5534_v59 = vmul.f32 %v5530_v63, %v5520_v18 }
0x2944   : > { %v5430_v51 = vpop.permute.xlu2 %5429 }
0x2945   : > { %v5535_v11 = vadd.f32 %v5533_v39, %v5516_v13  ;;  %v5536_v28 = vadd.f32 %v5534_v59, %v5517_v57 }
0x2949   : > { %5480 = vperm.xlu1 %6582, %v11170_v55  }
0x294a   : > { %v5432_v56 = vpop.permute.xlu1 %5431  ;;  %6568 = vrot.lane.b32.xlu2 %v12311_v62, %s12122_s23 }
0x294b   : > { %v5435_v43 = vsel %vm5398_vm5, %v5430_v51, %v5432_v56  ;;  %v5436_v50 = vsel %vm5398_vm5, %v5432_v56, %v6512_v20  ;;  %6583 = vset.pattern.permute.xlu2 %v6773_v37  ;;  %v6518_v56 = vunpack.i.h.bf16 %v11264_v15 }
0x294c   : > { %v11304_v5 = vpop.permute.xlu2 %6534 }
0x294d   : > { %v6536_v32 = vunpack.i.l.bf16 %v11304_v5 }
0x294f   : > { %v5547_v31 = vsel %vm5511_vm2, %v6536_v32, %v10741_v2 }
0x2951   : > { %5613 = vrot.lane.b32.xlu1 %v12478_v47, %s6755_s24 }
0x2952   : > { %v5546_v7 = vpop.permute.xlu1 %5545  ;;  %6573 = vrot.lane.b32.xlu2 %v12311_v62, %s12394_s25  ;;  %6597 = vset.pattern.permute.xlu1 %v6774_v17 }
0x2953   : > { %v5548_v49 = vsel %vm5511_vm2, %v10741_v2, %v5546_v7 }
0x2954   : > { %v6540_v35 = vpop.permute.xlu2 %6539 }
0x2955   : > { %v6542_v40 = vunpack.i.h.bf16 %v6540_v35 }
0x2957   : > { %v5647_v57 = vsel %vm5645_vm4, %v6542_v40, %v10781_v54 }
0x2958   : > { %v5651_v54 = vmul.f32 %v5647_v57, %v10879_v21 }
0x2959   : > { %5729 = vrot.lane.b32.xlu1 %v12478_v47, %s6760_s4 }
0x295a   : > { %v11312_v12 = vpop.permute.xlu1 %6544  ;;  %5711 = vrot.lane.b32.xlu2 %v12371_v9, %s6759_s5  ;;  %v6541_v9 = vunpack.i.l.bf16 %v6540_v35 }
0x295b   : > { %v6546_v53 = vunpack.i.l.bf16 %v11312_v12 }
0x295c   : > { %v5659_v61 = vpop.permute.xlu2 %5658  ;;  %v5646_v39 = vsel %vm5645_vm4, %v6541_v9, %v6542_v40 }
0x295d   : > { %v5663_v16 = vsel %vm5662_vm8, %v6546_v53, %v5659_v61  ;;  %v5664_v2 = vsel %vm5662_vm8, %v5659_v61, %v10830_v34  ;;  %v5650_v59 = vmul.f32 %v5646_v39, %v10879_v21  ;;  %v6528_v61 = vunpack.i.h.bf16 %v11277_v26 }
0x295e   : > { %v6537_v39 = vunpack.i.h.bf16 %v11304_v5 }
0x2961   : > { %5726 = vperm.xlu1 %6597, %v11170_v55  }
0x2962   : > { %v5427_v3 = vpop.permute.xlu1 %5426  ;;  %5592 = vperm.xlu2 %6583, %v11170_v55  }
0x2963   : > { %v5439_v60 = vmul.f32 %v5435_v43, %v5427_v3  ;;  %v5440_v4 = vmul.f32 %v5436_v50, %v5427_v3 }
0x2964   : > { %v5539_v24 = vpop.permute.xlu2 %5538 }
0x2965   : > { %v5441_v29 = vadd.f32 %v5439_v60, %v5423_v10  ;;  %v5442_v13 = vadd.f32 %v5440_v4, %v5424_v36  ;;  %v5551_v8 = vmul.f32 %v5547_v31, %v5539_v24  ;;  %v5552_v63 = vmul.f32 %v5548_v49, %v5539_v24 }
0x2966   : > { %v6775_v36 = vmov 70   ;;  %v5566_v49 = vsel %vm5528_vm11, %v10956_v42, %v6528_v61 }
0x2967   : > { %v5553_v30 = vadd.f32 %v5551_v8, %v5535_v11  ;;  %v5554_v18 = vadd.f32 %v5552_v63, %v5536_v28 }
0x2969   : > { %6599 = vrot.lane.b32.xlu1 %v12311_v62, %s6759_s5 }
0x296a   : > { %6586 = vrot.lane.b32.xlu2 %v12311_v62, %s6755_s24  ;;  %6604 = vset.pattern.permute.xlu1 %v12314_v58 }
0x296b   : > { %v5654_v10 = vpop.permute.xlu1 %5653  ;;  %6603 = vset.pattern.permute.xlu2 %v6775_v36 }
0x296c   : > { %v5667_v51 = vmul.f32 %v5663_v16, %v5654_v10  ;;  %v5668_v11 = vmul.f32 %v5664_v2, %v5654_v10  ;;  %v5448_v28 = vpop.permute.xlu2 %5447 }
0x296e   : > { %v5669_v25 = vadd.f32 %v5667_v51, %v5650_v59  ;;  %v5670_v20 = vadd.f32 %v5668_v11, %v5651_v54 }
0x2972   : > { %6591 = vrot.lane.b32.xlu2 %v12311_v62, %s6760_s4  ;;  %s12489_s4 = sld [smem:[#allocation235_spill]] }
0x2973   : > { %v5450_v43 = vpop.permute.xlu1 %5449 }
0x2974   : > { %v5453_v34 = vsel %vm3824_vm15, %v5448_v28, %v5450_v43  ;;  %v5454_v50 = vsel %vm3824_vm15, %v5450_v43, %v6518_v56  ;;  %v5560_v37 = vpop.permute.xlu2 %5559  ;;  %v6547_v56 = vunpack.i.h.bf16 %v11312_v12 }
0x2975   : > { %v5565_v3 = vsel %vm5528_vm11, %v5560_v37, %v10956_v42 }
0x297a   : > { %5747 = vrot.lane.b32.xlu2 %v12478_v47, %s6759_s5 }
0x297b   : > { %v6554_v21 = vpop.permute.xlu1 %6553 }
0x297c   : > { %v6555_v7 = vunpack.i.l.bf16 %v6554_v21  ;;  %v5678_v17 = vpop.permute.xlu2 %5677  ;;  %v6556_v28 = vunpack.i.h.bf16 %v6554_v21 }
0x297d   : > { %v5682_v35 = vsel %vm5645_vm4, %v5678_v17, %v10986_v6 }
0x297e   : > { %v5681_v15 = vsel %vm5645_vm4, %v6555_v7, %v5678_v17  ;;  %v5686_v53 = vmul.f32 %v5682_v35, %v11006_v44  ;;  %v5718_v43 = vsel %vm5645_vm4, %v11058_v45, %v6556_v28 }
0x297f   : > { %v5685_v62 = vmul.f32 %v5681_v15, %v11006_v44  ;;  %v5722_v35 = vmul.f32 %v5718_v43, %v11092_v19  ;;  %v12484_v15 = vld [vmem:[#allocation66_spill] sm:$0xff] }
0x2980   : > { %v5688_v16 = vadd.f32 %v5686_v53, %v5670_v20 }
0x2981   : > { %v11350_v32 = vadd.f32 %v5685_v62, %v5669_v25 }
0x2982   : > { %5744 = vperm.xlu2 %6603, %v11170_v55  }
0x2983   : > { %v5445_v47 = vpop.permute.xlu1 %5444 }
0x2984   : > { %v5457_v60 = vmul.f32 %v5453_v34, %v5445_v47  ;;  %v5458_v4 = vmul.f32 %v5454_v50, %v5445_v47  ;;  %v5557_v6 = vpop.permute.xlu2 %5556 }
0x2985   : > { %v5569_v40 = vmul.f32 %v5565_v3, %v5557_v6  ;;  %v5570_v9 = vmul.f32 %v5566_v49, %v5557_v6 }
0x2986   : > { %v5459_v44 = vadd.f32 %v5457_v60, %v5441_v29  ;;  %v5460_v24 = vadd.f32 %v5458_v4, %v5442_v13 }
0x2987   : > { %v5571_v26 = vadd.f32 %v5569_v40, %v5553_v30  ;;  %v5572_v31 = vadd.f32 %v5570_v9, %v5554_v18 }
0x298a   : > { %6605 = vset.pattern.permute.xlu2 %v12314_v58 }
0x298b   : > { %v5466_v8 = vpop.permute.xlu1 %5465 }
0x298c   : > { %v6561_v55 = vpop.permute.xlu2 %6560 }
0x298d   : > { %v6562_v63 = vunpack.i.l.bf16 %v6561_v55  ;;  %v6563_v30 = vunpack.i.h.bf16 %v6561_v55 }
0x298f   : > { %v5471_v57 = vsel %vm5398_vm5, %v5466_v8, %v6562_v63  ;;  %v5472_v51 = vsel %vm5398_vm5, %v6562_v63, %v6563_v30  ;;  %vm12495_vm5 = vmmov %vm12491_vm6 }
0x2993   : > { %v5578_v2 = vpop.permute.xlu1 %5577 }
0x2994   : > { %v5580_v10 = vpop.permute.xlu2 %5579 }
0x2995   : > { %v5583_v36 = vsel %vm5511_vm2, %v5578_v2, %v5580_v10  ;;  %v5584_v42 = vsel %vm5511_vm2, %v5580_v10, %v6537_v39 }
0x2996   : > { %v5587_v29 = vmul.f32 %v5583_v36, %v11026_v33  ;;  %v5588_v13 = vmul.f32 %v5584_v42, %v11026_v33 }
0x2998   : > { %v5589_v18 = vadd.f32 %v5587_v29, %v5571_v26  ;;  %v5590_v58 = vadd.f32 %v5588_v13, %v5572_v31 }
0x299b   : > { %v11364_v59 = vpop.permute.xlu1 %5695 }
0x299c   : > { %v5463_v54 = vpop.permute.xlu2 %5462  ;;  %v5700_v33 = vsel %vm5662_vm8, %v11364_v59, %v6547_v56 }
0x299d   : > { %v5475_v11 = vmul.f32 %v5471_v57, %v5463_v54  ;;  %v5476_v5 = vmul.f32 %v5472_v51, %v5463_v54 }
0x299f   : > { %v5477_v25 = vadd.f32 %v5475_v11, %v5459_v44  ;;  %v5478_v20 = vadd.f32 %v5476_v5, %v5460_v24 }
0x29a3   : > { %v11372_v34 = vpop.permute.xlu1 %5690 }
0x29a4   : > { %v5704_v50 = vmul.f32 %v5700_v33, %v11372_v34  ;;  %v6569_v37 = vpop.permute.xlu2 %6568 }
0x29a5   : > { %v6571_v7 = vunpack.i.h.bf16 %v6569_v37  ;;  %v6570_v17 = vunpack.i.l.bf16 %v6569_v37 }
0x29a6   : > { %v5706_v21 = vadd.f32 %v5704_v50, %v5688_v16 }
0x29a7   : > { %v5362_v53 = vsel %vm12485_vm12, %v12484_v15, %v6570_v17  ;;  %v5363_v12 = vsel %vm12486_vm0, %v6570_v17, %v6571_v7 }
0x29a8   : > { %v5366_v62 = vmul.f32 %v5362_v53, %v11238_v48  ;;  %v5367_v61 = vmul.f32 %v5363_v12, %v11238_v48  ;;  %v11381_v47 = vadd.f32 %v5722_v35, %v5706_v21 }
0x29aa   : > { %v5368_v3 = vadd.f32 %v5366_v62, %v11240_v27  ;;  %v5369_v60 = vadd.f32 %v5367_v61, %v11242_v22 }
0x29ab   : > { %v5484_v4 = vpop.permute.xlu1 %5483 }
0x29ac   : > { %v6574_v6 = vpop.permute.xlu2 %6573  ;;  %v5370_v49 = vadd.f32 %v5368_v3, %v11203_v41  ;;  %v5371_v16 = vadd.f32 %v5369_v60, %v11206_v38 }
0x29ad   : > { %v6576_v44 = vunpack.i.h.bf16 %v6574_v6  ;;  %v6575_v24 = vunpack.i.l.bf16 %v6574_v6 }
0x29af   : > { %v5489_v26 = vsel %vm3824_vm15, %v5484_v4, %v6575_v24  ;;  %v5490_v48 = vsel %vm3824_vm15, %v6575_v24, %v6576_v44  ;;  %vm5627_vm15 = vcmp.lt.s32.totalorder %v12194_v14, 8 }
0x29b3   : > { %v6579_v40 = vpop.permute.xlu1 %6578 }
0x29b4   : > { %v5712_v9 = vpop.permute.xlu2 %5711  ;;  %v6581_v57 = vunpack.i.h.bf16 %v6579_v40  ;;  %v6580_v39 = vunpack.i.l.bf16 %v6579_v40 }
0x29b5   : > { %v5717_v62 = vsel %vm5645_vm4, %v5712_v9, %v11058_v45  ;;  %v5907_v45 = vld [vmem:[%s12489_s4] sm:$0x3f] }
0x29b6   : > { %v5601_v36 = vsel %vm5528_vm11, %v11037_v23, %v6580_v39  ;;  %v5602_v42 = vsel %vm5528_vm11, %v6580_v39, %v6581_v57  ;;  %v5721_v4 = vmul.f32 %v5717_v62, %v11092_v19  ;;  %vm12497_vm11 = vmmov %vm12493_vm1 }
0x29bb   : > { %v5481_v31 = vpop.permute.xlu1 %5480 }
0x29bc   : > { %v5493_v8 = vmul.f32 %v5489_v26, %v5481_v31  ;;  %v5494_v55 = vmul.f32 %v5490_v48, %v5481_v31  ;;  %v5593_v27 = vpop.permute.xlu2 %5592 }
0x29bd   : > { %v5605_v13 = vmul.f32 %v5601_v36, %v5593_v27  ;;  %v5606_v30 = vmul.f32 %v5602_v42, %v5593_v27 }
0x29be   : > { %v5495_v63 = vadd.f32 %v5493_v8, %v5477_v25  ;;  %v5496_v22 = vadd.f32 %v5494_v55, %v5478_v20  ;;  %v12487_v20 = vmov 0.0  }
0x29bf   : > { %v5607_v5 = vadd.f32 %v5605_v13, %v5589_v18  ;;  %v5608_v28 = vadd.f32 %v5606_v30, %v5590_v58  ;;  %v5629_v56 = vsel %vm5627_vm15, 1.0, %v12487_v20  ;;  %v5630_v43 = vsel %vm5628_vm14, 1.0, %v12487_v20  ;;  %v5788_v18 = vld [vmem:[%s11473_s21] sm:$0x3f] }
0x29c0   : > { %v5497_v41 = vmul.f32 %v5495_v63, %v11176_v52  ;;  %v5498_v38 = vmul.f32 %v5496_v22, %v11181_v46  ;;  %5791 = vperm.xlu1 %6604, %v5788_v18   ;;  %v5763_v27 = vsel %vm5761_vm7, 1.0, %v12487_v20  ;;  %v5764_v63 = vsel %vm5762_vm3, 1.0, %v12487_v20  ;;  %v5852_v30 = vld [vmem:[%s11461_s9] sm:$0x3f]  ;;  %v5916_v18 = vld [vmem:[%s6932_s30 + $0x8] sm:$0x3f] }
0x29c1   : > { %5855 = vperm.xlu2 %6605, %v5852_v30   ;;  %v5843_v20 = vld [vmem:[#allocation3] sm:$0x3f] }
0x29c2   : > { %v5499_v2 = vadd.f32 %v5497_v41, %v5370_v49  ;;  %v5500_v10 = vadd.f32 %v5498_v38, %v5371_v16  ;;  %v5773_v38 = vpop.permute.xlu0 %5772 }
0x29c3   : > { %v5614_v29 = vpop.permute.xlu1 %5613 }
0x29c4   : > { %v6587_v54 = vpop.permute.xlu2 %6586 }
0x29c5   : > { %v6589_v51 = vunpack.i.h.bf16 %v6587_v54  ;;  %v6588_v11 = vunpack.i.l.bf16 %v6587_v54 }
0x29c7   : > { %v5619_v52 = vsel %vm5511_vm2, %v5614_v29, %v6588_v11  ;;  %v5620_v46 = vsel %vm5511_vm2, %v6588_v11, %v6589_v51  ;;  %vm12496_vm2 = vmmov %vm12493_vm1 }
0x29c8   : > { %v5623_v23 = vmul.f32 %v5619_v52, %v11139_v0  ;;  %v5624_v25 = vmul.f32 %v5620_v46, %v11139_v0  ;;  %v12488_v0 = vld [vmem:[#allocation19_spill] sm:$0xff]  ;;  %5910 = vperm.xlu1 %6604, %v5907_v45   ;;  %v5845_v46 = vld [vmem:[#allocation4] sm:$0x3f] }
0x29c9   : > { %v5699_v58 = vsel %vm5662_vm8, %v12488_v0, %v11364_v59 }
0x29ca   : > { %v5625_v33 = vadd.f32 %v5623_v23, %v5607_v5  ;;  %v5626_v50 = vadd.f32 %v5624_v25, %v5608_v28  ;;  %v5703_v60 = vmul.f32 %v5699_v58, %v11372_v34  ;;  %v5846_v23 = vld [vmem:[#allocation4 + $0x8] sm:$0x3f] }
0x29cb   : > { %v5730_v37 = vpop.permute.xlu1 %5729 }
0x29cc   : > { %v5631_v7 = vmul.f32 %v5629_v56, %v5625_v33  ;;  %v5632_v17 = vmul.f32 %v5630_v43, %v5626_v50  ;;  %v6592_v35 = vpop.permute.xlu2 %6591  ;;  %v5705_v16 = vadd.f32 %v5703_v60, %v11350_v32  ;;  %v5844_v43 = vld [vmem:[#allocation3 + $0x8] sm:$0x3f]  ;;  %v5851_v33 = vld [vmem:[%s11460_s8] sm:$0x3f] }
0x29cd   : > { %v6594_v61 = vunpack.i.h.bf16 %v6592_v35  ;;  %v6593_v3 = vunpack.i.l.bf16 %v6592_v35 }
0x29ce   : > { %v5633_v21 = vadd.f32 %v5631_v7, %v5499_v2  ;;  %v5634_v15 = vadd.f32 %v5632_v17, %v5500_v10  ;;  %v5723_v48 = vadd.f32 %v5721_v4, %v5705_v16 }
0x29cf   : > { %v5735_v6 = vsel %vm5662_vm8, %v5730_v37, %v6593_v3  ;;  %v5736_v49 = vsel %vm5662_vm8, %v6593_v3, %v6594_v61 }
0x29d3   : > { %v5727_v53 = vpop.permute.xlu1 %5726 }
0x29d4   : > { %v5748_v12 = vpop.permute.xlu2 %5747  ;;  %v5739_v40 = vmul.f32 %v5735_v6, %v5727_v53  ;;  %v5740_v44 = vmul.f32 %v5736_v49, %v5727_v53 }
0x29d6   : > { %v5741_v32 = vadd.f32 %v5739_v40, %v5723_v48  ;;  %v5742_v31 = vadd.f32 %v5740_v44, %v11381_v47  ;;  %v5785_v47 = vld [vmem:[%s11472_s20] sm:$0x3f] }
0x29db   : > { %v6600_v24 = vpop.permute.xlu1 %6599 }
0x29dc   : > { %v6602_v59 = vunpack.i.h.bf16 %v6600_v24  ;;  %v6601_v9 = vunpack.i.l.bf16 %v6600_v24  ;;  %v5745_v26 = vpop.permute.xlu2 %5744 }
0x29de   : > { %v5753_v19 = vsel %vm5645_vm4, %v5748_v12, %v6601_v9  ;;  %v5754_v34 = vsel %vm5645_vm4, %v6601_v9, %v6602_v59 }
0x29df   : > { %v5757_v8 = vmul.f32 %v5753_v19, %v5745_v26  ;;  %v5758_v55 = vmul.f32 %v5754_v34, %v5745_v26 }
0x29e1   : > { %v5759_v22 = vadd.f32 %v5757_v8, %v5741_v32  ;;  %v5760_v57 = vadd.f32 %v5758_v55, %v5742_v31 }
0x29e3   : > { %v5765_v39 = vmul.f32 %v5763_v27, %v5759_v22  ;;  %v5766_v14 = vmul.f32 %v5764_v63, %v5760_v57 }
0x29e5   : > { %v5767_v41 = vadd.f32 %v5765_v39, %v5633_v21  ;;  %v5768_v1 = vadd.f32 %v5766_v14, %v5634_v15  ;;  %v5915_v15 = vld [vmem:[%s6932_s30] sm:$0x3f] }
0x29e7   : > { %v5775_v2 = vadd.f32 %v5773_v38, %v5767_v41  ;;  %v5776_v10 = vadd.f32 %v5773_v38, %v5768_v1 }
0x29e9   : > { %v5779_v36 = vrot.slane %v5775_v2, 4  ;;  %v5780_v42 = vrot.slane %v5776_v10, 4 }
0x29eb   : > { %5783 = vst [vmem:[#allocation5] sm:$0x30] %v5779_v36 }
0x29ec   : > { %5784 = vst [vmem:[#allocation5 + $0x8] sm:$0x30] %v5780_v42 }
0x29f2   : > { %v5786_v29 = vld [vmem:[#allocation5] sm:$0x3f] }
0x29f3   : > { %5993 = vmatpush.msk.msrb.mxu0 %vm12490_vm10, %v5786_v29  ;;  %v5787_v13 = vld [vmem:[#allocation5 + $0x8] sm:$0x3f] }
0x29f4   : > { %5995 = vmatpush.msk.msrb.mxu1 %vm12491_vm6, %v5787_v13  ;;  %5994 = vmatmul.msk.f32.vlgmr.msrb.gmra.mxu0 %vm12492_vm9, %v5785_v47 }
0x29f5   : > { %5996 = vmatmul.msk.f32.vlgmr.msrb.gmra.mxu1 %vm12493_vm1, %v5785_v47 }
0x2a1b   : > { %v5856_v37 = vpop.permute.xlu2 %5855 }
0x2a32   : > { %v5792_v54 = vpop.permute.xlu1 %5791 }
0x2a3a   : > { %v5911_v21 = vpop.permute.xlu1 %5910 }
0x2a71   : > { %v5820_v51 = vpop.f32.mrf.mxu0 }
0x2a72   : > { %v5821_v11 = vadd.f32 %v5820_v51, %v5792_v54  ;;  %v5840_v52 = vpop.f32.mrf.mxu1 }
0x2a73   : > { %v5841_v5 = vadd.f32 %v5840_v52, %v5792_v54 }
0x2a74   : > { %v5847_v28 = vmul.f32 %v5845_v46, %v5821_v11 }
0x2a75   : > { %v5848_v25 = vmul.f32 %v5846_v23, %v5841_v5 }
0x2a76   : > { %v5849_v56 = vmul.f32 %v5847_v28, %v5843_v20 }
0x2a77   : > { %v5850_v50 = vmul.f32 %v5848_v25, %v5844_v43 }
0x2a78   : > { %5997 = vmatpush.msk.msrb.mxu2 %vm12494_vm13, %v5849_v56 }
0x2a79   : > { %5999 = vmatpush.msk.msrb.mxu3 %vm12495_vm5, %v5850_v50  ;;  %5998 = vmatmul.msk.f32.vlgmr.msrb.gmra.mxu2 %vm12496_vm2, %v5851_v33 }
0x2a7a   : > { %6000 = vmatmul.msk.f32.vlgmr.msrb.gmra.mxu3 %vm12497_vm11, %v5851_v33 }
0x2afc   : > { %v5884_v7 = vpop.f32.mrf.mxu2 }
0x2afd   : > { %v5885_v17 = vadd.f32 %v5884_v7, %v5856_v37  ;;  %v5904_v35 = vpop.f32.mrf.mxu3 }
0x2afe   : > { %v5905_v53 = vadd.f32 %v5904_v35, %v5856_v37 }
0x2aff   : > { %v5913_v12 = vmul.f32 %v5911_v21, %v5885_v17 }
0x2b00   : > { %v5914_v0 = vmul.f32 %v5911_v21, %v5905_v53 }
0x2b01   : > { %v5917_v58 = vadd.f32 %v5915_v15, %v5913_v12 }
0x2b02   : > { %v5918_v62 = vadd.f32 %v5916_v18, %v5914_v0 }
0x2b03   : > { %5919 = vst [vmem:[%s683_s29] sm:$0x3f] %v5917_v58 }
0x2b04   : > { %5920 = vst [vmem:[%s683_s29 + $0x8] sm:$0x3f] %v5918_v62 }
0x2b05 PF: > { %s32_s3 = sadd.s32 1, %s6638_s3  }
0x2b06   : > { %p29_p4 = scmp.ge.s32.totalorder %s32_s3, 4  }
0x2b08   :  { %31 = sbr.rel (!%p29_p4) target bundleno = 8 (0x8), region = 138 }

</bundles_post_ra>
